<compile_context>
chip_gen: v7x
topology: tpu7x:2x2x1
jax: 0.10.0
libtpu: 0.0.40
codegen_flags: <defaults>
</compile_context>

<pallas_src>
import functools

import jax
import jax.numpy as jnp
from jax.experimental import pallas as pl
from jax.experimental.pallas import tpu as pltpu


# ---------------------------------------------------------------------------
# Pallas kernels: out = act(A @ W + b)   [optionally + fused 1x1 head dot]
# Single K block (K fully VMEM-resident), bias/ReLU fused in the epilogue.
# ---------------------------------------------------------------------------
def _mm_kernel(a_ref, w_ref, b_ref, o_ref, *, relu):
    acc = jnp.dot(a_ref[...], w_ref[...], preferred_element_type=jnp.float32)
    acc = acc + b_ref[...]
    if relu:
        acc = jnp.maximum(acc, 0.0)
    o_ref[...] = acc.astype(o_ref.dtype)


def _mm_head_kernel(a_ref, w_ref, b_ref, wh_ref, bh_ref, o_ref, oh_ref, *, relu):
    acc = jnp.dot(a_ref[...], w_ref[...], preferred_element_type=jnp.float32)
    acc = acc + b_ref[...]
    if relu:
        acc = jnp.maximum(acc, 0.0)
    o_ref[...] = acc.astype(o_ref.dtype)
    # Fused 1x1 head (keypoint / correspondence) on the just-computed features.
    head = jnp.dot(acc.astype(wh_ref.dtype), wh_ref[...],
                   preferred_element_type=jnp.float32)
    oh_ref[...] = (head + bh_ref[...]).astype(oh_ref.dtype)


def fused_matmul(a, w, b, *, relu, out_dtype=jnp.bfloat16, head=None,
                 head_out_dtype=jnp.float32):
    """a: (M, K<=Kp) -> bf16; w: (Kp, N) bf16 pre-padded; b: (1, N) f32.

    head = (wh (N, Nh) bf16, bh (1, Nh) f32) for a fused 1x1 conv head.
    Returns (M, N) [and (M, Nh)] with K collapsed (single grid step along K).
    """
    M, K = a.shape
    Kp, N = w.shape
    a = a.astype(jnp.bfloat16)
    if K < Kp:                      # only conv1 (im2col K=27 -> padded to 128)
        a = jnp.pad(a, ((0, 0), (0, Kp - K)))

    # 2-extent "parallel" M axis (v7x megacore) when halves stay 16-row aligned.
    gm = 2 if (M % 32 == 0) else 1
    tm = M // gm

    in_specs = [
        pl.BlockSpec((tm, Kp), lambda i: (i, 0)),
        pl.BlockSpec((Kp, N), lambda i: (0, 0)),
        pl.BlockSpec((1, N), lambda i: (0, 0)),
    ]
    out_shape = jax.ShapeDtypeStruct((M, N), out_dtype)
    out_specs = pl.BlockSpec((tm, N), lambda i: (i, 0))
    operands = [a, w, b]
    flops = 2 * M * Kp * N
    bytes_accessed = (a.size * 2 + w.size * 2 + b.size * 4
                      + M * N * jnp.dtype(out_dtype).itemsize)

    if head is not None:
        wh, bh = head
        Nh = wh.shape[1]
        kernel = functools.partial(_mm_head_kernel, relu=relu)
        in_specs += [pl.BlockSpec((N, Nh), lambda i: (0, 0)),
                     pl.BlockSpec((1, Nh), lambda i: (0, 0))]
        out_shape = (out_shape, jax.ShapeDtypeStruct((M, Nh), head_out_dtype))
        out_specs = (out_specs, pl.BlockSpec((tm, Nh), lambda i: (i, 0)))
        operands += [wh, bh]
        flops += 2 * M * N * Nh
        bytes_accessed += (wh.size * 2 + bh.size * 4
                           + M * Nh * jnp.dtype(head_out_dtype).itemsize)
    else:
        kernel = functools.partial(_mm_kernel, relu=relu)

    return pl.pallas_call(
        kernel,
        out_shape=out_shape,
        grid_spec=pltpu.PrefetchScalarGridSpec(
            num_scalar_prefetch=0,
            grid=(gm,),
            in_specs=in_specs,
            out_specs=out_specs,
        ),
        compiler_params=pltpu.CompilerParams(
            dimension_semantics=("parallel",),
            vmem_limit_bytes=32 * 1024 * 1024,   # footprint is a few MB; safe on v5e/v6e/v7x
        ),
        cost_estimate=pl.CostEstimate(flops=int(flops), transcendentals=0,
                                      bytes_accessed=int(bytes_accessed)),
    )(*operands)


# ---------------------------------------------------------------------------
# 3x3 / pad-1 im2col (thin bf16 XLA glue on tiny activations).
# ---------------------------------------------------------------------------
def _im2col3x3(x_nhwc, stride):
    B, H, W, C = x_nhwc.shape
    Hout = (H + 2 - 3) // stride + 1
    Wout = (W + 2 - 3) // stride + 1
    xp = jnp.pad(x_nhwc, ((0, 0), (1, 1), (1, 1), (0, 0)))
    cols = [xp[:, i:i + stride * Hout:stride, j:j + stride * Wout:stride, :]
            for i in range(3) for j in range(3)]
    return jnp.concatenate(cols, axis=-1).reshape(B * Hout * Wout, 9 * C)


# ---------------------------------------------------------------------------
# Parameters: random init (shapes follow the PyTorch module), then converted
# ONCE to padded bf16 matmul layout.  The forward only ever sees these.
# ---------------------------------------------------------------------------
def _round_up(x, m):
    return (x + m - 1) // m * m


def _init_conv_raw(key, kh, kw, cin, cout):
    kw_key, kb_key = jax.random.split(key)
    fan_in = kh * kw * cin
    w = jax.random.normal(kw_key, (kh, kw, cin, cout), jnp.float32) * jnp.sqrt(2.0 / fan_in)
    b = jax.random.normal(kb_key, (cout,), jnp.float32) * 0.01
    return w, b


def _prep_conv(w_hwio, b, *, cin_pad=None, cout_pad=None, k_pad=None):
    """HWIO f32 conv weight -> (kh*kw*cin_pad [-> k_pad], cout_pad) bf16 matmul layout."""
    kh, kw, cin, cout = w_hwio.shape
    cin_pad = cin if cin_pad is None else cin_pad
    cout_pad = cout if cout_pad is None else cout_pad
    w = jnp.pad(w_hwio, ((0, 0), (0, 0), (0, cin_pad - cin), (0, cout_pad - cout)))
    wm = w.reshape(kh * kw * cin_pad, cout_pad)
    if k_pad is not None and k_pad > wm.shape[0]:
        wm = jnp.pad(wm, ((0, k_pad - wm.shape[0]), (0, 0)))
    bm = jnp.pad(b, (0, cout_pad - cout)).reshape(1, cout_pad)
    return wm.astype(jnp.bfloat16), bm.astype(jnp.float32)


def init_params(key, num_keypoints):
    ks = jax.random.split(key, 8)
    nk_pad = _round_up(num_keypoints, 128)
    return {
        "num_keypoints": num_keypoints,
        # KeypointExtractor.conv_layers (cout of conv1 padded 64->128; the
        # padded channels are exactly zero so the chain stays exact).
        "conv1": _prep_conv(*_init_conv_raw(ks[0], 3, 3, 3, 64), cout_pad=128, k_pad=128),
        "conv2": _prep_conv(*_init_conv_raw(ks[1], 3, 3, 64, 128), cin_pad=128),
        "conv3": _prep_conv(*_init_conv_raw(ks[2], 3, 3, 128, 256)),
        "conv4": _prep_conv(*_init_conv_raw(ks[3], 3, 3, 256, 512)),
        # KeypointExtractor.keypoint_head (1x1), fused into conv4's kernel.
        "kp_head": _prep_conv(*_init_conv_raw(ks[4], 1, 1, 512, num_keypoints), cout_pad=nk_pad),
        # DenseCorrespondenceModel.feature_encoder
        "fe1": _prep_conv(*_init_conv_raw(ks[5], 3, 3, 512, 256)),
        "fe2": _prep_conv(*_init_conv_raw(ks[6], 3, 3, 256, 128)),
        # correspondence_head (1x1), fused into fe2's kernel.
        "corr_head": _prep_conv(*_init_conv_raw(ks[7], 1, 1, 128, num_keypoints), cout_pad=nk_pad),
    }


# ---------------------------------------------------------------------------
# Forward pass (matches DenseCorrespondenceModel.forward).
# Trunk intermediates are kept in bf16 (MXU-friendly); compare vs the f32
# PyTorch reference with bf16-level tolerances.
# ---------------------------------------------------------------------------
def dense_correspondence_forward(params, img1_nchw, img2_nchw):
    nk = params["num_keypoints"]
    B, _, H, W = img1_nchw.shape
    Hf, Wf = H // 8, W // 8
    m_img = B * Hf * Wf

    # NCHW -> NHWC; the shared trunk runs ONCE on the batched image pair.
    x = jnp.concatenate([img1_nchw, img2_nchw], axis=0)
    x = jnp.transpose(x, (0, 2, 3, 1)).astype(jnp.bfloat16)          # (2B,H,W,3)

    # conv1..conv4 (+ReLU); conv4 also runs the fused 1x1 keypoint head.
    a = _im2col3x3(x, stride=1)
    y = fused_matmul(a, *params["conv1"], relu=True)                  # (2B*H*W, 128)
    a = _im2col3x3(y.reshape(2 * B, H, W, 128), stride=2)
    y = fused_matmul(a, *params["conv2"], relu=True)                  # (2B*H/2*W/2, 128)
    a = _im2col3x3(y.reshape(2 * B, H // 2, W // 2, 128), stride=2)
    y = fused_matmul(a, *params["conv3"], relu=True)                  # (2B*H/4*W/4, 256)
    a = _im2col3x3(y.reshape(2 * B, H // 4, W // 4, 256), stride=2)
    feats, kp = fused_matmul(a, *params["conv4"], relu=True,
                             head=params["kp_head"])                  # (2B*Hf*Wf,512), (...,128)

    # keypoint_probs = keypoint_head(conv_layers(img1))  (raw logits, as in the reference)
    keypoint_probs = kp[:m_img, :nk].reshape(B, Hf, Wf, nk)

    # correspondence_map = correspondence_head(feature_encoder(conv_layers(img2)))
    f2 = feats[m_img:2 * m_img].reshape(B, Hf, Wf, 512)
    a = _im2col3x3(f2, stride=1)
    e = fused_matmul(a, *params["fe1"], relu=True)                    # (m_img, 256)
    a = _im2col3x3(e.reshape(B, Hf, Wf, 256), stride=1)
    _, corr = fused_matmul(a, *params["fe2"], relu=True,
                           head=params["corr_head"])                  # (m_img, 128) f32
    correspondence_map = corr[:, :nk].reshape(B, Hf, Wf, nk)

    to_nchw = lambda t: jnp.transpose(t, (0, 3, 1, 2))
    return to_nchw(correspondence_map), to_nchw(keypoint_probs)


# ---------------------------------------------------------------------------
if __name__ == "__main__":
    NUM_KEYPOINTS = 8
    B, C, H, W = 2, 3, 16, 16       # IMG_HEIGHT = 16 -> 2x2 feature maps

    root = jax.random.PRNGKey(0)
    k_params, k_img1, k_img2 = jax.random.split(root, 3)

    params = init_params(k_params, NUM_KEYPOINTS)
    img1 = jax.random.normal(k_img1, (B, C, H, W), jnp.float32)
    img2 = jax.random.normal(k_img2, (B, C, H, W), jnp.float32)

    fwd = jax.jit(functools.partial(dense_correspondence_forward, params))
    correspondence_map, keypoint_probs = fwd(img1, img2)
    jax.block_until_ready((correspondence_map, keypoint_probs))

    assert correspondence_map.shape == (B, NUM_KEYPOINTS, H // 8, W // 8)
    assert keypoint_probs.shape == (B, NUM_KEYPOINTS, H // 8, W // 8)
    assert correspondence_map.dtype == jnp.float32
    assert keypoint_probs.dtype == jnp.float32
    assert bool(jnp.all(jnp.isfinite(correspondence_map)))
    assert bool(jnp.all(jnp.isfinite(keypoint_probs)))

    print("KERNEL_OK")
</pallas_src>

<mosaic_0001>
module attributes {stable_mosaic.version = 11 : i64} {
  func.func @_mm_kernel(%arg0: i32, %arg1: memref<512x128xbf16, #tpu.memory_space<vmem>>, %arg2: memref<128x128xbf16, #tpu.memory_space<vmem>>, %arg3: memref<1x128xf32, #tpu.memory_space<vmem>>, %arg4: memref<512x128xbf16, #tpu.memory_space<vmem>>) attributes {dimension_semantics = [#tpu.dimension_semantics<parallel>], iteration_bounds = array<i64: 2>, scalar_prefetch = 0 : i64, scratch_operands = 0 : i64, tpu.core_type = #tpu.core_type<tc>, window_params = [{transform_indices = @transform_0, window_bounds = array<i64: 512, 128>}, {pipeline_mode = #tpu.pipeline_mode<synchronous>, transform_indices = @transform_1, window_bounds = array<i64: 128, 128>}, {pipeline_mode = #tpu.pipeline_mode<synchronous>, transform_indices = @transform_2, window_bounds = array<i64: 1, 128>}, {transform_indices = @transform_3, window_bounds = array<i64: 512, 128>}]} {
    %c0 = arith.constant 0 : index
    %c0_0 = arith.constant 0 : index
    %0 = vector.load %arg1[%c0, %c0_0] : memref<512x128xbf16, #tpu.memory_space<vmem>>, vector<512x128xbf16>
    %c0_1 = arith.constant 0 : index
    %c0_2 = arith.constant 0 : index
    %1 = vector.load %arg2[%c0_1, %c0_2] : memref<128x128xbf16, #tpu.memory_space<vmem>>, vector<128x128xbf16>
    %cst = arith.constant dense<0.000000e+00> : vector<512x128xf32>
    %2 = tpu.matmul %0, %1, %cst {dimension_numbers = #tpu.dot_dimension_numbers<[1], [0], [0], [1], [0, 0, 1, 1], [], []>} : vector<512x128xbf16>, vector<128x128xbf16>, vector<512x128xf32> -> vector<512x128xf32>
    %c0_3 = arith.constant 0 : index
    %c0_4 = arith.constant 0 : index
    %3 = vector.load %arg3[%c0_3, %c0_4] : memref<1x128xf32, #tpu.memory_space<vmem>>, vector<1x128xf32>
    %4 = vector.broadcast %3 : vector<1x128xf32> to vector<512x128xf32>
    %5 = arith.addf %2, %4 : vector<512x128xf32>
    %cst_5 = arith.constant 0.000000e+00 : f32
    %6 = vector.broadcast %cst_5 : f32 to vector<512x128xf32>
    %7 = arith.maximumf %5, %6 : vector<512x128xf32>
    %8 = arith.truncf %7 : vector<512x128xf32> to vector<512x128xbf16>
    %c0_6 = arith.constant 0 : index
    %c0_7 = arith.constant 0 : index
    %9 = vector.load %arg4[%c0_6, %c0_7] : memref<512x128xbf16, #tpu.memory_space<vmem>>, vector<512x128xbf16>
    tpu.vector_store %arg4[%c0_6, %c0_7], %8 {strides = array<i32>} : memref<512x128xbf16, #tpu.memory_space<vmem>>, vector<512x128xbf16>,
    return
  }
  func.func @transform_0(%arg0: i32) -> (i32, i32) {
    %c0_i32 = arith.constant 0 : i32
    %c0_i32_0 = arith.constant 0 : i32
    return %arg0, %c0_i32 : i32, i32
  }
  func.func @transform_1(%arg0: i32) -> (i32, i32) {
    %c0_i32 = arith.constant 0 : i32
    %c0_i32_0 = arith.constant 0 : i32
    %c0_i32_1 = arith.constant 0 : i32
    return %c0_i32, %c0_i32_0 : i32, i32
  }
  func.func @transform_2(%arg0: i32) -> (i32, i32) {
    %c0_i32 = arith.constant 0 : i32
    %c0_i32_0 = arith.constant 0 : i32
    %c0_i32_1 = arith.constant 0 : i32
    return %c0_i32, %c0_i32_0 : i32, i32
  }
  func.func @transform_3(%arg0: i32) -> (i32, i32) {
    %c0_i32 = arith.constant 0 : i32
    %c0_i32_0 = arith.constant 0 : i32
    return %arg0, %c0_i32 : i32, i32
  }
}

module attributes {stable_mosaic.version = 11 : i64} {
  func.func @_mm_kernel(%arg0: i32, %arg1: memref<128x1152xbf16, #tpu.memory_space<vmem>>, %arg2: memref<1152x128xbf16, #tpu.memory_space<vmem>>, %arg3: memref<1x128xf32, #tpu.memory_space<vmem>>, %arg4: memref<128x128xbf16, #tpu.memory_space<vmem>>) attributes {dimension_semantics = [#tpu.dimension_semantics<parallel>], iteration_bounds = array<i64: 2>, scalar_prefetch = 0 : i64, scratch_operands = 0 : i64, tpu.core_type = #tpu.core_type<tc>, window_params = [{transform_indices = @transform_0, window_bounds = array<i64: 128, 1152>}, {pipeline_mode = #tpu.pipeline_mode<synchronous>, transform_indices = @transform_1, window_bounds = array<i64: 1152, 128>}, {pipeline_mode = #tpu.pipeline_mode<synchronous>, transform_indices = @transform_2, window_bounds = array<i64: 1, 128>}, {transform_indices = @transform_3, window_bounds = array<i64: 128, 128>}]} {
    %c0 = arith.constant 0 : index
    %c0_0 = arith.constant 0 : index
    %0 = vector.load %arg1[%c0, %c0_0] : memref<128x1152xbf16, #tpu.memory_space<vmem>>, vector<128x1152xbf16>
    %c0_1 = arith.constant 0 : index
    %c0_2 = arith.constant 0 : index
    %1 = vector.load %arg2[%c0_1, %c0_2] : memref<1152x128xbf16, #tpu.memory_space<vmem>>, vector<1152x128xbf16>
    %cst = arith.constant dense<0.000000e+00> : vector<128x128xf32>
    %2 = tpu.matmul %0, %1, %cst {dimension_numbers = #tpu.dot_dimension_numbers<[1], [0], [0], [1], [0, 0, 1, 1], [], []>} : vector<128x1152xbf16>, vector<1152x128xbf16>, vector<128x128xf32> -> vector<128x128xf32>
    %c0_3 = arith.constant 0 : index
    %c0_4 = arith.constant 0 : index
    %3 = vector.load %arg3[%c0_3, %c0_4] : memref<1x128xf32, #tpu.memory_space<vmem>>, vector<1x128xf32>
    %4 = vector.broadcast %3 : vector<1x128xf32> to vector<128x128xf32>
    %5 = arith.addf %2, %4 : vector<128x128xf32>
    %cst_5 = arith.constant 0.000000e+00 : f32
    %6 = vector.broadcast %cst_5 : f32 to vector<128x128xf32>
    %7 = arith.maximumf %5, %6 : vector<128x128xf32>
    %8 = arith.truncf %7 : vector<128x128xf32> to vector<128x128xbf16>
    %c0_6 = arith.constant 0 : index
    %c0_7 = arith.constant 0 : index
    %9 = vector.load %arg4[%c0_6, %c0_7] : memref<128x128xbf16, #tpu.memory_space<vmem>>, vector<128x128xbf16>
    tpu.vector_store %arg4[%c0_6, %c0_7], %8 {strides = array<i32>} : memref<128x128xbf16, #tpu.memory_space<vmem>>, vector<128x128xbf16>,
    return
  }
  func.func @transform_0(%arg0: i32) -> (i32, i32) {
    %c0_i32 = arith.constant 0 : i32
    %c0_i32_0 = arith.constant 0 : i32
    return %arg0, %c0_i32 : i32, i32
  }
  func.func @transform_1(%arg0: i32) -> (i32, i32) {
    %c0_i32 = arith.constant 0 : i32
    %c0_i32_0 = arith.constant 0 : i32
    %c0_i32_1 = arith.constant 0 : i32
    return %c0_i32, %c0_i32_0 : i32, i32
  }
  func.func @transform_2(%arg0: i32) -> (i32, i32) {
    %c0_i32 = arith.constant 0 : i32
    %c0_i32_0 = arith.constant 0 : i32
    %c0_i32_1 = arith.constant 0 : i32
    return %c0_i32, %c0_i32_0 : i32, i32
  }
  func.func @transform_3(%arg0: i32) -> (i32, i32) {
    %c0_i32 = arith.constant 0 : i32
    %c0_i32_0 = arith.constant 0 : i32
    return %arg0, %c0_i32 : i32, i32
  }
}

module attributes {stable_mosaic.version = 11 : i64} {
  func.func @_mm_kernel(%arg0: i32, %arg1: memref<32x1152xbf16, #tpu.memory_space<vmem>>, %arg2: memref<1152x256xbf16, #tpu.memory_space<vmem>>, %arg3: memref<1x256xf32, #tpu.memory_space<vmem>>, %arg4: memref<32x256xbf16, #tpu.memory_space<vmem>>) attributes {dimension_semantics = [#tpu.dimension_semantics<parallel>], iteration_bounds = array<i64: 2>, scalar_prefetch = 0 : i64, scratch_operands = 0 : i64, tpu.core_type = #tpu.core_type<tc>, window_params = [{transform_indices = @transform_0, window_bounds = array<i64: 32, 1152>}, {pipeline_mode = #tpu.pipeline_mode<synchronous>, transform_indices = @transform_1, window_bounds = array<i64: 1152, 256>}, {pipeline_mode = #tpu.pipeline_mode<synchronous>, transform_indices = @transform_2, window_bounds = array<i64: 1, 256>}, {transform_indices = @transform_3, window_bounds = array<i64: 32, 256>}]} {
    %c0 = arith.constant 0 : index
    %c0_0 = arith.constant 0 : index
    %0 = vector.load %arg1[%c0, %c0_0] : memref<32x1152xbf16, #tpu.memory_space<vmem>>, vector<32x1152xbf16>
    %c0_1 = arith.constant 0 : index
    %c0_2 = arith.constant 0 : index
    %1 = vector.load %arg2[%c0_1, %c0_2] : memref<1152x256xbf16, #tpu.memory_space<vmem>>, vector<1152x256xbf16>
    %cst = arith.constant dense<0.000000e+00> : vector<32x256xf32>
    %2 = tpu.matmul %0, %1, %cst {dimension_numbers = #tpu.dot_dimension_numbers<[1], [0], [0], [1], [0, 0, 1, 1], [], []>} : vector<32x1152xbf16>, vector<1152x256xbf16>, vector<32x256xf32> -> vector<32x256xf32>
    %c0_3 = arith.constant 0 : index
    %c0_4 = arith.constant 0 : index
    %3 = vector.load %arg3[%c0_3, %c0_4] : memref<1x256xf32, #tpu.memory_space<vmem>>, vector<1x256xf32>
    %4 = vector.broadcast %3 : vector<1x256xf32> to vector<32x256xf32>
    %5 = arith.addf %2, %4 : vector<32x256xf32>
    %cst_5 = arith.constant 0.000000e+00 : f32
    %6 = vector.broadcast %cst_5 : f32 to vector<32x256xf32>
    %7 = arith.maximumf %5, %6 : vector<32x256xf32>
    %8 = arith.truncf %7 : vector<32x256xf32> to vector<32x256xbf16>
    %c0_6 = arith.constant 0 : index
    %c0_7 = arith.constant 0 : index
    %9 = vector.load %arg4[%c0_6, %c0_7] : memref<32x256xbf16, #tpu.memory_space<vmem>>, vector<32x256xbf16>
    tpu.vector_store %arg4[%c0_6, %c0_7], %8 {strides = array<i32>} : memref<32x256xbf16, #tpu.memory_space<vmem>>, vector<32x256xbf16>,
    return
  }
  func.func @transform_0(%arg0: i32) -> (i32, i32) {
    %c0_i32 = arith.constant 0 : i32
    %c0_i32_0 = arith.constant 0 : i32
    return %arg0, %c0_i32 : i32, i32
  }
  func.func @transform_1(%arg0: i32) -> (i32, i32) {
    %c0_i32 = arith.constant 0 : i32
    %c0_i32_0 = arith.constant 0 : i32
    %c0_i32_1 = arith.constant 0 : i32
    return %c0_i32, %c0_i32_0 : i32, i32
  }
  func.func @transform_2(%arg0: i32) -> (i32, i32) {
    %c0_i32 = arith.constant 0 : i32
    %c0_i32_0 = arith.constant 0 : i32
    %c0_i32_1 = arith.constant 0 : i32
    return %c0_i32, %c0_i32_0 : i32, i32
  }
  func.func @transform_3(%arg0: i32) -> (i32, i32) {
    %c0_i32 = arith.constant 0 : i32
    %c0_i32_0 = arith.constant 0 : i32
    return %arg0, %c0_i32 : i32, i32
  }
}

module attributes {stable_mosaic.version = 11 : i64} {
  func.func @_mm_head_kernel(%arg0: i32, %arg1: memref<16x2304xbf16, #tpu.memory_space<vmem>>, %arg2: memref<2304x512xbf16, #tpu.memory_space<vmem>>, %arg3: memref<1x512xf32, #tpu.memory_space<vmem>>, %arg4: memref<512x128xbf16, #tpu.memory_space<vmem>>, %arg5: memref<1x128xf32, #tpu.memory_space<vmem>>, %arg6: memref<16x512xbf16, #tpu.memory_space<vmem>>, %arg7: memref<16x128xf32, #tpu.memory_space<vmem>>) attributes {dimension_semantics = [#tpu.dimension_semantics<parallel>], iteration_bounds = array<i64: 1>, scalar_prefetch = 0 : i64, scratch_operands = 0 : i64, tpu.core_type = #tpu.core_type<tc>, window_params = [{transform_indices = @transform_0, window_bounds = array<i64: 16, 2304>}, {pipeline_mode = #tpu.pipeline_mode<synchronous>, transform_indices = @transform_1, window_bounds = array<i64: 2304, 512>}, {pipeline_mode = #tpu.pipeline_mode<synchronous>, transform_indices = @transform_2, window_bounds = array<i64: 1, 512>}, {pipeline_mode = #tpu.pipeline_mode<synchronous>, transform_indices = @transform_3, window_bounds = array<i64: 512, 128>}, {pipeline_mode = #tpu.pipeline_mode<synchronous>, transform_indices = @transform_4, window_bounds = array<i64: 1, 128>}, {transform_indices = @transform_5, window_bounds = array<i64: 16, 512>}, {transform_indices = @transform_6, window_bounds = array<i64: 16, 128>}]} {
    %c0 = arith.constant 0 : index
    %c0_0 = arith.constant 0 : index
    %0 = vector.load %arg1[%c0, %c0_0] : memref<16x2304xbf16, #tpu.memory_space<vmem>>, vector<16x2304xbf16>
    %c0_1 = arith.constant 0 : index
    %c0_2 = arith.constant 0 : index
    %1 = vector.load %arg2[%c0_1, %c0_2] : memref<2304x512xbf16, #tpu.memory_space<vmem>>, vector<2304x512xbf16>
    %cst = arith.constant dense<0.000000e+00> : vector<16x512xf32>
    %2 = tpu.matmul %0, %1, %cst {dimension_numbers = #tpu.dot_dimension_numbers<[1], [0], [0], [1], [0, 0, 1, 1], [], []>} : vector<16x2304xbf16>, vector<2304x512xbf16>, vector<16x512xf32> -> vector<16x512xf32>
    %c0_3 = arith.constant 0 : index
    %c0_4 = arith.constant 0 : index
    %3 = vector.load %arg3[%c0_3, %c0_4] : memref<1x512xf32, #tpu.memory_space<vmem>>, vector<1x512xf32>
    %4 = vector.broadcast %3 : vector<1x512xf32> to vector<16x512xf32>
    %5 = arith.addf %2, %4 : vector<16x512xf32>
    %cst_5 = arith.constant 0.000000e+00 : f32
    %6 = vector.broadcast %cst_5 : f32 to vector<16x512xf32>
    %7 = arith.maximumf %5, %6 : vector<16x512xf32>
    %8 = arith.truncf %7 : vector<16x512xf32> to vector<16x512xbf16>
    %c0_6 = arith.constant 0 : index
    %c0_7 = arith.constant 0 : index
    %9 = vector.load %arg6[%c0_6, %c0_7] : memref<16x512xbf16, #tpu.memory_space<vmem>>, vector<16x512xbf16>
    tpu.vector_store %arg6[%c0_6, %c0_7], %8 {strides = array<i32>} : memref<16x512xbf16, #tpu.memory_space<vmem>>, vector<16x512xbf16>,
    %10 = arith.truncf %7 : vector<16x512xf32> to vector<16x512xbf16>
    %c0_8 = arith.constant 0 : index
    %c0_9 = arith.constant 0 : index
    %11 = vector.load %arg4[%c0_8, %c0_9] : memref<512x128xbf16, #tpu.memory_space<vmem>>, vector<512x128xbf16>
    %cst_10 = arith.constant dense<0.000000e+00> : vector<16x128xf32>
    %12 = tpu.matmul %10, %11, %cst_10 {dimension_numbers = #tpu.dot_dimension_numbers<[1], [0], [0], [1], [0, 0, 1, 1], [], []>} : vector<16x512xbf16>, vector<512x128xbf16>, vector<16x128xf32> -> vector<16x128xf32>
    %c0_11 = arith.constant 0 : index
    %c0_12 = arith.constant 0 : index
    %13 = vector.load %arg5[%c0_11, %c0_12] : memref<1x128xf32, #tpu.memory_space<vmem>>, vector<1x128xf32>
    %14 = vector.broadcast %13 : vector<1x128xf32> to vector<16x128xf32>
    %15 = arith.addf %12, %14 : vector<16x128xf32>
    %c0_13 = arith.constant 0 : index
    %c0_14 = arith.constant 0 : index
    %16 = vector.load %arg7[%c0_13, %c0_14] : memref<16x128xf32, #tpu.memory_space<vmem>>, vector<16x128xf32>
    tpu.vector_store %arg7[%c0_13, %c0_14], %15 {strides = array<i32>} : memref<16x128xf32, #tpu.memory_space<vmem>>, vector<16x128xf32>,
    return
  }
  func.func @transform_0(%arg0: i32) -> (i32, i32) {
    %c0_i32 = arith.constant 0 : i32
    %c0_i32_0 = arith.constant 0 : i32
    return %arg0, %c0_i32 : i32, i32
  }
  func.func @transform_1(%arg0: i32) -> (i32, i32) {
    %c0_i32 = arith.constant 0 : i32
    %c0_i32_0 = arith.constant 0 : i32
    %c0_i32_1 = arith.constant 0 : i32
    return %c0_i32, %c0_i32_0 : i32, i32
  }
  func.func @transform_2(%arg0: i32) -> (i32, i32) {
    %c0_i32 = arith.constant 0 : i32
    %c0_i32_0 = arith.constant 0 : i32
    %c0_i32_1 = arith.constant 0 : i32
    return %c0_i32, %c0_i32_0 : i32, i32
  }
  func.func @transform_3(%arg0: i32) -> (i32, i32) {
    %c0_i32 = arith.constant 0 : i32
    %c0_i32_0 = arith.constant 0 : i32
    %c0_i32_1 = arith.constant 0 : i32
    return %c0_i32, %c0_i32_0 : i32, i32
  }
  func.func @transform_4(%arg0: i32) -> (i32, i32) {
    %c0_i32 = arith.constant 0 : i32
    %c0_i32_0 = arith.constant 0 : i32
    %c0_i32_1 = arith.constant 0 : i32
    return %c0_i32, %c0_i32_0 : i32, i32
  }
  func.func @transform_5(%arg0: i32) -> (i32, i32) {
    %c0_i32 = arith.constant 0 : i32
    %c0_i32_0 = arith.constant 0 : i32
    return %arg0, %c0_i32 : i32, i32
  }
  func.func @transform_6(%arg0: i32) -> (i32, i32) {
    %c0_i32 = arith.constant 0 : i32
    %c0_i32_0 = arith.constant 0 : i32
    return %arg0, %c0_i32 : i32, i32
  }
}

module attributes {stable_mosaic.version = 11 : i64} {
  func.func @_mm_kernel(%arg0: i32, %arg1: memref<8x4608xbf16, #tpu.memory_space<vmem>>, %arg2: memref<4608x256xbf16, #tpu.memory_space<vmem>>, %arg3: memref<1x256xf32, #tpu.memory_space<vmem>>, %arg4: memref<8x256xbf16, #tpu.memory_space<vmem>>) attributes {dimension_semantics = [#tpu.dimension_semantics<parallel>], iteration_bounds = array<i64: 1>, scalar_prefetch = 0 : i64, scratch_operands = 0 : i64, tpu.core_type = #tpu.core_type<tc>, window_params = [{transform_indices = @transform_0, window_bounds = array<i64: 8, 4608>}, {pipeline_mode = #tpu.pipeline_mode<synchronous>, transform_indices = @transform_1, window_bounds = array<i64: 4608, 256>}, {pipeline_mode = #tpu.pipeline_mode<synchronous>, transform_indices = @transform_2, window_bounds = array<i64: 1, 256>}, {transform_indices = @transform_3, window_bounds = array<i64: 8, 256>}]} {
    %c0 = arith.constant 0 : index
    %c0_0 = arith.constant 0 : index
    %0 = vector.load %arg1[%c0, %c0_0] : memref<8x4608xbf16, #tpu.memory_space<vmem>>, vector<8x4608xbf16>
    %c0_1 = arith.constant 0 : index
    %c0_2 = arith.constant 0 : index
    %1 = vector.load %arg2[%c0_1, %c0_2] : memref<4608x256xbf16, #tpu.memory_space<vmem>>, vector<4608x256xbf16>
    %cst = arith.constant dense<0.000000e+00> : vector<8x256xf32>
    %2 = tpu.matmul %0, %1, %cst {dimension_numbers = #tpu.dot_dimension_numbers<[1], [0], [0], [1], [0, 0, 1, 1], [], []>} : vector<8x4608xbf16>, vector<4608x256xbf16>, vector<8x256xf32> -> vector<8x256xf32>
    %c0_3 = arith.constant 0 : index
    %c0_4 = arith.constant 0 : index
    %3 = vector.load %arg3[%c0_3, %c0_4] : memref<1x256xf32, #tpu.memory_space<vmem>>, vector<1x256xf32>
    %4 = vector.broadcast %3 : vector<1x256xf32> to vector<8x256xf32>
    %5 = arith.addf %2, %4 : vector<8x256xf32>
    %cst_5 = arith.constant 0.000000e+00 : f32
    %6 = vector.broadcast %cst_5 : f32 to vector<8x256xf32>
    %7 = arith.maximumf %5, %6 : vector<8x256xf32>
    %8 = arith.truncf %7 : vector<8x256xf32> to vector<8x256xbf16>
    %c0_6 = arith.constant 0 : index
    %c0_7 = arith.constant 0 : index
    %9 = vector.load %arg4[%c0_6, %c0_7] : memref<8x256xbf16, #tpu.memory_space<vmem>>, vector<8x256xbf16>
    tpu.vector_store %arg4[%c0_6, %c0_7], %8 {strides = array<i32>} : memref<8x256xbf16, #tpu.memory_space<vmem>>, vector<8x256xbf16>,
    return
  }
  func.func @transform_0(%arg0: i32) -> (i32, i32) {
    %c0_i32 = arith.constant 0 : i32
    %c0_i32_0 = arith.constant 0 : i32
    return %arg0, %c0_i32 : i32, i32
  }
  func.func @transform_1(%arg0: i32) -> (i32, i32) {
    %c0_i32 = arith.constant 0 : i32
    %c0_i32_0 = arith.constant 0 : i32
    %c0_i32_1 = arith.constant 0 : i32
    return %c0_i32, %c0_i32_0 : i32, i32
  }
  func.func @transform_2(%arg0: i32) -> (i32, i32) {
    %c0_i32 = arith.constant 0 : i32
    %c0_i32_0 = arith.constant 0 : i32
    %c0_i32_1 = arith.constant 0 : i32
    return %c0_i32, %c0_i32_0 : i32, i32
  }
  func.func @transform_3(%arg0: i32) -> (i32, i32) {
    %c0_i32 = arith.constant 0 : i32
    %c0_i32_0 = arith.constant 0 : i32
    return %arg0, %c0_i32 : i32, i32
  }
}

module attributes {stable_mosaic.version = 11 : i64} {
  func.func @_mm_head_kernel(%arg0: i32, %arg1: memref<8x2304xbf16, #tpu.memory_space<vmem>>, %arg2: memref<2304x128xbf16, #tpu.memory_space<vmem>>, %arg3: memref<1x128xf32, #tpu.memory_space<vmem>>, %arg4: memref<128x128xbf16, #tpu.memory_space<vmem>>, %arg5: memref<1x128xf32, #tpu.memory_space<vmem>>, %arg6: memref<8x128xbf16, #tpu.memory_space<vmem>>, %arg7: memref<8x128xf32, #tpu.memory_space<vmem>>) attributes {dimension_semantics = [#tpu.dimension_semantics<parallel>], iteration_bounds = array<i64: 1>, scalar_prefetch = 0 : i64, scratch_operands = 0 : i64, tpu.core_type = #tpu.core_type<tc>, window_params = [{transform_indices = @transform_0, window_bounds = array<i64: 8, 2304>}, {pipeline_mode = #tpu.pipeline_mode<synchronous>, transform_indices = @transform_1, window_bounds = array<i64: 2304, 128>}, {pipeline_mode = #tpu.pipeline_mode<synchronous>, transform_indices = @transform_2, window_bounds = array<i64: 1, 128>}, {pipeline_mode = #tpu.pipeline_mode<synchronous>, transform_indices = @transform_3, window_bounds = array<i64: 128, 128>}, {pipeline_mode = #tpu.pipeline_mode<synchronous>, transform_indices = @transform_4, window_bounds = array<i64: 1, 128>}, {transform_indices = @transform_5, window_bounds = array<i64: 8, 128>}, {transform_indices = @transform_6, window_bounds = array<i64: 8, 128>}]} {
    %c0 = arith.constant 0 : index
    %c0_0 = arith.constant 0 : index
    %0 = vector.load %arg1[%c0, %c0_0] : memref<8x2304xbf16, #tpu.memory_space<vmem>>, vector<8x2304xbf16>
    %c0_1 = arith.constant 0 : index
    %c0_2 = arith.constant 0 : index
    %1 = vector.load %arg2[%c0_1, %c0_2] : memref<2304x128xbf16, #tpu.memory_space<vmem>>, vector<2304x128xbf16>
    %cst = arith.constant dense<0.000000e+00> : vector<8x128xf32>
    %2 = tpu.matmul %0, %1, %cst {dimension_numbers = #tpu.dot_dimension_numbers<[1], [0], [0], [1], [0, 0, 1, 1], [], []>} : vector<8x2304xbf16>, vector<2304x128xbf16>, vector<8x128xf32> -> vector<8x128xf32>
    %c0_3 = arith.constant 0 : index
    %c0_4 = arith.constant 0 : index
    %3 = vector.load %arg3[%c0_3, %c0_4] : memref<1x128xf32, #tpu.memory_space<vmem>>, vector<1x128xf32>
    %4 = vector.broadcast %3 : vector<1x128xf32> to vector<8x128xf32>
    %5 = arith.addf %2, %4 : vector<8x128xf32>
    %cst_5 = arith.constant 0.000000e+00 : f32
    %6 = vector.broadcast %cst_5 : f32 to vector<8x128xf32>
    %7 = arith.maximumf %5, %6 : vector<8x128xf32>
    %8 = arith.truncf %7 : vector<8x128xf32> to vector<8x128xbf16>
    %c0_6 = arith.constant 0 : index
    %c0_7 = arith.constant 0 : index
    %9 = vector.load %arg6[%c0_6, %c0_7] : memref<8x128xbf16, #tpu.memory_space<vmem>>, vector<8x128xbf16>
    tpu.vector_store %arg6[%c0_6, %c0_7], %8 {strides = array<i32>} : memref<8x128xbf16, #tpu.memory_space<vmem>>, vector<8x128xbf16>,
    %10 = arith.truncf %7 : vector<8x128xf32> to vector<8x128xbf16>
    %c0_8 = arith.constant 0 : index
    %c0_9 = arith.constant 0 : index
    %11 = vector.load %arg4[%c0_8, %c0_9] : memref<128x128xbf16, #tpu.memory_space<vmem>>, vector<128x128xbf16>
    %cst_10 = arith.constant dense<0.000000e+00> : vector<8x128xf32>
    %12 = tpu.matmul %10, %11, %cst_10 {dimension_numbers = #tpu.dot_dimension_numbers<[1], [0], [0], [1], [0, 0, 1, 1], [], []>} : vector<8x128xbf16>, vector<128x128xbf16>, vector<8x128xf32> -> vector<8x128xf32>
    %c0_11 = arith.constant 0 : index
    %c0_12 = arith.constant 0 : index
    %13 = vector.load %arg5[%c0_11, %c0_12] : memref<1x128xf32, #tpu.memory_space<vmem>>, vector<1x128xf32>
    %14 = vector.broadcast %13 : vector<1x128xf32> to vector<8x128xf32>
    %15 = arith.addf %12, %14 : vector<8x128xf32>
    %c0_13 = arith.constant 0 : index
    %c0_14 = arith.constant 0 : index
    %16 = vector.load %arg7[%c0_13, %c0_14] : memref<8x128xf32, #tpu.memory_space<vmem>>, vector<8x128xf32>
    tpu.vector_store %arg7[%c0_13, %c0_14], %15 {strides = array<i32>} : memref<8x128xf32, #tpu.memory_space<vmem>>, vector<8x128xf32>,
    return
  }
  func.func @transform_0(%arg0: i32) -> (i32, i32) {
    %c0_i32 = arith.constant 0 : i32
    %c0_i32_0 = arith.constant 0 : i32
    return %arg0, %c0_i32 : i32, i32
  }
  func.func @transform_1(%arg0: i32) -> (i32, i32) {
    %c0_i32 = arith.constant 0 : i32
    %c0_i32_0 = arith.constant 0 : i32
    %c0_i32_1 = arith.constant 0 : i32
    return %c0_i32, %c0_i32_0 : i32, i32
  }
  func.func @transform_2(%arg0: i32) -> (i32, i32) {
    %c0_i32 = arith.constant 0 : i32
    %c0_i32_0 = arith.constant 0 : i32
    %c0_i32_1 = arith.constant 0 : i32
    return %c0_i32, %c0_i32_0 : i32, i32
  }
  func.func @transform_3(%arg0: i32) -> (i32, i32) {
    %c0_i32 = arith.constant 0 : i32
    %c0_i32_0 = arith.constant 0 : i32
    %c0_i32_1 = arith.constant 0 : i32
    return %c0_i32, %c0_i32_0 : i32, i32
  }
  func.func @transform_4(%arg0: i32) -> (i32, i32) {
    %c0_i32 = arith.constant 0 : i32
    %c0_i32_0 = arith.constant 0 : i32
    %c0_i32_1 = arith.constant 0 : i32
    return %c0_i32, %c0_i32_0 : i32, i32
  }
  func.func @transform_5(%arg0: i32) -> (i32, i32) {
    %c0_i32 = arith.constant 0 : i32
    %c0_i32_0 = arith.constant 0 : i32
    return %arg0, %c0_i32 : i32, i32
  }
  func.func @transform_6(%arg0: i32) -> (i32, i32) {
    %c0_i32 = arith.constant 0 : i32
    %c0_i32_0 = arith.constant 0 : i32
    return %arg0, %c0_i32 : i32, i32
  }
}

</mosaic_0001>

<bundles_post_ra>
// kernel: dense_correspondence_forward.6
= control target key start
LH: loop header
LB: loop body
LE: loop exit
PB: predicated region body
PF: predicated region fallthrough
CT: control target
= control target key end

     0   :  { %s1814_s12 = smov 0   ;;  %s1999_s0 = inlined_call_operand.vmem [shape: bf16[1024,128], index: 0, kind: input, shape index: {}]   ;;  %s2000_s1 = inlined_call_operand.vmem [shape: bf16[128,128], index: 1, kind: input, shape index: {}]   ;;  %s2001_s2 = inlined_call_operand.vmem [shape: f32[1,128], index: 2, kind: input, shape index: {}]   ;;  %s2002_s3 = inlined_call_operand.vmem [shape: bf16[1024,128], index: 3, kind: output, shape index: {}]  }
   0x1 LB: > { %s1231_s13 = sadd.s32 4294967295, %s1792_s12   ;;  %p1235_p0 = scmp.ge.s32.totalorder %s1792_s12, 1  ;;  %s1792_s12 = sphi %s1814_s12, %s13_s12  }
   0x2   : > { %p138_p1 = scmp.lt.s32.totalorder %s1792_s12, 3 }
   0x4   : > { %p139_p2 = pnand %p1235_p0, %p138_p1 }
   0x5   : > { %v1746_v0 = vld [vmem:[%s2000_s1] sm:$0xff] (!%p139_p2)   ;;  %s1236_s16 = sshll.u32 (!%p139_p2), %s1231_s13, 6  ;;  %v1747_v1 = vld [vmem:[%s2000_s1 + $0x8] sm:$0xff] (!%p139_p2)   ;;  %v1748_v2 = vld [vmem:[%s2000_s1 + $0x10] sm:$0xff] (!%p139_p2)  }
   0x6   : > { %142 = sbr.rel (%p139_p2) target bundleno = 316 (0x13c), region = 32  ;;  %p163_p3 = scmp.lt.s32.totalorder (!%p139_p2), %s1236_s16, 127  ;;  %1642 = vmatprep.subr.bf16.mxu0 (!%p139_p2), %v1746_v0  ;;  %1722 = vmatprep.subr.bf16.mxu1 (!%p139_p2), %v1746_v0  ;;  %v1749_v3 = vld [vmem:[%s2000_s1 + $0x18] sm:$0xff] (!%p139_p2)   ;;  %v1750_v6 = vld [vmem:[%s2000_s1 + $0x20] sm:$0xff] (!%p139_p2)   ;;  %v1751_v7 = vld [vmem:[%s2000_s1 + $0x28] sm:$0xff] (!%p139_p2)  }
   0x7   : > { %1643 = vmatpush3.bf16.msra.mxu0 (!%p139_p2), %v1746_v0  ;;  %1730 = vmatpush3.bf16.msra.mxu1 (!%p139_p2), %v1746_v0  ;;  %v1752_v8 = vld [vmem:[%s2000_s1 + $0x30] sm:$0xff] (!%p139_p2)   ;;  %v1753_v9 = vld [vmem:[%s2000_s1 + $0x38] sm:$0xff] (!%p139_p2)   ;;  %v1891_v40 = vld [vmem:[%s2001_s2] ss:$0 sm:$0xff] (!%p139_p2) }
   0x8   : > { %1644 = vmatprep.subr.bf16.mxu0 (!%p139_p2), %v1747_v1  ;;  %1723 = vmatprep.subr.bf16.mxu1 (!%p139_p2), %v1747_v1 }
   0xb   : > { %1645 = vmatpush3.bf16.msra.mxu0 (!%p139_p2), %v1747_v1  ;;  %1731 = vmatpush3.bf16.msra.mxu1 (!%p139_p2), %v1747_v1 }
   0xc   : > { %1646 = vmatprep.subr.bf16.mxu0 (!%p139_p2), %v1748_v2  ;;  %1724 = vmatprep.subr.bf16.mxu1 (!%p139_p2), %v1748_v2 }
   0xd   : > { %s2004_s16 = smov (!%p163_p3, %s1236_s16), 127 }
   0xe   : > { %s1237_s21 = sshll.u32 %s2004_s16, 2 }
   0xf   : > { %s1839_s24 = scalar_lea.vmem %s1999_s0, %s1237_s21  ;;  %1647 = vmatpush3.bf16.msra.mxu0 %v1748_v2  ;;  %1732 = vmatpush3.bf16.msra.mxu1 %v1748_v2  ;;  %s1906_s13 = scalar_lea.vmem %s2002_s3, %s1237_s21 }
  0x10   : > { %v1754_v4 = vld [vmem:[%s1839_s24] sm:$0xff]   ;;  %1648 = vmatprep.subr.bf16.mxu0 %v1749_v3  ;;  %1725 = vmatprep.subr.bf16.mxu1 %v1749_v3  ;;  %v1756_v10 = vld [vmem:[%s1839_s24 + $0x8] sm:$0xff]   ;;  %v1758_v12 = vld [vmem:[%s1839_s24 + $0x10] sm:$0xff]  }
  0x11   : > { %v1755_v5 = vld [vmem:[%s1839_s24 + $0x80] sm:$0xff]   ;;  %1658 = vmatprep.mubr.bf16.mxu0 %v1754_v4  ;;  %v1757_v11 = vld [vmem:[%s1839_s24 + $0x88] sm:$0xff]   ;;  %v1759_v13 = vld [vmem:[%s1839_s24 + $0x90] sm:$0xff]  }
  0x12   : > { %1690 = vmatprep.mubr.bf16.mxu1 %v1755_v5  ;;  %v1760_v14 = vld [vmem:[%s1839_s24 + $0x18] sm:$0xff]   ;;  %v1762_v16 = vld [vmem:[%s1839_s24 + $0x20] sm:$0xff]   ;;  %v1764_v18 = vld [vmem:[%s1839_s24 + $0x28] sm:$0xff]  }
  0x13   : > { %1649 = vmatpush3.bf16.msra.mxu0 %v1749_v3  ;;  %1733 = vmatpush3.bf16.msra.mxu1 %v1749_v3  ;;  %v1761_v15 = vld [vmem:[%s1839_s24 + $0x98] sm:$0xff]   ;;  %v1763_v17 = vld [vmem:[%s1839_s24 + $0xa0] sm:$0xff]   ;;  %v1765_v19 = vld [vmem:[%s1839_s24 + $0xa8] sm:$0xff]  }
  0x14   : > { %1650 = vmatprep.subr.bf16.mxu0 %v1750_v6  ;;  %1726 = vmatprep.subr.bf16.mxu1 %v1750_v6  ;;  %v1766_v20 = vld [vmem:[%s1839_s24 + $0x30] sm:$0xff]   ;;  %v1768_v22 = vld [vmem:[%s1839_s24 + $0x38] sm:$0xff]   ;;  %v1770_v24 = vld [vmem:[%s1839_s24 + $0x40] sm:$0xff]  }
  0x15   : > { %v1767_v21 = vld [vmem:[%s1839_s24 + $0xb0] sm:$0xff]   ;;  %v1769_v23 = vld [vmem:[%s1839_s24 + $0xb8] sm:$0xff]   ;;  %v1771_v25 = vld [vmem:[%s1839_s24 + $0xc0] sm:$0xff]  }
  0x16   : > { %v1772_v26 = vld [vmem:[%s1839_s24 + $0x48] sm:$0xff]   ;;  %v1774_v28 = vld [vmem:[%s1839_s24 + $0x50] sm:$0xff]   ;;  %v1776_v30 = vld [vmem:[%s1839_s24 + $0x58] sm:$0xff]  }
  0x17   : > { %1651 = vmatpush3.bf16.msra.mxu0 %v1750_v6  ;;  %1734 = vmatpush3.bf16.msra.mxu1 %v1750_v6  ;;  %v1773_v27 = vld [vmem:[%s1839_s24 + $0xc8] sm:$0xff]   ;;  %v1775_v29 = vld [vmem:[%s1839_s24 + $0xd0] sm:$0xff]   ;;  %v1777_v31 = vld [vmem:[%s1839_s24 + $0xd8] sm:$0xff]  }
  0x18   : > { %1652 = vmatprep.subr.bf16.mxu0 %v1751_v7  ;;  %1727 = vmatprep.subr.bf16.mxu1 %v1751_v7  ;;  %v1778_v32 = vld [vmem:[%s1839_s24 + $0x60] sm:$0xff]   ;;  %v1780_v34 = vld [vmem:[%s1839_s24 + $0x68] sm:$0xff]   ;;  %v1782_v36 = vld [vmem:[%s1839_s24 + $0x70] sm:$0xff]  }
  0x19   : > { %v1779_v33 = vld [vmem:[%s1839_s24 + $0xe0] sm:$0xff]   ;;  %v1781_v35 = vld [vmem:[%s1839_s24 + $0xe8] sm:$0xff]   ;;  %v1783_v37 = vld [vmem:[%s1839_s24 + $0xf0] sm:$0xff]  }
  0x1a   : > { %v1784_v38 = vld [vmem:[%s1839_s24 + $0x78] sm:$0xff]  }
  0x1b   : > { %1653 = vmatpush3.bf16.msra.mxu0 %v1751_v7  ;;  %1735 = vmatpush3.bf16.msra.mxu1 %v1751_v7  ;;  %v1785_v39 = vld [vmem:[%s1839_s24 + $0xf8] sm:$0xff]  }
  0x1c   : > { %1654 = vmatprep.subr.bf16.mxu0 %v1752_v8  ;;  %1728 = vmatprep.subr.bf16.mxu1 %v1752_v8 }
  0x1f   : > { %1655 = vmatpush3.bf16.msra.mxu0 %v1752_v8  ;;  %1736 = vmatpush3.bf16.msra.mxu1 %v1752_v8 }
  0x20   : > { %1656 = vmatprep.subr.bf16.mxu0 %v1753_v9  ;;  %1729 = vmatprep.subr.bf16.mxu1 %v1753_v9 }
  0x23   : > { %1657 = vmatpush3.bf16.msra.mxu0 %v1753_v9  ;;  %1737 = vmatpush3.bf16.msra.mxu1 %v1753_v9 }
  0x26   : > { %1659 = vmatmul.mubr.bf16.vlgmr.msra.gmra.mrb[0].mxu0 %v1756_v10  ;;  %1691 = vmatmul.mubr.bf16.vlgmr.msra.gmra.mrb[0].mxu1 %v1757_v11 }
  0x27   : > { %1662 = vmatprep.mubr.bf16.mxu0 %v1758_v12  ;;  %1694 = vmatprep.mubr.bf16.mxu1 %v1759_v13 }
  0x2e   : > { %1663 = vmatmul.mubr.bf16.gmra.mrb[4].mxu0 %v1760_v14  ;;  %1695 = vmatmul.mubr.bf16.gmra.mrb[4].mxu1 %v1761_v15 }
  0x2f   : > { %1666 = vmatprep.mubr.bf16.mxu0 %v1762_v16  ;;  %1698 = vmatprep.mubr.bf16.mxu1 %v1763_v17 }
  0x36   : > { %1667 = vmatmul.mubr.bf16.gmra.mrb[8].mxu0 %v1764_v18  ;;  %1699 = vmatmul.mubr.bf16.gmra.mrb[8].mxu1 %v1765_v19 }
  0x37   : > { %1670 = vmatprep.mubr.bf16.mxu0 %v1766_v20  ;;  %1702 = vmatprep.mubr.bf16.mxu1 %v1767_v21 }
  0x3e   : > { %1671 = vmatmul.mubr.bf16.gmra.mrb[12].mxu0 %v1768_v22  ;;  %1703 = vmatmul.mubr.bf16.gmra.mrb[12].mxu1 %v1769_v23 }
  0x3f   : > { %1674 = vmatprep.mubr.bf16.mxu0 %v1770_v24  ;;  %1706 = vmatprep.mubr.bf16.mxu1 %v1771_v25 }
  0x46   : > { %1675 = vmatmul.mubr.bf16.gmra.mrb[16].mxu0 %v1772_v26  ;;  %1707 = vmatmul.mubr.bf16.gmra.mrb[16].mxu1 %v1773_v27 }
  0x47   : > { %1678 = vmatprep.mubr.bf16.mxu0 %v1774_v28  ;;  %1710 = vmatprep.mubr.bf16.mxu1 %v1775_v29 }
  0x4e   : > { %1679 = vmatmul.mubr.bf16.gmra.mrb[20].mxu0 %v1776_v30  ;;  %1711 = vmatmul.mubr.bf16.gmra.mrb[20].mxu1 %v1777_v31 }
  0x4f   : > { %1682 = vmatprep.mubr.bf16.mxu0 %v1778_v32  ;;  %1714 = vmatprep.mubr.bf16.mxu1 %v1779_v33 }
  0x56   : > { %1683 = vmatmul.mubr.bf16.gmra.mrb[24].mxu0 %v1780_v34  ;;  %1715 = vmatmul.mubr.bf16.gmra.mrb[24].mxu1 %v1781_v35 }
  0x57   : > { %1686 = vmatprep.mubr.bf16.mxu0 %v1782_v36  ;;  %1718 = vmatprep.mubr.bf16.mxu1 %v1783_v37 }
  0x5e   : > { %1687 = vmatmul.mubr.bf16.gmra.mrb[28].mxu0 %v1784_v38  ;;  %1719 = vmatmul.mubr.bf16.gmra.mrb[28].mxu1 %v1785_v39 }
  0xf9   : > { %v1660_v41 = vpop.f32.mrb[0].mxu0  ;;  %v1692_v42 = vpop.f32.mrb[0].mxu1 }
  0xfa   : > { %v545_v43 = vadd.f32 %v1660_v41, %v1891_v40  ;;  %v673_v44 = vadd.f32 %v1692_v42, %v1891_v40  ;;  %v536_v45 = vpop.f32.mrb[1].mxu0  ;;  %v664_v46 = vpop.f32.mrb[1].mxu1 }
  0xfb   : > { %v537_v47 = vadd.f32 %v1891_v40, %v536_v45  ;;  %v665_v48 = vadd.f32 %v1891_v40, %v664_v46  ;;  %v1661_v49 = vpop.f32.mrb[2].mxu0  ;;  %v1693_v50 = vpop.f32.mrb[2].mxu1 }
  0xfc   : > { %v548_v51 = vadd.f32 %v1661_v49, %v1891_v40  ;;  %v676_v52 = vadd.f32 %v1693_v50, %v1891_v40  ;;  %v539_v53 = vpop.f32.mrb[3].mxu0  ;;  %v667_v54 = vpop.f32.mrb[3].mxu1  ;;  %v793_v57 = vmax.f32 %v545_v43, 0.0  ;;  %v825_v58 = vmax.f32 %v673_v44, 0.0 }
  0xfd   : > { %v540_v55 = vadd.f32 %v1891_v40, %v539_v53  ;;  %v668_v56 = vadd.f32 %v1891_v40, %v667_v54  ;;  %v791_v61 = vmax.f32 %v537_v47, 0.0  ;;  %v823_v62 = vmax.f32 %v665_v48, 0.0 }
  0xfe   : > { %v794_v59 = vmax.f32 %v548_v51, 0.0  ;;  %v826_v60 = vmax.f32 %v676_v52, 0.0 }
  0xff   : > { %v792_v63 = vmax.f32 %v540_v55, 0.0  ;;  %v824_v0 = vmax.f32 %v668_v56, 0.0 }
 0x100   : > { %v1419_v1 = vpack.c.bf16 %v794_v59, %v793_v57  ;;  %v1499_v2 = vpack.c.bf16 %v826_v60, %v825_v58 }
 0x101   : > { %v1414_v3 = vpack.c.bf16 %v792_v63, %v791_v61  ;;  %v1494_v4 = vpack.c.bf16 %v824_v0, %v823_v62  ;;  %v1664_v5 = vpop.f32.mrb[4].mxu0  ;;  %v1696_v6 = vpop.f32.mrb[4].mxu1 }
 0x102   : > { %1571 = vst [vmem:[%s1906_s13 + $0x8] sm:$0xff] %v1419_v1   ;;  %1587 = vst [vmem:[%s1906_s13 + $0x88] sm:$0xff] %v1499_v2   ;;  %v561_v7 = vadd.f32 %v1664_v5, %v1891_v40  ;;  %v689_v8 = vadd.f32 %v1696_v6, %v1891_v40  ;;  %v552_v9 = vpop.f32.mrb[5].mxu0  ;;  %v680_v10 = vpop.f32.mrb[5].mxu1 }
 0x103   : > { %1415 = vst [vmem:[%s1906_s13] sm:$0xff] %v1414_v3   ;;  %1586 = vst [vmem:[%s1906_s13 + $0x80] sm:$0xff] %v1494_v4   ;;  %v553_v11 = vadd.f32 %v1891_v40, %v552_v9  ;;  %v681_v12 = vadd.f32 %v1891_v40, %v680_v10  ;;  %v1665_v13 = vpop.f32.mrb[6].mxu0  ;;  %v1697_v14 = vpop.f32.mrb[6].mxu1 }
 0x104   : > { %v564_v15 = vadd.f32 %v1665_v13, %v1891_v40  ;;  %v692_v16 = vadd.f32 %v1697_v14, %v1891_v40  ;;  %v555_v17 = vpop.f32.mrb[7].mxu0  ;;  %v683_v18 = vpop.f32.mrb[7].mxu1  ;;  %v797_v21 = vmax.f32 %v561_v7, 0.0  ;;  %v829_v22 = vmax.f32 %v689_v8, 0.0 }
 0x105   : > { %v556_v19 = vadd.f32 %v1891_v40, %v555_v17  ;;  %v684_v20 = vadd.f32 %v1891_v40, %v683_v18  ;;  %v795_v25 = vmax.f32 %v553_v11, 0.0  ;;  %v827_v26 = vmax.f32 %v681_v12, 0.0 }
 0x106   : > { %v798_v23 = vmax.f32 %v564_v15, 0.0  ;;  %v830_v24 = vmax.f32 %v692_v16, 0.0 }
 0x107   : > { %v796_v27 = vmax.f32 %v556_v19, 0.0  ;;  %v828_v28 = vmax.f32 %v684_v20, 0.0 }
 0x108   : > { %v1429_v29 = vpack.c.bf16 %v798_v23, %v797_v21  ;;  %v1509_v30 = vpack.c.bf16 %v830_v24, %v829_v22 }
 0x109   : > { %v1424_v31 = vpack.c.bf16 %v796_v27, %v795_v25  ;;  %v1504_v32 = vpack.c.bf16 %v828_v28, %v827_v26  ;;  %v1668_v33 = vpop.f32.mrb[8].mxu0  ;;  %v1700_v34 = vpop.f32.mrb[8].mxu1 }
 0x10a   : > { %1573 = vst [vmem:[%s1906_s13 + $0x18] sm:$0xff] %v1429_v29   ;;  %1589 = vst [vmem:[%s1906_s13 + $0x98] sm:$0xff] %v1509_v30   ;;  %v577_v35 = vadd.f32 %v1668_v33, %v1891_v40  ;;  %v705_v36 = vadd.f32 %v1700_v34, %v1891_v40  ;;  %v568_v37 = vpop.f32.mrb[9].mxu0  ;;  %v696_v38 = vpop.f32.mrb[9].mxu1 }
 0x10b   : > { %1572 = vst [vmem:[%s1906_s13 + $0x10] sm:$0xff] %v1424_v31   ;;  %1588 = vst [vmem:[%s1906_s13 + $0x90] sm:$0xff] %v1504_v32   ;;  %v569_v39 = vadd.f32 %v1891_v40, %v568_v37  ;;  %v697_v41 = vadd.f32 %v1891_v40, %v696_v38  ;;  %v1669_v42 = vpop.f32.mrb[10].mxu0  ;;  %v1701_v43 = vpop.f32.mrb[10].mxu1 }
 0x10c   : > { %v580_v44 = vadd.f32 %v1669_v42, %v1891_v40  ;;  %v708_v45 = vadd.f32 %v1701_v43, %v1891_v40  ;;  %v571_v46 = vpop.f32.mrb[11].mxu0  ;;  %v699_v47 = vpop.f32.mrb[11].mxu1  ;;  %v801_v50 = vmax.f32 %v577_v35, 0.0  ;;  %v833_v51 = vmax.f32 %v705_v36, 0.0 }
 0x10d   : > { %v572_v48 = vadd.f32 %v1891_v40, %v571_v46  ;;  %v700_v49 = vadd.f32 %v1891_v40, %v699_v47  ;;  %v799_v54 = vmax.f32 %v569_v39, 0.0  ;;  %v831_v55 = vmax.f32 %v697_v41, 0.0 }
 0x10e   : > { %v802_v52 = vmax.f32 %v580_v44, 0.0  ;;  %v834_v53 = vmax.f32 %v708_v45, 0.0 }
 0x10f   : > { %v800_v56 = vmax.f32 %v572_v48, 0.0  ;;  %v832_v57 = vmax.f32 %v700_v49, 0.0 }
 0x110   : > { %v1439_v58 = vpack.c.bf16 %v802_v52, %v801_v50  ;;  %v1519_v59 = vpack.c.bf16 %v834_v53, %v833_v51 }
 0x111   : > { %v1434_v60 = vpack.c.bf16 %v800_v56, %v799_v54  ;;  %v1514_v61 = vpack.c.bf16 %v832_v57, %v831_v55  ;;  %v1672_v62 = vpop.f32.mrb[12].mxu0  ;;  %v1704_v63 = vpop.f32.mrb[12].mxu1 }
 0x112   : > { %1575 = vst [vmem:[%s1906_s13 + $0x28] sm:$0xff] %v1439_v58   ;;  %1591 = vst [vmem:[%s1906_s13 + $0xa8] sm:$0xff] %v1519_v59   ;;  %v593_v0 = vadd.f32 %v1672_v62, %v1891_v40  ;;  %v721_v1 = vadd.f32 %v1704_v63, %v1891_v40  ;;  %v584_v2 = vpop.f32.mrb[13].mxu0  ;;  %v712_v3 = vpop.f32.mrb[13].mxu1 }
 0x113   : > { %1574 = vst [vmem:[%s1906_s13 + $0x20] sm:$0xff] %v1434_v60   ;;  %1590 = vst [vmem:[%s1906_s13 + $0xa0] sm:$0xff] %v1514_v61   ;;  %v585_v4 = vadd.f32 %v1891_v40, %v584_v2  ;;  %v713_v5 = vadd.f32 %v1891_v40, %v712_v3  ;;  %v1673_v6 = vpop.f32.mrb[14].mxu0  ;;  %v1705_v7 = vpop.f32.mrb[14].mxu1 }
 0x114   : > { %v596_v8 = vadd.f32 %v1673_v6, %v1891_v40  ;;  %v724_v9 = vadd.f32 %v1705_v7, %v1891_v40  ;;  %v587_v10 = vpop.f32.mrb[15].mxu0  ;;  %v715_v11 = vpop.f32.mrb[15].mxu1  ;;  %v805_v14 = vmax.f32 %v593_v0, 0.0  ;;  %v837_v15 = vmax.f32 %v721_v1, 0.0 }
 0x115   : > { %v588_v12 = vadd.f32 %v1891_v40, %v587_v10  ;;  %v716_v13 = vadd.f32 %v1891_v40, %v715_v11  ;;  %v803_v18 = vmax.f32 %v585_v4, 0.0  ;;  %v835_v19 = vmax.f32 %v713_v5, 0.0 }
 0x116   : > { %v806_v16 = vmax.f32 %v596_v8, 0.0  ;;  %v838_v17 = vmax.f32 %v724_v9, 0.0 }
 0x117   : > { %v804_v20 = vmax.f32 %v588_v12, 0.0  ;;  %v836_v21 = vmax.f32 %v716_v13, 0.0 }
 0x118   : > { %v1449_v22 = vpack.c.bf16 %v806_v16, %v805_v14  ;;  %v1529_v23 = vpack.c.bf16 %v838_v17, %v837_v15 }
 0x119   : > { %v1444_v24 = vpack.c.bf16 %v804_v20, %v803_v18  ;;  %v1524_v25 = vpack.c.bf16 %v836_v21, %v835_v19  ;;  %v1676_v26 = vpop.f32.mrb[16].mxu0  ;;  %v1708_v27 = vpop.f32.mrb[16].mxu1 }
 0x11a   : > { %1577 = vst [vmem:[%s1906_s13 + $0x38] sm:$0xff] %v1449_v22   ;;  %1593 = vst [vmem:[%s1906_s13 + $0xb8] sm:$0xff] %v1529_v23   ;;  %v609_v28 = vadd.f32 %v1676_v26, %v1891_v40  ;;  %v737_v29 = vadd.f32 %v1708_v27, %v1891_v40  ;;  %v600_v30 = vpop.f32.mrb[17].mxu0  ;;  %v728_v31 = vpop.f32.mrb[17].mxu1 }
 0x11b   : > { %1576 = vst [vmem:[%s1906_s13 + $0x30] sm:$0xff] %v1444_v24   ;;  %1592 = vst [vmem:[%s1906_s13 + $0xb0] sm:$0xff] %v1524_v25   ;;  %v601_v32 = vadd.f32 %v1891_v40, %v600_v30  ;;  %v729_v33 = vadd.f32 %v1891_v40, %v728_v31  ;;  %v1677_v34 = vpop.f32.mrb[18].mxu0  ;;  %v1709_v35 = vpop.f32.mrb[18].mxu1 }
 0x11c   : > { %v612_v36 = vadd.f32 %v1677_v34, %v1891_v40  ;;  %v740_v37 = vadd.f32 %v1709_v35, %v1891_v40  ;;  %v603_v38 = vpop.f32.mrb[19].mxu0  ;;  %v731_v39 = vpop.f32.mrb[19].mxu1  ;;  %v809_v43 = vmax.f32 %v609_v28, 0.0  ;;  %v841_v44 = vmax.f32 %v737_v29, 0.0 }
 0x11d   : > { %v604_v41 = vadd.f32 %v1891_v40, %v603_v38  ;;  %v732_v42 = vadd.f32 %v1891_v40, %v731_v39  ;;  %v807_v47 = vmax.f32 %v601_v32, 0.0  ;;  %v839_v48 = vmax.f32 %v729_v33, 0.0 }
 0x11e   : > { %v810_v45 = vmax.f32 %v612_v36, 0.0  ;;  %v842_v46 = vmax.f32 %v740_v37, 0.0 }
 0x11f   : > { %v808_v49 = vmax.f32 %v604_v41, 0.0  ;;  %v840_v50 = vmax.f32 %v732_v42, 0.0 }
 0x120   : > { %v1459_v51 = vpack.c.bf16 %v810_v45, %v809_v43  ;;  %v1539_v52 = vpack.c.bf16 %v842_v46, %v841_v44 }
 0x121   : > { %v1454_v53 = vpack.c.bf16 %v808_v49, %v807_v47  ;;  %v1534_v54 = vpack.c.bf16 %v840_v50, %v839_v48  ;;  %v1680_v55 = vpop.f32.mrb[20].mxu0  ;;  %v1712_v56 = vpop.f32.mrb[20].mxu1 }
 0x122   : > { %1579 = vst [vmem:[%s1906_s13 + $0x48] sm:$0xff] %v1459_v51   ;;  %1595 = vst [vmem:[%s1906_s13 + $0xc8] sm:$0xff] %v1539_v52   ;;  %v625_v57 = vadd.f32 %v1680_v55, %v1891_v40  ;;  %v753_v58 = vadd.f32 %v1712_v56, %v1891_v40  ;;  %v616_v59 = vpop.f32.mrb[21].mxu0  ;;  %v744_v60 = vpop.f32.mrb[21].mxu1 }
 0x123   : > { %1578 = vst [vmem:[%s1906_s13 + $0x40] sm:$0xff] %v1454_v53   ;;  %1594 = vst [vmem:[%s1906_s13 + $0xc0] sm:$0xff] %v1534_v54   ;;  %v617_v61 = vadd.f32 %v1891_v40, %v616_v59  ;;  %v745_v62 = vadd.f32 %v1891_v40, %v744_v60  ;;  %v1681_v63 = vpop.f32.mrb[22].mxu0  ;;  %v1713_v0 = vpop.f32.mrb[22].mxu1 }
 0x124   : > { %v628_v1 = vadd.f32 %v1681_v63, %v1891_v40  ;;  %v756_v2 = vadd.f32 %v1713_v0, %v1891_v40  ;;  %v619_v3 = vpop.f32.mrb[23].mxu0  ;;  %v747_v4 = vpop.f32.mrb[23].mxu1  ;;  %v813_v7 = vmax.f32 %v625_v57, 0.0  ;;  %v845_v8 = vmax.f32 %v753_v58, 0.0 }
 0x125   : > { %v620_v5 = vadd.f32 %v1891_v40, %v619_v3  ;;  %v748_v6 = vadd.f32 %v1891_v40, %v747_v4  ;;  %v811_v11 = vmax.f32 %v617_v61, 0.0  ;;  %v843_v12 = vmax.f32 %v745_v62, 0.0 }
 0x126   : > { %v814_v9 = vmax.f32 %v628_v1, 0.0  ;;  %v846_v10 = vmax.f32 %v756_v2, 0.0 }
 0x127   : > { %v812_v13 = vmax.f32 %v620_v5, 0.0  ;;  %v844_v14 = vmax.f32 %v748_v6, 0.0 }
 0x128   : > { %v1469_v15 = vpack.c.bf16 %v814_v9, %v813_v7  ;;  %v1549_v16 = vpack.c.bf16 %v846_v10, %v845_v8 }
 0x129   : > { %v1464_v17 = vpack.c.bf16 %v812_v13, %v811_v11  ;;  %v1544_v18 = vpack.c.bf16 %v844_v14, %v843_v12  ;;  %v1684_v19 = vpop.f32.mrb[24].mxu0  ;;  %v1716_v20 = vpop.f32.mrb[24].mxu1 }
 0x12a   : > { %1581 = vst [vmem:[%s1906_s13 + $0x58] sm:$0xff] %v1469_v15   ;;  %1597 = vst [vmem:[%s1906_s13 + $0xd8] sm:$0xff] %v1549_v16   ;;  %v641_v21 = vadd.f32 %v1684_v19, %v1891_v40  ;;  %v769_v22 = vadd.f32 %v1716_v20, %v1891_v40  ;;  %v632_v23 = vpop.f32.mrb[25].mxu0  ;;  %v760_v24 = vpop.f32.mrb[25].mxu1 }
 0x12b   : > { %1580 = vst [vmem:[%s1906_s13 + $0x50] sm:$0xff] %v1464_v17   ;;  %1596 = vst [vmem:[%s1906_s13 + $0xd0] sm:$0xff] %v1544_v18   ;;  %v633_v25 = vadd.f32 %v1891_v40, %v632_v23  ;;  %v761_v26 = vadd.f32 %v1891_v40, %v760_v24  ;;  %v1685_v27 = vpop.f32.mrb[26].mxu0  ;;  %v1717_v28 = vpop.f32.mrb[26].mxu1 }
 0x12c   : > { %v644_v29 = vadd.f32 %v1685_v27, %v1891_v40  ;;  %v772_v30 = vadd.f32 %v1717_v28, %v1891_v40  ;;  %v635_v31 = vpop.f32.mrb[27].mxu0  ;;  %v763_v32 = vpop.f32.mrb[27].mxu1  ;;  %v817_v35 = vmax.f32 %v641_v21, 0.0  ;;  %v849_v36 = vmax.f32 %v769_v22, 0.0 }
 0x12d   : > { %v636_v33 = vadd.f32 %v1891_v40, %v635_v31  ;;  %v764_v34 = vadd.f32 %v1891_v40, %v763_v32  ;;  %v815_v39 = vmax.f32 %v633_v25, 0.0  ;;  %v847_v41 = vmax.f32 %v761_v26, 0.0 }
 0x12e   : > { %v818_v37 = vmax.f32 %v644_v29, 0.0  ;;  %v850_v38 = vmax.f32 %v772_v30, 0.0 }
 0x12f   : > { %v816_v42 = vmax.f32 %v636_v33, 0.0  ;;  %v848_v43 = vmax.f32 %v764_v34, 0.0 }
 0x130   : > { %v1479_v44 = vpack.c.bf16 %v818_v37, %v817_v35  ;;  %v1559_v45 = vpack.c.bf16 %v850_v38, %v849_v36 }
 0x131   : > { %v1474_v46 = vpack.c.bf16 %v816_v42, %v815_v39  ;;  %v1554_v47 = vpack.c.bf16 %v848_v43, %v847_v41  ;;  %v1688_v48 = vpop.f32.mrb[28].mxu0  ;;  %v1720_v49 = vpop.f32.mrb[28].mxu1 }
 0x132   : > { %1583 = vst [vmem:[%s1906_s13 + $0x68] sm:$0xff] %v1479_v44   ;;  %1599 = vst [vmem:[%s1906_s13 + $0xe8] sm:$0xff] %v1559_v45   ;;  %v657_v50 = vadd.f32 %v1688_v48, %v1891_v40  ;;  %v785_v51 = vadd.f32 %v1720_v49, %v1891_v40  ;;  %v648_v52 = vpop.f32.mrb[29].mxu0  ;;  %v776_v53 = vpop.f32.mrb[29].mxu1 }
 0x133   : > { %1582 = vst [vmem:[%s1906_s13 + $0x60] sm:$0xff] %v1474_v46   ;;  %1598 = vst [vmem:[%s1906_s13 + $0xe0] sm:$0xff] %v1554_v47   ;;  %v649_v54 = vadd.f32 %v1891_v40, %v648_v52  ;;  %v777_v55 = vadd.f32 %v1891_v40, %v776_v53  ;;  %v1689_v56 = vpop.f32.mrb[30].mxu0  ;;  %v1721_v57 = vpop.f32.mrb[30].mxu1 }
 0x134   : > { %v660_v58 = vadd.f32 %v1689_v56, %v1891_v40  ;;  %v788_v59 = vadd.f32 %v1721_v57, %v1891_v40  ;;  %v651_v60 = vpop.f32.mrb[31].mxu0  ;;  %v779_v61 = vpop.f32.mrb[31].mxu1  ;;  %v821_v0 = vmax.f32 %v657_v50, 0.0  ;;  %v853_v1 = vmax.f32 %v785_v51, 0.0 }
 0x135   : > { %v652_v62 = vadd.f32 %v1891_v40, %v651_v60  ;;  %v780_v63 = vadd.f32 %v1891_v40, %v779_v61  ;;  %v819_v4 = vmax.f32 %v649_v54, 0.0  ;;  %v851_v5 = vmax.f32 %v777_v55, 0.0 }
 0x136   : > { %v822_v2 = vmax.f32 %v660_v58, 0.0  ;;  %v854_v3 = vmax.f32 %v788_v59, 0.0 }
 0x137   : > { %v820_v6 = vmax.f32 %v652_v62, 0.0  ;;  %v852_v7 = vmax.f32 %v780_v63, 0.0 }
 0x138   : > { %v1489_v8 = vpack.c.bf16 %v822_v2, %v821_v0  ;;  %v1569_v9 = vpack.c.bf16 %v854_v3, %v853_v1 }
 0x139   : > { %v1484_v10 = vpack.c.bf16 %v820_v6, %v819_v4  ;;  %v1564_v11 = vpack.c.bf16 %v852_v7, %v851_v5 }
 0x13a   : > { %1585 = vst [vmem:[%s1906_s13 + $0x78] sm:$0xff] %v1489_v8   ;;  %1601 = vst [vmem:[%s1906_s13 + $0xf8] sm:$0xff] %v1569_v9  }
 0x13b   : > { %1584 = vst [vmem:[%s1906_s13 + $0x70] sm:$0xff] %v1484_v10   ;;  %1600 = vst [vmem:[%s1906_s13 + $0xf0] sm:$0xff] %v1564_v11  }
 0x13c PF: > { %s13_s12 = sadd.s32 1, %s1792_s12  }
 0x13d   : > { %p10_p4 = scmp.ge.s32.totalorder %s13_s12, 4  }
 0x13f   :  { %12 = sbr.rel (!%p10_p4) target bundleno = 1 (0x1), region = 62 }

// kernel: dense_correspondence_forward.7
= control target key start
LH: loop header
LB: loop body
LE: loop exit
PB: predicated region body
PF: predicated region fallthrough
CT: control target
= control target key end

     0   :  { %s2614_s12 = smov 0   ;;  %s3036_s0 = inlined_call_operand.vmem [shape: bf16[256,1152], index: 0, kind: input, shape index: {}]   ;;  %s3037_s1 = inlined_call_operand.vmem [shape: bf16[1152,128], index: 1, kind: input, shape index: {}]   ;;  %s3038_s2 = inlined_call_operand.vmem [shape: f32[1,128], index: 2, kind: input, shape index: {}]   ;;  %s3039_s3 = inlined_call_operand.vmem [shape: bf16[256,128], index: 3, kind: output, shape index: {}]  }
   0x1 LB: > { %s1846_s13 = sadd.s32 4294967295, %s2592_s12   ;;  %p1850_p0 = scmp.ge.s32.totalorder %s2592_s12, 1  ;;  %s2592_s12 = sphi %s2614_s12, %s13_s12  }
   0x2   : > { %p139_p1 = scmp.lt.s32.totalorder %s2592_s12, 3 }
   0x4   : > { %p140_p2 = pnand %p1850_p0, %p139_p1 }
   0x5   : > { %v2410_v0 = vld [vmem:[%s3037_s1 + $0x40] sm:$0xff] (!%p140_p2)   ;;  %v2414_v4 = vld [vmem:[%s3037_s1 + $0x48] sm:$0xff] (!%p140_p2)   ;;  %v2418_v8 = vld [vmem:[%s3037_s1 + $0x50] sm:$0xff] (!%p140_p2)   ;;  %s1851_s19 = sshll.u32 (!%p140_p2), %s1846_s13, 4 }
   0x6   : > { %143 = sbr.rel (%p140_p2) target bundleno = 398 (0x18e), region = 32  ;;  %v2411_v1 = vld [vmem:[%s3037_s1 + $0xc0] sm:$0xff] (!%p140_p2)   ;;  %2081 = vmatprep.subr.bf16.mxu0 (!%p140_p2), %v2410_v0  ;;  %v2415_v5 = vld [vmem:[%s3037_s1 + $0xc8] sm:$0xff] (!%p140_p2)   ;;  %v2419_v9 = vld [vmem:[%s3037_s1 + $0xd0] sm:$0xff] (!%p140_p2)   ;;  %p165_p3 = scmp.lt.s32.totalorder (!%p140_p2), %s1851_s19, 31 }
   0x7   : > { %v2412_v2 = vld [vmem:[%s3037_s1] sm:$0xff] (!%p140_p2)   ;;  %2145 = vmatprep.subr.bf16.mxu1 (!%p140_p2), %v2411_v1  ;;  %v2416_v6 = vld [vmem:[%s3037_s1 + $0x8] sm:$0xff] (!%p140_p2)   ;;  %v2420_v10 = vld [vmem:[%s3037_s1 + $0x10] sm:$0xff] (!%p140_p2)  }
   0x8   : > { %v2413_v3 = vld [vmem:[%s3037_s1 + $0x80] sm:$0xff] (!%p140_p2)   ;;  %2082 = vmatpush3.bf16.msra.mxu0 (!%p140_p2), %v2412_v2  ;;  %v2417_v7 = vld [vmem:[%s3037_s1 + $0x88] sm:$0xff] (!%p140_p2)   ;;  %v2421_v11 = vld [vmem:[%s3037_s1 + $0x90] sm:$0xff] (!%p140_p2)  }
   0x9   : > { %2146 = vmatpush3.bf16.msra.mxu1 (!%p140_p2), %v2413_v3  ;;  %2083 = vmatprep.subr.bf16.mxu0 (!%p140_p2), %v2414_v4  ;;  %v2422_v12 = vld [vmem:[%s3037_s1 + $0x58] sm:$0xff] (!%p140_p2)   ;;  %v2426_v16 = vld [vmem:[%s3037_s1 + $0x60] sm:$0xff] (!%p140_p2)   ;;  %v2430_v20 = vld [vmem:[%s3037_s1 + $0x68] sm:$0xff] (!%p140_p2)  }
   0xa   : > { %2147 = vmatprep.subr.bf16.mxu1 (!%p140_p2), %v2415_v5  ;;  %v2423_v13 = vld [vmem:[%s3037_s1 + $0xd8] sm:$0xff] (!%p140_p2)   ;;  %v2427_v17 = vld [vmem:[%s3037_s1 + $0xe0] sm:$0xff] (!%p140_p2)   ;;  %v2431_v21 = vld [vmem:[%s3037_s1 + $0xe8] sm:$0xff] (!%p140_p2)  }
   0xb   : > { %v2424_v14 = vld [vmem:[%s3037_s1 + $0x18] sm:$0xff] (!%p140_p2)   ;;  %v2428_v18 = vld [vmem:[%s3037_s1 + $0x20] sm:$0xff] (!%p140_p2)   ;;  %v2432_v22 = vld [vmem:[%s3037_s1 + $0x28] sm:$0xff] (!%p140_p2)  }
   0xc   : > { %2084 = vmatpush3.bf16.msra.mxu0 (!%p140_p2), %v2416_v6  ;;  %v2425_v15 = vld [vmem:[%s3037_s1 + $0x98] sm:$0xff] (!%p140_p2)   ;;  %v2429_v19 = vld [vmem:[%s3037_s1 + $0xa0] sm:$0xff] (!%p140_p2)   ;;  %v2433_v23 = vld [vmem:[%s3037_s1 + $0xa8] sm:$0xff] (!%p140_p2)  }
   0xd   : > { %2148 = vmatpush3.bf16.msra.mxu1 %v2417_v7  ;;  %2085 = vmatprep.subr.bf16.mxu0 %v2418_v8  ;;  %s3041_s19 = smov (!%p165_p3, %s1851_s19), 31  ;;  %v2434_v24 = vld [vmem:[%s3037_s1 + $0x70] sm:$0xff]   ;;  %v2438_v28 = vld [vmem:[%s3037_s1 + $0x78] sm:$0xff]   ;;  %v2448_v36 = vld [vmem:[%s3037_s1 + $0x140] sm:$0xff]  }
   0xe   : > { %2149 = vmatprep.subr.bf16.mxu1 %v2419_v9  ;;  %v2435_v25 = vld [vmem:[%s3037_s1 + $0xf0] sm:$0xff]   ;;  %s2401_s16 = smul.u32 36, %s3041_s19  ;;  %v2439_v29 = vld [vmem:[%s3037_s1 + $0xf8] sm:$0xff]   ;;  %v2449_v37 = vld [vmem:[%s3037_s1 + $0x1c0] sm:$0xff]  }
   0xf   : > { %v2436_v26 = vld [vmem:[%s3037_s1 + $0x30] sm:$0xff]   ;;  %v2440_v30 = vld [vmem:[%s3037_s1 + $0x38] sm:$0xff]   ;;  %v2450_v38 = vld [vmem:[%s3037_s1 + $0x100] sm:$0xff]  }
  0x10   : > { %2086 = vmatpush3.bf16.msra.mxu0 %v2420_v10  ;;  %v2437_v27 = vld [vmem:[%s3037_s1 + $0xb0] sm:$0xff]   ;;  %s2720_s13 = scalar_lea.vmem %s3036_s0, %s2401_s16  ;;  %v2441_v31 = vld [vmem:[%s3037_s1 + $0xb8] sm:$0xff]   ;;  %v2451_v39 = vld [vmem:[%s3037_s1 + $0x180] sm:$0xff]  }
  0x11   : > { %2150 = vmatpush3.bf16.msra.mxu1 %v2421_v11  ;;  %2087 = vmatprep.subr.bf16.mxu0 %v2422_v12  ;;  %v2442_v32 = vld [vmem:[%s2720_s13] ss:$36 sps:$4 sm:$0xff]   ;;  %v2445_v34 = vld [vmem:[%s2720_s13 + $0x8] ss:$36 sps:$4 sm:$0xff]   ;;  %v2454_v41 = vld [vmem:[%s2720_s13 + $0x54] ss:$36 sps:$4 sm:$0xff]  }
  0x12   : > { %2151 = vmatprep.subr.bf16.mxu1 %v2423_v13  ;;  %v2444_v33 = vld [vmem:[%s2720_s13 + $0x4] ss:$36 sps:$4 sm:$0xff]   ;;  %v2447_v35 = vld [vmem:[%s2720_s13 + $0xc] ss:$36 sps:$4 sm:$0xff]   ;;  %v2462_v48 = vld [vmem:[%s2720_s13 + $0x94] ss:$36 sps:$4 sm:$0xff]  }
  0x13   : > { %1241 = vmatprep.mubr.bf16.mxu0 %v2444_v33  ;;  %1338 = vmatprep.mubr.bf16.mxu1 %v2447_v35  ;;  %v2452_v40 = vld [vmem:[%s2720_s13 + $0x4c] ss:$36 sps:$4 sm:$0xff]   ;;  %v2464_v49 = vld [vmem:[%s2720_s13 + $0x9c] ss:$36 sps:$4 sm:$0xff]   ;;  %v2474_v57 = vld [vmem:[%s2720_s13 + $0xe4] ss:$36 sps:$4 sm:$0xff]  }
  0x14   : > { %2088 = vmatpush3.bf16.msra.mxu0 %v2424_v14  ;;  %v2456_v42 = vld [vmem:[%s2720_s13 + $0x48] ss:$36 sps:$4 sm:$0xff]   ;;  %v2457_v43 = vld [vmem:[%s2720_s13 + $0x50] ss:$36 sps:$4 sm:$0xff]   ;;  %v2467_v51 = vld [vmem:[%s2720_s13 + $0x98] ss:$36 sps:$4 sm:$0xff]  }
  0x15   : > { %2152 = vmatpush3.bf16.msra.mxu1 %v2425_v15  ;;  %2089 = vmatprep.subr.bf16.mxu0 %v2426_v16  ;;  %v2458_v44 = vld [vmem:[%s3037_s1 + $0x148] sm:$0xff]   ;;  %v2466_v50 = vld [vmem:[%s2720_s13 + $0x90] ss:$36 sps:$4 sm:$0xff]   ;;  %v2472_v56 = vld [vmem:[%s2720_s13 + $0xdc] ss:$36 sps:$4 sm:$0xff]  }
  0x16   : > { %2153 = vmatprep.subr.bf16.mxu1 %v2427_v17  ;;  %v2459_v45 = vld [vmem:[%s3037_s1 + $0x1c8] sm:$0xff]   ;;  %v2468_v52 = vld [vmem:[%s3037_s1 + $0x150] sm:$0xff]   ;;  %v2476_v58 = vld [vmem:[%s2720_s13 + $0xd8] ss:$36 sps:$4 sm:$0xff]  }
  0x17   : > { %v2460_v46 = vld [vmem:[%s3037_s1 + $0x108] sm:$0xff]   ;;  %v2469_v53 = vld [vmem:[%s3037_s1 + $0x1d0] sm:$0xff]   ;;  %v2477_v59 = vld [vmem:[%s2720_s13 + $0xe0] ss:$36 sps:$4 sm:$0xff]  }
  0x18   : > { %2090 = vmatpush3.bf16.msra.mxu0 %v2428_v18  ;;  %v2461_v47 = vld [vmem:[%s3037_s1 + $0x188] sm:$0xff]   ;;  %v2470_v54 = vld [vmem:[%s3037_s1 + $0x110] sm:$0xff]   ;;  %v2478_v60 = vld [vmem:[%s3037_s1 + $0x158] sm:$0xff]  }
  0x19   : > { %2154 = vmatpush3.bf16.msra.mxu1 %v2429_v19  ;;  %2091 = vmatprep.subr.bf16.mxu0 %v2430_v20  ;;  %v2471_v55 = vld [vmem:[%s3037_s1 + $0x190] sm:$0xff]   ;;  %v2479_v61 = vld [vmem:[%s3037_s1 + $0x1d8] sm:$0xff]   ;;  %v2482_v0 = vld [vmem:[%s2720_s13 + $0x124] ss:$36 sps:$4 sm:$0xff]  }
  0x1a   : > { %2155 = vmatprep.subr.bf16.mxu1 %v2431_v21  ;;  %v2480_v62 = vld [vmem:[%s3037_s1 + $0x118] sm:$0xff]   ;;  %v2484_v1 = vld [vmem:[%s2720_s13 + $0x12c] ss:$36 sps:$4 sm:$0xff]   ;;  %v2486_v2 = vld [vmem:[%s2720_s13 + $0x120] ss:$36 sps:$4 sm:$0xff]  }
  0x1b   : > { %v2481_v63 = vld [vmem:[%s3037_s1 + $0x198] sm:$0xff]   ;;  %v2488_v3 = vld [vmem:[%s3037_s1 + $0x160] sm:$0xff]   ;;  %v2487_v4 = vld [vmem:[%s2720_s13 + $0x128] ss:$36 sps:$4 sm:$0xff]  }
  0x1c   : > { %2092 = vmatpush3.bf16.msra.mxu0 %v2432_v22  ;;  %v2489_v5 = vld [vmem:[%s3037_s1 + $0x1e0] sm:$0xff]   ;;  %v2492_v8 = vld [vmem:[%s2720_s13 + $0x16c] ss:$36 sps:$4 sm:$0xff]   ;;  %v2494_v9 = vld [vmem:[%s2720_s13 + $0x174] ss:$36 sps:$4 sm:$0xff]  }
  0x1d   : > { %2156 = vmatpush3.bf16.msra.mxu1 %v2433_v23  ;;  %2093 = vmatprep.subr.bf16.mxu0 %v2434_v24  ;;  %v2490_v6 = vld [vmem:[%s3037_s1 + $0x120] sm:$0xff]   ;;  %v2498_v10 = vld [vmem:[%s3037_s1 + $0x168] sm:$0xff]   ;;  %v2497_v15 = vld [vmem:[%s2720_s13 + $0x170] ss:$36 sps:$4 sm:$0xff]  }
  0x1e   : > { %2157 = vmatprep.subr.bf16.mxu1 %v2435_v25  ;;  %v2491_v7 = vld [vmem:[%s3037_s1 + $0x1a0] sm:$0xff]   ;;  %v2499_v11 = vld [vmem:[%s3037_s1 + $0x1e8] sm:$0xff]   ;;  %v2502_v16 = vld [vmem:[%s2720_s13 + $0x1b4] ss:$36 sps:$4 sm:$0xff]  }
  0x1f   : > { %v2496_v12 = vld [vmem:[%s2720_s13 + $0x168] ss:$36 sps:$4 sm:$0xff]   ;;  %v2504_v17 = vld [vmem:[%s2720_s13 + $0x1bc] ss:$36 sps:$4 sm:$0xff]   ;;  %v2508_v18 = vld [vmem:[%s3037_s1 + $0x170] sm:$0xff]  }
  0x20   : > { %2094 = vmatpush3.bf16.msra.mxu0 %v2436_v26  ;;  %v2500_v13 = vld [vmem:[%s3037_s1 + $0x128] sm:$0xff]   ;;  %v2509_v19 = vld [vmem:[%s3037_s1 + $0x1f0] sm:$0xff]   ;;  %v2507_v23 = vld [vmem:[%s2720_s13 + $0x1b8] ss:$36 sps:$4 sm:$0xff]  }
  0x21   : > { %2158 = vmatpush3.bf16.msra.mxu1 %v2437_v27  ;;  %2095 = vmatprep.subr.bf16.mxu0 %v2438_v28  ;;  %v2501_v14 = vld [vmem:[%s3037_s1 + $0x1a8] sm:$0xff]   ;;  %v2510_v20 = vld [vmem:[%s3037_s1 + $0x130] sm:$0xff]   ;;  %v2512_v24 = vld [vmem:[%s2720_s13 + $0x1fc] ss:$36 sps:$4 sm:$0xff]  }
  0x22   : > { %2159 = vmatprep.subr.bf16.mxu1 %v2439_v29  ;;  %v2511_v21 = vld [vmem:[%s3037_s1 + $0x1b0] sm:$0xff]   ;;  %v2514_v25 = vld [vmem:[%s2720_s13 + $0x204] ss:$36 sps:$4 sm:$0xff]   ;;  %v2518_v26 = vld [vmem:[%s3037_s1 + $0x178] sm:$0xff]  }
  0x23   : > { %v2506_v22 = vld [vmem:[%s2720_s13 + $0x1b0] ss:$36 sps:$4 sm:$0xff]   ;;  %v2519_v27 = vld [vmem:[%s3037_s1 + $0x1f8] sm:$0xff]  }
  0x24   : > { %2096 = vmatpush3.bf16.msra.mxu0 %v2440_v30  ;;  %v2520_v28 = vld [vmem:[%s3037_s1 + $0x138] sm:$0xff]   ;;  %v2522_v35 = vld [vmem:[%s2720_s13 + $0x10] ss:$36 sps:$4 sm:$0xff]  }
  0x25   : > { %2160 = vmatpush3.bf16.msra.mxu1 %v2441_v31  ;;  %2209 = vmatprep.subr.bf16.mxu0 %v2448_v36  ;;  %v2521_v29 = vld [vmem:[%s3037_s1 + $0x1b8] sm:$0xff]   ;;  %v2517_v31 = vld [vmem:[%s2720_s13 + $0x200] ss:$36 sps:$4 sm:$0xff]  }
  0x26   : > { %2273 = vmatprep.subr.bf16.mxu1 %v2449_v37  ;;  %v2516_v30 = vld [vmem:[%s2720_s13 + $0x1f8] ss:$36 sps:$4 sm:$0xff]  }
  0x27   : > { %1242 = vmatmul.mubr.bf16.vlgmr.msra.gmra.mrb[0].mxu0 %v2442_v32  ;;  %v2528_v32 = vld [vmem:[%s3037_s1 + $0x200] sm:$0xff]   ;;  %v2524_v33 = vld [vmem:[%s2720_s13 + $0x14] ss:$36 sps:$4 sm:$0xff]  }
  0x28   : > { %1339 = vmatmul.mubr.bf16.vlgmr.msra.gmra.mrb[0].mxu1 %v2445_v34  ;;  %2210 = vmatpush3.bf16.msra.mxu0 %v2450_v38  ;;  %v2527_v34 = vld [vmem:[%s2720_s13 + $0x1c] ss:$36 sps:$4 sm:$0xff]   ;;  %v2531_v38 = vld [vmem:[%s2720_s13 + $0x64] ss:$36 sps:$4 sm:$0xff]  }
  0x29   : > { %2274 = vmatpush3.bf16.msra.mxu1 %v2451_v39  ;;  %1249 = vmatprep.mubr.bf16.mxu0 %v2452_v40  ;;  %v2525_v36 = vld [vmem:[%s2720_s13 + $0x18] ss:$36 sps:$4 sm:$0xff]   ;;  %v2535_v39 = vld [vmem:[%s3037_s1 + $0x208] sm:$0xff]   ;;  %v2542_v40 = vld [vmem:[%s3037_s1 + $0x210] sm:$0xff]  }
  0x2a   : > { %1346 = vmatprep.mubr.bf16.mxu1 %v2454_v41  ;;  %2211 = vmatprep.subr.bf16.mxu0 %v2458_v44  ;;  %v2529_v37 = vld [vmem:[%s2720_s13 + $0x5c] ss:$36 sps:$4 sm:$0xff]   ;;  %v2538_v44 = vld [vmem:[%s2720_s13 + $0xac] ss:$36 sps:$4 sm:$0xff]  }
  0x2b   : > { %2275 = vmatprep.subr.bf16.mxu1 %v2459_v45  ;;  %v2533_v41 = vld [vmem:[%s2720_s13 + $0x58] ss:$36 sps:$4 sm:$0xff]  }
  0x2c   : > { %2212 = vmatpush3.bf16.msra.mxu0 %v2460_v46  ;;  %v2549_v45 = vld [vmem:[%s3037_s1 + $0x218] sm:$0xff]   ;;  %v2556_v46 = vld [vmem:[%s3037_s1 + $0x220] sm:$0xff]  }
  0x2d   : > { %2276 = vmatpush3.bf16.msra.mxu1 %v2461_v47  ;;  %2213 = vmatprep.subr.bf16.mxu0 %v2468_v52  ;;  %v2540_v47 = vld [vmem:[%s2720_s13 + $0xa0] ss:$36 sps:$4 sm:$0xff]   ;;  %v2547_v52 = vld [vmem:[%s2720_s13 + $0xe8] ss:$36 sps:$4 sm:$0xff]  }
  0x2e   : > { %2277 = vmatprep.subr.bf16.mxu1 %v2469_v53  ;;  %v2570_v53 = vld [vmem:[%s3037_s1 + $0x230] sm:$0xff]  }
  0x2f   : > { %1250 = vmatmul.mubr.bf16.gmra.mrb[4].mxu0 %v2456_v42  ;;  %v2534_v42 = vld [vmem:[%s2720_s13 + $0x60] ss:$36 sps:$4 sm:$0xff]  }
  0x30   : > { %1347 = vmatmul.mubr.bf16.gmra.mrb[4].mxu1 %v2457_v43  ;;  %1257 = vmatprep.mubr.bf16.mxu0 %v2462_v48  ;;  %v2536_v43 = vld [vmem:[%s2720_s13 + $0xa4] ss:$36 sps:$4 sm:$0xff]  }
  0x31   : > { %1354 = vmatprep.mubr.bf16.mxu1 %v2464_v49  ;;  %2214 = vmatpush3.bf16.msra.mxu0 %v2470_v54  ;;  %v2541_v48 = vld [vmem:[%s2720_s13 + $0xa8] ss:$36 sps:$4 sm:$0xff]   ;;  %v2548_v54 = vld [vmem:[%s2720_s13 + $0xf0] ss:$36 sps:$4 sm:$0xff]  }
  0x32   : > { %2278 = vmatpush3.bf16.msra.mxu1 %v2471_v55  ;;  %2215 = vmatprep.subr.bf16.mxu0 %v2478_v60  ;;  %v2543_v49 = vld [vmem:[%s2720_s13 + $0xec] ss:$36 sps:$4 sm:$0xff]   ;;  %v2550_v55 = vld [vmem:[%s2720_s13 + $0x134] ss:$36 sps:$4 sm:$0xff]   ;;  %v2557_v60 = vld [vmem:[%s2720_s13 + $0x17c] ss:$36 sps:$4 sm:$0xff]  }
  0x33   : > { %2279 = vmatprep.subr.bf16.mxu1 %v2479_v61  ;;  %v2559_v61 = vld [vmem:[%s2720_s13 + $0x184] ss:$36 sps:$4 sm:$0xff]  }
  0x35   : > { %2216 = vmatpush3.bf16.msra.mxu0 %v2480_v62  ;;  %v2561_v62 = vld [vmem:[%s2720_s13 + $0x178] ss:$36 sps:$4 sm:$0xff]  }
  0x36   : > { %2280 = vmatpush3.bf16.msra.mxu1 %v2481_v63  ;;  %2217 = vmatprep.subr.bf16.mxu0 %v2488_v3  ;;  %v2562_v63 = vld [vmem:[%s2720_s13 + $0x180] ss:$36 sps:$4 sm:$0xff]   ;;  %v2569_v3 = vld [vmem:[%s2720_s13 + $0x1c8] ss:$36 sps:$4 sm:$0xff]  }
  0x37   : > { %1258 = vmatmul.mubr.bf16.gmra.mrb[8].mxu0 %v2466_v50  ;;  %2281 = vmatprep.subr.bf16.mxu1 %v2489_v5  ;;  %v2545_v50 = vld [vmem:[%s2720_s13 + $0xf4] ss:$36 sps:$4 sm:$0xff]  }
  0x38   : > { %1355 = vmatmul.mubr.bf16.gmra.mrb[8].mxu1 %v2467_v51  ;;  %1265 = vmatprep.mubr.bf16.mxu0 %v2472_v56  ;;  %v2563_v51 = vld [vmem:[%s3037_s1 + $0x228] sm:$0xff]   ;;  %v2552_v56 = vld [vmem:[%s2720_s13 + $0x13c] ss:$36 sps:$4 sm:$0xff]   ;;  %v2573_v5 = vld [vmem:[%s2720_s13 + $0x214] ss:$36 sps:$4 sm:$0xff]  }
  0x39   : > { %1362 = vmatprep.mubr.bf16.mxu1 %v2474_v57  ;;  %2218 = vmatpush3.bf16.msra.mxu0 %v2490_v6  ;;  %v2577_v57 = vld [vmem:[%s3037_s1 + $0x238] sm:$0xff]   ;;  %v2575_v6 = vld [vmem:[%s2720_s13 + $0x208] ss:$36 sps:$4 sm:$0xff]  }
  0x3a   : > { %2282 = vmatpush3.bf16.msra.mxu1 %v2491_v7  ;;  %2219 = vmatprep.subr.bf16.mxu0 %v2498_v10  ;;  %v2576_v7 = vld [vmem:[%s2720_s13 + $0x210] ss:$36 sps:$4 sm:$0xff]   ;;  %v2580_v10 = vld [vmem:[%s2720_s13 + $0x68] ss:$36 sps:$4 sm:$0xff]  }
  0x3b   : > { %2283 = vmatprep.subr.bf16.mxu1 %v2499_v11  ;;  %v2581_v11 = vld [vmem:[%s2720_s13 + $0x188] ss:$36 sps:$4 sm:$0xff]  }
  0x3d   : > { %2220 = vmatpush3.bf16.msra.mxu0 %v2500_v13  ;;  %v2583_v13 = vld [vmem:[%s2720_s13 + $0x1d0] ss:$36 sps:$4 sm:$0xff]  }
  0x3e   : > { %2284 = vmatpush3.bf16.msra.mxu1 %v2501_v14  ;;  %2221 = vmatprep.subr.bf16.mxu0 %v2508_v18  ;;  %v2584_v14 = vld [vmem:[%s2720_s13 + $0xf8] ss:$36 sps:$4 sm:$0xff]   ;;  %v2923_v18 = vld [vmem:[%s3038_s2] ss:$0 sm:$0xff] }
  0x3f   : > { %1266 = vmatmul.mubr.bf16.gmra.mrb[12].mxu0 %v2476_v58  ;;  %2285 = vmatprep.subr.bf16.mxu1 %v2509_v19  ;;  %v2554_v58 = vld [vmem:[%s2720_s13 + $0x130] ss:$36 sps:$4 sm:$0xff]  }
  0x40   : > { %1363 = vmatmul.mubr.bf16.gmra.mrb[12].mxu1 %v2477_v59  ;;  %1273 = vmatprep.mubr.bf16.mxu0 %v2482_v0  ;;  %v2555_v59 = vld [vmem:[%s2720_s13 + $0x138] ss:$36 sps:$4 sm:$0xff]   ;;  %v2564_v0 = vld [vmem:[%s2720_s13 + $0x1c4] ss:$36 sps:$4 sm:$0xff]  }
  0x41   : > { %1370 = vmatprep.mubr.bf16.mxu1 %v2484_v1  ;;  %2222 = vmatpush3.bf16.msra.mxu0 %v2510_v20  ;;  %v2566_v1 = vld [vmem:[%s2720_s13 + $0x1cc] ss:$36 sps:$4 sm:$0xff]  }
  0x42   : > { %2286 = vmatpush3.bf16.msra.mxu1 %v2511_v21  ;;  %2223 = vmatprep.subr.bf16.mxu0 %v2518_v26 }
  0x43   : > { %2287 = vmatprep.subr.bf16.mxu1 %v2519_v27 }
  0x45   : > { %2224 = vmatpush3.bf16.msra.mxu0 %v2520_v28 }
  0x46   : > { %2288 = vmatpush3.bf16.msra.mxu1 %v2521_v29  ;;  %2353 = vmatprep.subr.bf16.mxu0 %v2528_v32 }
  0x47   : > { %1274 = vmatmul.mubr.bf16.gmra.mrb[16].mxu0 %v2486_v2  ;;  %2385 = vmatprep.subr.bf16.mxu1 %v2528_v32  ;;  %v2568_v2 = vld [vmem:[%s2720_s13 + $0x1c0] ss:$36 sps:$4 sm:$0xff]  }
  0x48   : > { %1371 = vmatmul.mubr.bf16.gmra.mrb[16].mxu1 %v2487_v4  ;;  %1281 = vmatprep.mubr.bf16.mxu0 %v2492_v8  ;;  %v2571_v4 = vld [vmem:[%s2720_s13 + $0x20c] ss:$36 sps:$4 sm:$0xff]   ;;  %v2578_v8 = vld [vmem:[%s2720_s13 + $0x20] ss:$36 sps:$4 sm:$0xff]  }
  0x49   : > { %1378 = vmatprep.mubr.bf16.mxu1 %v2494_v9  ;;  %v2579_v9 = vld [vmem:[%s2720_s13 + $0x140] ss:$36 sps:$4 sm:$0xff]  }
  0x4f   : > { %1282 = vmatmul.mubr.bf16.gmra.mrb[20].mxu0 %v2496_v12  ;;  %v2582_v12 = vld [vmem:[%s2720_s13 + $0xb0] ss:$36 sps:$4 sm:$0xff]  }
  0x50   : > { %1379 = vmatmul.mubr.bf16.gmra.mrb[20].mxu1 %v2497_v15  ;;  %1289 = vmatprep.mubr.bf16.mxu0 %v2502_v16  ;;  %v2585_v15 = vld [vmem:[%s2720_s13 + $0x218] ss:$36 sps:$4 sm:$0xff]   ;;  %s1854_s13 = sshll.u32 %s3041_s19, 2 }
  0x51   : > { %1386 = vmatprep.mubr.bf16.mxu1 %v2504_v17  ;;  %s3018_s20 = scalar_lea.vmem %s3039_s3, %s1854_s13 }
  0x57   : > { %1290 = vmatmul.mubr.bf16.gmra.mrb[24].mxu0 %v2506_v22 }
  0x58   : > { %1387 = vmatmul.mubr.bf16.gmra.mrb[24].mxu1 %v2507_v23  ;;  %1297 = vmatprep.mubr.bf16.mxu0 %v2512_v24 }
  0x59   : > { %1394 = vmatprep.mubr.bf16.mxu1 %v2514_v25 }
  0x5f   : > { %1298 = vmatmul.mubr.bf16.gmra.mrb[28].mxu0 %v2516_v30 }
  0x60   : > { %1395 = vmatmul.mubr.bf16.gmra.mrb[28].mxu1 %v2517_v31  ;;  %1435 = vmatprep.mubr.bf16.mxu0 %v2524_v33 }
  0x61   : > { %1532 = vmatprep.mubr.bf16.mxu1 %v2527_v34 }
  0x67   : > { %1436 = vmatmul.mubr.bf16.vlgmr.msra.gmra.mrb[32].mxu0 %v2522_v35 }
  0x68   : > { %1533 = vmatmul.mubr.bf16.vlgmr.msra.gmra.mrb[32].mxu1 %v2525_v36  ;;  %2354 = vmatpush3.bf16.msra.mxu0 %v2528_v32 }
  0x69   : > { %2393 = vmatpush3.bf16.msra.mxu1 %v2528_v32  ;;  %1443 = vmatprep.mubr.bf16.mxu0 %v2529_v37 }
  0x6a   : > { %1540 = vmatprep.mubr.bf16.mxu1 %v2531_v38  ;;  %2355 = vmatprep.subr.bf16.mxu0 %v2535_v39 }
  0x6b   : > { %2386 = vmatprep.subr.bf16.mxu1 %v2535_v39 }
  0x6c   : > { %2356 = vmatpush3.bf16.msra.mxu0 %v2535_v39 }
  0x6d   : > { %2394 = vmatpush3.bf16.msra.mxu1 %v2535_v39  ;;  %2357 = vmatprep.subr.bf16.mxu0 %v2542_v40 }
  0x6e   : > { %2387 = vmatprep.subr.bf16.mxu1 %v2542_v40 }
  0x6f   : > { %1444 = vmatmul.mubr.bf16.gmra.mrb[36].mxu0 %v2533_v41 }
  0x70   : > { %1541 = vmatmul.mubr.bf16.gmra.mrb[36].mxu1 %v2534_v42  ;;  %1451 = vmatprep.mubr.bf16.mxu0 %v2536_v43 }
  0x71   : > { %1548 = vmatprep.mubr.bf16.mxu1 %v2538_v44  ;;  %2358 = vmatpush3.bf16.msra.mxu0 %v2542_v40 }
  0x72   : > { %2395 = vmatpush3.bf16.msra.mxu1 %v2542_v40  ;;  %2359 = vmatprep.subr.bf16.mxu0 %v2549_v45 }
  0x73   : > { %2388 = vmatprep.subr.bf16.mxu1 %v2549_v45 }
  0x75   : > { %2360 = vmatpush3.bf16.msra.mxu0 %v2549_v45 }
  0x76   : > { %2396 = vmatpush3.bf16.msra.mxu1 %v2549_v45  ;;  %2361 = vmatprep.subr.bf16.mxu0 %v2556_v46 }
  0x77   : > { %1452 = vmatmul.mubr.bf16.gmra.mrb[40].mxu0 %v2540_v47  ;;  %2389 = vmatprep.subr.bf16.mxu1 %v2556_v46 }
  0x78   : > { %1549 = vmatmul.mubr.bf16.gmra.mrb[40].mxu1 %v2541_v48  ;;  %1459 = vmatprep.mubr.bf16.mxu0 %v2543_v49 }
  0x79   : > { %1556 = vmatprep.mubr.bf16.mxu1 %v2545_v50  ;;  %2362 = vmatpush3.bf16.msra.mxu0 %v2556_v46 }
  0x7a   : > { %2397 = vmatpush3.bf16.msra.mxu1 %v2556_v46  ;;  %2363 = vmatprep.subr.bf16.mxu0 %v2563_v51 }
  0x7b   : > { %2390 = vmatprep.subr.bf16.mxu1 %v2563_v51 }
  0x7d   : > { %2364 = vmatpush3.bf16.msra.mxu0 %v2563_v51 }
  0x7e   : > { %2398 = vmatpush3.bf16.msra.mxu1 %v2563_v51  ;;  %2365 = vmatprep.subr.bf16.mxu0 %v2570_v53 }
  0x7f   : > { %1460 = vmatmul.mubr.bf16.gmra.mrb[44].mxu0 %v2547_v52  ;;  %2391 = vmatprep.subr.bf16.mxu1 %v2570_v53 }
  0x80   : > { %1557 = vmatmul.mubr.bf16.gmra.mrb[44].mxu1 %v2548_v54  ;;  %1467 = vmatprep.mubr.bf16.mxu0 %v2550_v55 }
  0x81   : > { %1564 = vmatprep.mubr.bf16.mxu1 %v2552_v56  ;;  %2366 = vmatpush3.bf16.msra.mxu0 %v2570_v53 }
  0x82   : > { %2399 = vmatpush3.bf16.msra.mxu1 %v2570_v53  ;;  %2367 = vmatprep.subr.bf16.mxu0 %v2577_v57 }
  0x83   : > { %2392 = vmatprep.subr.bf16.mxu1 %v2577_v57 }
  0x85   : > { %2368 = vmatpush3.bf16.msra.mxu0 %v2577_v57 }
  0x86   : > { %2400 = vmatpush3.bf16.msra.mxu1 %v2577_v57 }
  0x87   : > { %1468 = vmatmul.mubr.bf16.gmra.mrb[48].mxu0 %v2554_v58 }
  0x88   : > { %1565 = vmatmul.mubr.bf16.gmra.mrb[48].mxu1 %v2555_v59  ;;  %1475 = vmatprep.mubr.bf16.mxu0 %v2557_v60 }
  0x89   : > { %1572 = vmatprep.mubr.bf16.mxu1 %v2559_v61 }
  0x8f   : > { %1476 = vmatmul.mubr.bf16.gmra.mrb[52].mxu0 %v2561_v62 }
  0x90   : > { %1573 = vmatmul.mubr.bf16.gmra.mrb[52].mxu1 %v2562_v63  ;;  %1483 = vmatprep.mubr.bf16.mxu0 %v2564_v0 }
  0x91   : > { %1580 = vmatprep.mubr.bf16.mxu1 %v2566_v1 }
  0x97   : > { %1484 = vmatmul.mubr.bf16.gmra.mrb[56].mxu0 %v2568_v2 }
  0x98   : > { %1581 = vmatmul.mubr.bf16.gmra.mrb[56].mxu1 %v2569_v3  ;;  %1491 = vmatprep.mubr.bf16.mxu0 %v2571_v4 }
  0x99   : > { %1588 = vmatprep.mubr.bf16.mxu1 %v2573_v5 }
  0x9f   : > { %1492 = vmatmul.mubr.bf16.gmra.mrb[60].mxu0 %v2575_v6 }
  0xa0   : > { %1589 = vmatmul.mubr.bf16.gmra.mrb[60].mxu1 %v2576_v7  ;;  %2369 = vmatprep.mubr.bf16.mxu0 %v2578_v8 }
  0xa1   : > { %2377 = vmatprep.mubr.bf16.mxu1 %v2579_v9 }
  0xa7   : > { %2370 = vmatmul.mubr.bf16.vlgmr.msra.gmra.mrb[64].mxu0 %v2580_v10 }
  0xa8   : > { %2378 = vmatmul.mubr.bf16.vlgmr.msra.gmra.mrb[64].mxu1 %v2581_v11  ;;  %2373 = vmatprep.mubr.bf16.mxu0 %v2582_v12 }
  0xa9   : > { %2381 = vmatprep.mubr.bf16.mxu1 %v2583_v13 }
  0xaf   : > { %2374 = vmatmul.mubr.bf16.gmra.mrb[68].mxu0 %v2584_v14 }
  0xb0   : > { %2382 = vmatmul.mubr.bf16.gmra.mrb[68].mxu1 %v2585_v15 }
  0xfa   : > { %v2097_v16 = vpop.f32.mrb[0].mxu0 }
  0xfb   : > { %v2161_v17 = vpop.f32.mrb[0].mxu1  ;;  %v2098_v19 = vpop.f32.mrb[1].mxu0 }
  0xfc   : > { %v2099_v20 = vadd.f32 %v2098_v19, %v2097_v16  ;;  %v2162_v21 = vpop.f32.mrb[1].mxu1  ;;  %v2100_v22 = vpop.f32.mrb[2].mxu0 }
  0xfd   : > { %v2163_v23 = vadd.f32 %v2162_v21, %v2161_v17  ;;  %v2164_v24 = vpop.f32.mrb[2].mxu1  ;;  %v2101_v25 = vpop.f32.mrb[3].mxu0 }
  0xfe   : > { %v1244_v26 = vadd.f32 %v2099_v20, %v2923_v18  ;;  %v2102_v27 = vadd.f32 %v2101_v25, %v2100_v22  ;;  %v2165_v28 = vpop.f32.mrb[3].mxu1 }
  0xff   : > { %v2166_v29 = vadd.f32 %v2165_v28, %v2164_v24 }
 0x100   : > { %v2926_v30 = vadd.f32 %v2163_v23, %v1244_v26  ;;  %v1247_v31 = vadd.f32 %v2102_v27, %v2923_v18 }
 0x102   : > { %v2929_v32 = vadd.f32 %v2166_v29, %v1247_v31  ;;  %v2103_v33 = vpop.f32.mrb[4].mxu0 }
 0x103   : > { %v2167_v34 = vpop.f32.mrb[4].mxu1  ;;  %v2104_v35 = vpop.f32.mrb[5].mxu0 }
 0x104   : > { %v2105_v36 = vadd.f32 %v2104_v35, %v2103_v33  ;;  %v2168_v37 = vpop.f32.mrb[5].mxu1  ;;  %v2106_v38 = vpop.f32.mrb[6].mxu0 }
 0x105   : > { %v2169_v39 = vadd.f32 %v2168_v37, %v2167_v34  ;;  %v2170_v40 = vpop.f32.mrb[6].mxu1  ;;  %v2107_v41 = vpop.f32.mrb[7].mxu0 }
 0x106   : > { %v1252_v42 = vadd.f32 %v2105_v36, %v2923_v18  ;;  %v2108_v43 = vadd.f32 %v2107_v41, %v2106_v38  ;;  %v2171_v44 = vpop.f32.mrb[7].mxu1 }
 0x107   : > { %v2172_v45 = vadd.f32 %v2171_v44, %v2170_v40 }
 0x108   : > { %v2932_v46 = vadd.f32 %v2169_v39, %v1252_v42  ;;  %v1255_v47 = vadd.f32 %v2108_v43, %v2923_v18 }
 0x10a   : > { %v2935_v48 = vadd.f32 %v2172_v45, %v1255_v47  ;;  %v2109_v49 = vpop.f32.mrb[8].mxu0 }
 0x10b   : > { %v2173_v50 = vpop.f32.mrb[8].mxu1  ;;  %v2110_v51 = vpop.f32.mrb[9].mxu0 }
 0x10c   : > { %v2111_v52 = vadd.f32 %v2110_v51, %v2109_v49  ;;  %v2174_v53 = vpop.f32.mrb[9].mxu1  ;;  %v2112_v54 = vpop.f32.mrb[10].mxu0 }
 0x10d   : > { %v2175_v55 = vadd.f32 %v2174_v53, %v2173_v50  ;;  %v2176_v56 = vpop.f32.mrb[10].mxu1  ;;  %v2113_v57 = vpop.f32.mrb[11].mxu0 }
 0x10e   : > { %v1260_v58 = vadd.f32 %v2111_v52, %v2923_v18  ;;  %v2114_v59 = vadd.f32 %v2113_v57, %v2112_v54  ;;  %v2177_v60 = vpop.f32.mrb[11].mxu1 }
 0x10f   : > { %v2178_v61 = vadd.f32 %v2177_v60, %v2176_v56 }
 0x110   : > { %v2938_v62 = vadd.f32 %v2175_v55, %v1260_v58  ;;  %v1263_v63 = vadd.f32 %v2114_v59, %v2923_v18 }
 0x112   : > { %v2941_v0 = vadd.f32 %v2178_v61, %v1263_v63  ;;  %v2115_v1 = vpop.f32.mrb[12].mxu0 }
 0x113   : > { %v2179_v2 = vpop.f32.mrb[12].mxu1  ;;  %v2116_v3 = vpop.f32.mrb[13].mxu0 }
 0x114   : > { %v2117_v4 = vadd.f32 %v2116_v3, %v2115_v1  ;;  %v2180_v5 = vpop.f32.mrb[13].mxu1  ;;  %v2118_v6 = vpop.f32.mrb[14].mxu0 }
 0x115   : > { %v2181_v7 = vadd.f32 %v2180_v5, %v2179_v2  ;;  %v2182_v8 = vpop.f32.mrb[14].mxu1  ;;  %v2119_v9 = vpop.f32.mrb[15].mxu0 }
 0x116   : > { %v1268_v10 = vadd.f32 %v2117_v4, %v2923_v18  ;;  %v2120_v11 = vadd.f32 %v2119_v9, %v2118_v6  ;;  %v2183_v12 = vpop.f32.mrb[15].mxu1 }
 0x117   : > { %v2184_v13 = vadd.f32 %v2183_v12, %v2182_v8 }
 0x118   : > { %v2944_v14 = vadd.f32 %v2181_v7, %v1268_v10  ;;  %v1271_v15 = vadd.f32 %v2120_v11, %v2923_v18 }
 0x11a   : > { %v2947_v16 = vadd.f32 %v2184_v13, %v1271_v15  ;;  %v2121_v17 = vpop.f32.mrb[16].mxu0 }
 0x11b   : > { %v2185_v19 = vpop.f32.mrb[16].mxu1  ;;  %v2122_v20 = vpop.f32.mrb[17].mxu0 }
 0x11c   : > { %v2123_v21 = vadd.f32 %v2122_v20, %v2121_v17  ;;  %v2186_v22 = vpop.f32.mrb[17].mxu1  ;;  %v2124_v23 = vpop.f32.mrb[18].mxu0 }
 0x11d   : > { %v2187_v24 = vadd.f32 %v2186_v22, %v2185_v19  ;;  %v2188_v25 = vpop.f32.mrb[18].mxu1  ;;  %v2125_v26 = vpop.f32.mrb[19].mxu0 }
 0x11e   : > { %v1276_v27 = vadd.f32 %v2123_v21, %v2923_v18  ;;  %v2126_v28 = vadd.f32 %v2125_v26, %v2124_v23  ;;  %v2189_v29 = vpop.f32.mrb[19].mxu1 }
 0x11f   : > { %v2190_v31 = vadd.f32 %v2189_v29, %v2188_v25 }
 0x120   : > { %v2950_v33 = vadd.f32 %v2187_v24, %v1276_v27  ;;  %v1279_v34 = vadd.f32 %v2126_v28, %v2923_v18 }
 0x122   : > { %v2953_v35 = vadd.f32 %v2190_v31, %v1279_v34  ;;  %v2127_v36 = vpop.f32.mrb[20].mxu0 }
 0x123   : > { %v2191_v37 = vpop.f32.mrb[20].mxu1  ;;  %v2128_v38 = vpop.f32.mrb[21].mxu0 }
 0x124   : > { %v2129_v39 = vadd.f32 %v2128_v38, %v2127_v36  ;;  %v2192_v40 = vpop.f32.mrb[21].mxu1  ;;  %v2130_v41 = vpop.f32.mrb[22].mxu0 }
 0x125   : > { %v2193_v42 = vadd.f32 %v2192_v40, %v2191_v37  ;;  %v2194_v43 = vpop.f32.mrb[22].mxu1  ;;  %v2131_v44 = vpop.f32.mrb[23].mxu0 }
 0x126   : > { %v1284_v45 = vadd.f32 %v2129_v39, %v2923_v18  ;;  %v2132_v47 = vadd.f32 %v2131_v44, %v2130_v41  ;;  %v2195_v49 = vpop.f32.mrb[23].mxu1 }
 0x127   : > { %v2196_v50 = vadd.f32 %v2195_v49, %v2194_v43 }
 0x128   : > { %v2956_v51 = vadd.f32 %v2193_v42, %v1284_v45  ;;  %v1287_v52 = vadd.f32 %v2132_v47, %v2923_v18 }
 0x12a   : > { %v2959_v53 = vadd.f32 %v2196_v50, %v1287_v52  ;;  %v2133_v54 = vpop.f32.mrb[24].mxu0 }
 0x12b   : > { %v2197_v55 = vpop.f32.mrb[24].mxu1  ;;  %v2134_v56 = vpop.f32.mrb[25].mxu0 }
 0x12c   : > { %v2135_v57 = vadd.f32 %v2134_v56, %v2133_v54  ;;  %v2198_v58 = vpop.f32.mrb[25].mxu1  ;;  %v2136_v59 = vpop.f32.mrb[26].mxu0 }
 0x12d   : > { %v2199_v60 = vadd.f32 %v2198_v58, %v2197_v55  ;;  %v2200_v61 = vpop.f32.mrb[26].mxu1  ;;  %v2137_v63 = vpop.f32.mrb[27].mxu0 }
 0x12e   : > { %v1292_v1 = vadd.f32 %v2135_v57, %v2923_v18  ;;  %v2138_v2 = vadd.f32 %v2137_v63, %v2136_v59  ;;  %v2201_v3 = vpop.f32.mrb[27].mxu1 }
 0x12f   : > { %v2202_v4 = vadd.f32 %v2201_v3, %v2200_v61 }
 0x130   : > { %v2962_v5 = vadd.f32 %v2199_v60, %v1292_v1  ;;  %v1295_v6 = vadd.f32 %v2138_v2, %v2923_v18 }
 0x132   : > { %v2965_v7 = vadd.f32 %v2202_v4, %v1295_v6  ;;  %v2139_v8 = vpop.f32.mrb[28].mxu0 }
 0x133   : > { %v2203_v9 = vpop.f32.mrb[28].mxu1  ;;  %v2140_v10 = vpop.f32.mrb[29].mxu0 }
 0x134   : > { %v2141_v11 = vadd.f32 %v2140_v10, %v2139_v8  ;;  %v2204_v12 = vpop.f32.mrb[29].mxu1  ;;  %v2142_v13 = vpop.f32.mrb[30].mxu0 }
 0x135   : > { %v2205_v15 = vadd.f32 %v2204_v12, %v2203_v9  ;;  %v2206_v17 = vpop.f32.mrb[30].mxu1  ;;  %v2143_v19 = vpop.f32.mrb[31].mxu0 }
 0x136   : > { %v1300_v20 = vadd.f32 %v2141_v11, %v2923_v18  ;;  %v2144_v21 = vadd.f32 %v2143_v19, %v2142_v13  ;;  %v2207_v22 = vpop.f32.mrb[31].mxu1 }
 0x137   : > { %v2208_v23 = vadd.f32 %v2207_v22, %v2206_v17 }
 0x138   : > { %v2968_v24 = vadd.f32 %v2205_v15, %v1300_v20  ;;  %v1303_v25 = vadd.f32 %v2144_v21, %v2923_v18 }
 0x13a   : > { %v2971_v26 = vadd.f32 %v2208_v23, %v1303_v25  ;;  %v2225_v27 = vpop.f32.mrb[32].mxu0 }
 0x13b   : > { %v2289_v28 = vpop.f32.mrb[32].mxu1  ;;  %v2226_v29 = vpop.f32.mrb[33].mxu0 }
 0x13c   : > { %v2227_v31 = vadd.f32 %v2226_v29, %v2225_v27  ;;  %v2290_v34 = vpop.f32.mrb[33].mxu1  ;;  %v2228_v36 = vpop.f32.mrb[34].mxu0 }
 0x13d   : > { %v2291_v37 = vadd.f32 %v2290_v34, %v2289_v28  ;;  %v2292_v38 = vpop.f32.mrb[34].mxu1  ;;  %v2229_v39 = vpop.f32.mrb[35].mxu0 }
 0x13e   : > { %v1438_v40 = vadd.f32 %v2227_v31, %v2926_v30  ;;  %v2230_v41 = vadd.f32 %v2229_v39, %v2228_v36  ;;  %v2293_v42 = vpop.f32.mrb[35].mxu1 }
 0x13f   : > { %v2294_v43 = vadd.f32 %v2293_v42, %v2292_v38 }
 0x140   : > { %v1441_v44 = vadd.f32 %v2230_v41, %v2929_v32  ;;  %v2975_v45 = vadd.f32 %v2291_v37, %v1438_v40 }
 0x142   : > { %v2231_v18 = vpop.f32.mrb[36].mxu0  ;;  %v2977_v47 = vadd.f32 %v2294_v43, %v1441_v44 }
 0x143   : > { %v2295_v49 = vpop.f32.mrb[36].mxu1  ;;  %v2232_v50 = vpop.f32.mrb[37].mxu0 }
 0x144   : > { %v2233_v52 = vadd.f32 %v2232_v50, %v2231_v18  ;;  %v2296_v54 = vpop.f32.mrb[37].mxu1  ;;  %v2234_v55 = vpop.f32.mrb[38].mxu0 }
 0x145   : > { %v2297_v56 = vadd.f32 %v2296_v54, %v2295_v49  ;;  %v2298_v57 = vpop.f32.mrb[38].mxu1  ;;  %v2235_v58 = vpop.f32.mrb[39].mxu0 }
 0x146   : > { %v1446_v30 = vadd.f32 %v2233_v52, %v2932_v46  ;;  %v2236_v59 = vadd.f32 %v2235_v58, %v2234_v55  ;;  %v2299_v60 = vpop.f32.mrb[39].mxu1 }
 0x147   : > { %v2300_v61 = vadd.f32 %v2299_v60, %v2298_v57 }
 0x148   : > { %v1449_v32 = vadd.f32 %v2236_v59, %v2935_v48  ;;  %v2981_v63 = vadd.f32 %v2297_v56, %v1446_v30 }
 0x14a   : > { %v2237_v1 = vpop.f32.mrb[40].mxu0  ;;  %v2983_v2 = vadd.f32 %v2300_v61, %v1449_v32 }
 0x14b   : > { %v2301_v3 = vpop.f32.mrb[40].mxu1  ;;  %v2238_v4 = vpop.f32.mrb[41].mxu0 }
 0x14c   : > { %v2239_v6 = vadd.f32 %v2238_v4, %v2237_v1  ;;  %v2302_v8 = vpop.f32.mrb[41].mxu1  ;;  %v2240_v9 = vpop.f32.mrb[42].mxu0 }
 0x14d   : > { %v2303_v10 = vadd.f32 %v2302_v8, %v2301_v3  ;;  %v2304_v11 = vpop.f32.mrb[42].mxu1  ;;  %v2241_v12 = vpop.f32.mrb[43].mxu0 }
 0x14e   : > { %v1454_v46 = vadd.f32 %v2239_v6, %v2938_v62  ;;  %v2242_v13 = vadd.f32 %v2241_v12, %v2240_v9  ;;  %v2305_v15 = vpop.f32.mrb[43].mxu1 }
 0x14f   : > { %v2306_v17 = vadd.f32 %v2305_v15, %v2304_v11 }
 0x150   : > { %v1457_v48 = vadd.f32 %v2242_v13, %v2941_v0  ;;  %v2987_v19 = vadd.f32 %v2303_v10, %v1454_v46 }
 0x152   : > { %v2243_v20 = vpop.f32.mrb[44].mxu0  ;;  %v2989_v21 = vadd.f32 %v2306_v17, %v1457_v48 }
 0x153   : > { %v2307_v22 = vpop.f32.mrb[44].mxu1  ;;  %v2244_v23 = vpop.f32.mrb[45].mxu0 }
 0x154   : > { %v2245_v25 = vadd.f32 %v2244_v23, %v2243_v20  ;;  %v2308_v27 = vpop.f32.mrb[45].mxu1  ;;  %v2246_v28 = vpop.f32.mrb[46].mxu0 }
 0x155   : > { %v2309_v29 = vadd.f32 %v2308_v27, %v2307_v22  ;;  %v2310_v31 = vpop.f32.mrb[46].mxu1  ;;  %v2247_v34 = vpop.f32.mrb[47].mxu0 }
 0x156   : > { %v1462_v62 = vadd.f32 %v2245_v25, %v2944_v14  ;;  %v2248_v36 = vadd.f32 %v2247_v34, %v2246_v28  ;;  %v2311_v37 = vpop.f32.mrb[47].mxu1 }
 0x157   : > { %v2312_v38 = vadd.f32 %v2311_v37, %v2310_v31 }
 0x158   : > { %v1465_v0 = vadd.f32 %v2248_v36, %v2947_v16  ;;  %v2993_v39 = vadd.f32 %v2309_v29, %v1462_v62 }
 0x15a   : > { %v2249_v40 = vpop.f32.mrb[48].mxu0  ;;  %v2995_v41 = vadd.f32 %v2312_v38, %v1465_v0 }
 0x15b   : > { %v2313_v42 = vpop.f32.mrb[48].mxu1  ;;  %v2250_v43 = vpop.f32.mrb[49].mxu0 }
 0x15c   : > { %v2251_v44 = vadd.f32 %v2250_v43, %v2249_v40  ;;  %v2314_v18 = vpop.f32.mrb[49].mxu1  ;;  %v2252_v49 = vpop.f32.mrb[50].mxu0 }
 0x15d   : > { %v2315_v50 = vadd.f32 %v2314_v18, %v2313_v42  ;;  %v2316_v52 = vpop.f32.mrb[50].mxu1  ;;  %v2253_v54 = vpop.f32.mrb[51].mxu0 }
 0x15e   : > { %v1470_v14 = vadd.f32 %v2251_v44, %v2950_v33  ;;  %v2254_v55 = vadd.f32 %v2253_v54, %v2252_v49  ;;  %v2317_v56 = vpop.f32.mrb[51].mxu1 }
 0x15f   : > { %v2318_v57 = vadd.f32 %v2317_v56, %v2316_v52 }
 0x160   : > { %v1473_v16 = vadd.f32 %v2254_v55, %v2953_v35  ;;  %v1567_v58 = vadd.f32 %v2315_v50, %v1470_v14 }
 0x162   : > { %v2255_v30 = vpop.f32.mrb[52].mxu0  ;;  %v2999_v59 = vadd.f32 %v2318_v57, %v1473_v16 }
 0x163   : > { %v2319_v60 = vpop.f32.mrb[52].mxu1  ;;  %v2256_v61 = vpop.f32.mrb[53].mxu0 }
 0x164   : > { %v2257_v32 = vadd.f32 %v2256_v61, %v2255_v30  ;;  %v2320_v1 = vpop.f32.mrb[53].mxu1  ;;  %v2258_v3 = vpop.f32.mrb[54].mxu0 }
 0x165   : > { %v2321_v4 = vadd.f32 %v2320_v1, %v2319_v60  ;;  %v2322_v6 = vpop.f32.mrb[54].mxu1  ;;  %v2259_v8 = vpop.f32.mrb[55].mxu0 }
 0x166   : > { %v1478_v9 = vadd.f32 %v2257_v32, %v2956_v51  ;;  %v2260_v33 = vadd.f32 %v2259_v8, %v2258_v3  ;;  %v2323_v10 = vpop.f32.mrb[55].mxu1 }
 0x167   : > { %v2324_v11 = vadd.f32 %v2323_v10, %v2322_v6 }
 0x168   : > { %v1481_v12 = vadd.f32 %v2260_v33, %v2959_v53  ;;  %v1575_v35 = vadd.f32 %v2321_v4, %v1478_v9 }
 0x16a   : > { %v2261_v46 = vpop.f32.mrb[56].mxu0  ;;  %v1578_v13 = vadd.f32 %v2324_v11, %v1481_v12 }
 0x16b   : > { %v2325_v15 = vpop.f32.mrb[56].mxu1  ;;  %v2262_v17 = vpop.f32.mrb[57].mxu0 }
 0x16c   : > { %v2263_v48 = vadd.f32 %v2262_v17, %v2261_v46  ;;  %v2326_v20 = vpop.f32.mrb[57].mxu1  ;;  %v2264_v22 = vpop.f32.mrb[58].mxu0 }
 0x16d   : > { %v2327_v23 = vadd.f32 %v2326_v20, %v2325_v15  ;;  %v2328_v25 = vpop.f32.mrb[58].mxu1  ;;  %v2265_v27 = vpop.f32.mrb[59].mxu0 }
 0x16e   : > { %v1486_v28 = vadd.f32 %v2263_v48, %v2962_v5  ;;  %v2266_v29 = vadd.f32 %v2265_v27, %v2264_v22  ;;  %v2329_v51 = vpop.f32.mrb[59].mxu1 }
 0x16f   : > { %v2330_v31 = vadd.f32 %v2329_v51, %v2328_v25 }
 0x170   : > { %v1489_v34 = vadd.f32 %v2266_v29, %v2965_v7  ;;  %v1583_v62 = vadd.f32 %v2327_v23, %v1486_v28 }
 0x172   : > { %v2267_v53 = vpop.f32.mrb[60].mxu0  ;;  %v3005_v36 = vadd.f32 %v2330_v31, %v1489_v34 }
 0x173   : > { %v2331_v37 = vpop.f32.mrb[60].mxu1  ;;  %v2268_v38 = vpop.f32.mrb[61].mxu0 }
 0x174   : > { %v2269_v0 = vadd.f32 %v2268_v38, %v2267_v53  ;;  %v2332_v40 = vpop.f32.mrb[61].mxu1  ;;  %v2270_v42 = vpop.f32.mrb[62].mxu0 }
 0x175   : > { %v2333_v43 = vadd.f32 %v2332_v40, %v2331_v37  ;;  %v2334_v44 = vpop.f32.mrb[62].mxu1  ;;  %v2271_v18 = vpop.f32.mrb[63].mxu0 }
 0x176   : > { %v1494_v49 = vadd.f32 %v2269_v0, %v2968_v24  ;;  %v2272_v5 = vadd.f32 %v2271_v18, %v2270_v42  ;;  %v2335_v50 = vpop.f32.mrb[63].mxu1 }
 0x177   : > { %v2336_v52 = vadd.f32 %v2335_v50, %v2334_v44 }
 0x178   : > { %v1497_v7 = vadd.f32 %v2272_v5, %v2971_v26  ;;  %v1591_v54 = vadd.f32 %v2333_v43, %v1494_v49 }
 0x17a   : > { %v2371_v14 = vpop.f32.mrb[64].mxu0  ;;  %v1594_v55 = vadd.f32 %v2336_v52, %v1497_v7 }
 0x17b   : > { %v1640_v56 = vadd.f32 %v2371_v14, %v2981_v63  ;;  %v2379_v57 = vpop.f32.mrb[64].mxu1  ;;  %v1631_v16 = vpop.f32.mrb[65].mxu0 }
 0x17c   : > { %v1672_v30 = vadd.f32 %v2379_v57, %v1575_v35  ;;  %v1632_v60 = vadd.f32 %v1631_v16, %v2975_v45  ;;  %v1663_v61 = vpop.f32.mrb[65].mxu1  ;;  %v2372_v32 = vpop.f32.mrb[66].mxu0 }
 0x17d   : > { %v1664_v1 = vadd.f32 %v1663_v61, %v1567_v58  ;;  %v1643_v24 = vadd.f32 %v2372_v32, %v2983_v2  ;;  %v2380_v3 = vpop.f32.mrb[66].mxu1  ;;  %v1634_v4 = vpop.f32.mrb[67].mxu0  ;;  %v1696_v9 = vmax.f32 %v1640_v56, 0.0 }
 0x17e   : > { %v1675_v6 = vadd.f32 %v2380_v3, %v1578_v13  ;;  %v1635_v26 = vadd.f32 %v1634_v4, %v2977_v47  ;;  %v1666_v8 = vpop.f32.mrb[67].mxu1  ;;  %v1704_v10 = vmax.f32 %v1672_v30, 0.0  ;;  %v1694_v11 = vmax.f32 %v1632_v60, 0.0 }
 0x17f   : > { %v1697_v33 = vmax.f32 %v1643_v24, 0.0  ;;  %v1667_v63 = vadd.f32 %v1666_v8, %v2999_v59  ;;  %v1702_v58 = vmax.f32 %v1664_v1, 0.0 }
 0x180   : > { %v1705_v45 = vmax.f32 %v1675_v6, 0.0  ;;  %v1695_v2 = vmax.f32 %v1635_v26, 0.0 }
 0x181   : > { %v2042_v12 = vpack.c.bf16 %v1697_v33, %v1696_v9  ;;  %v1703_v47 = vmax.f32 %v1667_v63, 0.0 }
 0x182   : > { %v2062_v35 = vpack.c.bf16 %v1705_v45, %v1704_v10  ;;  %v2037_v46 = vpack.c.bf16 %v1695_v2, %v1694_v11  ;;  %v2375_v13 = vpop.f32.mrb[68].mxu0 }
 0x183   : > { %2074 = vst [vmem:[%s3018_s20 + $0x8] sm:$0xff] %v2042_v12   ;;  %v2057_v59 = vpack.c.bf16 %v1703_v47, %v1702_v58  ;;  %v1656_v15 = vadd.f32 %v2375_v13, %v2993_v39  ;;  %v2383_v17 = vpop.f32.mrb[68].mxu1  ;;  %v1647_v48 = vpop.f32.mrb[69].mxu0 }
 0x184   : > { %2078 = vst [vmem:[%s3018_s20 + $0x28] sm:$0xff] %v2062_v35   ;;  %2038 = vst [vmem:[%s3018_s20] sm:$0xff] %v2037_v46   ;;  %v1688_v20 = vadd.f32 %v2383_v17, %v1591_v54  ;;  %v1648_v22 = vadd.f32 %v1647_v48, %v2987_v19  ;;  %v1679_v23 = vpop.f32.mrb[69].mxu1  ;;  %v2376_v25 = vpop.f32.mrb[70].mxu0 }
 0x185   : > { %2077 = vst [vmem:[%s3018_s20 + $0x20] sm:$0xff] %v2057_v59   ;;  %v1680_v27 = vadd.f32 %v1679_v23, %v1583_v62  ;;  %v1659_v28 = vadd.f32 %v2376_v25, %v2995_v41  ;;  %v2384_v29 = vpop.f32.mrb[70].mxu1  ;;  %v1650_v51 = vpop.f32.mrb[71].mxu0  ;;  %v1700_v53 = vmax.f32 %v1656_v15, 0.0 }
 0x186   : > { %v1691_v31 = vadd.f32 %v2384_v29, %v1594_v55  ;;  %v1651_v34 = vadd.f32 %v1650_v51, %v2989_v21  ;;  %v1682_v39 = vpop.f32.mrb[71].mxu1  ;;  %v1708_v38 = vmax.f32 %v1688_v20, 0.0  ;;  %v1698_v0 = vmax.f32 %v1648_v22, 0.0 }
 0x187   : > { %v1701_v37 = vmax.f32 %v1659_v28, 0.0  ;;  %v1683_v19 = vadd.f32 %v1682_v39, %v3005_v36  ;;  %v1706_v42 = vmax.f32 %v1680_v27, 0.0 }
 0x188   : > { %v1709_v40 = vmax.f32 %v1691_v31, 0.0  ;;  %v1699_v62 = vmax.f32 %v1651_v34, 0.0 }
 0x189   : > { %v2052_v41 = vpack.c.bf16 %v1701_v37, %v1700_v53  ;;  %v1707_v43 = vmax.f32 %v1683_v19, 0.0 }
 0x18a   : > { %v2072_v44 = vpack.c.bf16 %v1709_v40, %v1708_v38  ;;  %v2047_v18 = vpack.c.bf16 %v1699_v62, %v1698_v0 }
 0x18b   : > { %2076 = vst [vmem:[%s3018_s20 + $0x18] sm:$0xff] %v2052_v41   ;;  %v2067_v49 = vpack.c.bf16 %v1707_v43, %v1706_v42 }
 0x18c   : > { %2080 = vst [vmem:[%s3018_s20 + $0x38] sm:$0xff] %v2072_v44   ;;  %2075 = vst [vmem:[%s3018_s20 + $0x10] sm:$0xff] %v2047_v18  }
 0x18d   : > { %2079 = vst [vmem:[%s3018_s20 + $0x30] sm:$0xff] %v2067_v49  }
 0x18e PF: > { %s13_s12 = sadd.s32 1, %s2592_s12  }
 0x18f   : > { %p10_p4 = scmp.ge.s32.totalorder %s13_s12, 4  }
 0x191   :  { %12 = sbr.rel (!%p10_p4) target bundleno = 1 (0x1), region = 62 }

// kernel: dense_correspondence_forward.8
= control target key start
LH: loop header
LB: loop body
LE: loop exit
PB: predicated region body
PF: predicated region fallthrough
CT: control target
= control target key end

     0   :  { %s2047_s12 = smov 0   ;;  %s2525_s0 = inlined_call_operand.vmem [shape: bf16[64,1152], index: 0, kind: input, shape index: {}]   ;;  %s2526_s1 = inlined_call_operand.vmem [shape: bf16[1152,256], index: 1, kind: input, shape index: {}]   ;;  %s2527_s2 = inlined_call_operand.vmem [shape: f32[1,256], index: 2, kind: input, shape index: {}]   ;;  %s2528_s3 = inlined_call_operand.vmem [shape: bf16[64,256], index: 3, kind: output, shape index: {}]  }
   0x1 LB: > { %s1527_s13 = sadd.s32 4294967295, %s2024_s12   ;;  %p1531_p0 = scmp.ge.s32.totalorder %s2024_s12, 1  ;;  %s2024_s12 = sphi %s2047_s12, %s13_s12  }
   0x2   : > { %p139_p1 = scmp.lt.s32.totalorder %s2024_s12, 3 }
   0x4   : > { %p140_p2 = pnand %p1531_p0, %p139_p1 }
   0x5   : > { %v1776_v0 = vld [vmem:[%s2526_s1 + $0x4] ss:$8 sps:$4 sm:$0xff] (!%p140_p2)   ;;  %v1780_v2 = vld [vmem:[%s2526_s1] ss:$8 sps:$4 sm:$0xff] (!%p140_p2)   ;;  %v1782_v4 = vld [vmem:[%s2526_s1 + $0x14] ss:$8 sps:$4 sm:$0xff] (!%p140_p2)  }
   0x6   : > { %143 = sbr.rel (%p140_p2) target bundleno = 389 (0x185), region = 32  ;;  %v1778_v1 = vld [vmem:[%s2526_s1 + $0x204] ss:$8 sps:$4 sm:$0xff] (!%p140_p2)   ;;  %1168 = vmatprep.subr.bf16.mxu1 (!%p140_p2), %v1776_v0  ;;  %v1781_v3 = vld [vmem:[%s2526_s1 + $0x200] ss:$8 sps:$4 sm:$0xff] (!%p140_p2)   ;;  %s1532_s24 = sshll.u32 (!%p140_p2), %s1527_s13, 2 }
   0x7   : > { %1274 = vmatprep.subr.bf16.mxu0 (!%p140_p2), %v1778_v1  ;;  %1169 = vmatpush1.bf16.msra.mxu1 (!%p140_p2), %v1780_v2  ;;  %v1784_v5 = vld [vmem:[%s2526_s1 + $0x214] ss:$8 sps:$4 sm:$0xff] (!%p140_p2)   ;;  %v1786_v6 = vld [vmem:[%s2526_s1 + $0x10] ss:$8 sps:$4 sm:$0xff] (!%p140_p2)   ;;  %v1788_v8 = vld [vmem:[%s2526_s1 + $0x24] ss:$8 sps:$4 sm:$0xff] (!%p140_p2)  }
   0x8   : > { %1275 = vmatpush1.bf16.msra.mxu0 (!%p140_p2), %v1781_v3  ;;  %1170 = vmatprep.subr.bf16.mxu1 (!%p140_p2), %v1782_v4  ;;  %v1787_v7 = vld [vmem:[%s2526_s1 + $0x210] ss:$8 sps:$4 sm:$0xff] (!%p140_p2)   ;;  %v1790_v9 = vld [vmem:[%s2526_s1 + $0x224] ss:$8 sps:$4 sm:$0xff] (!%p140_p2)   ;;  %v1792_v10 = vld [vmem:[%s2526_s1 + $0x20] ss:$8 sps:$4 sm:$0xff] (!%p140_p2)  }
   0x9   : > { %1276 = vmatprep.subr.bf16.mxu0 (!%p140_p2), %v1784_v5  ;;  %v1793_v11 = vld [vmem:[%s2526_s1 + $0x220] ss:$8 sps:$4 sm:$0xff] (!%p140_p2)   ;;  %v1794_v12 = vld [vmem:[%s2526_s1 + $0x34] ss:$8 sps:$4 sm:$0xff] (!%p140_p2)   ;;  %v1798_v14 = vld [vmem:[%s2526_s1 + $0x30] ss:$8 sps:$4 sm:$0xff] (!%p140_p2)  }
   0xa   : > { %v1796_v13 = vld [vmem:[%s2526_s1 + $0x234] ss:$8 sps:$4 sm:$0xff] (!%p140_p2)   ;;  %v1799_v15 = vld [vmem:[%s2526_s1 + $0x230] ss:$8 sps:$4 sm:$0xff] (!%p140_p2)   ;;  %v1800_v16 = vld [vmem:[%s2526_s1 + $0x44] ss:$8 sps:$4 sm:$0xff] (!%p140_p2)  }
   0xb   : > { %1171 = vmatpush1.bf16.msra.mxu1 (!%p140_p2), %v1786_v6  ;;  %v1802_v17 = vld [vmem:[%s2526_s1 + $0x244] ss:$8 sps:$4 sm:$0xff] (!%p140_p2)   ;;  %v1804_v18 = vld [vmem:[%s2526_s1 + $0x40] ss:$8 sps:$4 sm:$0xff] (!%p140_p2)   ;;  %v1806_v20 = vld [vmem:[%s2526_s1 + $0x54] ss:$8 sps:$4 sm:$0xff] (!%p140_p2)  }
   0xc   : > { %1277 = vmatpush1.bf16.msra.mxu0 (!%p140_p2), %v1787_v7  ;;  %1172 = vmatprep.subr.bf16.mxu1 (!%p140_p2), %v1788_v8  ;;  %v1805_v19 = vld [vmem:[%s2526_s1 + $0x240] ss:$8 sps:$4 sm:$0xff] (!%p140_p2)   ;;  %v1808_v21 = vld [vmem:[%s2526_s1 + $0x254] ss:$8 sps:$4 sm:$0xff] (!%p140_p2)   ;;  %v1810_v22 = vld [vmem:[%s2526_s1 + $0x50] ss:$8 sps:$4 sm:$0xff] (!%p140_p2)  }
   0xd   : > { %1278 = vmatprep.subr.bf16.mxu0 %v1790_v9  ;;  %v1811_v23 = vld [vmem:[%s2526_s1 + $0x250] ss:$8 sps:$4 sm:$0xff]   ;;  %v1812_v24 = vld [vmem:[%s2526_s1 + $0x64] ss:$8 sps:$4 sm:$0xff]   ;;  %v1816_v26 = vld [vmem:[%s2526_s1 + $0x60] ss:$8 sps:$4 sm:$0xff]  }
   0xe   : > { %v1814_v25 = vld [vmem:[%s2526_s1 + $0x264] ss:$8 sps:$4 sm:$0xff]   ;;  %v1817_v27 = vld [vmem:[%s2526_s1 + $0x260] ss:$8 sps:$4 sm:$0xff]   ;;  %v1818_v28 = vld [vmem:[%s2526_s1 + $0x74] ss:$8 sps:$4 sm:$0xff]  }
   0xf   : > { %1173 = vmatpush1.bf16.msra.mxu1 %v1792_v10  ;;  %v1820_v29 = vld [vmem:[%s2526_s1 + $0x274] ss:$8 sps:$4 sm:$0xff]   ;;  %v1822_v30 = vld [vmem:[%s2526_s1 + $0x70] ss:$8 sps:$4 sm:$0xff]   ;;  %v1824_v32 = vld [vmem:[%s2526_s1 + $0x84] ss:$8 sps:$4 sm:$0xff]  }
  0x10   : > { %1279 = vmatpush1.bf16.msra.mxu0 %v1793_v11  ;;  %1174 = vmatprep.subr.bf16.mxu1 %v1794_v12  ;;  %v1823_v31 = vld [vmem:[%s2526_s1 + $0x270] ss:$8 sps:$4 sm:$0xff]   ;;  %p166_p3 = scmp.lt.s32.totalorder %s1532_s24, 7  ;;  %v1826_v33 = vld [vmem:[%s2526_s1 + $0x284] ss:$8 sps:$4 sm:$0xff]  }
  0x11   : > { %1280 = vmatprep.subr.bf16.mxu0 %v1796_v13  ;;  %v1828_v34 = vld [vmem:[%s2526_s1 + $0x80] ss:$8 sps:$4 sm:$0xff]   ;;  %v1830_v36 = vld [vmem:[%s2526_s1 + $0x94] ss:$8 sps:$4 sm:$0xff]   ;;  %v1834_v38 = vld [vmem:[%s2526_s1 + $0x90] ss:$8 sps:$4 sm:$0xff]  }
  0x12   : > { %v1829_v35 = vld [vmem:[%s2526_s1 + $0x280] ss:$8 sps:$4 sm:$0xff]   ;;  %s2530_s24 = smov (!%p166_p3, %s1532_s24), 7  ;;  %v1832_v37 = vld [vmem:[%s2526_s1 + $0x294] ss:$8 sps:$4 sm:$0xff]  }
  0x13   : > { %1175 = vmatpush1.bf16.msra.mxu1 %v1798_v14  ;;  %v1835_v39 = vld [vmem:[%s2526_s1 + $0x290] ss:$8 sps:$4 sm:$0xff]   ;;  %v1836_v40 = vld [vmem:[%s2526_s1 + $0xa4] ss:$8 sps:$4 sm:$0xff]   ;;  %s1766_s21 = smul.u32 36, %s2530_s24 }
  0x14   : > { %1281 = vmatpush1.bf16.msra.mxu0 %v1799_v15  ;;  %1176 = vmatprep.subr.bf16.mxu1 %v1800_v16  ;;  %v1838_v41 = vld [vmem:[%s2526_s1 + $0x2a4] ss:$8 sps:$4 sm:$0xff]   ;;  %v1840_v42 = vld [vmem:[%s2526_s1 + $0xa0] ss:$8 sps:$4 sm:$0xff]   ;;  %v1842_v44 = vld [vmem:[%s2526_s1 + $0xb4] ss:$8 sps:$4 sm:$0xff]  }
  0x15   : > { %1282 = vmatprep.subr.bf16.mxu0 %v1802_v17  ;;  %v1841_v43 = vld [vmem:[%s2526_s1 + $0x2a0] ss:$8 sps:$4 sm:$0xff]   ;;  %s2198_s13 = scalar_lea.vmem %s2525_s0, %s1766_s21  ;;  %v1844_v45 = vld [vmem:[%s2526_s1 + $0x2b4] ss:$8 sps:$4 sm:$0xff]   ;;  %v1846_v46 = vld [vmem:[%s2526_s1 + $0xb0] ss:$8 sps:$4 sm:$0xff]  }
  0x16   : > { %v1847_v47 = vld [vmem:[%s2526_s1 + $0x2b0] ss:$8 sps:$4 sm:$0xff]   ;;  %v1874_v48 = vld [vmem:[%s2198_s13 + $0x4] ss:$36 sps:$4 sm:$0xff]   ;;  %v1854_v54 = vld [vmem:[%s2526_s1 + $0xd4] ss:$8 sps:$4 sm:$0xff]  }
  0x17   : > { %1177 = vmatpush1.bf16.msra.mxu1 %v1804_v18  ;;  %v1848_v49 = vld [vmem:[%s2526_s1 + $0xc4] ss:$8 sps:$4 sm:$0xff]   ;;  %1200 = vmatprep.mubr.bf16.mxu1 %v1874_v48  ;;  %v1880_v51 = vld [vmem:[%s2198_s13 + $0x14] ss:$36 sps:$4 sm:$0xff]   ;;  %v1852_v52 = vld [vmem:[%s2526_s1 + $0xc0] ss:$8 sps:$4 sm:$0xff]  }
  0x18   : > { %1283 = vmatpush1.bf16.msra.mxu0 %v1805_v19  ;;  %1178 = vmatprep.subr.bf16.mxu1 %v1806_v20  ;;  %v1850_v50 = vld [vmem:[%s2526_s1 + $0x2c4] ss:$8 sps:$4 sm:$0xff]   ;;  %v1853_v53 = vld [vmem:[%s2526_s1 + $0x2c0] ss:$8 sps:$4 sm:$0xff]   ;;  %v1856_v55 = vld [vmem:[%s2526_s1 + $0x2d4] ss:$8 sps:$4 sm:$0xff]  }
  0x19   : > { %1284 = vmatprep.subr.bf16.mxu0 %v1808_v21  ;;  %1306 = vmatprep.mubr.bf16.mxu0 %v1880_v51  ;;  %v1858_v56 = vld [vmem:[%s2526_s1 + $0xd0] ss:$8 sps:$4 sm:$0xff]   ;;  %v1860_v58 = vld [vmem:[%s2526_s1 + $0xe4] ss:$8 sps:$4 sm:$0xff]   ;;  %v1864_v60 = vld [vmem:[%s2526_s1 + $0xe0] ss:$8 sps:$4 sm:$0xff]  }
  0x1a   : > { %v1859_v57 = vld [vmem:[%s2526_s1 + $0x2d0] ss:$8 sps:$4 sm:$0xff]   ;;  %v1862_v59 = vld [vmem:[%s2526_s1 + $0x2e4] ss:$8 sps:$4 sm:$0xff]   ;;  %v1865_v61 = vld [vmem:[%s2526_s1 + $0x2e0] ss:$8 sps:$4 sm:$0xff]  }
  0x1b   : > { %1179 = vmatpush1.bf16.msra.mxu1 %v1810_v22  ;;  %v1866_v62 = vld [vmem:[%s2526_s1 + $0xf4] ss:$8 sps:$4 sm:$0xff]   ;;  %v1870_v0 = vld [vmem:[%s2526_s1 + $0xf0] ss:$8 sps:$4 sm:$0xff]   ;;  %v1877_v2 = vld [vmem:[%s2526_s1 + $0x104] ss:$8 sps:$4 sm:$0xff]  }
  0x1c   : > { %1285 = vmatpush1.bf16.msra.mxu0 %v1811_v23  ;;  %1180 = vmatprep.subr.bf16.mxu1 %v1812_v24  ;;  %v1868_v63 = vld [vmem:[%s2526_s1 + $0x2f4] ss:$8 sps:$4 sm:$0xff]   ;;  %v1871_v1 = vld [vmem:[%s2526_s1 + $0x2f0] ss:$8 sps:$4 sm:$0xff]   ;;  %v1883_v3 = vld [vmem:[%s2526_s1 + $0x304] ss:$8 sps:$4 sm:$0xff]  }
  0x1d   : > { %1286 = vmatprep.subr.bf16.mxu0 %v1814_v25  ;;  %v1872_v4 = vld [vmem:[%s2198_s13] ss:$36 sps:$4 sm:$0xff]   ;;  %v1878_v6 = vld [vmem:[%s2198_s13 + $0x10] ss:$36 sps:$4 sm:$0xff]  }
  0x1e   : > { %v1875_v5 = vld [vmem:[%s2526_s1 + $0x100] ss:$8 sps:$4 sm:$0xff]   ;;  %v1886_v8 = vld [vmem:[%s2526_s1 + $0x114] ss:$8 sps:$4 sm:$0xff]   ;;  %v1884_v10 = vld [vmem:[%s2526_s1 + $0x110] ss:$8 sps:$4 sm:$0xff]  }
  0x1f   : > { %1181 = vmatpush1.bf16.msra.mxu1 %v1816_v26  ;;  %v1881_v7 = vld [vmem:[%s2526_s1 + $0x300] ss:$8 sps:$4 sm:$0xff]   ;;  %v1889_v9 = vld [vmem:[%s2526_s1 + $0x314] ss:$8 sps:$4 sm:$0xff]   ;;  %v1887_v11 = vld [vmem:[%s2526_s1 + $0x310] ss:$8 sps:$4 sm:$0xff]  }
  0x20   : > { %1287 = vmatpush1.bf16.msra.mxu0 %v1817_v27  ;;  %1182 = vmatprep.subr.bf16.mxu1 %v1818_v28  ;;  %v1892_v12 = vld [vmem:[%s2526_s1 + $0x124] ss:$8 sps:$4 sm:$0xff]   ;;  %v1890_v14 = vld [vmem:[%s2526_s1 + $0x120] ss:$8 sps:$4 sm:$0xff]   ;;  %v1898_v16 = vld [vmem:[%s2526_s1 + $0x134] ss:$8 sps:$4 sm:$0xff]  }
  0x21   : > { %1288 = vmatprep.subr.bf16.mxu0 %v1820_v29  ;;  %v1895_v13 = vld [vmem:[%s2526_s1 + $0x324] ss:$8 sps:$4 sm:$0xff]   ;;  %v1893_v15 = vld [vmem:[%s2526_s1 + $0x320] ss:$8 sps:$4 sm:$0xff]   ;;  %v1901_v17 = vld [vmem:[%s2526_s1 + $0x334] ss:$8 sps:$4 sm:$0xff]  }
  0x22   : > { %v1896_v18 = vld [vmem:[%s2526_s1 + $0x130] ss:$8 sps:$4 sm:$0xff]   ;;  %v1904_v20 = vld [vmem:[%s2526_s1 + $0x144] ss:$8 sps:$4 sm:$0xff]   ;;  %v1902_v22 = vld [vmem:[%s2526_s1 + $0x140] ss:$8 sps:$4 sm:$0xff]  }
  0x23   : > { %1183 = vmatpush1.bf16.msra.mxu1 %v1822_v30  ;;  %v1899_v19 = vld [vmem:[%s2526_s1 + $0x330] ss:$8 sps:$4 sm:$0xff]   ;;  %v1907_v21 = vld [vmem:[%s2526_s1 + $0x344] ss:$8 sps:$4 sm:$0xff]   ;;  %v1905_v23 = vld [vmem:[%s2526_s1 + $0x340] ss:$8 sps:$4 sm:$0xff]  }
  0x24   : > { %1289 = vmatpush1.bf16.msra.mxu0 %v1823_v31  ;;  %1184 = vmatprep.subr.bf16.mxu1 %v1824_v32  ;;  %v1910_v24 = vld [vmem:[%s2526_s1 + $0x154] ss:$8 sps:$4 sm:$0xff]   ;;  %v1908_v26 = vld [vmem:[%s2526_s1 + $0x150] ss:$8 sps:$4 sm:$0xff]   ;;  %v1916_v28 = vld [vmem:[%s2526_s1 + $0x164] ss:$8 sps:$4 sm:$0xff]  }
  0x25   : > { %1290 = vmatprep.subr.bf16.mxu0 %v1826_v33  ;;  %v1913_v25 = vld [vmem:[%s2526_s1 + $0x354] ss:$8 sps:$4 sm:$0xff]   ;;  %v1911_v27 = vld [vmem:[%s2526_s1 + $0x350] ss:$8 sps:$4 sm:$0xff]   ;;  %v1966_v31 = vld [vmem:[%s2198_s13 + $0x48] ss:$36 sps:$4 sm:$0xff]  }
  0x26   : > { %v1962_v29 = vld [vmem:[%s2198_s13 + $0x4c] ss:$36 sps:$4 sm:$0xff]   ;;  %v1964_v30 = vld [vmem:[%s2198_s13 + $0x5c] ss:$36 sps:$4 sm:$0xff]  }
  0x27   : > { %1185 = vmatpush1.bf16.msra.mxu1 %v1828_v34  ;;  %v1919_v32 = vld [vmem:[%s2526_s1 + $0x364] ss:$8 sps:$4 sm:$0xff]   ;;  %v1970_v33 = vld [vmem:[%s2198_s13 + $0x58] ss:$36 sps:$4 sm:$0xff]   ;;  %v1914_v34 = vld [vmem:[%s2526_s1 + $0x160] ss:$8 sps:$4 sm:$0xff]  }
  0x28   : > { %1291 = vmatpush1.bf16.msra.mxu0 %v1829_v35  ;;  %1186 = vmatprep.subr.bf16.mxu1 %v1830_v36  ;;  %v1917_v35 = vld [vmem:[%s2526_s1 + $0x360] ss:$8 sps:$4 sm:$0xff]   ;;  %v1922_v36 = vld [vmem:[%s2526_s1 + $0x174] ss:$8 sps:$4 sm:$0xff]   ;;  %v1932_v48 = vld [vmem:[%s2526_s1 + $0x190] ss:$8 sps:$4 sm:$0xff]  }
  0x29   : > { %1292 = vmatprep.subr.bf16.mxu0 %v1832_v37  ;;  %v1925_v37 = vld [vmem:[%s2526_s1 + $0x374] ss:$8 sps:$4 sm:$0xff]   ;;  %v1943_v51 = vld [vmem:[%s2526_s1 + $0x3a4] ss:$8 sps:$4 sm:$0xff]  }
  0x2b   : > { %1187 = vmatpush1.bf16.msra.mxu1 %v1834_v38  ;;  %v1920_v38 = vld [vmem:[%s2526_s1 + $0x170] ss:$8 sps:$4 sm:$0xff]  }
  0x2c   : > { %1293 = vmatpush1.bf16.msra.mxu0 %v1835_v39  ;;  %1188 = vmatprep.subr.bf16.mxu1 %v1836_v40  ;;  %v1923_v39 = vld [vmem:[%s2526_s1 + $0x370] ss:$8 sps:$4 sm:$0xff]   ;;  %v1928_v40 = vld [vmem:[%s2526_s1 + $0x184] ss:$8 sps:$4 sm:$0xff]  }
  0x2d   : > { %1294 = vmatprep.subr.bf16.mxu0 %v1838_v41  ;;  %v1982_v41 = vld [vmem:[%s2198_s13 + $0xc] ss:$36 sps:$4 sm:$0xff]  }
  0x2f   : > { %1189 = vmatpush1.bf16.msra.mxu1 %v1840_v42  ;;  %v1931_v42 = vld [vmem:[%s2526_s1 + $0x384] ss:$8 sps:$4 sm:$0xff]  }
  0x30   : > { %1295 = vmatpush1.bf16.msra.mxu0 %v1841_v43  ;;  %1190 = vmatprep.subr.bf16.mxu1 %v1842_v44  ;;  %v1985_v43 = vld [vmem:[%s2198_s13 + $0x1c] ss:$36 sps:$4 sm:$0xff]  }
  0x31   : > { %1296 = vmatprep.subr.bf16.mxu0 %v1844_v45  ;;  %v1926_v44 = vld [vmem:[%s2526_s1 + $0x180] ss:$8 sps:$4 sm:$0xff]  }
  0x32   : > { %v1929_v45 = vld [vmem:[%s2526_s1 + $0x380] ss:$8 sps:$4 sm:$0xff]  }
  0x33   : > { %1191 = vmatpush1.bf16.msra.mxu1 %v1846_v46  ;;  %v1934_v46 = vld [vmem:[%s2526_s1 + $0x194] ss:$8 sps:$4 sm:$0xff]  }
  0x34   : > { %1297 = vmatpush1.bf16.msra.mxu0 %v1847_v47  ;;  %1192 = vmatprep.subr.bf16.mxu1 %v1848_v49  ;;  %v1937_v47 = vld [vmem:[%s2526_s1 + $0x394] ss:$8 sps:$4 sm:$0xff]   ;;  %v1935_v49 = vld [vmem:[%s2526_s1 + $0x390] ss:$8 sps:$4 sm:$0xff]  }
  0x35   : > { %1298 = vmatprep.subr.bf16.mxu0 %v1850_v50  ;;  %v1940_v50 = vld [vmem:[%s2526_s1 + $0x1a4] ss:$8 sps:$4 sm:$0xff]  }
  0x37   : > { %1193 = vmatpush1.bf16.msra.mxu1 %v1852_v52  ;;  %v1938_v52 = vld [vmem:[%s2526_s1 + $0x1a0] ss:$8 sps:$4 sm:$0xff]  }
  0x38   : > { %1299 = vmatpush1.bf16.msra.mxu0 %v1853_v53  ;;  %1194 = vmatprep.subr.bf16.mxu1 %v1854_v54  ;;  %v1941_v53 = vld [vmem:[%s2526_s1 + $0x3a0] ss:$8 sps:$4 sm:$0xff]   ;;  %v1946_v54 = vld [vmem:[%s2526_s1 + $0x1b4] ss:$8 sps:$4 sm:$0xff]  }
  0x39   : > { %1300 = vmatprep.subr.bf16.mxu0 %v1856_v55  ;;  %v1949_v55 = vld [vmem:[%s2526_s1 + $0x3b4] ss:$8 sps:$4 sm:$0xff]  }
  0x3b   : > { %1195 = vmatpush1.bf16.msra.mxu1 %v1858_v56  ;;  %v1944_v56 = vld [vmem:[%s2526_s1 + $0x1b0] ss:$8 sps:$4 sm:$0xff]  }
  0x3c   : > { %1301 = vmatpush1.bf16.msra.mxu0 %v1859_v57  ;;  %1196 = vmatprep.subr.bf16.mxu1 %v1860_v58  ;;  %v1947_v57 = vld [vmem:[%s2526_s1 + $0x3b0] ss:$8 sps:$4 sm:$0xff]   ;;  %v1952_v58 = vld [vmem:[%s2526_s1 + $0x1c4] ss:$8 sps:$4 sm:$0xff]  }
  0x3d   : > { %1302 = vmatprep.subr.bf16.mxu0 %v1862_v59  ;;  %v1955_v59 = vld [vmem:[%s2526_s1 + $0x3c4] ss:$8 sps:$4 sm:$0xff]  }
  0x3f   : > { %1197 = vmatpush1.bf16.msra.mxu1 %v1864_v60  ;;  %v1950_v60 = vld [vmem:[%s2526_s1 + $0x1c0] ss:$8 sps:$4 sm:$0xff]  }
  0x40   : > { %1303 = vmatpush1.bf16.msra.mxu0 %v1865_v61  ;;  %1198 = vmatprep.subr.bf16.mxu1 %v1866_v62  ;;  %v1953_v61 = vld [vmem:[%s2526_s1 + $0x3c0] ss:$8 sps:$4 sm:$0xff]   ;;  %v1958_v62 = vld [vmem:[%s2526_s1 + $0x1d4] ss:$8 sps:$4 sm:$0xff]  }
  0x41   : > { %1304 = vmatprep.subr.bf16.mxu0 %v1868_v63  ;;  %v1961_v63 = vld [vmem:[%s2526_s1 + $0x3d4] ss:$8 sps:$4 sm:$0xff]  }
  0x43   : > { %1199 = vmatpush1.bf16.msra.mxu1 %v1870_v0  ;;  %v1956_v0 = vld [vmem:[%s2526_s1 + $0x1d0] ss:$8 sps:$4 sm:$0xff]  }
  0x44   : > { %1305 = vmatpush1.bf16.msra.mxu0 %v1871_v1  ;;  %1221 = vmatprep.subr.bf16.mxu1 %v1877_v2  ;;  %v1959_v1 = vld [vmem:[%s2526_s1 + $0x3d0] ss:$8 sps:$4 sm:$0xff]   ;;  %v1969_v2 = vld [vmem:[%s2526_s1 + $0x1e4] ss:$8 sps:$4 sm:$0xff]  }
  0x45   : > { %1327 = vmatprep.subr.bf16.mxu0 %v1883_v3  ;;  %v1973_v3 = vld [vmem:[%s2526_s1 + $0x3e4] ss:$8 sps:$4 sm:$0xff]  }
  0x46   : > { %1201 = vmatmul.mubr.bf16.vlgmr.msra.gmra.mrb[0].mxu1 %v1872_v4  ;;  %v1967_v4 = vld [vmem:[%s2526_s1 + $0x1e0] ss:$8 sps:$4 sm:$0xff]  }
  0x47   : > { %1307 = vmatmul.mubr.bf16.vlgmr.msra.gmra.mrb[0].mxu0 %v1878_v6  ;;  %1222 = vmatpush1.bf16.msra.mxu1 %v1875_v5  ;;  %v1971_v5 = vld [vmem:[%s2526_s1 + $0x3e0] ss:$8 sps:$4 sm:$0xff]   ;;  %v1976_v6 = vld [vmem:[%s2526_s1 + $0x1f4] ss:$8 sps:$4 sm:$0xff]  }
  0x48   : > { %1328 = vmatpush1.bf16.msra.mxu0 %v1881_v7  ;;  %1223 = vmatprep.subr.bf16.mxu1 %v1886_v8  ;;  %v1979_v7 = vld [vmem:[%s2526_s1 + $0x3f4] ss:$8 sps:$4 sm:$0xff]   ;;  %v1974_v8 = vld [vmem:[%s2526_s1 + $0x1f0] ss:$8 sps:$4 sm:$0xff]  }
  0x49   : > { %1329 = vmatprep.subr.bf16.mxu0 %v1889_v9  ;;  %1210 = vmatprep.mubr.bf16.mxu1 %v1962_v29  ;;  %v1977_v9 = vld [vmem:[%s2526_s1 + $0x3f0] ss:$8 sps:$4 sm:$0xff]   ;;  %v2012_v29 = vld [vmem:[%s2526_s1 + $0x464] ss:$8 sps:$4 sm:$0xff]  }
  0x4a   : > { %1316 = vmatprep.mubr.bf16.mxu0 %v1964_v30  ;;  %v2010_v30 = vld [vmem:[%s2526_s1 + $0x460] ss:$8 sps:$4 sm:$0xff]  }
  0x4b   : > { %1224 = vmatpush1.bf16.msra.mxu1 %v1884_v10  ;;  %v1988_v10 = vld [vmem:[%s2526_s1 + $0x404] ss:$8 sps:$4 sm:$0xff]  }
  0x4c   : > { %1330 = vmatpush1.bf16.msra.mxu0 %v1887_v11  ;;  %1225 = vmatprep.subr.bf16.mxu1 %v1892_v12  ;;  %v1980_v11 = vld [vmem:[%s2198_s13 + $0x8] ss:$36 sps:$4 sm:$0xff]   ;;  %v1983_v12 = vld [vmem:[%s2198_s13 + $0x18] ss:$36 sps:$4 sm:$0xff]  }
  0x4d   : > { %1331 = vmatprep.subr.bf16.mxu0 %v1895_v13  ;;  %v1986_v13 = vld [vmem:[%s2526_s1 + $0x400] ss:$8 sps:$4 sm:$0xff]  }
  0x4e   : > { %1211 = vmatmul.mubr.bf16.gmra.mrb[4].mxu1 %v1966_v31  ;;  %v2015_v31 = vld [vmem:[%s2526_s1 + $0x474] ss:$8 sps:$4 sm:$0xff]  }
  0x4f   : > { %1226 = vmatpush1.bf16.msra.mxu1 %v1890_v14  ;;  %1317 = vmatmul.mubr.bf16.gmra.mrb[4].mxu0 %v1970_v33  ;;  %v1991_v14 = vld [vmem:[%s2526_s1 + $0x414] ss:$8 sps:$4 sm:$0xff]   ;;  %v2016_v33 = vld [vmem:[%s2198_s13 + $0x20] ss:$36 sps:$4 sm:$0xff]  }
  0x50   : > { %1332 = vmatpush1.bf16.msra.mxu0 %v1893_v15  ;;  %1227 = vmatprep.subr.bf16.mxu1 %v1898_v16  ;;  %v1992_v15 = vld [vmem:[%s2198_s13 + $0x54] ss:$36 sps:$4 sm:$0xff]   ;;  %v1994_v16 = vld [vmem:[%s2198_s13 + $0x64] ss:$36 sps:$4 sm:$0xff]  }
  0x51   : > { %1333 = vmatprep.subr.bf16.mxu0 %v1901_v17  ;;  %1253 = vmatprep.mubr.bf16.mxu1 %v1982_v41  ;;  %v1989_v17 = vld [vmem:[%s2526_s1 + $0x410] ss:$8 sps:$4 sm:$0xff]  }
  0x52   : > { %1359 = vmatprep.mubr.bf16.mxu0 %v1985_v43 }
  0x53   : > { %1228 = vmatpush1.bf16.msra.mxu1 %v1896_v18  ;;  %v2000_v18 = vld [vmem:[%s2526_s1 + $0x424] ss:$8 sps:$4 sm:$0xff]  }
  0x54   : > { %1334 = vmatpush1.bf16.msra.mxu0 %v1899_v19  ;;  %1229 = vmatprep.subr.bf16.mxu1 %v1904_v20  ;;  %v1996_v19 = vld [vmem:[%s2198_s13 + $0x50] ss:$36 sps:$4 sm:$0xff]   ;;  %v1997_v20 = vld [vmem:[%s2198_s13 + $0x60] ss:$36 sps:$4 sm:$0xff]  }
  0x55   : > { %1335 = vmatprep.subr.bf16.mxu0 %v1907_v21  ;;  %v1998_v21 = vld [vmem:[%s2526_s1 + $0x420] ss:$8 sps:$4 sm:$0xff]  }
  0x57   : > { %1230 = vmatpush1.bf16.msra.mxu1 %v1902_v22  ;;  %v2003_v22 = vld [vmem:[%s2526_s1 + $0x434] ss:$8 sps:$4 sm:$0xff]  }
  0x58   : > { %1336 = vmatpush1.bf16.msra.mxu0 %v1905_v23  ;;  %1231 = vmatprep.subr.bf16.mxu1 %v1910_v24  ;;  %v2001_v23 = vld [vmem:[%s2526_s1 + $0x430] ss:$8 sps:$4 sm:$0xff]   ;;  %v2006_v24 = vld [vmem:[%s2526_s1 + $0x444] ss:$8 sps:$4 sm:$0xff]  }
  0x59   : > { %1337 = vmatprep.subr.bf16.mxu0 %v1913_v25  ;;  %v2026_v25 = vmov 0  }
  0x5b   : > { %1232 = vmatpush1.bf16.msra.mxu1 %v1908_v26  ;;  %v2004_v26 = vld [vmem:[%s2526_s1 + $0x440] ss:$8 sps:$4 sm:$0xff]  }
  0x5c   : > { %1338 = vmatpush1.bf16.msra.mxu0 %v1911_v27  ;;  %1233 = vmatprep.subr.bf16.mxu1 %v1916_v28  ;;  %v2009_v27 = vld [vmem:[%s2526_s1 + $0x454] ss:$8 sps:$4 sm:$0xff]   ;;  %v2007_v28 = vld [vmem:[%s2526_s1 + $0x450] ss:$8 sps:$4 sm:$0xff]  }
  0x5d   : > { %1339 = vmatprep.subr.bf16.mxu0 %v1919_v32  ;;  %v2013_v32 = vld [vmem:[%s2526_s1 + $0x470] ss:$8 sps:$4 sm:$0xff]  }
  0x5f   : > { %1234 = vmatpush1.bf16.msra.mxu1 %v1914_v34  ;;  %v2017_v34 = vld [vmem:[%s2198_s13 + $0x68] ss:$36 sps:$4 sm:$0xff]   ;;  %s1705_s13 = sshll.u32 %s2530_s24, 3 }
  0x60   : > { %1340 = vmatpush1.bf16.msra.mxu0 %v1917_v35  ;;  %1235 = vmatprep.subr.bf16.mxu1 %v1922_v36  ;;  %v346_v35 = vlaneseq  ;;  %s177_s18 = scalar_lea.vmem %s2528_s3, %s1705_s13 }
  0x61   : > { %1341 = vmatprep.subr.bf16.mxu0 %v1925_v37 }
  0x62   : > { %v347_v36 = vshrl.u32 %v346_v35, 7 }
  0x63   : > { %1236 = vmatpush1.bf16.msra.mxu1 %v1920_v38 }
  0x64   : > { %1342 = vmatpush1.bf16.msra.mxu0 %v1923_v39  ;;  %1237 = vmatprep.subr.bf16.mxu1 %v1928_v40  ;;  %v348_v40 = vsub.s32 0, %v347_v36  ;;  %v352_v43 = vsub.s32 1, %v347_v36 }
  0x65   : > { %1343 = vmatprep.subr.bf16.mxu0 %v1931_v42  ;;  %v344_v42 = vld [vmem:[%s2527_s2] sm:$0x3] }
  0x67   : > { %1238 = vmatpush1.bf16.msra.mxu1 %v1926_v44  ;;  %v349_v44 = vrot.slane %v344_v42, %v348_v40 }
  0x68   : > { %1344 = vmatpush1.bf16.msra.mxu0 %v1929_v45  ;;  %1239 = vmatprep.subr.bf16.mxu1 %v1934_v46  ;;  %v353_v45 = vrot.slane %v344_v42, %v352_v43 }
  0x69   : > { %1345 = vmatprep.subr.bf16.mxu0 %v1937_v47 }
  0x6b   : > { %1240 = vmatpush1.bf16.msra.mxu1 %v1932_v48 }
  0x6c   : > { %1346 = vmatpush1.bf16.msra.mxu0 %v1935_v49  ;;  %1241 = vmatprep.subr.bf16.mxu1 %v1940_v50 }
  0x6d   : > { %1347 = vmatprep.subr.bf16.mxu0 %v1943_v51 }
  0x6f   : > { %1242 = vmatpush1.bf16.msra.mxu1 %v1938_v52 }
  0x70   : > { %1348 = vmatpush1.bf16.msra.mxu0 %v1941_v53  ;;  %1243 = vmatprep.subr.bf16.mxu1 %v1946_v54 }
  0x71   : > { %1349 = vmatprep.subr.bf16.mxu0 %v1949_v55 }
  0x73   : > { %1244 = vmatpush1.bf16.msra.mxu1 %v1944_v56 }
  0x74   : > { %1350 = vmatpush1.bf16.msra.mxu0 %v1947_v57  ;;  %1245 = vmatprep.subr.bf16.mxu1 %v1952_v58 }
  0x75   : > { %1351 = vmatprep.subr.bf16.mxu0 %v1955_v59 }
  0x77   : > { %1246 = vmatpush1.bf16.msra.mxu1 %v1950_v60 }
  0x78   : > { %1352 = vmatpush1.bf16.msra.mxu0 %v1953_v61  ;;  %1247 = vmatprep.subr.bf16.mxu1 %v1958_v62 }
  0x79   : > { %1353 = vmatprep.subr.bf16.mxu0 %v1961_v63 }
  0x7b   : > { %1248 = vmatpush1.bf16.msra.mxu1 %v1956_v0 }
  0x7c   : > { %1354 = vmatpush1.bf16.msra.mxu0 %v1959_v1  ;;  %1249 = vmatprep.subr.bf16.mxu1 %v1969_v2 }
  0x7d   : > { %1355 = vmatprep.subr.bf16.mxu0 %v1973_v3 }
  0x7f   : > { %1250 = vmatpush1.bf16.msra.mxu1 %v1967_v4 }
  0x80   : > { %1356 = vmatpush1.bf16.msra.mxu0 %v1971_v5  ;;  %1251 = vmatprep.subr.bf16.mxu1 %v1976_v6 }
  0x81   : > { %1357 = vmatprep.subr.bf16.mxu0 %v1979_v7 }
  0x83   : > { %1252 = vmatpush1.bf16.msra.mxu1 %v1974_v8 }
  0x84   : > { %1358 = vmatpush1.bf16.msra.mxu0 %v1977_v9  ;;  %1710 = vmatprep.subr.bf16.mxu1 %v1988_v10 }
  0x85   : > { %1380 = vmatprep.subr.bf16.mxu0 %v1988_v10 }
  0x86   : > { %1254 = vmatmul.mubr.bf16.vlgmr.msra.gmra.mrb[0].mxu1 %v1980_v11 }
  0x87   : > { %1360 = vmatmul.mubr.bf16.vlgmr.msra.gmra.mrb[0].mxu0 %v1983_v12  ;;  %1718 = vmatpush1.bf16.msra.mxu1 %v1986_v13 }
  0x88   : > { %1381 = vmatpush1.bf16.msra.mxu0 %v1986_v13  ;;  %1711 = vmatprep.subr.bf16.mxu1 %v1991_v14 }
  0x89   : > { %1382 = vmatprep.subr.bf16.mxu0 %v1991_v14  ;;  %1263 = vmatprep.mubr.bf16.mxu1 %v1992_v15 }
  0x8a   : > { %1369 = vmatprep.mubr.bf16.mxu0 %v1994_v16 }
  0x8b   : > { %1719 = vmatpush1.bf16.msra.mxu1 %v1989_v17 }
  0x8c   : > { %1383 = vmatpush1.bf16.msra.mxu0 %v1989_v17  ;;  %1712 = vmatprep.subr.bf16.mxu1 %v2000_v18 }
  0x8d   : > { %1384 = vmatprep.subr.bf16.mxu0 %v2000_v18 }
  0x8e   : > { %1264 = vmatmul.mubr.bf16.gmra.mrb[4].mxu1 %v1996_v19 }
  0x8f   : > { %1370 = vmatmul.mubr.bf16.gmra.mrb[4].mxu0 %v1997_v20  ;;  %1720 = vmatpush1.bf16.msra.mxu1 %v1998_v21 }
  0x90   : > { %1385 = vmatpush1.bf16.msra.mxu0 %v1998_v21  ;;  %1713 = vmatprep.subr.bf16.mxu1 %v2003_v22 }
  0x91   : > { %1386 = vmatprep.subr.bf16.mxu0 %v2003_v22  ;;  %1412 = vmatprep.mubr.bf16.mxu0 %v2026_v25 }
  0x92   : > { %1422 = vmatprep.mubr.bf16.mxu1 %v2026_v25 }
  0x93   : > { %1721 = vmatpush1.bf16.msra.mxu1 %v2001_v23 }
  0x94   : > { %1387 = vmatpush1.bf16.msra.mxu0 %v2001_v23  ;;  %1714 = vmatprep.subr.bf16.mxu1 %v2006_v24 }
  0x95   : > { %1388 = vmatprep.subr.bf16.mxu0 %v2006_v24 }
  0x97   : > { %1722 = vmatpush1.bf16.msra.mxu1 %v2004_v26 }
  0x98   : > { %1389 = vmatpush1.bf16.msra.mxu0 %v2004_v26  ;;  %1715 = vmatprep.subr.bf16.mxu1 %v2009_v27 }
  0x99   : > { %1390 = vmatprep.subr.bf16.mxu0 %v2009_v27 }
  0x9b   : > { %1723 = vmatpush1.bf16.msra.mxu1 %v2007_v28 }
  0x9c   : > { %1391 = vmatpush1.bf16.msra.mxu0 %v2007_v28  ;;  %1716 = vmatprep.subr.bf16.mxu1 %v2012_v29 }
  0x9d   : > { %1392 = vmatprep.subr.bf16.mxu0 %v2012_v29 }
  0x9f   : > { %1724 = vmatpush1.bf16.msra.mxu1 %v2010_v30 }
  0xa0   : > { %1393 = vmatpush1.bf16.msra.mxu0 %v2010_v30  ;;  %1717 = vmatprep.subr.bf16.mxu1 %v2015_v31 }
  0xa1   : > { %1394 = vmatprep.subr.bf16.mxu0 %v2015_v31 }
  0xa3   : > { %1725 = vmatpush1.bf16.msra.mxu1 %v2013_v32 }
  0xa4   : > { %1395 = vmatpush1.bf16.msra.mxu0 %v2013_v32 }
  0xa6   : > { %1423 = vmatmul.mubr.bf16.vlgmr.msra.gmra.mrb[8].mxu1 %v2017_v34 }
  0xa7   : > { %1413 = vmatmul.mubr.bf16.vlgmr.msra.gmra.mrb[0].mxu0 %v2016_v33 }
 0x159   : > { %v1255_v37 = vpop.f32.mrb[0].mxu1 }
 0x15a   : > { %v1257_v38 = vpop.f32.mrb[1].mxu1  ;;  %v1726_v62 = vadd.f32 %v1255_v37, %v349_v44 }
 0x15b   : > { %v1259_v39 = vpop.f32.mrb[2].mxu1  ;;  %v1728_v63 = vadd.f32 %v1257_v38, %v353_v45 }
 0x15c   : > { %v1261_v41 = vpop.f32.mrb[3].mxu1  ;;  %v1730_v2 = vadd.f32 %v1259_v39, %v349_v44 }
 0x15d   : > { %v1732_v7 = vadd.f32 %v1261_v41, %v353_v45 }
 0x161   : > { %v1265_v46 = vpop.f32.mrb[4].mxu1 }
 0x162   : > { %v1371_v47 = vpop.f32.mrb[4].mxu0  ;;  %v1734_v48 = vadd.f32 %v1265_v46, %v349_v44  ;;  %v1267_v49 = vpop.f32.mrb[5].mxu1 }
 0x163   : > { %v1373_v50 = vpop.f32.mrb[5].mxu0  ;;  %v1737_v51 = vadd.f32 %v1267_v49, %v353_v45  ;;  %v1269_v52 = vpop.f32.mrb[6].mxu1 }
 0x164   : > { %v1375_v53 = vpop.f32.mrb[6].mxu0  ;;  %v1735_v54 = vadd.f32 %v1734_v48, %v1371_v47  ;;  %v1740_v55 = vadd.f32 %v1269_v52, %v349_v44  ;;  %v1271_v56 = vpop.f32.mrb[7].mxu1 }
 0x165   : > { %v1377_v57 = vpop.f32.mrb[7].mxu0  ;;  %v1738_v58 = vadd.f32 %v1737_v51, %v1373_v50  ;;  %v1743_v59 = vadd.f32 %v1271_v56, %v353_v45 }
 0x166   : > { %v1741_v60 = vadd.f32 %v1740_v55, %v1375_v53 }
 0x167   : > { %v1744_v61 = vadd.f32 %v1743_v59, %v1377_v57 }
 0x179   : > { %v1424_v1 = vpop.f32.mrb[8].mxu1 }
 0x17a   : > { %v1414_v0 = vpop.f32.mrb[0].mxu0  ;;  %v1736_v4 = vadd.f32 %v1735_v54, %v1424_v1  ;;  %v1426_v6 = vpop.f32.mrb[9].mxu1 }
 0x17b   : > { %v1727_v3 = vadd.f32 %v1726_v62, %v1414_v0  ;;  %v1416_v5 = vpop.f32.mrb[1].mxu0  ;;  %v1739_v9 = vadd.f32 %v1738_v58, %v1426_v6  ;;  %v1428_v11 = vpop.f32.mrb[10].mxu1 }
 0x17c   : > { %v1729_v8 = vadd.f32 %v1728_v63, %v1416_v5  ;;  %v1418_v10 = vpop.f32.mrb[2].mxu0  ;;  %v1437_v13 = vmax.f32 %v1736_v4, 0.0  ;;  %v1742_v15 = vadd.f32 %v1741_v60, %v1428_v11  ;;  %v1430_v17 = vpop.f32.mrb[11].mxu1 }
 0x17d   : > { %v1433_v12 = vmax.f32 %v1727_v3, 0.0  ;;  %v1731_v14 = vadd.f32 %v1730_v2, %v1418_v10  ;;  %v1420_v16 = vpop.f32.mrb[3].mxu0  ;;  %v1438_v19 = vmax.f32 %v1739_v9, 0.0  ;;  %v1745_v21 = vadd.f32 %v1744_v61, %v1430_v17 }
 0x17e   : > { %v1434_v18 = vmax.f32 %v1729_v8, 0.0  ;;  %v1733_v20 = vadd.f32 %v1732_v7, %v1420_v16  ;;  %v1439_v23 = vmax.f32 %v1742_v15, 0.0 }
 0x17f   : > { %v1435_v22 = vmax.f32 %v1731_v14, 0.0  ;;  %v1708_v25 = vpack.c.bf16 %v1438_v19, %v1437_v13  ;;  %v1440_v27 = vmax.f32 %v1745_v21, 0.0 }
 0x180   : > { %v1706_v24 = vpack.c.bf16 %v1434_v18, %v1433_v12  ;;  %v1436_v26 = vmax.f32 %v1733_v20, 0.0 }
 0x181   : > { %v1709_v29 = vpack.c.bf16 %v1440_v27, %v1439_v23  ;;  %1467 = vst [vmem:[%s177_s18 + $0x10] sm:$0xff] %v1708_v25 }
 0x182   : > { %1465 = vst [vmem:[%s177_s18] sm:$0xff] %v1706_v24  ;;  %v1707_v28 = vpack.c.bf16 %v1436_v26, %v1435_v22 }
 0x183   : > { %1468 = vst [vmem:[%s177_s18 + $0x18] sm:$0xff] %v1709_v29 }
 0x184   : > { %1466 = vst [vmem:[%s177_s18 + $0x8] sm:$0xff] %v1707_v28 }
 0x185 PF: > { %s13_s12 = sadd.s32 1, %s2024_s12  }
 0x186   : > { %p10_p4 = scmp.ge.s32.totalorder %s13_s12, 4  }
 0x188   :  { %12 = sbr.rel (!%p10_p4) target bundleno = 1 (0x1), region = 62 }

// kernel: dense_correspondence_forward.9
= control target key start
LH: loop header
LB: loop body
LE: loop exit
PB: predicated region body
PF: predicated region fallthrough
CT: control target
= control target key end

     0   :  { %s8385_s1 = inlined_call_operand.vmem [shape: bf16[2304,512], index: 1, kind: input, shape index: {}]   ;;  %s8386_s0 = inlined_call_operand.vmem [shape: bf16[16,2304], index: 0, kind: input, shape index: {}]   ;;  %s8387_s3 = inlined_call_operand.vmem [shape: bf16[512,128], index: 3, kind: input, shape index: {}]   ;;  %s8388_s2 = inlined_call_operand.vmem [shape: f32[1,512], index: 2, kind: input, shape index: {}]   ;;  %s8389_s5 = inlined_call_operand.vmem [shape: bf16[16,512], index: 5, kind: output, shape index: {0}]   ;;  %s8390_s4 = inlined_call_operand.vmem [shape: f32[1,128], index: 4, kind: input, shape index: {}]   ;;  %s8391_s6 = inlined_call_operand.vmem [shape: f32[16,128], index: 6, kind: output, shape index: {1}]  }
   0x1   :  { %v5525_v0 = vld [vmem:[%s8385_s1 + $0x4] ss:$16 sps:$4 sm:$0xff]   ;;  %v5527_v1 = vld [vmem:[%s8385_s1 + $0xc] ss:$16 sps:$4 sm:$0xff]   ;;  %v5529_v2 = vld [vmem:[%s8385_s1] ss:$16 sps:$4 sm:$0xff]  }
   0x2   :  { %3609 = vmatprep.subr.bf16.mxu0 %v5525_v0  ;;  %v5530_v3 = vld [vmem:[%s8385_s1 + $0x8] ss:$16 sps:$4 sm:$0xff]   ;;  %3996 = vmatprep.subr.bf16.mxu1 %v5527_v1  ;;  %v5531_v4 = vld [vmem:[%s8385_s1 + $0x24] ss:$16 sps:$4 sm:$0xff]   ;;  %v5533_v5 = vld [vmem:[%s8385_s1 + $0x2c] ss:$16 sps:$4 sm:$0xff]  }
   0x3   :  { %3610 = vmatpush1.bf16.msra.mxu0 %v5529_v2  ;;  %3997 = vmatpush1.bf16.msra.mxu1 %v5530_v3  ;;  %v5535_v6 = vld [vmem:[%s8385_s1 + $0x20] ss:$16 sps:$4 sm:$0xff]   ;;  %v5536_v7 = vld [vmem:[%s8385_s1 + $0x28] ss:$16 sps:$4 sm:$0xff]   ;;  %v5537_v8 = vld [vmem:[%s8385_s1 + $0x44] ss:$16 sps:$4 sm:$0xff]  }
   0x4   :  { %3611 = vmatprep.subr.bf16.mxu0 %v5531_v4  ;;  %3998 = vmatprep.subr.bf16.mxu1 %v5533_v5  ;;  %v5539_v9 = vld [vmem:[%s8385_s1 + $0x4c] ss:$16 sps:$4 sm:$0xff]   ;;  %v5541_v10 = vld [vmem:[%s8385_s1 + $0x40] ss:$16 sps:$4 sm:$0xff]   ;;  %v5542_v11 = vld [vmem:[%s8385_s1 + $0x48] ss:$16 sps:$4 sm:$0xff]  }
   0x5   :  { %v5543_v12 = vld [vmem:[%s8385_s1 + $0x64] ss:$16 sps:$4 sm:$0xff]   ;;  %v5545_v13 = vld [vmem:[%s8385_s1 + $0x6c] ss:$16 sps:$4 sm:$0xff]   ;;  %v5547_v14 = vld [vmem:[%s8385_s1 + $0x60] ss:$16 sps:$4 sm:$0xff]  }
   0x6   :  { %v5548_v15 = vld [vmem:[%s8385_s1 + $0x68] ss:$16 sps:$4 sm:$0xff]   ;;  %v5549_v16 = vld [vmem:[%s8385_s1 + $0x84] ss:$16 sps:$4 sm:$0xff]   ;;  %v5551_v17 = vld [vmem:[%s8385_s1 + $0x8c] ss:$16 sps:$4 sm:$0xff]  }
   0x7   :  { %3612 = vmatpush1.bf16.msra.mxu0 %v5535_v6  ;;  %3999 = vmatpush1.bf16.msra.mxu1 %v5536_v7  ;;  %v5553_v18 = vld [vmem:[%s8385_s1 + $0x80] ss:$16 sps:$4 sm:$0xff]   ;;  %v5554_v19 = vld [vmem:[%s8385_s1 + $0x88] ss:$16 sps:$4 sm:$0xff]   ;;  %v5555_v20 = vld [vmem:[%s8385_s1 + $0xa4] ss:$16 sps:$4 sm:$0xff]  }
   0x8   :  { %3613 = vmatprep.subr.bf16.mxu0 %v5537_v8  ;;  %4000 = vmatprep.subr.bf16.mxu1 %v5539_v9  ;;  %v5557_v21 = vld [vmem:[%s8385_s1 + $0xac] ss:$16 sps:$4 sm:$0xff]   ;;  %v5559_v22 = vld [vmem:[%s8385_s1 + $0xa0] ss:$16 sps:$4 sm:$0xff]   ;;  %v5560_v23 = vld [vmem:[%s8385_s1 + $0xa8] ss:$16 sps:$4 sm:$0xff]  }
   0x9   :  { %v5561_v24 = vld [vmem:[%s8385_s1 + $0xc4] ss:$16 sps:$4 sm:$0xff]   ;;  %v5563_v25 = vld [vmem:[%s8385_s1 + $0xcc] ss:$16 sps:$4 sm:$0xff]   ;;  %v5565_v26 = vld [vmem:[%s8385_s1 + $0xc0] ss:$16 sps:$4 sm:$0xff]  }
   0xa   :  { %v5566_v27 = vld [vmem:[%s8385_s1 + $0xc8] ss:$16 sps:$4 sm:$0xff]   ;;  %v5567_v28 = vld [vmem:[%s8385_s1 + $0xe4] ss:$16 sps:$4 sm:$0xff]   ;;  %v5569_v29 = vld [vmem:[%s8385_s1 + $0xec] ss:$16 sps:$4 sm:$0xff]  }
   0xb   :  { %3614 = vmatpush1.bf16.msra.mxu0 %v5541_v10  ;;  %4001 = vmatpush1.bf16.msra.mxu1 %v5542_v11  ;;  %v5571_v30 = vld [vmem:[%s8385_s1 + $0xe0] ss:$16 sps:$4 sm:$0xff]   ;;  %v5572_v31 = vld [vmem:[%s8385_s1 + $0xe8] ss:$16 sps:$4 sm:$0xff]   ;;  %v5573_v32 = vld [vmem:[%s8385_s1 + $0x104] ss:$16 sps:$4 sm:$0xff]  }
   0xc   :  { %3615 = vmatprep.subr.bf16.mxu0 %v5543_v12  ;;  %4002 = vmatprep.subr.bf16.mxu1 %v5545_v13  ;;  %v5575_v33 = vld [vmem:[%s8385_s1 + $0x10c] ss:$16 sps:$4 sm:$0xff]   ;;  %v5577_v34 = vld [vmem:[%s8385_s1 + $0x100] ss:$16 sps:$4 sm:$0xff]   ;;  %v5578_v35 = vld [vmem:[%s8385_s1 + $0x108] ss:$16 sps:$4 sm:$0xff]  }
   0xd   :  { %v5579_v36 = vld [vmem:[%s8385_s1 + $0x124] ss:$16 sps:$4 sm:$0xff]   ;;  %v5581_v37 = vld [vmem:[%s8385_s1 + $0x12c] ss:$16 sps:$4 sm:$0xff]   ;;  %v5583_v38 = vld [vmem:[%s8385_s1 + $0x120] ss:$16 sps:$4 sm:$0xff]  }
   0xe   :  { %v5584_v39 = vld [vmem:[%s8385_s1 + $0x128] ss:$16 sps:$4 sm:$0xff]   ;;  %v5585_v40 = vld [vmem:[%s8385_s1 + $0x144] ss:$16 sps:$4 sm:$0xff]   ;;  %v5587_v41 = vld [vmem:[%s8385_s1 + $0x14c] ss:$16 sps:$4 sm:$0xff]  }
   0xf   :  { %3616 = vmatpush1.bf16.msra.mxu0 %v5547_v14  ;;  %4003 = vmatpush1.bf16.msra.mxu1 %v5548_v15  ;;  %v5589_v42 = vld [vmem:[%s8385_s1 + $0x140] ss:$16 sps:$4 sm:$0xff]   ;;  %v5590_v43 = vld [vmem:[%s8385_s1 + $0x148] ss:$16 sps:$4 sm:$0xff]   ;;  %v5591_v44 = vld [vmem:[%s8385_s1 + $0x164] ss:$16 sps:$4 sm:$0xff]  }
  0x10   :  { %3617 = vmatprep.subr.bf16.mxu0 %v5549_v16  ;;  %4004 = vmatprep.subr.bf16.mxu1 %v5551_v17  ;;  %v5593_v45 = vld [vmem:[%s8385_s1 + $0x16c] ss:$16 sps:$4 sm:$0xff]   ;;  %v5595_v46 = vld [vmem:[%s8385_s1 + $0x160] ss:$16 sps:$4 sm:$0xff]   ;;  %v5596_v47 = vld [vmem:[%s8385_s1 + $0x168] ss:$16 sps:$4 sm:$0xff]  }
  0x11   :  { %v5623_v48 = vld [vmem:[%s8386_s0 + $0x4] ss:$72 sps:$4 sm:$0xff]   ;;  %v5601_v51 = vld [vmem:[%s8385_s1 + $0x180] ss:$16 sps:$4 sm:$0xff]   ;;  %v5602_v52 = vld [vmem:[%s8385_s1 + $0x188] ss:$16 sps:$4 sm:$0xff]  }
  0x12   :  { %v5597_v49 = vld [vmem:[%s8385_s1 + $0x184] ss:$16 sps:$4 sm:$0xff]   ;;  %v5599_v50 = vld [vmem:[%s8385_s1 + $0x18c] ss:$16 sps:$4 sm:$0xff]   ;;  %3641 = vmatprep.mubr.bf16.mxu0 %v5623_v48  ;;  %4028 = vmatprep.mubr.bf16.mxu1 %v5623_v48  ;;  %v5607_v55 = vld [vmem:[%s8385_s1 + $0x1a0] ss:$16 sps:$4 sm:$0xff]  }
  0x13   :  { %3618 = vmatpush1.bf16.msra.mxu0 %v5553_v18  ;;  %4005 = vmatpush1.bf16.msra.mxu1 %v5554_v19  ;;  %v5603_v53 = vld [vmem:[%s8385_s1 + $0x1a4] ss:$16 sps:$4 sm:$0xff]   ;;  %v5605_v54 = vld [vmem:[%s8385_s1 + $0x1ac] ss:$16 sps:$4 sm:$0xff]   ;;  %v5608_v56 = vld [vmem:[%s8385_s1 + $0x1a8] ss:$16 sps:$4 sm:$0xff]  }
  0x14   :  { %3619 = vmatprep.subr.bf16.mxu0 %v5555_v20  ;;  %4006 = vmatprep.subr.bf16.mxu1 %v5557_v21  ;;  %v5609_v57 = vld [vmem:[%s8385_s1 + $0x1c4] ss:$16 sps:$4 sm:$0xff]   ;;  %v5611_v58 = vld [vmem:[%s8385_s1 + $0x1cc] ss:$16 sps:$4 sm:$0xff]   ;;  %v5613_v59 = vld [vmem:[%s8385_s1 + $0x1c0] ss:$16 sps:$4 sm:$0xff]  }
  0x15   :  { %v5614_v60 = vld [vmem:[%s8385_s1 + $0x1c8] ss:$16 sps:$4 sm:$0xff]   ;;  %v5615_v61 = vld [vmem:[%s8385_s1 + $0x1e4] ss:$16 sps:$4 sm:$0xff]   ;;  %v5617_v62 = vld [vmem:[%s8385_s1 + $0x1ec] ss:$16 sps:$4 sm:$0xff]  }
  0x16   :  { %v5619_v63 = vld [vmem:[%s8385_s1 + $0x1e0] ss:$16 sps:$4 sm:$0xff]   ;;  %v5620_v0 = vld [vmem:[%s8385_s1 + $0x1e8] ss:$16 sps:$4 sm:$0xff]   ;;  %v5626_v1 = vld [vmem:[%s8385_s1 + $0x204] ss:$16 sps:$4 sm:$0xff]  }
  0x17   :  { %3620 = vmatpush1.bf16.msra.mxu0 %v5559_v22  ;;  %4007 = vmatpush1.bf16.msra.mxu1 %v5560_v23  ;;  %v5629_v2 = vld [vmem:[%s8385_s1 + $0x20c] ss:$16 sps:$4 sm:$0xff]   ;;  %v5621_v3 = vld [vmem:[%s8386_s0] ss:$72 sps:$4 sm:$0xff]   ;;  %v5632_v6 = vld [vmem:[%s8385_s1 + $0x224] ss:$16 sps:$4 sm:$0xff]  }
  0x18   :  { %3621 = vmatprep.subr.bf16.mxu0 %v5561_v24  ;;  %4008 = vmatprep.subr.bf16.mxu1 %v5563_v25  ;;  %v5624_v4 = vld [vmem:[%s8385_s1 + $0x200] ss:$16 sps:$4 sm:$0xff]   ;;  %v5627_v5 = vld [vmem:[%s8385_s1 + $0x208] ss:$16 sps:$4 sm:$0xff]   ;;  %v5635_v7 = vld [vmem:[%s8385_s1 + $0x22c] ss:$16 sps:$4 sm:$0xff]  }
  0x19   :  { %v5630_v8 = vld [vmem:[%s8385_s1 + $0x220] ss:$16 sps:$4 sm:$0xff]   ;;  %v5633_v9 = vld [vmem:[%s8385_s1 + $0x228] ss:$16 sps:$4 sm:$0xff]   ;;  %v5638_v10 = vld [vmem:[%s8385_s1 + $0x244] ss:$16 sps:$4 sm:$0xff]  }
  0x1a   :  { %v5641_v11 = vld [vmem:[%s8385_s1 + $0x24c] ss:$16 sps:$4 sm:$0xff]   ;;  %v5636_v12 = vld [vmem:[%s8385_s1 + $0x240] ss:$16 sps:$4 sm:$0xff]   ;;  %v5639_v13 = vld [vmem:[%s8385_s1 + $0x248] ss:$16 sps:$4 sm:$0xff]  }
  0x1b   :  { %3622 = vmatpush1.bf16.msra.mxu0 %v5565_v26  ;;  %4009 = vmatpush1.bf16.msra.mxu1 %v5566_v27  ;;  %v5644_v14 = vld [vmem:[%s8385_s1 + $0x264] ss:$16 sps:$4 sm:$0xff]   ;;  %v5647_v15 = vld [vmem:[%s8385_s1 + $0x26c] ss:$16 sps:$4 sm:$0xff]   ;;  %v5642_v16 = vld [vmem:[%s8385_s1 + $0x260] ss:$16 sps:$4 sm:$0xff]  }
  0x1c   :  { %3623 = vmatprep.subr.bf16.mxu0 %v5567_v28  ;;  %4010 = vmatprep.subr.bf16.mxu1 %v5569_v29  ;;  %v5645_v17 = vld [vmem:[%s8385_s1 + $0x268] ss:$16 sps:$4 sm:$0xff]   ;;  %v5650_v18 = vld [vmem:[%s8385_s1 + $0x284] ss:$16 sps:$4 sm:$0xff]   ;;  %v5653_v19 = vld [vmem:[%s8385_s1 + $0x28c] ss:$16 sps:$4 sm:$0xff]  }
  0x1d   :  { %v5648_v20 = vld [vmem:[%s8385_s1 + $0x280] ss:$16 sps:$4 sm:$0xff]   ;;  %v5651_v21 = vld [vmem:[%s8385_s1 + $0x288] ss:$16 sps:$4 sm:$0xff]   ;;  %v5656_v22 = vld [vmem:[%s8385_s1 + $0x2a4] ss:$16 sps:$4 sm:$0xff]  }
  0x1e   :  { %v5659_v23 = vld [vmem:[%s8385_s1 + $0x2ac] ss:$16 sps:$4 sm:$0xff]   ;;  %v5654_v24 = vld [vmem:[%s8385_s1 + $0x2a0] ss:$16 sps:$4 sm:$0xff]   ;;  %v5657_v25 = vld [vmem:[%s8385_s1 + $0x2a8] ss:$16 sps:$4 sm:$0xff]  }
  0x1f   :  { %3624 = vmatpush1.bf16.msra.mxu0 %v5571_v30  ;;  %4011 = vmatpush1.bf16.msra.mxu1 %v5572_v31  ;;  %v5662_v26 = vld [vmem:[%s8385_s1 + $0x2c4] ss:$16 sps:$4 sm:$0xff]   ;;  %v5665_v27 = vld [vmem:[%s8385_s1 + $0x2cc] ss:$16 sps:$4 sm:$0xff]   ;;  %v5660_v28 = vld [vmem:[%s8385_s1 + $0x2c0] ss:$16 sps:$4 sm:$0xff]  }
  0x20   :  { %3625 = vmatprep.subr.bf16.mxu0 %v5573_v32  ;;  %4012 = vmatprep.subr.bf16.mxu1 %v5575_v33  ;;  %v5663_v29 = vld [vmem:[%s8385_s1 + $0x2c8] ss:$16 sps:$4 sm:$0xff]   ;;  %v5722_v30 = vld [vmem:[%s8386_s0 + $0xc] ss:$72 sps:$4 sm:$0xff]   ;;  %v5666_v33 = vld [vmem:[%s8385_s1 + $0x2e0] ss:$16 sps:$4 sm:$0xff]  }
  0x21   :  { %v5668_v31 = vld [vmem:[%s8385_s1 + $0x2e4] ss:$16 sps:$4 sm:$0xff]   ;;  %v5671_v32 = vld [vmem:[%s8385_s1 + $0x2ec] ss:$16 sps:$4 sm:$0xff]  }
  0x22   :  { %v5695_v48 = vld [vmem:[%s8385_s1 + $0x36c] ss:$16 sps:$4 sm:$0xff]  }
  0x23   :  { %3626 = vmatpush1.bf16.msra.mxu0 %v5577_v34  ;;  %4013 = vmatpush1.bf16.msra.mxu1 %v5578_v35  ;;  %v5669_v34 = vld [vmem:[%s8385_s1 + $0x2e8] ss:$16 sps:$4 sm:$0xff]   ;;  %v5674_v35 = vld [vmem:[%s8385_s1 + $0x304] ss:$16 sps:$4 sm:$0xff]  }
  0x24   :  { %3627 = vmatprep.subr.bf16.mxu0 %v5579_v36  ;;  %4014 = vmatprep.subr.bf16.mxu1 %v5581_v37  ;;  %v5677_v36 = vld [vmem:[%s8385_s1 + $0x30c] ss:$16 sps:$4 sm:$0xff]   ;;  %v5672_v37 = vld [vmem:[%s8385_s1 + $0x300] ss:$16 sps:$4 sm:$0xff]  }
  0x27   :  { %3628 = vmatpush1.bf16.msra.mxu0 %v5583_v38  ;;  %4015 = vmatpush1.bf16.msra.mxu1 %v5584_v39  ;;  %v5675_v38 = vld [vmem:[%s8385_s1 + $0x308] ss:$16 sps:$4 sm:$0xff]   ;;  %v5680_v39 = vld [vmem:[%s8385_s1 + $0x324] ss:$16 sps:$4 sm:$0xff]  }
  0x28   :  { %3629 = vmatprep.subr.bf16.mxu0 %v5585_v40  ;;  %4016 = vmatprep.subr.bf16.mxu1 %v5587_v41  ;;  %v5683_v40 = vld [vmem:[%s8385_s1 + $0x32c] ss:$16 sps:$4 sm:$0xff]   ;;  %v5678_v41 = vld [vmem:[%s8385_s1 + $0x320] ss:$16 sps:$4 sm:$0xff]  }
  0x2b   :  { %3630 = vmatpush1.bf16.msra.mxu0 %v5589_v42  ;;  %4017 = vmatpush1.bf16.msra.mxu1 %v5590_v43  ;;  %v5681_v42 = vld [vmem:[%s8385_s1 + $0x328] ss:$16 sps:$4 sm:$0xff]   ;;  %v5686_v43 = vld [vmem:[%s8385_s1 + $0x344] ss:$16 sps:$4 sm:$0xff]  }
  0x2c   :  { %3631 = vmatprep.subr.bf16.mxu0 %v5591_v44  ;;  %4018 = vmatprep.subr.bf16.mxu1 %v5593_v45  ;;  %v5689_v44 = vld [vmem:[%s8385_s1 + $0x34c] ss:$16 sps:$4 sm:$0xff]   ;;  %v5684_v45 = vld [vmem:[%s8385_s1 + $0x340] ss:$16 sps:$4 sm:$0xff]  }
  0x2f   :  { %3632 = vmatpush1.bf16.msra.mxu0 %v5595_v46  ;;  %4019 = vmatpush1.bf16.msra.mxu1 %v5596_v47  ;;  %v5687_v46 = vld [vmem:[%s8385_s1 + $0x348] ss:$16 sps:$4 sm:$0xff]   ;;  %v5692_v47 = vld [vmem:[%s8385_s1 + $0x364] ss:$16 sps:$4 sm:$0xff]  }
  0x30   :  { %3633 = vmatprep.subr.bf16.mxu0 %v5597_v49  ;;  %4020 = vmatprep.subr.bf16.mxu1 %v5599_v50  ;;  %v5690_v49 = vld [vmem:[%s8385_s1 + $0x360] ss:$16 sps:$4 sm:$0xff]   ;;  %v5693_v50 = vld [vmem:[%s8385_s1 + $0x368] ss:$16 sps:$4 sm:$0xff]  }
  0x33   :  { %3634 = vmatpush1.bf16.msra.mxu0 %v5601_v51  ;;  %4021 = vmatpush1.bf16.msra.mxu1 %v5602_v52  ;;  %v5698_v51 = vld [vmem:[%s8385_s1 + $0x384] ss:$16 sps:$4 sm:$0xff]   ;;  %v5701_v52 = vld [vmem:[%s8385_s1 + $0x38c] ss:$16 sps:$4 sm:$0xff]  }
  0x34   :  { %3635 = vmatprep.subr.bf16.mxu0 %v5603_v53  ;;  %4022 = vmatprep.subr.bf16.mxu1 %v5605_v54  ;;  %v5696_v53 = vld [vmem:[%s8385_s1 + $0x380] ss:$16 sps:$4 sm:$0xff]   ;;  %v5699_v54 = vld [vmem:[%s8385_s1 + $0x388] ss:$16 sps:$4 sm:$0xff]  }
  0x37   :  { %3636 = vmatpush1.bf16.msra.mxu0 %v5607_v55  ;;  %4023 = vmatpush1.bf16.msra.mxu1 %v5608_v56  ;;  %v5704_v55 = vld [vmem:[%s8385_s1 + $0x3a4] ss:$16 sps:$4 sm:$0xff]   ;;  %v5707_v56 = vld [vmem:[%s8385_s1 + $0x3ac] ss:$16 sps:$4 sm:$0xff]  }
  0x38   :  { %3637 = vmatprep.subr.bf16.mxu0 %v5609_v57  ;;  %4024 = vmatprep.subr.bf16.mxu1 %v5611_v58  ;;  %v5702_v57 = vld [vmem:[%s8385_s1 + $0x3a0] ss:$16 sps:$4 sm:$0xff]   ;;  %v5705_v58 = vld [vmem:[%s8385_s1 + $0x3a8] ss:$16 sps:$4 sm:$0xff]  }
  0x3b   :  { %3638 = vmatpush1.bf16.msra.mxu0 %v5613_v59  ;;  %4025 = vmatpush1.bf16.msra.mxu1 %v5614_v60  ;;  %v5710_v59 = vld [vmem:[%s8385_s1 + $0x3c4] ss:$16 sps:$4 sm:$0xff]   ;;  %v5713_v60 = vld [vmem:[%s8385_s1 + $0x3cc] ss:$16 sps:$4 sm:$0xff]  }
  0x3c   :  { %3639 = vmatprep.subr.bf16.mxu0 %v5615_v61  ;;  %4026 = vmatprep.subr.bf16.mxu1 %v5617_v62  ;;  %v5708_v61 = vld [vmem:[%s8385_s1 + $0x3c0] ss:$16 sps:$4 sm:$0xff]   ;;  %v5711_v62 = vld [vmem:[%s8385_s1 + $0x3c8] ss:$16 sps:$4 sm:$0xff]  }
  0x3f   :  { %3640 = vmatpush1.bf16.msra.mxu0 %v5619_v63  ;;  %4027 = vmatpush1.bf16.msra.mxu1 %v5620_v0  ;;  %v5716_v63 = vld [vmem:[%s8385_s1 + $0x3e4] ss:$16 sps:$4 sm:$0xff]   ;;  %v5719_v0 = vld [vmem:[%s8385_s1 + $0x3ec] ss:$16 sps:$4 sm:$0xff]  }
  0x40   :  { %3652 = vmatprep.subr.bf16.mxu0 %v5626_v1  ;;  %4039 = vmatprep.subr.bf16.mxu1 %v5629_v2  ;;  %v5714_v1 = vld [vmem:[%s8385_s1 + $0x3e0] ss:$16 sps:$4 sm:$0xff]   ;;  %v5717_v2 = vld [vmem:[%s8385_s1 + $0x3e8] ss:$16 sps:$4 sm:$0xff]  }
  0x42   :  { %3642 = vmatmul.mubr.bf16.vlgmr.msra.gmra.mrb[0].mxu0 %v5621_v3  ;;  %4029 = vmatmul.mubr.bf16.vlgmr.msra.gmra.mrb[0].mxu1 %v5621_v3  ;;  %v5725_v3 = vld [vmem:[%s8385_s1 + $0x404] ss:$16 sps:$4 sm:$0xff]  }
  0x43   :  { %3653 = vmatpush1.bf16.msra.mxu0 %v5624_v4  ;;  %4040 = vmatpush1.bf16.msra.mxu1 %v5627_v5  ;;  %v5728_v4 = vld [vmem:[%s8385_s1 + $0x40c] ss:$16 sps:$4 sm:$0xff]   ;;  %v5720_v5 = vld [vmem:[%s8386_s0 + $0x8] ss:$72 sps:$4 sm:$0xff]  }
  0x44   :  { %3654 = vmatprep.subr.bf16.mxu0 %v5632_v6  ;;  %4041 = vmatprep.subr.bf16.mxu1 %v5635_v7  ;;  %v5723_v6 = vld [vmem:[%s8385_s1 + $0x400] ss:$16 sps:$4 sm:$0xff]   ;;  %v5726_v7 = vld [vmem:[%s8385_s1 + $0x408] ss:$16 sps:$4 sm:$0xff]  }
  0x45   :  { %3684 = vmatprep.mubr.bf16.mxu0 %v5722_v30  ;;  %4071 = vmatprep.mubr.bf16.mxu1 %v5722_v30  ;;  %v5764_v30 = vld [vmem:[%s8385_s1 + $0x4cc] ss:$16 sps:$4 sm:$0xff]  }
  0x47   :  { %3655 = vmatpush1.bf16.msra.mxu0 %v5630_v8  ;;  %4042 = vmatpush1.bf16.msra.mxu1 %v5633_v9  ;;  %v5731_v8 = vld [vmem:[%s8385_s1 + $0x424] ss:$16 sps:$4 sm:$0xff]   ;;  %v5734_v9 = vld [vmem:[%s8385_s1 + $0x42c] ss:$16 sps:$4 sm:$0xff]  }
  0x48   :  { %3656 = vmatprep.subr.bf16.mxu0 %v5638_v10  ;;  %4043 = vmatprep.subr.bf16.mxu1 %v5641_v11  ;;  %v5729_v10 = vld [vmem:[%s8385_s1 + $0x420] ss:$16 sps:$4 sm:$0xff]   ;;  %v5732_v11 = vld [vmem:[%s8385_s1 + $0x428] ss:$16 sps:$4 sm:$0xff]  }
  0x4b   :  { %3657 = vmatpush1.bf16.msra.mxu0 %v5636_v12  ;;  %4044 = vmatpush1.bf16.msra.mxu1 %v5639_v13  ;;  %v5821_v12 = vld [vmem:[%s8386_s0 + $0x14] ss:$72 sps:$4 sm:$0xff]  }
  0x4c   :  { %3658 = vmatprep.subr.bf16.mxu0 %v5644_v14  ;;  %4045 = vmatprep.subr.bf16.mxu1 %v5647_v15  ;;  %v5737_v13 = vld [vmem:[%s8385_s1 + $0x444] ss:$16 sps:$4 sm:$0xff]   ;;  %v5740_v14 = vld [vmem:[%s8385_s1 + $0x44c] ss:$16 sps:$4 sm:$0xff]   ;;  %v5735_v15 = vld [vmem:[%s8385_s1 + $0x440] ss:$16 sps:$4 sm:$0xff]  }
  0x4f   :  { %3659 = vmatpush1.bf16.msra.mxu0 %v5642_v16  ;;  %4046 = vmatpush1.bf16.msra.mxu1 %v5645_v17  ;;  %v5738_v16 = vld [vmem:[%s8385_s1 + $0x448] ss:$16 sps:$4 sm:$0xff]   ;;  %v5743_v17 = vld [vmem:[%s8385_s1 + $0x464] ss:$16 sps:$4 sm:$0xff]  }
  0x50   :  { %3660 = vmatprep.subr.bf16.mxu0 %v5650_v18  ;;  %4047 = vmatprep.subr.bf16.mxu1 %v5653_v19  ;;  %v5746_v18 = vld [vmem:[%s8385_s1 + $0x46c] ss:$16 sps:$4 sm:$0xff]   ;;  %v5741_v19 = vld [vmem:[%s8385_s1 + $0x460] ss:$16 sps:$4 sm:$0xff]  }
  0x53   :  { %3661 = vmatpush1.bf16.msra.mxu0 %v5648_v20  ;;  %4048 = vmatpush1.bf16.msra.mxu1 %v5651_v21  ;;  %v5744_v20 = vld [vmem:[%s8385_s1 + $0x468] ss:$16 sps:$4 sm:$0xff]   ;;  %v5749_v21 = vld [vmem:[%s8385_s1 + $0x484] ss:$16 sps:$4 sm:$0xff]  }
  0x54   :  { %3662 = vmatprep.subr.bf16.mxu0 %v5656_v22  ;;  %4049 = vmatprep.subr.bf16.mxu1 %v5659_v23  ;;  %v5752_v22 = vld [vmem:[%s8385_s1 + $0x48c] ss:$16 sps:$4 sm:$0xff]   ;;  %v5747_v23 = vld [vmem:[%s8385_s1 + $0x480] ss:$16 sps:$4 sm:$0xff]  }
  0x57   :  { %3663 = vmatpush1.bf16.msra.mxu0 %v5654_v24  ;;  %4050 = vmatpush1.bf16.msra.mxu1 %v5657_v25  ;;  %v5750_v24 = vld [vmem:[%s8385_s1 + $0x488] ss:$16 sps:$4 sm:$0xff]   ;;  %v5755_v25 = vld [vmem:[%s8385_s1 + $0x4a4] ss:$16 sps:$4 sm:$0xff]  }
  0x58   :  { %3664 = vmatprep.subr.bf16.mxu0 %v5662_v26  ;;  %4051 = vmatprep.subr.bf16.mxu1 %v5665_v27  ;;  %v5758_v26 = vld [vmem:[%s8385_s1 + $0x4ac] ss:$16 sps:$4 sm:$0xff]   ;;  %v5753_v27 = vld [vmem:[%s8385_s1 + $0x4a0] ss:$16 sps:$4 sm:$0xff]  }
  0x5b   :  { %3665 = vmatpush1.bf16.msra.mxu0 %v5660_v28  ;;  %4052 = vmatpush1.bf16.msra.mxu1 %v5663_v29  ;;  %v5756_v28 = vld [vmem:[%s8385_s1 + $0x4a8] ss:$16 sps:$4 sm:$0xff]   ;;  %v5761_v29 = vld [vmem:[%s8385_s1 + $0x4c4] ss:$16 sps:$4 sm:$0xff]  }
  0x5c   :  { %3666 = vmatprep.subr.bf16.mxu0 %v5668_v31  ;;  %4053 = vmatprep.subr.bf16.mxu1 %v5671_v32  ;;  %v5759_v31 = vld [vmem:[%s8385_s1 + $0x4c0] ss:$16 sps:$4 sm:$0xff]   ;;  %v5762_v32 = vld [vmem:[%s8385_s1 + $0x4c8] ss:$16 sps:$4 sm:$0xff]  }
  0x5f   :  { %3667 = vmatpush1.bf16.msra.mxu0 %v5666_v33  ;;  %4054 = vmatpush1.bf16.msra.mxu1 %v5669_v34  ;;  %v5767_v33 = vld [vmem:[%s8385_s1 + $0x4e4] ss:$16 sps:$4 sm:$0xff]   ;;  %v5770_v34 = vld [vmem:[%s8385_s1 + $0x4ec] ss:$16 sps:$4 sm:$0xff]  }
  0x60   :  { %3668 = vmatprep.subr.bf16.mxu0 %v5674_v35  ;;  %4055 = vmatprep.subr.bf16.mxu1 %v5677_v36  ;;  %v5765_v35 = vld [vmem:[%s8385_s1 + $0x4e0] ss:$16 sps:$4 sm:$0xff]   ;;  %v5768_v36 = vld [vmem:[%s8385_s1 + $0x4e8] ss:$16 sps:$4 sm:$0xff]  }
  0x63   :  { %3669 = vmatpush1.bf16.msra.mxu0 %v5672_v37  ;;  %4056 = vmatpush1.bf16.msra.mxu1 %v5675_v38  ;;  %v5773_v37 = vld [vmem:[%s8385_s1 + $0x504] ss:$16 sps:$4 sm:$0xff]   ;;  %v5776_v38 = vld [vmem:[%s8385_s1 + $0x50c] ss:$16 sps:$4 sm:$0xff]  }
  0x64   :  { %3670 = vmatprep.subr.bf16.mxu0 %v5680_v39  ;;  %4057 = vmatprep.subr.bf16.mxu1 %v5683_v40  ;;  %v5771_v39 = vld [vmem:[%s8385_s1 + $0x500] ss:$16 sps:$4 sm:$0xff]   ;;  %v5774_v40 = vld [vmem:[%s8385_s1 + $0x508] ss:$16 sps:$4 sm:$0xff]  }
  0x67   :  { %3671 = vmatpush1.bf16.msra.mxu0 %v5678_v41  ;;  %4058 = vmatpush1.bf16.msra.mxu1 %v5681_v42  ;;  %v5779_v41 = vld [vmem:[%s8385_s1 + $0x524] ss:$16 sps:$4 sm:$0xff]   ;;  %v5782_v42 = vld [vmem:[%s8385_s1 + $0x52c] ss:$16 sps:$4 sm:$0xff]  }
  0x68   :  { %3672 = vmatprep.subr.bf16.mxu0 %v5686_v43  ;;  %4059 = vmatprep.subr.bf16.mxu1 %v5689_v44  ;;  %v5777_v43 = vld [vmem:[%s8385_s1 + $0x520] ss:$16 sps:$4 sm:$0xff]   ;;  %v5780_v44 = vld [vmem:[%s8385_s1 + $0x528] ss:$16 sps:$4 sm:$0xff]  }
  0x6b   :  { %3673 = vmatpush1.bf16.msra.mxu0 %v5684_v45  ;;  %4060 = vmatpush1.bf16.msra.mxu1 %v5687_v46  ;;  %v5785_v45 = vld [vmem:[%s8385_s1 + $0x544] ss:$16 sps:$4 sm:$0xff]   ;;  %v5788_v46 = vld [vmem:[%s8385_s1 + $0x54c] ss:$16 sps:$4 sm:$0xff]  }
  0x6c   :  { %3674 = vmatprep.subr.bf16.mxu0 %v5692_v47  ;;  %4061 = vmatprep.subr.bf16.mxu1 %v5695_v48  ;;  %v5783_v47 = vld [vmem:[%s8385_s1 + $0x540] ss:$16 sps:$4 sm:$0xff]   ;;  %v5786_v48 = vld [vmem:[%s8385_s1 + $0x548] ss:$16 sps:$4 sm:$0xff]  }
  0x6f   :  { %3675 = vmatpush1.bf16.msra.mxu0 %v5690_v49  ;;  %4062 = vmatpush1.bf16.msra.mxu1 %v5693_v50  ;;  %v5791_v49 = vld [vmem:[%s8385_s1 + $0x564] ss:$16 sps:$4 sm:$0xff]   ;;  %v5794_v50 = vld [vmem:[%s8385_s1 + $0x56c] ss:$16 sps:$4 sm:$0xff]  }
  0x70   :  { %3676 = vmatprep.subr.bf16.mxu0 %v5698_v51  ;;  %4063 = vmatprep.subr.bf16.mxu1 %v5701_v52  ;;  %v5789_v51 = vld [vmem:[%s8385_s1 + $0x560] ss:$16 sps:$4 sm:$0xff]   ;;  %v5792_v52 = vld [vmem:[%s8385_s1 + $0x568] ss:$16 sps:$4 sm:$0xff]  }
  0x73   :  { %3677 = vmatpush1.bf16.msra.mxu0 %v5696_v53  ;;  %4064 = vmatpush1.bf16.msra.mxu1 %v5699_v54  ;;  %v5797_v53 = vld [vmem:[%s8385_s1 + $0x584] ss:$16 sps:$4 sm:$0xff]   ;;  %v5800_v54 = vld [vmem:[%s8385_s1 + $0x58c] ss:$16 sps:$4 sm:$0xff]  }
  0x74   :  { %3678 = vmatprep.subr.bf16.mxu0 %v5704_v55  ;;  %4065 = vmatprep.subr.bf16.mxu1 %v5707_v56  ;;  %v5795_v55 = vld [vmem:[%s8385_s1 + $0x580] ss:$16 sps:$4 sm:$0xff]   ;;  %v5798_v56 = vld [vmem:[%s8385_s1 + $0x588] ss:$16 sps:$4 sm:$0xff]  }
  0x77   :  { %3679 = vmatpush1.bf16.msra.mxu0 %v5702_v57  ;;  %4066 = vmatpush1.bf16.msra.mxu1 %v5705_v58  ;;  %v5803_v57 = vld [vmem:[%s8385_s1 + $0x5a4] ss:$16 sps:$4 sm:$0xff]   ;;  %v5806_v58 = vld [vmem:[%s8385_s1 + $0x5ac] ss:$16 sps:$4 sm:$0xff]  }
  0x78   :  { %3680 = vmatprep.subr.bf16.mxu0 %v5710_v59  ;;  %4067 = vmatprep.subr.bf16.mxu1 %v5713_v60  ;;  %v5801_v59 = vld [vmem:[%s8385_s1 + $0x5a0] ss:$16 sps:$4 sm:$0xff]   ;;  %v5804_v60 = vld [vmem:[%s8385_s1 + $0x5a8] ss:$16 sps:$4 sm:$0xff]  }
  0x7b   :  { %3681 = vmatpush1.bf16.msra.mxu0 %v5708_v61  ;;  %4068 = vmatpush1.bf16.msra.mxu1 %v5711_v62  ;;  %v5809_v61 = vld [vmem:[%s8385_s1 + $0x5c4] ss:$16 sps:$4 sm:$0xff]   ;;  %v5812_v62 = vld [vmem:[%s8385_s1 + $0x5cc] ss:$16 sps:$4 sm:$0xff]  }
  0x7c   :  { %3682 = vmatprep.subr.bf16.mxu0 %v5716_v63  ;;  %4069 = vmatprep.subr.bf16.mxu1 %v5719_v0  ;;  %v5807_v63 = vld [vmem:[%s8385_s1 + $0x5c0] ss:$16 sps:$4 sm:$0xff]   ;;  %v5810_v0 = vld [vmem:[%s8385_s1 + $0x5c8] ss:$16 sps:$4 sm:$0xff]  }
  0x7f   :  { %3683 = vmatpush1.bf16.msra.mxu0 %v5714_v1  ;;  %4070 = vmatpush1.bf16.msra.mxu1 %v5717_v2  ;;  %v5815_v1 = vld [vmem:[%s8385_s1 + $0x5e4] ss:$16 sps:$4 sm:$0xff]   ;;  %v5818_v2 = vld [vmem:[%s8385_s1 + $0x5ec] ss:$16 sps:$4 sm:$0xff]  }
  0x80   :  { %3695 = vmatprep.subr.bf16.mxu0 %v5725_v3  ;;  %4082 = vmatprep.subr.bf16.mxu1 %v5728_v4  ;;  %v5813_v3 = vld [vmem:[%s8385_s1 + $0x5e0] ss:$16 sps:$4 sm:$0xff]   ;;  %v5816_v4 = vld [vmem:[%s8385_s1 + $0x5e8] ss:$16 sps:$4 sm:$0xff]  }
  0x82   :  { %3685 = vmatmul.mubr.bf16.vlgmr.msra.gmra.mrb[0].mxu0 %v5720_v5  ;;  %4072 = vmatmul.mubr.bf16.vlgmr.msra.gmra.mrb[0].mxu1 %v5720_v5  ;;  %v5824_v5 = vld [vmem:[%s8385_s1 + $0x604] ss:$16 sps:$4 sm:$0xff]  }
  0x83   :  { %3696 = vmatpush1.bf16.msra.mxu0 %v5723_v6  ;;  %4083 = vmatpush1.bf16.msra.mxu1 %v5726_v7  ;;  %v5827_v6 = vld [vmem:[%s8385_s1 + $0x60c] ss:$16 sps:$4 sm:$0xff]   ;;  %v5819_v7 = vld [vmem:[%s8386_s0 + $0x10] ss:$72 sps:$4 sm:$0xff]  }
  0x84   :  { %3697 = vmatprep.subr.bf16.mxu0 %v5731_v8  ;;  %4084 = vmatprep.subr.bf16.mxu1 %v5734_v9  ;;  %v5822_v8 = vld [vmem:[%s8385_s1 + $0x600] ss:$16 sps:$4 sm:$0xff]   ;;  %v5825_v9 = vld [vmem:[%s8385_s1 + $0x608] ss:$16 sps:$4 sm:$0xff]  }
  0x85   :  { %3727 = vmatprep.mubr.bf16.mxu0 %v5821_v12  ;;  %4114 = vmatprep.mubr.bf16.mxu1 %v5821_v12  ;;  %v5920_v12 = vld [vmem:[%s8386_s0 + $0x1c] ss:$72 sps:$4 sm:$0xff]  }
  0x87   :  { %3698 = vmatpush1.bf16.msra.mxu0 %v5729_v10  ;;  %4085 = vmatpush1.bf16.msra.mxu1 %v5732_v11  ;;  %v5830_v10 = vld [vmem:[%s8385_s1 + $0x624] ss:$16 sps:$4 sm:$0xff]   ;;  %v5833_v11 = vld [vmem:[%s8385_s1 + $0x62c] ss:$16 sps:$4 sm:$0xff]  }
  0x88   :  { %3699 = vmatprep.subr.bf16.mxu0 %v5737_v13  ;;  %4086 = vmatprep.subr.bf16.mxu1 %v5740_v14  ;;  %v5828_v13 = vld [vmem:[%s8385_s1 + $0x620] ss:$16 sps:$4 sm:$0xff]   ;;  %v5831_v14 = vld [vmem:[%s8385_s1 + $0x628] ss:$16 sps:$4 sm:$0xff]  }
  0x8b   :  { %3700 = vmatpush1.bf16.msra.mxu0 %v5735_v15  ;;  %4087 = vmatpush1.bf16.msra.mxu1 %v5738_v16  ;;  %v5836_v15 = vld [vmem:[%s8385_s1 + $0x644] ss:$16 sps:$4 sm:$0xff]   ;;  %v5839_v16 = vld [vmem:[%s8385_s1 + $0x64c] ss:$16 sps:$4 sm:$0xff]  }
  0x8c   :  { %3701 = vmatprep.subr.bf16.mxu0 %v5743_v17  ;;  %4088 = vmatprep.subr.bf16.mxu1 %v5746_v18  ;;  %v5834_v17 = vld [vmem:[%s8385_s1 + $0x640] ss:$16 sps:$4 sm:$0xff]   ;;  %v5837_v18 = vld [vmem:[%s8385_s1 + $0x648] ss:$16 sps:$4 sm:$0xff]  }
  0x8f   :  { %3702 = vmatpush1.bf16.msra.mxu0 %v5741_v19  ;;  %4089 = vmatpush1.bf16.msra.mxu1 %v5744_v20  ;;  %v5842_v19 = vld [vmem:[%s8385_s1 + $0x664] ss:$16 sps:$4 sm:$0xff]   ;;  %v5845_v20 = vld [vmem:[%s8385_s1 + $0x66c] ss:$16 sps:$4 sm:$0xff]  }
  0x90   :  { %3703 = vmatprep.subr.bf16.mxu0 %v5749_v21  ;;  %4090 = vmatprep.subr.bf16.mxu1 %v5752_v22  ;;  %v5840_v21 = vld [vmem:[%s8385_s1 + $0x660] ss:$16 sps:$4 sm:$0xff]   ;;  %v5843_v22 = vld [vmem:[%s8385_s1 + $0x668] ss:$16 sps:$4 sm:$0xff]  }
  0x93   :  { %3704 = vmatpush1.bf16.msra.mxu0 %v5747_v23  ;;  %4091 = vmatpush1.bf16.msra.mxu1 %v5750_v24  ;;  %v5848_v23 = vld [vmem:[%s8385_s1 + $0x684] ss:$16 sps:$4 sm:$0xff]   ;;  %v5851_v24 = vld [vmem:[%s8385_s1 + $0x68c] ss:$16 sps:$4 sm:$0xff]  }
  0x94   :  { %3705 = vmatprep.subr.bf16.mxu0 %v5755_v25  ;;  %4092 = vmatprep.subr.bf16.mxu1 %v5758_v26  ;;  %v5846_v25 = vld [vmem:[%s8385_s1 + $0x680] ss:$16 sps:$4 sm:$0xff]   ;;  %v5849_v26 = vld [vmem:[%s8385_s1 + $0x688] ss:$16 sps:$4 sm:$0xff]  }
  0x97   :  { %3706 = vmatpush1.bf16.msra.mxu0 %v5753_v27  ;;  %4093 = vmatpush1.bf16.msra.mxu1 %v5756_v28  ;;  %v5854_v27 = vld [vmem:[%s8385_s1 + $0x6a4] ss:$16 sps:$4 sm:$0xff]   ;;  %v5857_v28 = vld [vmem:[%s8385_s1 + $0x6ac] ss:$16 sps:$4 sm:$0xff]  }
  0x98   :  { %3707 = vmatprep.subr.bf16.mxu0 %v5761_v29  ;;  %4094 = vmatprep.subr.bf16.mxu1 %v5764_v30  ;;  %v5852_v29 = vld [vmem:[%s8385_s1 + $0x6a0] ss:$16 sps:$4 sm:$0xff]   ;;  %v5855_v30 = vld [vmem:[%s8385_s1 + $0x6a8] ss:$16 sps:$4 sm:$0xff]  }
  0x9b   :  { %3708 = vmatpush1.bf16.msra.mxu0 %v5759_v31  ;;  %4095 = vmatpush1.bf16.msra.mxu1 %v5762_v32  ;;  %v5860_v31 = vld [vmem:[%s8385_s1 + $0x6c4] ss:$16 sps:$4 sm:$0xff]   ;;  %v5863_v32 = vld [vmem:[%s8385_s1 + $0x6cc] ss:$16 sps:$4 sm:$0xff]  }
  0x9c   :  { %3709 = vmatprep.subr.bf16.mxu0 %v5767_v33  ;;  %4096 = vmatprep.subr.bf16.mxu1 %v5770_v34  ;;  %v5858_v33 = vld [vmem:[%s8385_s1 + $0x6c0] ss:$16 sps:$4 sm:$0xff]   ;;  %v5861_v34 = vld [vmem:[%s8385_s1 + $0x6c8] ss:$16 sps:$4 sm:$0xff]  }
  0x9f   :  { %3710 = vmatpush1.bf16.msra.mxu0 %v5765_v35  ;;  %4097 = vmatpush1.bf16.msra.mxu1 %v5768_v36  ;;  %v5866_v35 = vld [vmem:[%s8385_s1 + $0x6e4] ss:$16 sps:$4 sm:$0xff]   ;;  %v5869_v36 = vld [vmem:[%s8385_s1 + $0x6ec] ss:$16 sps:$4 sm:$0xff]  }
  0xa0   :  { %3711 = vmatprep.subr.bf16.mxu0 %v5773_v37  ;;  %4098 = vmatprep.subr.bf16.mxu1 %v5776_v38  ;;  %v5864_v37 = vld [vmem:[%s8385_s1 + $0x6e0] ss:$16 sps:$4 sm:$0xff]   ;;  %v5867_v38 = vld [vmem:[%s8385_s1 + $0x6e8] ss:$16 sps:$4 sm:$0xff]  }
  0xa3   :  { %3712 = vmatpush1.bf16.msra.mxu0 %v5771_v39  ;;  %4099 = vmatpush1.bf16.msra.mxu1 %v5774_v40  ;;  %v5872_v39 = vld [vmem:[%s8385_s1 + $0x704] ss:$16 sps:$4 sm:$0xff]   ;;  %v5875_v40 = vld [vmem:[%s8385_s1 + $0x70c] ss:$16 sps:$4 sm:$0xff]  }
  0xa4   :  { %3713 = vmatprep.subr.bf16.mxu0 %v5779_v41  ;;  %4100 = vmatprep.subr.bf16.mxu1 %v5782_v42  ;;  %v5870_v41 = vld [vmem:[%s8385_s1 + $0x700] ss:$16 sps:$4 sm:$0xff]   ;;  %v5873_v42 = vld [vmem:[%s8385_s1 + $0x708] ss:$16 sps:$4 sm:$0xff]  }
  0xa7   :  { %3714 = vmatpush1.bf16.msra.mxu0 %v5777_v43  ;;  %4101 = vmatpush1.bf16.msra.mxu1 %v5780_v44  ;;  %v5878_v43 = vld [vmem:[%s8385_s1 + $0x724] ss:$16 sps:$4 sm:$0xff]   ;;  %v5881_v44 = vld [vmem:[%s8385_s1 + $0x72c] ss:$16 sps:$4 sm:$0xff]  }
  0xa8   :  { %3715 = vmatprep.subr.bf16.mxu0 %v5785_v45  ;;  %4102 = vmatprep.subr.bf16.mxu1 %v5788_v46  ;;  %v5876_v45 = vld [vmem:[%s8385_s1 + $0x720] ss:$16 sps:$4 sm:$0xff]   ;;  %v5879_v46 = vld [vmem:[%s8385_s1 + $0x728] ss:$16 sps:$4 sm:$0xff]  }
  0xab   :  { %3716 = vmatpush1.bf16.msra.mxu0 %v5783_v47  ;;  %4103 = vmatpush1.bf16.msra.mxu1 %v5786_v48  ;;  %v5884_v47 = vld [vmem:[%s8385_s1 + $0x744] ss:$16 sps:$4 sm:$0xff]   ;;  %v5887_v48 = vld [vmem:[%s8385_s1 + $0x74c] ss:$16 sps:$4 sm:$0xff]  }
  0xac   :  { %3717 = vmatprep.subr.bf16.mxu0 %v5791_v49  ;;  %4104 = vmatprep.subr.bf16.mxu1 %v5794_v50  ;;  %v5882_v49 = vld [vmem:[%s8385_s1 + $0x740] ss:$16 sps:$4 sm:$0xff]   ;;  %v5885_v50 = vld [vmem:[%s8385_s1 + $0x748] ss:$16 sps:$4 sm:$0xff]  }
  0xaf   :  { %3718 = vmatpush1.bf16.msra.mxu0 %v5789_v51  ;;  %4105 = vmatpush1.bf16.msra.mxu1 %v5792_v52  ;;  %v5890_v51 = vld [vmem:[%s8385_s1 + $0x764] ss:$16 sps:$4 sm:$0xff]   ;;  %v5893_v52 = vld [vmem:[%s8385_s1 + $0x76c] ss:$16 sps:$4 sm:$0xff]  }
  0xb0   :  { %3719 = vmatprep.subr.bf16.mxu0 %v5797_v53  ;;  %4106 = vmatprep.subr.bf16.mxu1 %v5800_v54  ;;  %v5888_v53 = vld [vmem:[%s8385_s1 + $0x760] ss:$16 sps:$4 sm:$0xff]   ;;  %v5891_v54 = vld [vmem:[%s8385_s1 + $0x768] ss:$16 sps:$4 sm:$0xff]  }
  0xb3   :  { %3720 = vmatpush1.bf16.msra.mxu0 %v5795_v55  ;;  %4107 = vmatpush1.bf16.msra.mxu1 %v5798_v56  ;;  %v5896_v55 = vld [vmem:[%s8385_s1 + $0x784] ss:$16 sps:$4 sm:$0xff]   ;;  %v5899_v56 = vld [vmem:[%s8385_s1 + $0x78c] ss:$16 sps:$4 sm:$0xff]  }
  0xb4   :  { %3721 = vmatprep.subr.bf16.mxu0 %v5803_v57  ;;  %4108 = vmatprep.subr.bf16.mxu1 %v5806_v58  ;;  %v5894_v57 = vld [vmem:[%s8385_s1 + $0x780] ss:$16 sps:$4 sm:$0xff]   ;;  %v5897_v58 = vld [vmem:[%s8385_s1 + $0x788] ss:$16 sps:$4 sm:$0xff]  }
  0xb7   :  { %3722 = vmatpush1.bf16.msra.mxu0 %v5801_v59  ;;  %4109 = vmatpush1.bf16.msra.mxu1 %v5804_v60  ;;  %v5902_v59 = vld [vmem:[%s8385_s1 + $0x7a4] ss:$16 sps:$4 sm:$0xff]   ;;  %v5905_v60 = vld [vmem:[%s8385_s1 + $0x7ac] ss:$16 sps:$4 sm:$0xff]  }
  0xb8   :  { %3723 = vmatprep.subr.bf16.mxu0 %v5809_v61  ;;  %4110 = vmatprep.subr.bf16.mxu1 %v5812_v62  ;;  %v5900_v61 = vld [vmem:[%s8385_s1 + $0x7a0] ss:$16 sps:$4 sm:$0xff]   ;;  %v5903_v62 = vld [vmem:[%s8385_s1 + $0x7a8] ss:$16 sps:$4 sm:$0xff]  }
  0xbb   :  { %3724 = vmatpush1.bf16.msra.mxu0 %v5807_v63  ;;  %4111 = vmatpush1.bf16.msra.mxu1 %v5810_v0  ;;  %v5908_v63 = vld [vmem:[%s8385_s1 + $0x7c4] ss:$16 sps:$4 sm:$0xff]   ;;  %v5911_v0 = vld [vmem:[%s8385_s1 + $0x7cc] ss:$16 sps:$4 sm:$0xff]  }
  0xbc   :  { %3725 = vmatprep.subr.bf16.mxu0 %v5815_v1  ;;  %4112 = vmatprep.subr.bf16.mxu1 %v5818_v2  ;;  %v5906_v1 = vld [vmem:[%s8385_s1 + $0x7c0] ss:$16 sps:$4 sm:$0xff]   ;;  %v5909_v2 = vld [vmem:[%s8385_s1 + $0x7c8] ss:$16 sps:$4 sm:$0xff]  }
  0xbf   :  { %3726 = vmatpush1.bf16.msra.mxu0 %v5813_v3  ;;  %4113 = vmatpush1.bf16.msra.mxu1 %v5816_v4  ;;  %v5914_v3 = vld [vmem:[%s8385_s1 + $0x7e4] ss:$16 sps:$4 sm:$0xff]   ;;  %v5917_v4 = vld [vmem:[%s8385_s1 + $0x7ec] ss:$16 sps:$4 sm:$0xff]  }
  0xc0   :  { %3738 = vmatprep.subr.bf16.mxu0 %v5824_v5  ;;  %4125 = vmatprep.subr.bf16.mxu1 %v5827_v6  ;;  %v5912_v5 = vld [vmem:[%s8385_s1 + $0x7e0] ss:$16 sps:$4 sm:$0xff]   ;;  %v5915_v6 = vld [vmem:[%s8385_s1 + $0x7e8] ss:$16 sps:$4 sm:$0xff]  }
  0xc2   :  { %3728 = vmatmul.mubr.bf16.vlgmr.msra.gmra.mrb[0].mxu0 %v5819_v7  ;;  %4115 = vmatmul.mubr.bf16.vlgmr.msra.gmra.mrb[0].mxu1 %v5819_v7  ;;  %v5923_v7 = vld [vmem:[%s8385_s1 + $0x804] ss:$16 sps:$4 sm:$0xff]  }
  0xc3   :  { %3739 = vmatpush1.bf16.msra.mxu0 %v5822_v8  ;;  %4126 = vmatpush1.bf16.msra.mxu1 %v5825_v9  ;;  %v5926_v8 = vld [vmem:[%s8385_s1 + $0x80c] ss:$16 sps:$4 sm:$0xff]   ;;  %v5918_v9 = vld [vmem:[%s8386_s0 + $0x18] ss:$72 sps:$4 sm:$0xff]  }
  0xc4   :  { %3740 = vmatprep.subr.bf16.mxu0 %v5830_v10  ;;  %4127 = vmatprep.subr.bf16.mxu1 %v5833_v11  ;;  %v5921_v10 = vld [vmem:[%s8385_s1 + $0x800] ss:$16 sps:$4 sm:$0xff]   ;;  %v5924_v11 = vld [vmem:[%s8385_s1 + $0x808] ss:$16 sps:$4 sm:$0xff]  }
  0xc5   :  { %3770 = vmatprep.mubr.bf16.mxu0 %v5920_v12  ;;  %4157 = vmatprep.mubr.bf16.mxu1 %v5920_v12  ;;  %v5929_v12 = vld [vmem:[%s8385_s1 + $0x824] ss:$16 sps:$4 sm:$0xff]  }
  0xc7   :  { %3741 = vmatpush1.bf16.msra.mxu0 %v5828_v13  ;;  %4128 = vmatpush1.bf16.msra.mxu1 %v5831_v14  ;;  %v5932_v13 = vld [vmem:[%s8385_s1 + $0x82c] ss:$16 sps:$4 sm:$0xff]  }
  0xc8   :  { %3742 = vmatprep.subr.bf16.mxu0 %v5836_v15  ;;  %4129 = vmatprep.subr.bf16.mxu1 %v5839_v16  ;;  %v6019_v14 = vld [vmem:[%s8386_s0 + $0x24] ss:$72 sps:$4 sm:$0xff]   ;;  %v5927_v15 = vld [vmem:[%s8385_s1 + $0x820] ss:$16 sps:$4 sm:$0xff]   ;;  %v5930_v16 = vld [vmem:[%s8385_s1 + $0x828] ss:$16 sps:$4 sm:$0xff]  }
  0xcb   :  { %3743 = vmatpush1.bf16.msra.mxu0 %v5834_v17  ;;  %4130 = vmatpush1.bf16.msra.mxu1 %v5837_v18  ;;  %v5935_v17 = vld [vmem:[%s8385_s1 + $0x844] ss:$16 sps:$4 sm:$0xff]   ;;  %v5938_v18 = vld [vmem:[%s8385_s1 + $0x84c] ss:$16 sps:$4 sm:$0xff]  }
  0xcc   :  { %3744 = vmatprep.subr.bf16.mxu0 %v5842_v19  ;;  %4131 = vmatprep.subr.bf16.mxu1 %v5845_v20  ;;  %v5933_v19 = vld [vmem:[%s8385_s1 + $0x840] ss:$16 sps:$4 sm:$0xff]   ;;  %v5936_v20 = vld [vmem:[%s8385_s1 + $0x848] ss:$16 sps:$4 sm:$0xff]  }
  0xcf   :  { %3745 = vmatpush1.bf16.msra.mxu0 %v5840_v21  ;;  %4132 = vmatpush1.bf16.msra.mxu1 %v5843_v22  ;;  %v5941_v21 = vld [vmem:[%s8385_s1 + $0x864] ss:$16 sps:$4 sm:$0xff]   ;;  %v5944_v22 = vld [vmem:[%s8385_s1 + $0x86c] ss:$16 sps:$4 sm:$0xff]  }
  0xd0   :  { %3746 = vmatprep.subr.bf16.mxu0 %v5848_v23  ;;  %4133 = vmatprep.subr.bf16.mxu1 %v5851_v24  ;;  %v5939_v23 = vld [vmem:[%s8385_s1 + $0x860] ss:$16 sps:$4 sm:$0xff]   ;;  %v5942_v24 = vld [vmem:[%s8385_s1 + $0x868] ss:$16 sps:$4 sm:$0xff]  }
  0xd3   :  { %3747 = vmatpush1.bf16.msra.mxu0 %v5846_v25  ;;  %4134 = vmatpush1.bf16.msra.mxu1 %v5849_v26  ;;  %v5947_v25 = vld [vmem:[%s8385_s1 + $0x884] ss:$16 sps:$4 sm:$0xff]   ;;  %v5950_v26 = vld [vmem:[%s8385_s1 + $0x88c] ss:$16 sps:$4 sm:$0xff]  }
  0xd4   :  { %3748 = vmatprep.subr.bf16.mxu0 %v5854_v27  ;;  %4135 = vmatprep.subr.bf16.mxu1 %v5857_v28  ;;  %v5945_v27 = vld [vmem:[%s8385_s1 + $0x880] ss:$16 sps:$4 sm:$0xff]   ;;  %v5948_v28 = vld [vmem:[%s8385_s1 + $0x888] ss:$16 sps:$4 sm:$0xff]  }
  0xd7   :  { %3749 = vmatpush1.bf16.msra.mxu0 %v5852_v29  ;;  %4136 = vmatpush1.bf16.msra.mxu1 %v5855_v30  ;;  %v5953_v29 = vld [vmem:[%s8385_s1 + $0x8a4] ss:$16 sps:$4 sm:$0xff]   ;;  %v5956_v30 = vld [vmem:[%s8385_s1 + $0x8ac] ss:$16 sps:$4 sm:$0xff]  }
  0xd8   :  { %3750 = vmatprep.subr.bf16.mxu0 %v5860_v31  ;;  %4137 = vmatprep.subr.bf16.mxu1 %v5863_v32  ;;  %v5951_v31 = vld [vmem:[%s8385_s1 + $0x8a0] ss:$16 sps:$4 sm:$0xff]   ;;  %v5954_v32 = vld [vmem:[%s8385_s1 + $0x8a8] ss:$16 sps:$4 sm:$0xff]  }
  0xdb   :  { %3751 = vmatpush1.bf16.msra.mxu0 %v5858_v33  ;;  %4138 = vmatpush1.bf16.msra.mxu1 %v5861_v34  ;;  %v5959_v33 = vld [vmem:[%s8385_s1 + $0x8c4] ss:$16 sps:$4 sm:$0xff]   ;;  %v5962_v34 = vld [vmem:[%s8385_s1 + $0x8cc] ss:$16 sps:$4 sm:$0xff]  }
  0xdc   :  { %3752 = vmatprep.subr.bf16.mxu0 %v5866_v35  ;;  %4139 = vmatprep.subr.bf16.mxu1 %v5869_v36  ;;  %v5957_v35 = vld [vmem:[%s8385_s1 + $0x8c0] ss:$16 sps:$4 sm:$0xff]   ;;  %v5960_v36 = vld [vmem:[%s8385_s1 + $0x8c8] ss:$16 sps:$4 sm:$0xff]  }
  0xdf   :  { %3753 = vmatpush1.bf16.msra.mxu0 %v5864_v37  ;;  %4140 = vmatpush1.bf16.msra.mxu1 %v5867_v38  ;;  %v5965_v37 = vld [vmem:[%s8385_s1 + $0x8e4] ss:$16 sps:$4 sm:$0xff]   ;;  %v5968_v38 = vld [vmem:[%s8385_s1 + $0x8ec] ss:$16 sps:$4 sm:$0xff]  }
  0xe0   :  { %3754 = vmatprep.subr.bf16.mxu0 %v5872_v39  ;;  %4141 = vmatprep.subr.bf16.mxu1 %v5875_v40  ;;  %v5963_v39 = vld [vmem:[%s8385_s1 + $0x8e0] ss:$16 sps:$4 sm:$0xff]   ;;  %v5966_v40 = vld [vmem:[%s8385_s1 + $0x8e8] ss:$16 sps:$4 sm:$0xff]  }
  0xe3   :  { %3755 = vmatpush1.bf16.msra.mxu0 %v5870_v41  ;;  %4142 = vmatpush1.bf16.msra.mxu1 %v5873_v42  ;;  %v5971_v41 = vld [vmem:[%s8385_s1 + $0x904] ss:$16 sps:$4 sm:$0xff]   ;;  %v5974_v42 = vld [vmem:[%s8385_s1 + $0x90c] ss:$16 sps:$4 sm:$0xff]  }
  0xe4   :  { %3756 = vmatprep.subr.bf16.mxu0 %v5878_v43  ;;  %4143 = vmatprep.subr.bf16.mxu1 %v5881_v44  ;;  %v5969_v43 = vld [vmem:[%s8385_s1 + $0x900] ss:$16 sps:$4 sm:$0xff]   ;;  %v5972_v44 = vld [vmem:[%s8385_s1 + $0x908] ss:$16 sps:$4 sm:$0xff]  }
  0xe7   :  { %3757 = vmatpush1.bf16.msra.mxu0 %v5876_v45  ;;  %4144 = vmatpush1.bf16.msra.mxu1 %v5879_v46  ;;  %v5977_v45 = vld [vmem:[%s8385_s1 + $0x924] ss:$16 sps:$4 sm:$0xff]   ;;  %v5980_v46 = vld [vmem:[%s8385_s1 + $0x92c] ss:$16 sps:$4 sm:$0xff]  }
  0xe8   :  { %3758 = vmatprep.subr.bf16.mxu0 %v5884_v47  ;;  %4145 = vmatprep.subr.bf16.mxu1 %v5887_v48  ;;  %v5975_v47 = vld [vmem:[%s8385_s1 + $0x920] ss:$16 sps:$4 sm:$0xff]   ;;  %v5978_v48 = vld [vmem:[%s8385_s1 + $0x928] ss:$16 sps:$4 sm:$0xff]  }
  0xeb   :  { %3759 = vmatpush1.bf16.msra.mxu0 %v5882_v49  ;;  %4146 = vmatpush1.bf16.msra.mxu1 %v5885_v50  ;;  %v5983_v49 = vld [vmem:[%s8385_s1 + $0x944] ss:$16 sps:$4 sm:$0xff]   ;;  %v5986_v50 = vld [vmem:[%s8385_s1 + $0x94c] ss:$16 sps:$4 sm:$0xff]  }
  0xec   :  { %3760 = vmatprep.subr.bf16.mxu0 %v5890_v51  ;;  %4147 = vmatprep.subr.bf16.mxu1 %v5893_v52  ;;  %v5981_v51 = vld [vmem:[%s8385_s1 + $0x940] ss:$16 sps:$4 sm:$0xff]   ;;  %v5984_v52 = vld [vmem:[%s8385_s1 + $0x948] ss:$16 sps:$4 sm:$0xff]  }
  0xef   :  { %3761 = vmatpush1.bf16.msra.mxu0 %v5888_v53  ;;  %4148 = vmatpush1.bf16.msra.mxu1 %v5891_v54  ;;  %v5989_v53 = vld [vmem:[%s8385_s1 + $0x964] ss:$16 sps:$4 sm:$0xff]   ;;  %v5992_v54 = vld [vmem:[%s8385_s1 + $0x96c] ss:$16 sps:$4 sm:$0xff]  }
  0xf0   :  { %3762 = vmatprep.subr.bf16.mxu0 %v5896_v55  ;;  %4149 = vmatprep.subr.bf16.mxu1 %v5899_v56  ;;  %v5987_v55 = vld [vmem:[%s8385_s1 + $0x960] ss:$16 sps:$4 sm:$0xff]   ;;  %v5990_v56 = vld [vmem:[%s8385_s1 + $0x968] ss:$16 sps:$4 sm:$0xff]  }
  0xf3   :  { %3763 = vmatpush1.bf16.msra.mxu0 %v5894_v57  ;;  %4150 = vmatpush1.bf16.msra.mxu1 %v5897_v58  ;;  %v5995_v57 = vld [vmem:[%s8385_s1 + $0x984] ss:$16 sps:$4 sm:$0xff]   ;;  %v5998_v58 = vld [vmem:[%s8385_s1 + $0x98c] ss:$16 sps:$4 sm:$0xff]  }
  0xf4   :  { %3764 = vmatprep.subr.bf16.mxu0 %v5902_v59  ;;  %4151 = vmatprep.subr.bf16.mxu1 %v5905_v60  ;;  %v5993_v59 = vld [vmem:[%s8385_s1 + $0x980] ss:$16 sps:$4 sm:$0xff]   ;;  %v5996_v60 = vld [vmem:[%s8385_s1 + $0x988] ss:$16 sps:$4 sm:$0xff]  }
  0xf7   :  { %3765 = vmatpush1.bf16.msra.mxu0 %v5900_v61  ;;  %4152 = vmatpush1.bf16.msra.mxu1 %v5903_v62  ;;  %v6001_v61 = vld [vmem:[%s8385_s1 + $0x9a4] ss:$16 sps:$4 sm:$0xff]   ;;  %v6004_v62 = vld [vmem:[%s8385_s1 + $0x9ac] ss:$16 sps:$4 sm:$0xff]  }
  0xf8   :  { %3766 = vmatprep.subr.bf16.mxu0 %v5908_v63  ;;  %4153 = vmatprep.subr.bf16.mxu1 %v5911_v0  ;;  %v5999_v63 = vld [vmem:[%s8385_s1 + $0x9a0] ss:$16 sps:$4 sm:$0xff]   ;;  %v6002_v0 = vld [vmem:[%s8385_s1 + $0x9a8] ss:$16 sps:$4 sm:$0xff]  }
  0xfb   :  { %3767 = vmatpush1.bf16.msra.mxu0 %v5906_v1  ;;  %4154 = vmatpush1.bf16.msra.mxu1 %v5909_v2  ;;  %v6007_v1 = vld [vmem:[%s8385_s1 + $0x9c4] ss:$16 sps:$4 sm:$0xff]   ;;  %v6010_v2 = vld [vmem:[%s8385_s1 + $0x9cc] ss:$16 sps:$4 sm:$0xff]  }
  0xfc   :  { %3768 = vmatprep.subr.bf16.mxu0 %v5914_v3  ;;  %4155 = vmatprep.subr.bf16.mxu1 %v5917_v4  ;;  %v6005_v3 = vld [vmem:[%s8385_s1 + $0x9c0] ss:$16 sps:$4 sm:$0xff]   ;;  %v6008_v4 = vld [vmem:[%s8385_s1 + $0x9c8] ss:$16 sps:$4 sm:$0xff]  }
  0xff   :  { %3769 = vmatpush1.bf16.msra.mxu0 %v5912_v5  ;;  %4156 = vmatpush1.bf16.msra.mxu1 %v5915_v6  ;;  %v6013_v5 = vld [vmem:[%s8385_s1 + $0x9e4] ss:$16 sps:$4 sm:$0xff]   ;;  %v6016_v6 = vld [vmem:[%s8385_s1 + $0x9ec] ss:$16 sps:$4 sm:$0xff]  }
 0x100   :  { %3781 = vmatprep.subr.bf16.mxu0 %v5923_v7  ;;  %4168 = vmatprep.subr.bf16.mxu1 %v5926_v8  ;;  %v6011_v7 = vld [vmem:[%s8385_s1 + $0x9e0] ss:$16 sps:$4 sm:$0xff]   ;;  %v6014_v8 = vld [vmem:[%s8385_s1 + $0x9e8] ss:$16 sps:$4 sm:$0xff]  }
 0x102   :  { %3771 = vmatmul.mubr.bf16.vlgmr.msra.gmra.mrb[0].mxu0 %v5918_v9  ;;  %4158 = vmatmul.mubr.bf16.vlgmr.msra.gmra.mrb[0].mxu1 %v5918_v9  ;;  %v6017_v9 = vld [vmem:[%s8386_s0 + $0x20] ss:$72 sps:$4 sm:$0xff]  }
 0x103   :  { %3782 = vmatpush1.bf16.msra.mxu0 %v5921_v10  ;;  %4169 = vmatpush1.bf16.msra.mxu1 %v5924_v11  ;;  %v6022_v10 = vld [vmem:[%s8385_s1 + $0xa04] ss:$16 sps:$4 sm:$0xff]   ;;  %v6025_v11 = vld [vmem:[%s8385_s1 + $0xa0c] ss:$16 sps:$4 sm:$0xff]  }
 0x104   :  { %3783 = vmatprep.subr.bf16.mxu0 %v5929_v12  ;;  %4170 = vmatprep.subr.bf16.mxu1 %v5932_v13  ;;  %v6020_v12 = vld [vmem:[%s8385_s1 + $0xa00] ss:$16 sps:$4 sm:$0xff]   ;;  %v6023_v13 = vld [vmem:[%s8385_s1 + $0xa08] ss:$16 sps:$4 sm:$0xff]  }
 0x105   :  { %3813 = vmatprep.mubr.bf16.mxu0 %v6019_v14  ;;  %4200 = vmatprep.mubr.bf16.mxu1 %v6019_v14  ;;  %v6028_v14 = vld [vmem:[%s8385_s1 + $0xa24] ss:$16 sps:$4 sm:$0xff]  }
 0x107   :  { %3784 = vmatpush1.bf16.msra.mxu0 %v5927_v15  ;;  %4171 = vmatpush1.bf16.msra.mxu1 %v5930_v16  ;;  %v6031_v15 = vld [vmem:[%s8385_s1 + $0xa2c] ss:$16 sps:$4 sm:$0xff]  }
 0x108   :  { %3785 = vmatprep.subr.bf16.mxu0 %v5935_v17  ;;  %4172 = vmatprep.subr.bf16.mxu1 %v5938_v18  ;;  %v6118_v16 = vld [vmem:[%s8386_s0 + $0x2c] ss:$72 sps:$4 sm:$0xff]   ;;  %v6026_v17 = vld [vmem:[%s8385_s1 + $0xa20] ss:$16 sps:$4 sm:$0xff]   ;;  %v6029_v18 = vld [vmem:[%s8385_s1 + $0xa28] ss:$16 sps:$4 sm:$0xff]  }
 0x10b   :  { %3786 = vmatpush1.bf16.msra.mxu0 %v5933_v19  ;;  %4173 = vmatpush1.bf16.msra.mxu1 %v5936_v20  ;;  %v6034_v19 = vld [vmem:[%s8385_s1 + $0xa44] ss:$16 sps:$4 sm:$0xff]   ;;  %v6037_v20 = vld [vmem:[%s8385_s1 + $0xa4c] ss:$16 sps:$4 sm:$0xff]  }
 0x10c   :  { %3787 = vmatprep.subr.bf16.mxu0 %v5941_v21  ;;  %4174 = vmatprep.subr.bf16.mxu1 %v5944_v22  ;;  %v6032_v21 = vld [vmem:[%s8385_s1 + $0xa40] ss:$16 sps:$4 sm:$0xff]   ;;  %v6035_v22 = vld [vmem:[%s8385_s1 + $0xa48] ss:$16 sps:$4 sm:$0xff]  }
 0x10f   :  { %3788 = vmatpush1.bf16.msra.mxu0 %v5939_v23  ;;  %4175 = vmatpush1.bf16.msra.mxu1 %v5942_v24  ;;  %v6040_v23 = vld [vmem:[%s8385_s1 + $0xa64] ss:$16 sps:$4 sm:$0xff]   ;;  %v6043_v24 = vld [vmem:[%s8385_s1 + $0xa6c] ss:$16 sps:$4 sm:$0xff]  }
 0x110   :  { %3789 = vmatprep.subr.bf16.mxu0 %v5947_v25  ;;  %4176 = vmatprep.subr.bf16.mxu1 %v5950_v26  ;;  %v6038_v25 = vld [vmem:[%s8385_s1 + $0xa60] ss:$16 sps:$4 sm:$0xff]   ;;  %v6041_v26 = vld [vmem:[%s8385_s1 + $0xa68] ss:$16 sps:$4 sm:$0xff]  }
 0x113   :  { %3790 = vmatpush1.bf16.msra.mxu0 %v5945_v27  ;;  %4177 = vmatpush1.bf16.msra.mxu1 %v5948_v28  ;;  %v6046_v27 = vld [vmem:[%s8385_s1 + $0xa84] ss:$16 sps:$4 sm:$0xff]   ;;  %v6049_v28 = vld [vmem:[%s8385_s1 + $0xa8c] ss:$16 sps:$4 sm:$0xff]  }
 0x114   :  { %3791 = vmatprep.subr.bf16.mxu0 %v5953_v29  ;;  %4178 = vmatprep.subr.bf16.mxu1 %v5956_v30  ;;  %v6044_v29 = vld [vmem:[%s8385_s1 + $0xa80] ss:$16 sps:$4 sm:$0xff]   ;;  %v6047_v30 = vld [vmem:[%s8385_s1 + $0xa88] ss:$16 sps:$4 sm:$0xff]  }
 0x117   :  { %3792 = vmatpush1.bf16.msra.mxu0 %v5951_v31  ;;  %4179 = vmatpush1.bf16.msra.mxu1 %v5954_v32  ;;  %v6052_v31 = vld [vmem:[%s8385_s1 + $0xaa4] ss:$16 sps:$4 sm:$0xff]   ;;  %v6055_v32 = vld [vmem:[%s8385_s1 + $0xaac] ss:$16 sps:$4 sm:$0xff]  }
 0x118   :  { %3793 = vmatprep.subr.bf16.mxu0 %v5959_v33  ;;  %4180 = vmatprep.subr.bf16.mxu1 %v5962_v34  ;;  %v6050_v33 = vld [vmem:[%s8385_s1 + $0xaa0] ss:$16 sps:$4 sm:$0xff]   ;;  %v6053_v34 = vld [vmem:[%s8385_s1 + $0xaa8] ss:$16 sps:$4 sm:$0xff]  }
 0x11b   :  { %3794 = vmatpush1.bf16.msra.mxu0 %v5957_v35  ;;  %4181 = vmatpush1.bf16.msra.mxu1 %v5960_v36  ;;  %v6058_v35 = vld [vmem:[%s8385_s1 + $0xac4] ss:$16 sps:$4 sm:$0xff]   ;;  %v6061_v36 = vld [vmem:[%s8385_s1 + $0xacc] ss:$16 sps:$4 sm:$0xff]  }
 0x11c   :  { %3795 = vmatprep.subr.bf16.mxu0 %v5965_v37  ;;  %4182 = vmatprep.subr.bf16.mxu1 %v5968_v38  ;;  %v6056_v37 = vld [vmem:[%s8385_s1 + $0xac0] ss:$16 sps:$4 sm:$0xff]   ;;  %v6059_v38 = vld [vmem:[%s8385_s1 + $0xac8] ss:$16 sps:$4 sm:$0xff]  }
 0x11f   :  { %3796 = vmatpush1.bf16.msra.mxu0 %v5963_v39  ;;  %4183 = vmatpush1.bf16.msra.mxu1 %v5966_v40  ;;  %v6064_v39 = vld [vmem:[%s8385_s1 + $0xae4] ss:$16 sps:$4 sm:$0xff]   ;;  %v6067_v40 = vld [vmem:[%s8385_s1 + $0xaec] ss:$16 sps:$4 sm:$0xff]  }
 0x120   :  { %3797 = vmatprep.subr.bf16.mxu0 %v5971_v41  ;;  %4184 = vmatprep.subr.bf16.mxu1 %v5974_v42  ;;  %v6062_v41 = vld [vmem:[%s8385_s1 + $0xae0] ss:$16 sps:$4 sm:$0xff]   ;;  %v6065_v42 = vld [vmem:[%s8385_s1 + $0xae8] ss:$16 sps:$4 sm:$0xff]  }
 0x123   :  { %3798 = vmatpush1.bf16.msra.mxu0 %v5969_v43  ;;  %4185 = vmatpush1.bf16.msra.mxu1 %v5972_v44  ;;  %v6070_v43 = vld [vmem:[%s8385_s1 + $0xb04] ss:$16 sps:$4 sm:$0xff]   ;;  %v6073_v44 = vld [vmem:[%s8385_s1 + $0xb0c] ss:$16 sps:$4 sm:$0xff]  }
 0x124   :  { %3799 = vmatprep.subr.bf16.mxu0 %v5977_v45  ;;  %4186 = vmatprep.subr.bf16.mxu1 %v5980_v46  ;;  %v6068_v45 = vld [vmem:[%s8385_s1 + $0xb00] ss:$16 sps:$4 sm:$0xff]   ;;  %v6071_v46 = vld [vmem:[%s8385_s1 + $0xb08] ss:$16 sps:$4 sm:$0xff]  }
 0x127   :  { %3800 = vmatpush1.bf16.msra.mxu0 %v5975_v47  ;;  %4187 = vmatpush1.bf16.msra.mxu1 %v5978_v48  ;;  %v6076_v47 = vld [vmem:[%s8385_s1 + $0xb24] ss:$16 sps:$4 sm:$0xff]   ;;  %v6079_v48 = vld [vmem:[%s8385_s1 + $0xb2c] ss:$16 sps:$4 sm:$0xff]  }
 0x128   :  { %3801 = vmatprep.subr.bf16.mxu0 %v5983_v49  ;;  %4188 = vmatprep.subr.bf16.mxu1 %v5986_v50  ;;  %v6074_v49 = vld [vmem:[%s8385_s1 + $0xb20] ss:$16 sps:$4 sm:$0xff]   ;;  %v6077_v50 = vld [vmem:[%s8385_s1 + $0xb28] ss:$16 sps:$4 sm:$0xff]  }
 0x12b   :  { %3802 = vmatpush1.bf16.msra.mxu0 %v5981_v51  ;;  %4189 = vmatpush1.bf16.msra.mxu1 %v5984_v52  ;;  %v6082_v51 = vld [vmem:[%s8385_s1 + $0xb44] ss:$16 sps:$4 sm:$0xff]   ;;  %v6085_v52 = vld [vmem:[%s8385_s1 + $0xb4c] ss:$16 sps:$4 sm:$0xff]  }
 0x12c   :  { %3803 = vmatprep.subr.bf16.mxu0 %v5989_v53  ;;  %4190 = vmatprep.subr.bf16.mxu1 %v5992_v54  ;;  %v6080_v53 = vld [vmem:[%s8385_s1 + $0xb40] ss:$16 sps:$4 sm:$0xff]   ;;  %v6083_v54 = vld [vmem:[%s8385_s1 + $0xb48] ss:$16 sps:$4 sm:$0xff]  }
 0x12f   :  { %3804 = vmatpush1.bf16.msra.mxu0 %v5987_v55  ;;  %4191 = vmatpush1.bf16.msra.mxu1 %v5990_v56  ;;  %v6088_v55 = vld [vmem:[%s8385_s1 + $0xb64] ss:$16 sps:$4 sm:$0xff]   ;;  %v6091_v56 = vld [vmem:[%s8385_s1 + $0xb6c] ss:$16 sps:$4 sm:$0xff]  }
 0x130   :  { %3805 = vmatprep.subr.bf16.mxu0 %v5995_v57  ;;  %4192 = vmatprep.subr.bf16.mxu1 %v5998_v58  ;;  %v6086_v57 = vld [vmem:[%s8385_s1 + $0xb60] ss:$16 sps:$4 sm:$0xff]   ;;  %v6089_v58 = vld [vmem:[%s8385_s1 + $0xb68] ss:$16 sps:$4 sm:$0xff]  }
 0x133   :  { %3806 = vmatpush1.bf16.msra.mxu0 %v5993_v59  ;;  %4193 = vmatpush1.bf16.msra.mxu1 %v5996_v60  ;;  %v6094_v59 = vld [vmem:[%s8385_s1 + $0xb84] ss:$16 sps:$4 sm:$0xff]   ;;  %v6097_v60 = vld [vmem:[%s8385_s1 + $0xb8c] ss:$16 sps:$4 sm:$0xff]  }
 0x134   :  { %3807 = vmatprep.subr.bf16.mxu0 %v6001_v61  ;;  %4194 = vmatprep.subr.bf16.mxu1 %v6004_v62  ;;  %v6092_v61 = vld [vmem:[%s8385_s1 + $0xb80] ss:$16 sps:$4 sm:$0xff]   ;;  %v6095_v62 = vld [vmem:[%s8385_s1 + $0xb88] ss:$16 sps:$4 sm:$0xff]  }
 0x137   :  { %3808 = vmatpush1.bf16.msra.mxu0 %v5999_v63  ;;  %4195 = vmatpush1.bf16.msra.mxu1 %v6002_v0  ;;  %v6100_v63 = vld [vmem:[%s8385_s1 + $0xba4] ss:$16 sps:$4 sm:$0xff]   ;;  %v6103_v0 = vld [vmem:[%s8385_s1 + $0xbac] ss:$16 sps:$4 sm:$0xff]  }
 0x138   :  { %3809 = vmatprep.subr.bf16.mxu0 %v6007_v1  ;;  %4196 = vmatprep.subr.bf16.mxu1 %v6010_v2  ;;  %v6098_v1 = vld [vmem:[%s8385_s1 + $0xba0] ss:$16 sps:$4 sm:$0xff]   ;;  %v6101_v2 = vld [vmem:[%s8385_s1 + $0xba8] ss:$16 sps:$4 sm:$0xff]  }
 0x13b   :  { %3810 = vmatpush1.bf16.msra.mxu0 %v6005_v3  ;;  %4197 = vmatpush1.bf16.msra.mxu1 %v6008_v4  ;;  %v6106_v3 = vld [vmem:[%s8385_s1 + $0xbc4] ss:$16 sps:$4 sm:$0xff]   ;;  %v6109_v4 = vld [vmem:[%s8385_s1 + $0xbcc] ss:$16 sps:$4 sm:$0xff]  }
 0x13c   :  { %3811 = vmatprep.subr.bf16.mxu0 %v6013_v5  ;;  %4198 = vmatprep.subr.bf16.mxu1 %v6016_v6  ;;  %v6104_v5 = vld [vmem:[%s8385_s1 + $0xbc0] ss:$16 sps:$4 sm:$0xff]   ;;  %v6107_v6 = vld [vmem:[%s8385_s1 + $0xbc8] ss:$16 sps:$4 sm:$0xff]  }
 0x13f   :  { %3812 = vmatpush1.bf16.msra.mxu0 %v6011_v7  ;;  %4199 = vmatpush1.bf16.msra.mxu1 %v6014_v8  ;;  %v6112_v7 = vld [vmem:[%s8385_s1 + $0xbe4] ss:$16 sps:$4 sm:$0xff]   ;;  %v6115_v8 = vld [vmem:[%s8385_s1 + $0xbec] ss:$16 sps:$4 sm:$0xff]  }
 0x140   :  { %3824 = vmatprep.subr.bf16.mxu0 %v6022_v10  ;;  %4211 = vmatprep.subr.bf16.mxu1 %v6025_v11  ;;  %v6113_v10 = vld [vmem:[%s8385_s1 + $0xbe8] ss:$16 sps:$4 sm:$0xff]   ;;  %v6121_v11 = vld [vmem:[%s8385_s1 + $0xc04] ss:$16 sps:$4 sm:$0xff]  }
 0x142   :  { %3814 = vmatmul.mubr.bf16.vlgmr.msra.gmra.mrb[0].mxu0 %v6017_v9  ;;  %4201 = vmatmul.mubr.bf16.vlgmr.msra.gmra.mrb[0].mxu1 %v6017_v9  ;;  %v6110_v9 = vld [vmem:[%s8385_s1 + $0xbe0] ss:$16 sps:$4 sm:$0xff]  }
 0x143   :  { %3825 = vmatpush1.bf16.msra.mxu0 %v6020_v12  ;;  %4212 = vmatpush1.bf16.msra.mxu1 %v6023_v13  ;;  %v6124_v12 = vld [vmem:[%s8385_s1 + $0xc0c] ss:$16 sps:$4 sm:$0xff]   ;;  %v6116_v13 = vld [vmem:[%s8386_s0 + $0x28] ss:$72 sps:$4 sm:$0xff]  }
 0x144   :  { %3826 = vmatprep.subr.bf16.mxu0 %v6028_v14  ;;  %4213 = vmatprep.subr.bf16.mxu1 %v6031_v15  ;;  %v6119_v14 = vld [vmem:[%s8385_s1 + $0xc00] ss:$16 sps:$4 sm:$0xff]   ;;  %v6122_v15 = vld [vmem:[%s8385_s1 + $0xc08] ss:$16 sps:$4 sm:$0xff]  }
 0x145   :  { %3856 = vmatprep.mubr.bf16.mxu0 %v6118_v16  ;;  %4243 = vmatprep.mubr.bf16.mxu1 %v6118_v16  ;;  %v6127_v16 = vld [vmem:[%s8385_s1 + $0xc24] ss:$16 sps:$4 sm:$0xff]  }
 0x147   :  { %3827 = vmatpush1.bf16.msra.mxu0 %v6026_v17  ;;  %4214 = vmatpush1.bf16.msra.mxu1 %v6029_v18  ;;  %v6130_v17 = vld [vmem:[%s8385_s1 + $0xc2c] ss:$16 sps:$4 sm:$0xff]  }
 0x148   :  { %3828 = vmatprep.subr.bf16.mxu0 %v6034_v19  ;;  %4215 = vmatprep.subr.bf16.mxu1 %v6037_v20  ;;  %v6217_v18 = vld [vmem:[%s8386_s0 + $0x34] ss:$72 sps:$4 sm:$0xff]   ;;  %v6125_v19 = vld [vmem:[%s8385_s1 + $0xc20] ss:$16 sps:$4 sm:$0xff]   ;;  %v6128_v20 = vld [vmem:[%s8385_s1 + $0xc28] ss:$16 sps:$4 sm:$0xff]  }
 0x14b   :  { %3829 = vmatpush1.bf16.msra.mxu0 %v6032_v21  ;;  %4216 = vmatpush1.bf16.msra.mxu1 %v6035_v22  ;;  %v6133_v21 = vld [vmem:[%s8385_s1 + $0xc44] ss:$16 sps:$4 sm:$0xff]   ;;  %v6136_v22 = vld [vmem:[%s8385_s1 + $0xc4c] ss:$16 sps:$4 sm:$0xff]  }
 0x14c   :  { %3830 = vmatprep.subr.bf16.mxu0 %v6040_v23  ;;  %4217 = vmatprep.subr.bf16.mxu1 %v6043_v24  ;;  %v6131_v23 = vld [vmem:[%s8385_s1 + $0xc40] ss:$16 sps:$4 sm:$0xff]   ;;  %v6134_v24 = vld [vmem:[%s8385_s1 + $0xc48] ss:$16 sps:$4 sm:$0xff]  }
 0x14f   :  { %3831 = vmatpush1.bf16.msra.mxu0 %v6038_v25  ;;  %4218 = vmatpush1.bf16.msra.mxu1 %v6041_v26  ;;  %v6139_v25 = vld [vmem:[%s8385_s1 + $0xc64] ss:$16 sps:$4 sm:$0xff]   ;;  %v6142_v26 = vld [vmem:[%s8385_s1 + $0xc6c] ss:$16 sps:$4 sm:$0xff]  }
 0x150   :  { %3832 = vmatprep.subr.bf16.mxu0 %v6046_v27  ;;  %4219 = vmatprep.subr.bf16.mxu1 %v6049_v28  ;;  %v6137_v27 = vld [vmem:[%s8385_s1 + $0xc60] ss:$16 sps:$4 sm:$0xff]   ;;  %v6140_v28 = vld [vmem:[%s8385_s1 + $0xc68] ss:$16 sps:$4 sm:$0xff]  }
 0x153   :  { %3833 = vmatpush1.bf16.msra.mxu0 %v6044_v29  ;;  %4220 = vmatpush1.bf16.msra.mxu1 %v6047_v30  ;;  %v6145_v29 = vld [vmem:[%s8385_s1 + $0xc84] ss:$16 sps:$4 sm:$0xff]   ;;  %v6148_v30 = vld [vmem:[%s8385_s1 + $0xc8c] ss:$16 sps:$4 sm:$0xff]  }
 0x154   :  { %3834 = vmatprep.subr.bf16.mxu0 %v6052_v31  ;;  %4221 = vmatprep.subr.bf16.mxu1 %v6055_v32  ;;  %v6143_v31 = vld [vmem:[%s8385_s1 + $0xc80] ss:$16 sps:$4 sm:$0xff]   ;;  %v6146_v32 = vld [vmem:[%s8385_s1 + $0xc88] ss:$16 sps:$4 sm:$0xff]  }
 0x157   :  { %3835 = vmatpush1.bf16.msra.mxu0 %v6050_v33  ;;  %4222 = vmatpush1.bf16.msra.mxu1 %v6053_v34  ;;  %v6151_v33 = vld [vmem:[%s8385_s1 + $0xca4] ss:$16 sps:$4 sm:$0xff]   ;;  %v6154_v34 = vld [vmem:[%s8385_s1 + $0xcac] ss:$16 sps:$4 sm:$0xff]  }
 0x158   :  { %3836 = vmatprep.subr.bf16.mxu0 %v6058_v35  ;;  %4223 = vmatprep.subr.bf16.mxu1 %v6061_v36  ;;  %v6149_v35 = vld [vmem:[%s8385_s1 + $0xca0] ss:$16 sps:$4 sm:$0xff]   ;;  %v6152_v36 = vld [vmem:[%s8385_s1 + $0xca8] ss:$16 sps:$4 sm:$0xff]  }
 0x15b   :  { %3837 = vmatpush1.bf16.msra.mxu0 %v6056_v37  ;;  %4224 = vmatpush1.bf16.msra.mxu1 %v6059_v38  ;;  %v6157_v37 = vld [vmem:[%s8385_s1 + $0xcc4] ss:$16 sps:$4 sm:$0xff]   ;;  %v6160_v38 = vld [vmem:[%s8385_s1 + $0xccc] ss:$16 sps:$4 sm:$0xff]  }
 0x15c   :  { %3838 = vmatprep.subr.bf16.mxu0 %v6064_v39  ;;  %4225 = vmatprep.subr.bf16.mxu1 %v6067_v40  ;;  %v6155_v39 = vld [vmem:[%s8385_s1 + $0xcc0] ss:$16 sps:$4 sm:$0xff]   ;;  %v6158_v40 = vld [vmem:[%s8385_s1 + $0xcc8] ss:$16 sps:$4 sm:$0xff]  }
 0x15f   :  { %3839 = vmatpush1.bf16.msra.mxu0 %v6062_v41  ;;  %4226 = vmatpush1.bf16.msra.mxu1 %v6065_v42  ;;  %v6163_v41 = vld [vmem:[%s8385_s1 + $0xce4] ss:$16 sps:$4 sm:$0xff]   ;;  %v6166_v42 = vld [vmem:[%s8385_s1 + $0xcec] ss:$16 sps:$4 sm:$0xff]  }
 0x160   :  { %3840 = vmatprep.subr.bf16.mxu0 %v6070_v43  ;;  %4227 = vmatprep.subr.bf16.mxu1 %v6073_v44  ;;  %v6161_v43 = vld [vmem:[%s8385_s1 + $0xce0] ss:$16 sps:$4 sm:$0xff]   ;;  %v6164_v44 = vld [vmem:[%s8385_s1 + $0xce8] ss:$16 sps:$4 sm:$0xff]  }
 0x163   :  { %3841 = vmatpush1.bf16.msra.mxu0 %v6068_v45  ;;  %4228 = vmatpush1.bf16.msra.mxu1 %v6071_v46  ;;  %v6169_v45 = vld [vmem:[%s8385_s1 + $0xd04] ss:$16 sps:$4 sm:$0xff]   ;;  %v6172_v46 = vld [vmem:[%s8385_s1 + $0xd0c] ss:$16 sps:$4 sm:$0xff]  }
 0x164   :  { %3842 = vmatprep.subr.bf16.mxu0 %v6076_v47  ;;  %4229 = vmatprep.subr.bf16.mxu1 %v6079_v48  ;;  %v6167_v47 = vld [vmem:[%s8385_s1 + $0xd00] ss:$16 sps:$4 sm:$0xff]   ;;  %v6170_v48 = vld [vmem:[%s8385_s1 + $0xd08] ss:$16 sps:$4 sm:$0xff]  }
 0x167   :  { %3843 = vmatpush1.bf16.msra.mxu0 %v6074_v49  ;;  %4230 = vmatpush1.bf16.msra.mxu1 %v6077_v50  ;;  %v6175_v49 = vld [vmem:[%s8385_s1 + $0xd24] ss:$16 sps:$4 sm:$0xff]   ;;  %v6178_v50 = vld [vmem:[%s8385_s1 + $0xd2c] ss:$16 sps:$4 sm:$0xff]  }
 0x168   :  { %3844 = vmatprep.subr.bf16.mxu0 %v6082_v51  ;;  %4231 = vmatprep.subr.bf16.mxu1 %v6085_v52  ;;  %v6173_v51 = vld [vmem:[%s8385_s1 + $0xd20] ss:$16 sps:$4 sm:$0xff]   ;;  %v6176_v52 = vld [vmem:[%s8385_s1 + $0xd28] ss:$16 sps:$4 sm:$0xff]  }
 0x16b   :  { %3845 = vmatpush1.bf16.msra.mxu0 %v6080_v53  ;;  %4232 = vmatpush1.bf16.msra.mxu1 %v6083_v54  ;;  %v6181_v53 = vld [vmem:[%s8385_s1 + $0xd44] ss:$16 sps:$4 sm:$0xff]   ;;  %v6184_v54 = vld [vmem:[%s8385_s1 + $0xd4c] ss:$16 sps:$4 sm:$0xff]  }
 0x16c   :  { %3846 = vmatprep.subr.bf16.mxu0 %v6088_v55  ;;  %4233 = vmatprep.subr.bf16.mxu1 %v6091_v56  ;;  %v6179_v55 = vld [vmem:[%s8385_s1 + $0xd40] ss:$16 sps:$4 sm:$0xff]   ;;  %v6182_v56 = vld [vmem:[%s8385_s1 + $0xd48] ss:$16 sps:$4 sm:$0xff]  }
 0x16f   :  { %3847 = vmatpush1.bf16.msra.mxu0 %v6086_v57  ;;  %4234 = vmatpush1.bf16.msra.mxu1 %v6089_v58  ;;  %v6187_v57 = vld [vmem:[%s8385_s1 + $0xd64] ss:$16 sps:$4 sm:$0xff]   ;;  %v6190_v58 = vld [vmem:[%s8385_s1 + $0xd6c] ss:$16 sps:$4 sm:$0xff]  }
 0x170   :  { %3848 = vmatprep.subr.bf16.mxu0 %v6094_v59  ;;  %4235 = vmatprep.subr.bf16.mxu1 %v6097_v60  ;;  %v6185_v59 = vld [vmem:[%s8385_s1 + $0xd60] ss:$16 sps:$4 sm:$0xff]   ;;  %v6188_v60 = vld [vmem:[%s8385_s1 + $0xd68] ss:$16 sps:$4 sm:$0xff]  }
 0x173   :  { %3849 = vmatpush1.bf16.msra.mxu0 %v6092_v61  ;;  %4236 = vmatpush1.bf16.msra.mxu1 %v6095_v62  ;;  %v6193_v61 = vld [vmem:[%s8385_s1 + $0xd84] ss:$16 sps:$4 sm:$0xff]   ;;  %v6196_v62 = vld [vmem:[%s8385_s1 + $0xd8c] ss:$16 sps:$4 sm:$0xff]  }
 0x174   :  { %3850 = vmatprep.subr.bf16.mxu0 %v6100_v63  ;;  %4237 = vmatprep.subr.bf16.mxu1 %v6103_v0  ;;  %v6191_v63 = vld [vmem:[%s8385_s1 + $0xd80] ss:$16 sps:$4 sm:$0xff]   ;;  %v6194_v0 = vld [vmem:[%s8385_s1 + $0xd88] ss:$16 sps:$4 sm:$0xff]  }
 0x177   :  { %3851 = vmatpush1.bf16.msra.mxu0 %v6098_v1  ;;  %4238 = vmatpush1.bf16.msra.mxu1 %v6101_v2  ;;  %v6199_v1 = vld [vmem:[%s8385_s1 + $0xda4] ss:$16 sps:$4 sm:$0xff]   ;;  %v6202_v2 = vld [vmem:[%s8385_s1 + $0xdac] ss:$16 sps:$4 sm:$0xff]  }
 0x178   :  { %3852 = vmatprep.subr.bf16.mxu0 %v6106_v3  ;;  %4239 = vmatprep.subr.bf16.mxu1 %v6109_v4  ;;  %v6197_v3 = vld [vmem:[%s8385_s1 + $0xda0] ss:$16 sps:$4 sm:$0xff]   ;;  %v6200_v4 = vld [vmem:[%s8385_s1 + $0xda8] ss:$16 sps:$4 sm:$0xff]  }
 0x17b   :  { %3853 = vmatpush1.bf16.msra.mxu0 %v6104_v5  ;;  %4240 = vmatpush1.bf16.msra.mxu1 %v6107_v6  ;;  %v6205_v5 = vld [vmem:[%s8385_s1 + $0xdc4] ss:$16 sps:$4 sm:$0xff]   ;;  %v6208_v6 = vld [vmem:[%s8385_s1 + $0xdcc] ss:$16 sps:$4 sm:$0xff]  }
 0x17c   :  { %3854 = vmatprep.subr.bf16.mxu0 %v6112_v7  ;;  %4241 = vmatprep.subr.bf16.mxu1 %v6115_v8  ;;  %v6203_v7 = vld [vmem:[%s8385_s1 + $0xdc0] ss:$16 sps:$4 sm:$0xff]   ;;  %v6206_v8 = vld [vmem:[%s8385_s1 + $0xdc8] ss:$16 sps:$4 sm:$0xff]  }
 0x17f   :  { %3855 = vmatpush1.bf16.msra.mxu0 %v6110_v9  ;;  %4242 = vmatpush1.bf16.msra.mxu1 %v6113_v10  ;;  %v6211_v9 = vld [vmem:[%s8385_s1 + $0xde4] ss:$16 sps:$4 sm:$0xff]   ;;  %v6214_v10 = vld [vmem:[%s8385_s1 + $0xdec] ss:$16 sps:$4 sm:$0xff]  }
 0x180   :  { %3867 = vmatprep.subr.bf16.mxu0 %v6121_v11  ;;  %4254 = vmatprep.subr.bf16.mxu1 %v6124_v12  ;;  %v6209_v11 = vld [vmem:[%s8385_s1 + $0xde0] ss:$16 sps:$4 sm:$0xff]   ;;  %v6212_v12 = vld [vmem:[%s8385_s1 + $0xde8] ss:$16 sps:$4 sm:$0xff]  }
 0x182   :  { %3857 = vmatmul.mubr.bf16.vlgmr.msra.gmra.mrb[0].mxu0 %v6116_v13  ;;  %4244 = vmatmul.mubr.bf16.vlgmr.msra.gmra.mrb[0].mxu1 %v6116_v13  ;;  %v6220_v13 = vld [vmem:[%s8385_s1 + $0xe04] ss:$16 sps:$4 sm:$0xff]  }
 0x183   :  { %3868 = vmatpush1.bf16.msra.mxu0 %v6119_v14  ;;  %4255 = vmatpush1.bf16.msra.mxu1 %v6122_v15  ;;  %v6223_v14 = vld [vmem:[%s8385_s1 + $0xe0c] ss:$16 sps:$4 sm:$0xff]   ;;  %v6215_v15 = vld [vmem:[%s8386_s0 + $0x30] ss:$72 sps:$4 sm:$0xff]  }
 0x184   :  { %3869 = vmatprep.subr.bf16.mxu0 %v6127_v16  ;;  %4256 = vmatprep.subr.bf16.mxu1 %v6130_v17  ;;  %v6218_v16 = vld [vmem:[%s8385_s1 + $0xe00] ss:$16 sps:$4 sm:$0xff]   ;;  %v6221_v17 = vld [vmem:[%s8385_s1 + $0xe08] ss:$16 sps:$4 sm:$0xff]  }
 0x185   :  { %3899 = vmatprep.mubr.bf16.mxu0 %v6217_v18  ;;  %4286 = vmatprep.mubr.bf16.mxu1 %v6217_v18  ;;  %v6226_v18 = vld [vmem:[%s8385_s1 + $0xe24] ss:$16 sps:$4 sm:$0xff]  }
 0x187   :  { %3870 = vmatpush1.bf16.msra.mxu0 %v6125_v19  ;;  %4257 = vmatpush1.bf16.msra.mxu1 %v6128_v20  ;;  %v6229_v19 = vld [vmem:[%s8385_s1 + $0xe2c] ss:$16 sps:$4 sm:$0xff]  }
 0x188   :  { %3871 = vmatprep.subr.bf16.mxu0 %v6133_v21  ;;  %4258 = vmatprep.subr.bf16.mxu1 %v6136_v22  ;;  %v6316_v20 = vld [vmem:[%s8386_s0 + $0x3c] ss:$72 sps:$4 sm:$0xff]   ;;  %v6224_v21 = vld [vmem:[%s8385_s1 + $0xe20] ss:$16 sps:$4 sm:$0xff]   ;;  %v6227_v22 = vld [vmem:[%s8385_s1 + $0xe28] ss:$16 sps:$4 sm:$0xff]  }
 0x18b   :  { %3872 = vmatpush1.bf16.msra.mxu0 %v6131_v23  ;;  %4259 = vmatpush1.bf16.msra.mxu1 %v6134_v24  ;;  %v6232_v23 = vld [vmem:[%s8385_s1 + $0xe44] ss:$16 sps:$4 sm:$0xff]   ;;  %v6235_v24 = vld [vmem:[%s8385_s1 + $0xe4c] ss:$16 sps:$4 sm:$0xff]  }
 0x18c   :  { %3873 = vmatprep.subr.bf16.mxu0 %v6139_v25  ;;  %4260 = vmatprep.subr.bf16.mxu1 %v6142_v26  ;;  %v6230_v25 = vld [vmem:[%s8385_s1 + $0xe40] ss:$16 sps:$4 sm:$0xff]   ;;  %v6233_v26 = vld [vmem:[%s8385_s1 + $0xe48] ss:$16 sps:$4 sm:$0xff]  }
 0x18f   :  { %3874 = vmatpush1.bf16.msra.mxu0 %v6137_v27  ;;  %4261 = vmatpush1.bf16.msra.mxu1 %v6140_v28  ;;  %v6238_v27 = vld [vmem:[%s8385_s1 + $0xe64] ss:$16 sps:$4 sm:$0xff]   ;;  %v6241_v28 = vld [vmem:[%s8385_s1 + $0xe6c] ss:$16 sps:$4 sm:$0xff]  }
 0x190   :  { %3875 = vmatprep.subr.bf16.mxu0 %v6145_v29  ;;  %4262 = vmatprep.subr.bf16.mxu1 %v6148_v30  ;;  %v6236_v29 = vld [vmem:[%s8385_s1 + $0xe60] ss:$16 sps:$4 sm:$0xff]   ;;  %v6239_v30 = vld [vmem:[%s8385_s1 + $0xe68] ss:$16 sps:$4 sm:$0xff]  }
 0x193   :  { %3876 = vmatpush1.bf16.msra.mxu0 %v6143_v31  ;;  %4263 = vmatpush1.bf16.msra.mxu1 %v6146_v32  ;;  %v6244_v31 = vld [vmem:[%s8385_s1 + $0xe84] ss:$16 sps:$4 sm:$0xff]   ;;  %v6247_v32 = vld [vmem:[%s8385_s1 + $0xe8c] ss:$16 sps:$4 sm:$0xff]  }
 0x194   :  { %3877 = vmatprep.subr.bf16.mxu0 %v6151_v33  ;;  %4264 = vmatprep.subr.bf16.mxu1 %v6154_v34  ;;  %v6242_v33 = vld [vmem:[%s8385_s1 + $0xe80] ss:$16 sps:$4 sm:$0xff]   ;;  %v6245_v34 = vld [vmem:[%s8385_s1 + $0xe88] ss:$16 sps:$4 sm:$0xff]  }
 0x197   :  { %3878 = vmatpush1.bf16.msra.mxu0 %v6149_v35  ;;  %4265 = vmatpush1.bf16.msra.mxu1 %v6152_v36  ;;  %v6250_v35 = vld [vmem:[%s8385_s1 + $0xea4] ss:$16 sps:$4 sm:$0xff]   ;;  %v6253_v36 = vld [vmem:[%s8385_s1 + $0xeac] ss:$16 sps:$4 sm:$0xff]  }
 0x198   :  { %3879 = vmatprep.subr.bf16.mxu0 %v6157_v37  ;;  %4266 = vmatprep.subr.bf16.mxu1 %v6160_v38  ;;  %v6248_v37 = vld [vmem:[%s8385_s1 + $0xea0] ss:$16 sps:$4 sm:$0xff]   ;;  %v6251_v38 = vld [vmem:[%s8385_s1 + $0xea8] ss:$16 sps:$4 sm:$0xff]  }
 0x19b   :  { %3880 = vmatpush1.bf16.msra.mxu0 %v6155_v39  ;;  %4267 = vmatpush1.bf16.msra.mxu1 %v6158_v40  ;;  %v6256_v39 = vld [vmem:[%s8385_s1 + $0xec4] ss:$16 sps:$4 sm:$0xff]   ;;  %v6259_v40 = vld [vmem:[%s8385_s1 + $0xecc] ss:$16 sps:$4 sm:$0xff]  }
 0x19c   :  { %3881 = vmatprep.subr.bf16.mxu0 %v6163_v41  ;;  %4268 = vmatprep.subr.bf16.mxu1 %v6166_v42  ;;  %v6254_v41 = vld [vmem:[%s8385_s1 + $0xec0] ss:$16 sps:$4 sm:$0xff]   ;;  %v6257_v42 = vld [vmem:[%s8385_s1 + $0xec8] ss:$16 sps:$4 sm:$0xff]  }
 0x19f   :  { %3882 = vmatpush1.bf16.msra.mxu0 %v6161_v43  ;;  %4269 = vmatpush1.bf16.msra.mxu1 %v6164_v44  ;;  %v6262_v43 = vld [vmem:[%s8385_s1 + $0xee4] ss:$16 sps:$4 sm:$0xff]   ;;  %v6265_v44 = vld [vmem:[%s8385_s1 + $0xeec] ss:$16 sps:$4 sm:$0xff]  }
 0x1a0   :  { %3883 = vmatprep.subr.bf16.mxu0 %v6169_v45  ;;  %4270 = vmatprep.subr.bf16.mxu1 %v6172_v46  ;;  %v6260_v45 = vld [vmem:[%s8385_s1 + $0xee0] ss:$16 sps:$4 sm:$0xff]   ;;  %v6263_v46 = vld [vmem:[%s8385_s1 + $0xee8] ss:$16 sps:$4 sm:$0xff]  }
 0x1a3   :  { %3884 = vmatpush1.bf16.msra.mxu0 %v6167_v47  ;;  %4271 = vmatpush1.bf16.msra.mxu1 %v6170_v48  ;;  %v6268_v47 = vld [vmem:[%s8385_s1 + $0xf04] ss:$16 sps:$4 sm:$0xff]   ;;  %v6271_v48 = vld [vmem:[%s8385_s1 + $0xf0c] ss:$16 sps:$4 sm:$0xff]  }
 0x1a4   :  { %3885 = vmatprep.subr.bf16.mxu0 %v6175_v49  ;;  %4272 = vmatprep.subr.bf16.mxu1 %v6178_v50  ;;  %v6266_v49 = vld [vmem:[%s8385_s1 + $0xf00] ss:$16 sps:$4 sm:$0xff]   ;;  %v6269_v50 = vld [vmem:[%s8385_s1 + $0xf08] ss:$16 sps:$4 sm:$0xff]  }
 0x1a7   :  { %3886 = vmatpush1.bf16.msra.mxu0 %v6173_v51  ;;  %4273 = vmatpush1.bf16.msra.mxu1 %v6176_v52  ;;  %v6274_v51 = vld [vmem:[%s8385_s1 + $0xf24] ss:$16 sps:$4 sm:$0xff]   ;;  %v6277_v52 = vld [vmem:[%s8385_s1 + $0xf2c] ss:$16 sps:$4 sm:$0xff]  }
 0x1a8   :  { %3887 = vmatprep.subr.bf16.mxu0 %v6181_v53  ;;  %4274 = vmatprep.subr.bf16.mxu1 %v6184_v54  ;;  %v6272_v53 = vld [vmem:[%s8385_s1 + $0xf20] ss:$16 sps:$4 sm:$0xff]   ;;  %v6275_v54 = vld [vmem:[%s8385_s1 + $0xf28] ss:$16 sps:$4 sm:$0xff]  }
 0x1ab   :  { %3888 = vmatpush1.bf16.msra.mxu0 %v6179_v55  ;;  %4275 = vmatpush1.bf16.msra.mxu1 %v6182_v56  ;;  %v6280_v55 = vld [vmem:[%s8385_s1 + $0xf44] ss:$16 sps:$4 sm:$0xff]   ;;  %v6283_v56 = vld [vmem:[%s8385_s1 + $0xf4c] ss:$16 sps:$4 sm:$0xff]  }
 0x1ac   :  { %3889 = vmatprep.subr.bf16.mxu0 %v6187_v57  ;;  %4276 = vmatprep.subr.bf16.mxu1 %v6190_v58  ;;  %v6278_v57 = vld [vmem:[%s8385_s1 + $0xf40] ss:$16 sps:$4 sm:$0xff]   ;;  %v6281_v58 = vld [vmem:[%s8385_s1 + $0xf48] ss:$16 sps:$4 sm:$0xff]  }
 0x1af   :  { %3890 = vmatpush1.bf16.msra.mxu0 %v6185_v59  ;;  %4277 = vmatpush1.bf16.msra.mxu1 %v6188_v60  ;;  %v6286_v59 = vld [vmem:[%s8385_s1 + $0xf64] ss:$16 sps:$4 sm:$0xff]   ;;  %v6289_v60 = vld [vmem:[%s8385_s1 + $0xf6c] ss:$16 sps:$4 sm:$0xff]  }
 0x1b0   :  { %3891 = vmatprep.subr.bf16.mxu0 %v6193_v61  ;;  %4278 = vmatprep.subr.bf16.mxu1 %v6196_v62  ;;  %v6284_v61 = vld [vmem:[%s8385_s1 + $0xf60] ss:$16 sps:$4 sm:$0xff]   ;;  %v6287_v62 = vld [vmem:[%s8385_s1 + $0xf68] ss:$16 sps:$4 sm:$0xff]  }
 0x1b3   :  { %3892 = vmatpush1.bf16.msra.mxu0 %v6191_v63  ;;  %4279 = vmatpush1.bf16.msra.mxu1 %v6194_v0  ;;  %v6292_v63 = vld [vmem:[%s8385_s1 + $0xf84] ss:$16 sps:$4 sm:$0xff]   ;;  %v6295_v0 = vld [vmem:[%s8385_s1 + $0xf8c] ss:$16 sps:$4 sm:$0xff]  }
 0x1b4   :  { %3893 = vmatprep.subr.bf16.mxu0 %v6199_v1  ;;  %4280 = vmatprep.subr.bf16.mxu1 %v6202_v2  ;;  %v6290_v1 = vld [vmem:[%s8385_s1 + $0xf80] ss:$16 sps:$4 sm:$0xff]   ;;  %v6293_v2 = vld [vmem:[%s8385_s1 + $0xf88] ss:$16 sps:$4 sm:$0xff]  }
 0x1b7   :  { %3894 = vmatpush1.bf16.msra.mxu0 %v6197_v3  ;;  %4281 = vmatpush1.bf16.msra.mxu1 %v6200_v4  ;;  %v6298_v3 = vld [vmem:[%s8385_s1 + $0xfa4] ss:$16 sps:$4 sm:$0xff]   ;;  %v6301_v4 = vld [vmem:[%s8385_s1 + $0xfac] ss:$16 sps:$4 sm:$0xff]  }
 0x1b8   :  { %3895 = vmatprep.subr.bf16.mxu0 %v6205_v5  ;;  %4282 = vmatprep.subr.bf16.mxu1 %v6208_v6  ;;  %v6296_v5 = vld [vmem:[%s8385_s1 + $0xfa0] ss:$16 sps:$4 sm:$0xff]   ;;  %v6299_v6 = vld [vmem:[%s8385_s1 + $0xfa8] ss:$16 sps:$4 sm:$0xff]  }
 0x1bb   :  { %3896 = vmatpush1.bf16.msra.mxu0 %v6203_v7  ;;  %4283 = vmatpush1.bf16.msra.mxu1 %v6206_v8  ;;  %v6304_v7 = vld [vmem:[%s8385_s1 + $0xfc4] ss:$16 sps:$4 sm:$0xff]   ;;  %v6307_v8 = vld [vmem:[%s8385_s1 + $0xfcc] ss:$16 sps:$4 sm:$0xff]  }
 0x1bc   :  { %3897 = vmatprep.subr.bf16.mxu0 %v6211_v9  ;;  %4284 = vmatprep.subr.bf16.mxu1 %v6214_v10  ;;  %v6302_v9 = vld [vmem:[%s8385_s1 + $0xfc0] ss:$16 sps:$4 sm:$0xff]   ;;  %v6305_v10 = vld [vmem:[%s8385_s1 + $0xfc8] ss:$16 sps:$4 sm:$0xff]  }
 0x1bf   :  { %3898 = vmatpush1.bf16.msra.mxu0 %v6209_v11  ;;  %4285 = vmatpush1.bf16.msra.mxu1 %v6212_v12  ;;  %v6310_v11 = vld [vmem:[%s8385_s1 + $0xfe4] ss:$16 sps:$4 sm:$0xff]   ;;  %v6313_v12 = vld [vmem:[%s8385_s1 + $0xfec] ss:$16 sps:$4 sm:$0xff]  }
 0x1c0   :  { %3910 = vmatprep.subr.bf16.mxu0 %v6220_v13  ;;  %4297 = vmatprep.subr.bf16.mxu1 %v6223_v14  ;;  %v6308_v13 = vld [vmem:[%s8385_s1 + $0xfe0] ss:$16 sps:$4 sm:$0xff]   ;;  %v6311_v14 = vld [vmem:[%s8385_s1 + $0xfe8] ss:$16 sps:$4 sm:$0xff]  }
 0x1c2   :  { %3900 = vmatmul.mubr.bf16.vlgmr.msra.gmra.mrb[0].mxu0 %v6215_v15  ;;  %4287 = vmatmul.mubr.bf16.vlgmr.msra.gmra.mrb[0].mxu1 %v6215_v15  ;;  %v6319_v15 = vld [vmem:[%s8385_s1 + $0x1004] ss:$16 sps:$4 sm:$0xff]  }
 0x1c3   :  { %3911 = vmatpush1.bf16.msra.mxu0 %v6218_v16  ;;  %4298 = vmatpush1.bf16.msra.mxu1 %v6221_v17  ;;  %v6322_v16 = vld [vmem:[%s8385_s1 + $0x100c] ss:$16 sps:$4 sm:$0xff]   ;;  %v6314_v17 = vld [vmem:[%s8386_s0 + $0x38] ss:$72 sps:$4 sm:$0xff]  }
 0x1c4   :  { %3912 = vmatprep.subr.bf16.mxu0 %v6226_v18  ;;  %4299 = vmatprep.subr.bf16.mxu1 %v6229_v19  ;;  %v6317_v18 = vld [vmem:[%s8385_s1 + $0x1000] ss:$16 sps:$4 sm:$0xff]   ;;  %v6320_v19 = vld [vmem:[%s8385_s1 + $0x1008] ss:$16 sps:$4 sm:$0xff]  }
 0x1c5   :  { %3942 = vmatprep.mubr.bf16.mxu0 %v6316_v20  ;;  %4329 = vmatprep.mubr.bf16.mxu1 %v6316_v20  ;;  %v6325_v20 = vld [vmem:[%s8385_s1 + $0x1024] ss:$16 sps:$4 sm:$0xff]  }
 0x1c7   :  { %3913 = vmatpush1.bf16.msra.mxu0 %v6224_v21  ;;  %4300 = vmatpush1.bf16.msra.mxu1 %v6227_v22  ;;  %v6328_v21 = vld [vmem:[%s8385_s1 + $0x102c] ss:$16 sps:$4 sm:$0xff]  }
 0x1c8   :  { %3914 = vmatprep.subr.bf16.mxu0 %v6232_v23  ;;  %4301 = vmatprep.subr.bf16.mxu1 %v6235_v24  ;;  %v6415_v22 = vld [vmem:[%s8386_s0 + $0x44] ss:$72 sps:$4 sm:$0xff]   ;;  %v6323_v23 = vld [vmem:[%s8385_s1 + $0x1020] ss:$16 sps:$4 sm:$0xff]   ;;  %v6326_v24 = vld [vmem:[%s8385_s1 + $0x1028] ss:$16 sps:$4 sm:$0xff]  }
 0x1cb   :  { %3915 = vmatpush1.bf16.msra.mxu0 %v6230_v25  ;;  %4302 = vmatpush1.bf16.msra.mxu1 %v6233_v26  ;;  %v6331_v25 = vld [vmem:[%s8385_s1 + $0x1044] ss:$16 sps:$4 sm:$0xff]   ;;  %v6334_v26 = vld [vmem:[%s8385_s1 + $0x104c] ss:$16 sps:$4 sm:$0xff]  }
 0x1cc   :  { %3916 = vmatprep.subr.bf16.mxu0 %v6238_v27  ;;  %4303 = vmatprep.subr.bf16.mxu1 %v6241_v28  ;;  %v6329_v27 = vld [vmem:[%s8385_s1 + $0x1040] ss:$16 sps:$4 sm:$0xff]   ;;  %v6332_v28 = vld [vmem:[%s8385_s1 + $0x1048] ss:$16 sps:$4 sm:$0xff]  }
 0x1cf   :  { %3917 = vmatpush1.bf16.msra.mxu0 %v6236_v29  ;;  %4304 = vmatpush1.bf16.msra.mxu1 %v6239_v30  ;;  %v6337_v29 = vld [vmem:[%s8385_s1 + $0x1064] ss:$16 sps:$4 sm:$0xff]   ;;  %v6340_v30 = vld [vmem:[%s8385_s1 + $0x106c] ss:$16 sps:$4 sm:$0xff]  }
 0x1d0   :  { %3918 = vmatprep.subr.bf16.mxu0 %v6244_v31  ;;  %4305 = vmatprep.subr.bf16.mxu1 %v6247_v32  ;;  %v6335_v31 = vld [vmem:[%s8385_s1 + $0x1060] ss:$16 sps:$4 sm:$0xff]   ;;  %v6338_v32 = vld [vmem:[%s8385_s1 + $0x1068] ss:$16 sps:$4 sm:$0xff]  }
 0x1d3   :  { %3919 = vmatpush1.bf16.msra.mxu0 %v6242_v33  ;;  %4306 = vmatpush1.bf16.msra.mxu1 %v6245_v34  ;;  %v6343_v33 = vld [vmem:[%s8385_s1 + $0x1084] ss:$16 sps:$4 sm:$0xff]   ;;  %v6346_v34 = vld [vmem:[%s8385_s1 + $0x108c] ss:$16 sps:$4 sm:$0xff]  }
 0x1d4   :  { %3920 = vmatprep.subr.bf16.mxu0 %v6250_v35  ;;  %4307 = vmatprep.subr.bf16.mxu1 %v6253_v36  ;;  %v6341_v35 = vld [vmem:[%s8385_s1 + $0x1080] ss:$16 sps:$4 sm:$0xff]   ;;  %v6344_v36 = vld [vmem:[%s8385_s1 + $0x1088] ss:$16 sps:$4 sm:$0xff]  }
 0x1d7   :  { %3921 = vmatpush1.bf16.msra.mxu0 %v6248_v37  ;;  %4308 = vmatpush1.bf16.msra.mxu1 %v6251_v38  ;;  %v6349_v37 = vld [vmem:[%s8385_s1 + $0x10a4] ss:$16 sps:$4 sm:$0xff]   ;;  %v6352_v38 = vld [vmem:[%s8385_s1 + $0x10ac] ss:$16 sps:$4 sm:$0xff]  }
 0x1d8   :  { %3922 = vmatprep.subr.bf16.mxu0 %v6256_v39  ;;  %4309 = vmatprep.subr.bf16.mxu1 %v6259_v40  ;;  %v6347_v39 = vld [vmem:[%s8385_s1 + $0x10a0] ss:$16 sps:$4 sm:$0xff]   ;;  %v6350_v40 = vld [vmem:[%s8385_s1 + $0x10a8] ss:$16 sps:$4 sm:$0xff]  }
 0x1db   :  { %3923 = vmatpush1.bf16.msra.mxu0 %v6254_v41  ;;  %4310 = vmatpush1.bf16.msra.mxu1 %v6257_v42  ;;  %v6355_v41 = vld [vmem:[%s8385_s1 + $0x10c4] ss:$16 sps:$4 sm:$0xff]   ;;  %v6358_v42 = vld [vmem:[%s8385_s1 + $0x10cc] ss:$16 sps:$4 sm:$0xff]  }
 0x1dc   :  { %3924 = vmatprep.subr.bf16.mxu0 %v6262_v43  ;;  %4311 = vmatprep.subr.bf16.mxu1 %v6265_v44  ;;  %v6353_v43 = vld [vmem:[%s8385_s1 + $0x10c0] ss:$16 sps:$4 sm:$0xff]   ;;  %v6356_v44 = vld [vmem:[%s8385_s1 + $0x10c8] ss:$16 sps:$4 sm:$0xff]  }
 0x1df   :  { %3925 = vmatpush1.bf16.msra.mxu0 %v6260_v45  ;;  %4312 = vmatpush1.bf16.msra.mxu1 %v6263_v46  ;;  %v6361_v45 = vld [vmem:[%s8385_s1 + $0x10e4] ss:$16 sps:$4 sm:$0xff]   ;;  %v6364_v46 = vld [vmem:[%s8385_s1 + $0x10ec] ss:$16 sps:$4 sm:$0xff]  }
 0x1e0   :  { %3926 = vmatprep.subr.bf16.mxu0 %v6268_v47  ;;  %4313 = vmatprep.subr.bf16.mxu1 %v6271_v48  ;;  %v6359_v47 = vld [vmem:[%s8385_s1 + $0x10e0] ss:$16 sps:$4 sm:$0xff]   ;;  %v6362_v48 = vld [vmem:[%s8385_s1 + $0x10e8] ss:$16 sps:$4 sm:$0xff]  }
 0x1e3   :  { %3927 = vmatpush1.bf16.msra.mxu0 %v6266_v49  ;;  %4314 = vmatpush1.bf16.msra.mxu1 %v6269_v50  ;;  %v6367_v49 = vld [vmem:[%s8385_s1 + $0x1104] ss:$16 sps:$4 sm:$0xff]   ;;  %v6370_v50 = vld [vmem:[%s8385_s1 + $0x110c] ss:$16 sps:$4 sm:$0xff]  }
 0x1e4   :  { %3928 = vmatprep.subr.bf16.mxu0 %v6274_v51  ;;  %4315 = vmatprep.subr.bf16.mxu1 %v6277_v52  ;;  %v6365_v51 = vld [vmem:[%s8385_s1 + $0x1100] ss:$16 sps:$4 sm:$0xff]   ;;  %v6368_v52 = vld [vmem:[%s8385_s1 + $0x1108] ss:$16 sps:$4 sm:$0xff]  }
 0x1e7   :  { %3929 = vmatpush1.bf16.msra.mxu0 %v6272_v53  ;;  %4316 = vmatpush1.bf16.msra.mxu1 %v6275_v54  ;;  %v6373_v53 = vld [vmem:[%s8385_s1 + $0x1124] ss:$16 sps:$4 sm:$0xff]   ;;  %v6376_v54 = vld [vmem:[%s8385_s1 + $0x112c] ss:$16 sps:$4 sm:$0xff]  }
 0x1e8   :  { %3930 = vmatprep.subr.bf16.mxu0 %v6280_v55  ;;  %4317 = vmatprep.subr.bf16.mxu1 %v6283_v56  ;;  %v6371_v55 = vld [vmem:[%s8385_s1 + $0x1120] ss:$16 sps:$4 sm:$0xff]   ;;  %v6374_v56 = vld [vmem:[%s8385_s1 + $0x1128] ss:$16 sps:$4 sm:$0xff]  }
 0x1eb   :  { %3931 = vmatpush1.bf16.msra.mxu0 %v6278_v57  ;;  %4318 = vmatpush1.bf16.msra.mxu1 %v6281_v58  ;;  %v6379_v57 = vld [vmem:[%s8385_s1 + $0x1144] ss:$16 sps:$4 sm:$0xff]   ;;  %v6382_v58 = vld [vmem:[%s8385_s1 + $0x114c] ss:$16 sps:$4 sm:$0xff]  }
 0x1ec   :  { %3932 = vmatprep.subr.bf16.mxu0 %v6286_v59  ;;  %4319 = vmatprep.subr.bf16.mxu1 %v6289_v60  ;;  %v6377_v59 = vld [vmem:[%s8385_s1 + $0x1140] ss:$16 sps:$4 sm:$0xff]   ;;  %v6380_v60 = vld [vmem:[%s8385_s1 + $0x1148] ss:$16 sps:$4 sm:$0xff]  }
 0x1ef   :  { %3933 = vmatpush1.bf16.msra.mxu0 %v6284_v61  ;;  %4320 = vmatpush1.bf16.msra.mxu1 %v6287_v62  ;;  %v6385_v61 = vld [vmem:[%s8385_s1 + $0x1164] ss:$16 sps:$4 sm:$0xff]   ;;  %v6388_v62 = vld [vmem:[%s8385_s1 + $0x116c] ss:$16 sps:$4 sm:$0xff]  }
 0x1f0   :  { %3934 = vmatprep.subr.bf16.mxu0 %v6292_v63  ;;  %4321 = vmatprep.subr.bf16.mxu1 %v6295_v0  ;;  %v6383_v63 = vld [vmem:[%s8385_s1 + $0x1160] ss:$16 sps:$4 sm:$0xff]   ;;  %v6386_v0 = vld [vmem:[%s8385_s1 + $0x1168] ss:$16 sps:$4 sm:$0xff]  }
 0x1f3   :  { %3935 = vmatpush1.bf16.msra.mxu0 %v6290_v1  ;;  %4322 = vmatpush1.bf16.msra.mxu1 %v6293_v2  ;;  %v6391_v1 = vld [vmem:[%s8385_s1 + $0x1184] ss:$16 sps:$4 sm:$0xff]   ;;  %v6394_v2 = vld [vmem:[%s8385_s1 + $0x118c] ss:$16 sps:$4 sm:$0xff]  }
 0x1f4   :  { %3936 = vmatprep.subr.bf16.mxu0 %v6298_v3  ;;  %4323 = vmatprep.subr.bf16.mxu1 %v6301_v4  ;;  %v6389_v3 = vld [vmem:[%s8385_s1 + $0x1180] ss:$16 sps:$4 sm:$0xff]   ;;  %v6392_v4 = vld [vmem:[%s8385_s1 + $0x1188] ss:$16 sps:$4 sm:$0xff]  }
 0x1f7   :  { %3937 = vmatpush1.bf16.msra.mxu0 %v6296_v5  ;;  %4324 = vmatpush1.bf16.msra.mxu1 %v6299_v6  ;;  %v6397_v5 = vld [vmem:[%s8385_s1 + $0x11a4] ss:$16 sps:$4 sm:$0xff]   ;;  %v6400_v6 = vld [vmem:[%s8385_s1 + $0x11ac] ss:$16 sps:$4 sm:$0xff]  }
 0x1f8   :  { %3938 = vmatprep.subr.bf16.mxu0 %v6304_v7  ;;  %4325 = vmatprep.subr.bf16.mxu1 %v6307_v8  ;;  %v6395_v7 = vld [vmem:[%s8385_s1 + $0x11a0] ss:$16 sps:$4 sm:$0xff]   ;;  %v6398_v8 = vld [vmem:[%s8385_s1 + $0x11a8] ss:$16 sps:$4 sm:$0xff]  }
 0x1fb   :  { %3939 = vmatpush1.bf16.msra.mxu0 %v6302_v9  ;;  %4326 = vmatpush1.bf16.msra.mxu1 %v6305_v10  ;;  %v6403_v9 = vld [vmem:[%s8385_s1 + $0x11c4] ss:$16 sps:$4 sm:$0xff]   ;;  %v6406_v10 = vld [vmem:[%s8385_s1 + $0x11cc] ss:$16 sps:$4 sm:$0xff]  }
 0x1fc   :  { %3940 = vmatprep.subr.bf16.mxu0 %v6310_v11  ;;  %4327 = vmatprep.subr.bf16.mxu1 %v6313_v12  ;;  %v6401_v11 = vld [vmem:[%s8385_s1 + $0x11c0] ss:$16 sps:$4 sm:$0xff]   ;;  %v6404_v12 = vld [vmem:[%s8385_s1 + $0x11c8] ss:$16 sps:$4 sm:$0xff]  }
 0x1ff   :  { %3941 = vmatpush1.bf16.msra.mxu0 %v6308_v13  ;;  %4328 = vmatpush1.bf16.msra.mxu1 %v6311_v14  ;;  %v6409_v13 = vld [vmem:[%s8385_s1 + $0x11e4] ss:$16 sps:$4 sm:$0xff]   ;;  %v6412_v14 = vld [vmem:[%s8385_s1 + $0x11ec] ss:$16 sps:$4 sm:$0xff]  }
 0x200   :  { %3953 = vmatprep.subr.bf16.mxu0 %v6319_v15  ;;  %4340 = vmatprep.subr.bf16.mxu1 %v6322_v16  ;;  %v6407_v15 = vld [vmem:[%s8385_s1 + $0x11e0] ss:$16 sps:$4 sm:$0xff]   ;;  %v6410_v16 = vld [vmem:[%s8385_s1 + $0x11e8] ss:$16 sps:$4 sm:$0xff]  }
 0x202   :  { %3943 = vmatmul.mubr.bf16.vlgmr.msra.gmra.mrb[0].mxu0 %v6314_v17  ;;  %4330 = vmatmul.mubr.bf16.vlgmr.msra.gmra.mrb[0].mxu1 %v6314_v17  ;;  %v6416_v17 = vld [vmem:[%s8387_s3 + $0x40] sm:$0xff]  }
 0x203   :  { %3954 = vmatpush1.bf16.msra.mxu0 %v6317_v18  ;;  %4341 = vmatpush1.bf16.msra.mxu1 %v6320_v19  ;;  %v6417_v18 = vld [vmem:[%s8387_s3 + $0xc0] sm:$0xff]  }
 0x204   :  { %3955 = vmatprep.subr.bf16.mxu0 %v6325_v20  ;;  %4342 = vmatprep.subr.bf16.mxu1 %v6328_v21  ;;  %v6413_v19 = vld [vmem:[%s8386_s0 + $0x40] ss:$72 sps:$4 sm:$0xff]  }
 0x205   :  { %3985 = vmatprep.mubr.bf16.mxu0 %v6415_v22  ;;  %4372 = vmatprep.mubr.bf16.mxu1 %v6415_v22  ;;  %v6418_v20 = vld [vmem:[%s8387_s3] sm:$0xff]   ;;  %v6420_v22 = vld [vmem:[%s8387_s3 + $0x48] sm:$0xff]  }
 0x206   :  { %v6419_v21 = vld [vmem:[%s8387_s3 + $0x80] sm:$0xff]  }
 0x207   :  { %3956 = vmatpush1.bf16.msra.mxu0 %v6323_v23  ;;  %4343 = vmatpush1.bf16.msra.mxu1 %v6326_v24  ;;  %v6421_v23 = vld [vmem:[%s8387_s3 + $0xc8] sm:$0xff]  }
 0x208   :  { %3957 = vmatprep.subr.bf16.mxu0 %v6331_v25  ;;  %4344 = vmatprep.subr.bf16.mxu1 %v6334_v26  ;;  %v6422_v24 = vld [vmem:[%s8387_s3 + $0x8] sm:$0xff]   ;;  %v6424_v26 = vld [vmem:[%s8387_s3 + $0x50] sm:$0xff]  }
 0x209   :  { %v6423_v25 = vld [vmem:[%s8387_s3 + $0x88] sm:$0xff]  }
 0x20b   :  { %3958 = vmatpush1.bf16.msra.mxu0 %v6329_v27  ;;  %4345 = vmatpush1.bf16.msra.mxu1 %v6332_v28  ;;  %v6425_v27 = vld [vmem:[%s8387_s3 + $0xd0] sm:$0xff]  }
 0x20c   :  { %3959 = vmatprep.subr.bf16.mxu0 %v6337_v29  ;;  %4346 = vmatprep.subr.bf16.mxu1 %v6340_v30  ;;  %v6426_v28 = vld [vmem:[%s8387_s3 + $0x10] sm:$0xff]   ;;  %v6428_v30 = vld [vmem:[%s8387_s3 + $0x58] sm:$0xff]  }
 0x20d   :  { %v6427_v29 = vld [vmem:[%s8387_s3 + $0x90] sm:$0xff]  }
 0x20f   :  { %3960 = vmatpush1.bf16.msra.mxu0 %v6335_v31  ;;  %4347 = vmatpush1.bf16.msra.mxu1 %v6338_v32  ;;  %v6429_v31 = vld [vmem:[%s8387_s3 + $0xd8] sm:$0xff]  }
 0x210   :  { %3961 = vmatprep.subr.bf16.mxu0 %v6343_v33  ;;  %4348 = vmatprep.subr.bf16.mxu1 %v6346_v34  ;;  %v6430_v32 = vld [vmem:[%s8387_s3 + $0x18] sm:$0xff]   ;;  %v6432_v34 = vld [vmem:[%s8387_s3 + $0x60] sm:$0xff]  }
 0x211   :  { %v6431_v33 = vld [vmem:[%s8387_s3 + $0x98] sm:$0xff]  }
 0x213   :  { %3962 = vmatpush1.bf16.msra.mxu0 %v6341_v35  ;;  %4349 = vmatpush1.bf16.msra.mxu1 %v6344_v36  ;;  %v6433_v35 = vld [vmem:[%s8387_s3 + $0xe0] sm:$0xff]  }
 0x214   :  { %3963 = vmatprep.subr.bf16.mxu0 %v6349_v37  ;;  %4350 = vmatprep.subr.bf16.mxu1 %v6352_v38  ;;  %v6434_v36 = vld [vmem:[%s8387_s3 + $0x20] sm:$0xff]   ;;  %v6436_v38 = vld [vmem:[%s8387_s3 + $0x68] sm:$0xff]  }
 0x215   :  { %v6435_v37 = vld [vmem:[%s8387_s3 + $0xa0] sm:$0xff]  }
 0x217   :  { %3964 = vmatpush1.bf16.msra.mxu0 %v6347_v39  ;;  %4351 = vmatpush1.bf16.msra.mxu1 %v6350_v40  ;;  %v6437_v39 = vld [vmem:[%s8387_s3 + $0xe8] sm:$0xff]  }
 0x218   :  { %3965 = vmatprep.subr.bf16.mxu0 %v6355_v41  ;;  %4352 = vmatprep.subr.bf16.mxu1 %v6358_v42  ;;  %v6438_v40 = vld [vmem:[%s8387_s3 + $0x28] sm:$0xff]   ;;  %v6440_v42 = vld [vmem:[%s8387_s3 + $0x70] sm:$0xff]  }
 0x219   :  { %v6439_v41 = vld [vmem:[%s8387_s3 + $0xa8] sm:$0xff]  }
 0x21b   :  { %3966 = vmatpush1.bf16.msra.mxu0 %v6353_v43  ;;  %4353 = vmatpush1.bf16.msra.mxu1 %v6356_v44  ;;  %v6441_v43 = vld [vmem:[%s8387_s3 + $0xf0] sm:$0xff]  }
 0x21c   :  { %3967 = vmatprep.subr.bf16.mxu0 %v6361_v45  ;;  %4354 = vmatprep.subr.bf16.mxu1 %v6364_v46  ;;  %v6442_v44 = vld [vmem:[%s8387_s3 + $0x30] sm:$0xff]   ;;  %v6444_v46 = vld [vmem:[%s8387_s3 + $0x78] sm:$0xff]  }
 0x21d   :  { %v6443_v45 = vld [vmem:[%s8387_s3 + $0xb0] sm:$0xff]  }
 0x21f   :  { %3968 = vmatpush1.bf16.msra.mxu0 %v6359_v47  ;;  %4355 = vmatpush1.bf16.msra.mxu1 %v6362_v48  ;;  %v6445_v47 = vld [vmem:[%s8387_s3 + $0xf8] sm:$0xff]  }
 0x220   :  { %3969 = vmatprep.subr.bf16.mxu0 %v6367_v49  ;;  %4356 = vmatprep.subr.bf16.mxu1 %v6370_v50  ;;  %v6446_v48 = vld [vmem:[%s8387_s3 + $0x38] sm:$0xff]   ;;  %v619_v50 = vlaneseq }
 0x221   :  { %v6447_v49 = vld [vmem:[%s8387_s3 + $0xb8] sm:$0xff]  }
 0x223   :  { %3970 = vmatpush1.bf16.msra.mxu0 %v6365_v51  ;;  %4357 = vmatpush1.bf16.msra.mxu1 %v6368_v52  ;;  %v620_v51 = vshrl.u32 %v619_v50, 7 }
 0x224   :  { %3971 = vmatprep.subr.bf16.mxu0 %v6373_v53  ;;  %4358 = vmatprep.subr.bf16.mxu1 %v6376_v54  ;;  %v617_v54 = vld [vmem:[%s8388_s2] sm:$0xf] }
 0x225   :  { %v621_v52 = vsub.s32 0, %v620_v51  ;;  %v629_v53 = vsub.s32 2, %v620_v51 }
 0x227   :  { %3972 = vmatpush1.bf16.msra.mxu0 %v6371_v55  ;;  %4359 = vmatpush1.bf16.msra.mxu1 %v6374_v56  ;;  %v625_v55 = vsub.s32 1, %v620_v51  ;;  %v633_v56 = vsub.s32 3, %v620_v51 }
 0x228   :  { %3973 = vmatprep.subr.bf16.mxu0 %v6379_v57  ;;  %4360 = vmatprep.subr.bf16.mxu1 %v6382_v58  ;;  %v622_v57 = vrot.slane %v617_v54, %v621_v52  ;;  %v630_v58 = vrot.slane %v617_v54, %v629_v53 }
 0x22b   :  { %3974 = vmatpush1.bf16.msra.mxu0 %v6377_v59  ;;  %4361 = vmatpush1.bf16.msra.mxu1 %v6380_v60  ;;  %v626_v59 = vrot.slane %v617_v54, %v625_v55  ;;  %v634_v60 = vrot.slane %v617_v54, %v633_v56 }
 0x22c   :  { %3975 = vmatprep.subr.bf16.mxu0 %v6385_v61  ;;  %4362 = vmatprep.subr.bf16.mxu1 %v6388_v62 }
 0x22f   :  { %3976 = vmatpush1.bf16.msra.mxu0 %v6383_v63  ;;  %4363 = vmatpush1.bf16.msra.mxu1 %v6386_v0 }
 0x230   :  { %3977 = vmatprep.subr.bf16.mxu0 %v6391_v1  ;;  %4364 = vmatprep.subr.bf16.mxu1 %v6394_v2 }
 0x233   :  { %3978 = vmatpush1.bf16.msra.mxu0 %v6389_v3  ;;  %4365 = vmatpush1.bf16.msra.mxu1 %v6392_v4 }
 0x234   :  { %3979 = vmatprep.subr.bf16.mxu0 %v6397_v5  ;;  %4366 = vmatprep.subr.bf16.mxu1 %v6400_v6 }
 0x237   :  { %3980 = vmatpush1.bf16.msra.mxu0 %v6395_v7  ;;  %4367 = vmatpush1.bf16.msra.mxu1 %v6398_v8 }
 0x238   :  { %3981 = vmatprep.subr.bf16.mxu0 %v6403_v9  ;;  %4368 = vmatprep.subr.bf16.mxu1 %v6406_v10 }
 0x23b   :  { %3982 = vmatpush1.bf16.msra.mxu0 %v6401_v11  ;;  %4369 = vmatpush1.bf16.msra.mxu1 %v6404_v12 }
 0x23c   :  { %3983 = vmatprep.subr.bf16.mxu0 %v6409_v13  ;;  %4370 = vmatprep.subr.bf16.mxu1 %v6412_v14 }
 0x23f   :  { %3984 = vmatpush1.bf16.msra.mxu0 %v6407_v15  ;;  %4371 = vmatpush1.bf16.msra.mxu1 %v6410_v16 }
 0x240   :  { %5409 = vmatprep.subr.bf16.mxu0 %v6416_v17  ;;  %5431 = vmatprep.subr.bf16.mxu1 %v6417_v18 }
 0x242   :  { %3986 = vmatmul.mubr.bf16.vlgmr.msra.gmra.mrb[0].mxu0 %v6413_v19  ;;  %4373 = vmatmul.mubr.bf16.vlgmr.msra.gmra.mrb[0].mxu1 %v6413_v19 }
 0x243   :  { %5410 = vmatpush3.bf16.msra.mxu0 %v6418_v20  ;;  %5432 = vmatpush3.bf16.msra.mxu1 %v6419_v21 }
 0x244   :  { %5411 = vmatprep.subr.bf16.mxu0 %v6420_v22  ;;  %5433 = vmatprep.subr.bf16.mxu1 %v6421_v23 }
 0x247   :  { %5412 = vmatpush3.bf16.msra.mxu0 %v6422_v24  ;;  %5434 = vmatpush3.bf16.msra.mxu1 %v6423_v25 }
 0x248   :  { %5413 = vmatprep.subr.bf16.mxu0 %v6424_v26  ;;  %5435 = vmatprep.subr.bf16.mxu1 %v6425_v27 }
 0x24b   :  { %5414 = vmatpush3.bf16.msra.mxu0 %v6426_v28  ;;  %5436 = vmatpush3.bf16.msra.mxu1 %v6427_v29 }
 0x24c   :  { %5415 = vmatprep.subr.bf16.mxu0 %v6428_v30  ;;  %5437 = vmatprep.subr.bf16.mxu1 %v6429_v31  ;;  %v5372_v31 = vld [vmem:[%s8390_s4] ss:$0 sm:$0xff] }
 0x24f   :  { %5416 = vmatpush3.bf16.msra.mxu0 %v6430_v32  ;;  %5438 = vmatpush3.bf16.msra.mxu1 %v6431_v33 }
 0x250   :  { %5417 = vmatprep.subr.bf16.mxu0 %v6432_v34  ;;  %5439 = vmatprep.subr.bf16.mxu1 %v6433_v35 }
 0x253   :  { %5418 = vmatpush3.bf16.msra.mxu0 %v6434_v36  ;;  %5440 = vmatpush3.bf16.msra.mxu1 %v6435_v37 }
 0x254   :  { %5419 = vmatprep.subr.bf16.mxu0 %v6436_v38  ;;  %5441 = vmatprep.subr.bf16.mxu1 %v6437_v39 }
 0x257   :  { %5420 = vmatpush3.bf16.msra.mxu0 %v6438_v40  ;;  %5442 = vmatpush3.bf16.msra.mxu1 %v6439_v41 }
 0x258   :  { %5421 = vmatprep.subr.bf16.mxu0 %v6440_v42  ;;  %5443 = vmatprep.subr.bf16.mxu1 %v6441_v43 }
 0x25b   :  { %5422 = vmatpush3.bf16.msra.mxu0 %v6442_v44  ;;  %5444 = vmatpush3.bf16.msra.mxu1 %v6443_v45 }
 0x25c   :  { %5423 = vmatprep.subr.bf16.mxu0 %v6444_v46  ;;  %5445 = vmatprep.subr.bf16.mxu1 %v6445_v47 }
 0x25f   :  { %5424 = vmatpush3.bf16.msra.mxu0 %v6446_v48  ;;  %5446 = vmatpush3.bf16.msra.mxu1 %v6447_v49 }
 0x315   :  { %v3987_v61 = vpop.f32.mrb[0].mxu0  ;;  %v4374_v62 = vpop.f32.mrb[0].mxu1 }
 0x316   :  { %v5453_v63 = vadd.f32 %v3987_v61, %v622_v57  ;;  %v5457_v0 = vadd.f32 %v4374_v62, %v630_v58  ;;  %v3989_v1 = vpop.f32.mrb[1].mxu0  ;;  %v4376_v2 = vpop.f32.mrb[1].mxu1 }
 0x317   :  { %v5454_v3 = vadd.f32 %v3989_v1, %v626_v59  ;;  %v5458_v4 = vadd.f32 %v4376_v2, %v634_v60  ;;  %v3991_v5 = vpop.f32.mrb[2].mxu0  ;;  %v4378_v6 = vpop.f32.mrb[2].mxu1 }
 0x318   :  { %v4383_v7 = vmax.f32 %v5453_v63, 0.0  ;;  %v4385_v8 = vmax.f32 %v5457_v0, 0.0  ;;  %v5455_v9 = vadd.f32 %v3991_v5, %v622_v57  ;;  %v5459_v10 = vadd.f32 %v4378_v6, %v630_v58  ;;  %v3993_v11 = vpop.f32.mrb[3].mxu0  ;;  %v4380_v12 = vpop.f32.mrb[3].mxu1 }
 0x319   :  { %v4384_v13 = vmax.f32 %v5454_v3, 0.0  ;;  %v4386_v14 = vmax.f32 %v5458_v4, 0.0  ;;  %v5456_v15 = vadd.f32 %v3993_v11, %v626_v59  ;;  %v5460_v16 = vadd.f32 %v4380_v12, %v634_v60 }
 0x31a   :  { %v4387_v17 = vmax.f32 %v5455_v9, 0.0  ;;  %v4389_v18 = vmax.f32 %v5459_v10, 0.0 }
 0x31b   :  { %v5405_v19 = vpack.c.bf16 %v4384_v13, %v4383_v7  ;;  %v5406_v20 = vpack.c.bf16 %v4386_v14, %v4385_v8  ;;  %v4388_v21 = vmax.f32 %v5456_v15, 0.0  ;;  %v4390_v22 = vmax.f32 %v5460_v16, 0.0 }
 0x31c   :  { %v4391_v23 = vpack.c.bf16 %v4387_v17, %v4383_v7  ;;  %v4393_v24 = vpack.c.bf16 %v4389_v18, %v4385_v8 }
 0x31d   :  { %4415 = vst [vmem:[%s8389_s5] sm:$0xff] %v5405_v19  ;;  %4416 = vst [vmem:[%s8389_s5 + $0x8] sm:$0xff] %v5406_v20  ;;  %v4392_v25 = vpack.c.bf16 %v4388_v21, %v4384_v13  ;;  %v5407_v26 = vpack.c.bf16 %v4388_v21, %v4387_v17  ;;  %v4394_v27 = vpack.c.bf16 %v4390_v22, %v4386_v14 }
 0x31e   :  { %v5408_v28 = vpack.c.bf16 %v4390_v22, %v4389_v18 }
 0x31f   :  { %4417 = vst [vmem:[%s8389_s5 + $0x10] sm:$0xff] %v5407_v26  ;;  %4714 = vmatprep.mubr.bf16.mxu0 %v4392_v25  ;;  %4755 = vmatprep.mubr.bf16.mxu1 %v4394_v27 }
 0x320   :  { %4418 = vst [vmem:[%s8389_s5 + $0x18] sm:$0xff] %v5408_v28  ;;  %4715 = vmatmul.mubr.bf16.vlgmr.msra.gmra.mrb[4].mxu0 %v4391_v23  ;;  %4756 = vmatmul.mubr.bf16.vlgmr.msra.gmra.mrb[4].mxu1 %v4393_v24 }
 0x3f3   :  { %v5425_v29 = vpop.f32.mrb[4].mxu0  ;;  %v5447_v30 = vpop.f32.mrb[4].mxu1 }
 0x3f4   :  { %v5426_v32 = vpop.f32.mrb[5].mxu0  ;;  %v5448_v33 = vpop.f32.mrb[5].mxu1 }
 0x3f5   :  { %v5427_v34 = vadd.f32 %v5426_v32, %v5425_v29  ;;  %v5449_v35 = vadd.f32 %v5448_v33, %v5447_v30  ;;  %v5428_v36 = vpop.f32.mrb[6].mxu0  ;;  %v5450_v37 = vpop.f32.mrb[6].mxu1 }
 0x3f6   :  { %v5429_v38 = vpop.f32.mrb[7].mxu0  ;;  %v5451_v39 = vpop.f32.mrb[7].mxu1 }
 0x3f7   :  { %v4717_v40 = vadd.f32 %v5427_v34, %v5372_v31  ;;  %v5430_v41 = vadd.f32 %v5429_v38, %v5428_v36  ;;  %v5452_v42 = vadd.f32 %v5451_v39, %v5450_v37 }
 0x3f9   :  { %v4758_v43 = vadd.f32 %v5449_v35, %v4717_v40  ;;  %v4720_v44 = vadd.f32 %v5430_v41, %v5372_v31 }
 0x3fb   :  { %4764 = vst [vmem:[%s8391_s6] sm:$0xff] %v4758_v43  ;;  %v4761_v45 = vadd.f32 %v5452_v42, %v4720_v44 }
 0x3fd   :  { %4765 = vst [vmem:[%s8391_s6 + $0x8] sm:$0xff] %v4761_v45 }

// kernel: dense_correspondence_forward.11
= control target key start
LH: loop header
LB: loop body
LE: loop exit
PB: predicated region body
PF: predicated region fallthrough
CT: control target
= control target key end

     0   :  { %12 = vsyncpa [#allocation3], 0  ;;  %s2932_s0 = inlined_call_operand.vmem [shape: bf16[8,2304], index: 0, kind: input, shape index: {}]   ;;  %s2933_s1 = inlined_call_operand.vmem [shape: bf16[2304,128], index: 1, kind: input, shape index: {}]   ;;  %s2934_s2 = inlined_call_operand.vmem [shape: f32[1,128], index: 2, kind: input, shape index: {}]   ;;  %s2935_s3 = inlined_call_operand.vmem [shape: bf16[128,128], index: 3, kind: input, shape index: {}]   ;;  %s2936_s4 = inlined_call_operand.vmem [shape: f32[1,128], index: 4, kind: input, shape index: {}]   ;;  %s2937_s5 = inlined_call_operand.hbm [shape: bf16[8,128], index: 5, kind: output, shape index: {0}]   ;;  %s2938_s6 = inlined_call_operand.hbm [shape: f32[8,128], index: 6, kind: output, shape index: {1}]  }
   0x1   :  { %v2162_v0 = vld [vmem:[%s2933_s1 + $0x40] sm:$0xff]   ;;  %v2166_v4 = vld [vmem:[%s2933_s1 + $0x48] sm:$0xff]   ;;  %v2170_v8 = vld [vmem:[%s2933_s1 + $0x50] sm:$0xff]  }
   0x2   :  { %v2163_v1 = vld [vmem:[%s2933_s1] sm:$0xff]   ;;  %1931 = vmatprep.subr.bf16.mxu0 %v2162_v0  ;;  %v2167_v5 = vld [vmem:[%s2933_s1 + $0x8] sm:$0xff]   ;;  %v2171_v9 = vld [vmem:[%s2933_s1 + $0x10] sm:$0xff]  }
   0x3   :  { %v2164_v2 = vld [vmem:[%s2933_s1 + $0xc0] sm:$0xff]   ;;  %1932 = vmatpush3.bf16.msra.mxu0 %v2163_v1  ;;  %v2168_v6 = vld [vmem:[%s2933_s1 + $0xc8] sm:$0xff]   ;;  %v2172_v10 = vld [vmem:[%s2933_s1 + $0xd0] sm:$0xff]  }
   0x4   :  { %v2165_v3 = vld [vmem:[%s2933_s1 + $0x80] sm:$0xff]   ;;  %1953 = vmatprep.subr.bf16.mxu1 %v2164_v2  ;;  %1933 = vmatprep.subr.bf16.mxu0 %v2166_v4  ;;  %v2169_v7 = vld [vmem:[%s2933_s1 + $0x88] sm:$0xff]   ;;  %v2173_v11 = vld [vmem:[%s2933_s1 + $0x90] sm:$0xff]  }
   0x5   :  { %1954 = vmatpush3.bf16.msra.mxu1 %v2165_v3  ;;  %v2174_v12 = vld [vmem:[%s2933_s1 + $0x58] sm:$0xff]   ;;  %v2178_v16 = vld [vmem:[%s2933_s1 + $0x60] sm:$0xff]   ;;  %v2182_v20 = vld [vmem:[%s2933_s1 + $0x68] sm:$0xff]  }
   0x6   :  { %1955 = vmatprep.subr.bf16.mxu1 %v2168_v6  ;;  %v2175_v13 = vld [vmem:[%s2933_s1 + $0x18] sm:$0xff]   ;;  %v2179_v17 = vld [vmem:[%s2933_s1 + $0x20] sm:$0xff]   ;;  %v2183_v21 = vld [vmem:[%s2933_s1 + $0x28] sm:$0xff]  }
   0x7   :  { %1934 = vmatpush3.bf16.msra.mxu0 %v2167_v5  ;;  %v2176_v14 = vld [vmem:[%s2933_s1 + $0xd8] sm:$0xff]   ;;  %v2180_v18 = vld [vmem:[%s2933_s1 + $0xe0] sm:$0xff]   ;;  %v2184_v22 = vld [vmem:[%s2933_s1 + $0xe8] sm:$0xff]  }
   0x8   :  { %1935 = vmatprep.subr.bf16.mxu0 %v2170_v8  ;;  %v2177_v15 = vld [vmem:[%s2933_s1 + $0x98] sm:$0xff]   ;;  %v2181_v19 = vld [vmem:[%s2933_s1 + $0xa0] sm:$0xff]   ;;  %v2185_v23 = vld [vmem:[%s2933_s1 + $0xa8] sm:$0xff]  }
   0x9   :  { %1956 = vmatpush3.bf16.msra.mxu1 %v2169_v7  ;;  %v2186_v24 = vld [vmem:[%s2933_s1 + $0x70] sm:$0xff]   ;;  %v2190_v28 = vld [vmem:[%s2933_s1 + $0x78] sm:$0xff]   ;;  %v25_v31 = vld [vmem:[%s2932_s0] sm:$0xff] }
   0xa   :  { %1957 = vmatprep.subr.bf16.mxu1 %v2172_v10  ;;  %v2187_v25 = vld [vmem:[%s2933_s1 + $0x30] sm:$0xff]   ;;  %v2191_v29 = vld [vmem:[%s2933_s1 + $0x38] sm:$0xff]   ;;  %v1760_v32 = vcombine.low %v25_v31, %v25_v31  ;;  %v1761_v33 = vcombine.high %v25_v31, %v25_v31  ;;  %v2196_v35 = vld [vmem:[%s2933_s1 + $0x140] sm:$0xff]  }
   0xb   :  { %1936 = vmatpush3.bf16.msra.mxu0 %v2171_v9  ;;  %v2188_v26 = vld [vmem:[%s2933_s1 + $0xf0] sm:$0xff]   ;;  %v2192_v30 = vld [vmem:[%s2933_s1 + $0xf8] sm:$0xff]   ;;  %v26_v36 = vld [vmem:[%s2932_s0 + $0x8] sm:$0xff] }
   0xc   :  { %1937 = vmatprep.subr.bf16.mxu0 %v2174_v12  ;;  %v2189_v27 = vld [vmem:[%s2933_s1 + $0xb0] sm:$0xff]   ;;  %v2195_v34 = vld [vmem:[%s2933_s1 + $0xb8] sm:$0xff]   ;;  %1288 = vmatprep.mubr.bf16.mxu0 %v1761_v33  ;;  %v1762_v37 = vcombine.low %v26_v36, %v26_v36  ;;  %v1763_v38 = vcombine.high %v26_v36, %v26_v36  ;;  %v2199_v39 = vld [vmem:[%s2933_s1 + $0x100] sm:$0xff]  }
   0xd   :  { %1958 = vmatpush3.bf16.msra.mxu1 %v2173_v11  ;;  %v2200_v40 = vld [vmem:[%s2933_s1 + $0x1c0] sm:$0xff]   ;;  %v2202_v42 = vld [vmem:[%s2933_s1 + $0x148] sm:$0xff]   ;;  %v2206_v46 = vld [vmem:[%s2933_s1 + $0x150] sm:$0xff]  }
   0xe   :  { %1959 = vmatprep.subr.bf16.mxu1 %v2176_v14  ;;  %1328 = vmatprep.mubr.bf16.mxu1 %v1763_v38  ;;  %v2201_v41 = vld [vmem:[%s2933_s1 + $0x180] sm:$0xff]   ;;  %v2203_v43 = vld [vmem:[%s2933_s1 + $0x108] sm:$0xff]   ;;  %v2207_v47 = vld [vmem:[%s2933_s1 + $0x110] sm:$0xff]  }
   0xf   :  { %1938 = vmatpush3.bf16.msra.mxu0 %v2175_v13  ;;  %v2204_v44 = vld [vmem:[%s2933_s1 + $0x1c8] sm:$0xff]   ;;  %v2208_v48 = vld [vmem:[%s2933_s1 + $0x1d0] sm:$0xff]   ;;  %v2210_v50 = vld [vmem:[%s2933_s1 + $0x158] sm:$0xff]  }
  0x10   :  { %1939 = vmatprep.subr.bf16.mxu0 %v2178_v16  ;;  %v2205_v45 = vld [vmem:[%s2933_s1 + $0x188] sm:$0xff]   ;;  %v2209_v49 = vld [vmem:[%s2933_s1 + $0x190] sm:$0xff]   ;;  %v2211_v51 = vld [vmem:[%s2933_s1 + $0x118] sm:$0xff]  }
  0x11   :  { %1960 = vmatpush3.bf16.msra.mxu1 %v2177_v15  ;;  %v2212_v52 = vld [vmem:[%s2933_s1 + $0x1d8] sm:$0xff]   ;;  %v2214_v54 = vld [vmem:[%s2933_s1 + $0x160] sm:$0xff]   ;;  %v2218_v58 = vld [vmem:[%s2933_s1 + $0x168] sm:$0xff]  }
  0x12   :  { %1961 = vmatprep.subr.bf16.mxu1 %v2180_v18  ;;  %v2213_v53 = vld [vmem:[%s2933_s1 + $0x198] sm:$0xff]   ;;  %v2215_v55 = vld [vmem:[%s2933_s1 + $0x120] sm:$0xff]   ;;  %v2219_v59 = vld [vmem:[%s2933_s1 + $0x128] sm:$0xff]  }
  0x13   :  { %1940 = vmatpush3.bf16.msra.mxu0 %v2179_v17  ;;  %v2216_v56 = vld [vmem:[%s2933_s1 + $0x1e0] sm:$0xff]   ;;  %v2220_v60 = vld [vmem:[%s2933_s1 + $0x1e8] sm:$0xff]   ;;  %v2222_v62 = vld [vmem:[%s2933_s1 + $0x170] sm:$0xff]  }
  0x14   :  { %1941 = vmatprep.subr.bf16.mxu0 %v2182_v20  ;;  %v2217_v57 = vld [vmem:[%s2933_s1 + $0x1a0] sm:$0xff]   ;;  %v2221_v61 = vld [vmem:[%s2933_s1 + $0x1a8] sm:$0xff]   ;;  %v2223_v63 = vld [vmem:[%s2933_s1 + $0x130] sm:$0xff]  }
  0x15   :  { %1962 = vmatpush3.bf16.msra.mxu1 %v2181_v19  ;;  %v2224_v0 = vld [vmem:[%s2933_s1 + $0x1f0] sm:$0xff]   ;;  %v2226_v2 = vld [vmem:[%s2933_s1 + $0x178] sm:$0xff]   ;;  %v2232_v9 = vld [vmem:[%s2933_s1 + $0x240] sm:$0xff]  }
  0x16   :  { %1963 = vmatprep.subr.bf16.mxu1 %v2184_v22  ;;  %v2225_v1 = vld [vmem:[%s2933_s1 + $0x1b0] sm:$0xff]   ;;  %v2227_v3 = vld [vmem:[%s2933_s1 + $0x138] sm:$0xff]   ;;  %v2235_v13 = vld [vmem:[%s2933_s1 + $0x200] sm:$0xff]  }
  0x17   :  { %1942 = vmatpush3.bf16.msra.mxu0 %v2183_v21  ;;  %v2228_v4 = vld [vmem:[%s2933_s1 + $0x1f8] sm:$0xff]   ;;  %v27_v5 = vld [vmem:[%s2932_s0 + $0x10] sm:$0xff]  ;;  %v2236_v14 = vld [vmem:[%s2933_s1 + $0x2c0] sm:$0xff]  }
  0x18   :  { %1943 = vmatprep.subr.bf16.mxu0 %v2186_v24  ;;  %v1764_v6 = vcombine.low %v27_v5, %v27_v5  ;;  %v1765_v7 = vcombine.high %v27_v5, %v27_v5  ;;  %v2231_v8 = vld [vmem:[%s2933_s1 + $0x1b8] sm:$0xff]   ;;  %v2237_v15 = vld [vmem:[%s2933_s1 + $0x280] sm:$0xff]   ;;  %v2238_v16 = vld [vmem:[%s2933_s1 + $0x248] sm:$0xff]  }
  0x19   :  { %1964 = vmatpush3.bf16.msra.mxu1 %v2185_v23  ;;  %v28_v10 = vld [vmem:[%s2932_s0 + $0x18] sm:$0xff]  ;;  %v2239_v17 = vld [vmem:[%s2933_s1 + $0x208] sm:$0xff]   ;;  %v2242_v20 = vld [vmem:[%s2933_s1 + $0x250] sm:$0xff]  }
  0x1a   :  { %1965 = vmatprep.subr.bf16.mxu1 %v2188_v26  ;;  %v1766_v11 = vcombine.low %v28_v10, %v28_v10  ;;  %v1767_v12 = vcombine.high %v28_v10, %v28_v10  ;;  %v2240_v18 = vld [vmem:[%s2933_s1 + $0x2c8] sm:$0xff]   ;;  %v2243_v21 = vld [vmem:[%s2933_s1 + $0x210] sm:$0xff]   ;;  %v2246_v24 = vld [vmem:[%s2933_s1 + $0x258] sm:$0xff]  }
  0x1b   :  { %1944 = vmatpush3.bf16.msra.mxu0 %v2187_v25  ;;  %v2241_v19 = vld [vmem:[%s2933_s1 + $0x288] sm:$0xff]   ;;  %v2244_v22 = vld [vmem:[%s2933_s1 + $0x2d0] sm:$0xff]   ;;  %v2247_v25 = vld [vmem:[%s2933_s1 + $0x218] sm:$0xff]  }
  0x1c   :  { %1945 = vmatprep.subr.bf16.mxu0 %v2190_v28  ;;  %v2245_v23 = vld [vmem:[%s2933_s1 + $0x290] sm:$0xff]   ;;  %v2248_v26 = vld [vmem:[%s2933_s1 + $0x2d8] sm:$0xff]   ;;  %v2250_v28 = vld [vmem:[%s2933_s1 + $0x260] sm:$0xff]  }
  0x1d   :  { %1966 = vmatpush3.bf16.msra.mxu1 %v2189_v27  ;;  %v2249_v27 = vld [vmem:[%s2933_s1 + $0x298] sm:$0xff]   ;;  %v2253_v31 = vld [vmem:[%s2933_s1 + $0x2a0] sm:$0xff]   ;;  %v2255_v33 = vld [vmem:[%s2933_s1 + $0x228] sm:$0xff]  }
  0x1e   :  { %1967 = vmatprep.subr.bf16.mxu1 %v2192_v30  ;;  %v2252_v30 = vld [vmem:[%s2933_s1 + $0x2e0] sm:$0xff]   ;;  %v2258_v36 = vld [vmem:[%s2933_s1 + $0x270] sm:$0xff]  }
  0x1f   :  { %1946 = vmatpush3.bf16.msra.mxu0 %v2191_v29  ;;  %v2251_v29 = vld [vmem:[%s2933_s1 + $0x220] sm:$0xff]   ;;  %v2260_v38 = vld [vmem:[%s2933_s1 + $0x2f0] sm:$0xff]  }
  0x20   :  { %1975 = vmatprep.subr.bf16.mxu0 %v2196_v35  ;;  %v2257_v35 = vld [vmem:[%s2933_s1 + $0x2a8] sm:$0xff]   ;;  %v2289_v5 = vld [vmem:[%s2933_s1 + $0x3a0] sm:$0xff]   ;;  %v2294_v10 = vld [vmem:[%s2933_s1 + $0x370] sm:$0xff]  }
  0x21   :  { %1968 = vmatpush3.bf16.msra.mxu1 %v2195_v34  ;;  %v2256_v34 = vld [vmem:[%s2933_s1 + $0x2e8] sm:$0xff]  }
  0x22   :  { %1289 = vmatmul.mubr.bf16.vlgmr.msra.gmra.mrb[0].mxu0 %v1760_v32  ;;  %1997 = vmatprep.subr.bf16.mxu1 %v2200_v40  ;;  %v2254_v32 = vld [vmem:[%s2933_s1 + $0x268] sm:$0xff]   ;;  %v2262_v40 = vld [vmem:[%s2933_s1 + $0x278] sm:$0xff]  }
  0x23   :  { %1976 = vmatpush3.bf16.msra.mxu0 %v2199_v39  ;;  %1368 = vmatprep.mubr.bf16.mxu0 %v1765_v7  ;;  %v2261_v39 = vld [vmem:[%s2933_s1 + $0x2b0] sm:$0xff]   ;;  %v2291_v7 = vld [vmem:[%s2933_s1 + $0x328] sm:$0xff]  }
  0x24   :  { %1329 = vmatmul.mubr.bf16.vlgmr.msra.gmra.mrb[0].mxu1 %v1762_v37  ;;  %1977 = vmatprep.subr.bf16.mxu0 %v2202_v42  ;;  %v2259_v37 = vld [vmem:[%s2933_s1 + $0x230] sm:$0xff]   ;;  %v2264_v42 = vld [vmem:[%s2933_s1 + $0x2f8] sm:$0xff]  }
  0x25   :  { %1998 = vmatpush3.bf16.msra.mxu1 %v2201_v41  ;;  %1408 = vmatprep.mubr.bf16.mxu1 %v1767_v12  ;;  %v2263_v41 = vld [vmem:[%s2933_s1 + $0x238] sm:$0xff]   ;;  %v2296_v12 = vld [vmem:[%s2933_s1 + $0x3f0] sm:$0xff]  }
  0x26   :  { %1999 = vmatprep.subr.bf16.mxu1 %v2204_v44 }
  0x27   :  { %1978 = vmatpush3.bf16.msra.mxu0 %v2203_v43  ;;  %v29_v43 = vld [vmem:[%s2932_s0 + $0x20] sm:$0xff] }
  0x28   :  { %1979 = vmatprep.subr.bf16.mxu0 %v2206_v46  ;;  %v1768_v44 = vcombine.low %v29_v43, %v29_v43  ;;  %v2267_v46 = vld [vmem:[%s2933_s1 + $0x2b8] sm:$0xff]  }
  0x29   :  { %2000 = vmatpush3.bf16.msra.mxu1 %v2205_v45  ;;  %v1769_v45 = vcombine.high %v29_v43, %v29_v43 }
  0x2a   :  { %2001 = vmatprep.subr.bf16.mxu1 %v2208_v48  ;;  %v30_v48 = vld [vmem:[%s2932_s0 + $0x28] sm:$0xff] }
  0x2b   :  { %1980 = vmatpush3.bf16.msra.mxu0 %v2207_v47  ;;  %v2268_v47 = vld [vmem:[%s2933_s1 + $0x340] sm:$0xff]  }
  0x2c   :  { %1981 = vmatprep.subr.bf16.mxu0 %v2210_v50  ;;  %v1771_v50 = vcombine.high %v30_v48, %v30_v48 }
  0x2d   :  { %2002 = vmatpush3.bf16.msra.mxu1 %v2209_v49  ;;  %v1770_v49 = vcombine.low %v30_v48, %v30_v48 }
  0x2e   :  { %2003 = vmatprep.subr.bf16.mxu1 %v2212_v52  ;;  %v2272_v52 = vld [vmem:[%s2933_s1 + $0x3c0] sm:$0xff]  }
  0x2f   :  { %1982 = vmatpush3.bf16.msra.mxu0 %v2211_v51  ;;  %v2271_v51 = vld [vmem:[%s2933_s1 + $0x300] sm:$0xff]  }
  0x30   :  { %1983 = vmatprep.subr.bf16.mxu0 %v2214_v54  ;;  %v2274_v54 = vld [vmem:[%s2933_s1 + $0x348] sm:$0xff]  }
  0x31   :  { %2004 = vmatpush3.bf16.msra.mxu1 %v2213_v53  ;;  %v2273_v53 = vld [vmem:[%s2933_s1 + $0x380] sm:$0xff]  }
  0x32   :  { %2005 = vmatprep.subr.bf16.mxu1 %v2216_v56  ;;  %v2276_v56 = vld [vmem:[%s2933_s1 + $0x3c8] sm:$0xff]  }
  0x33   :  { %1984 = vmatpush3.bf16.msra.mxu0 %v2215_v55  ;;  %v2275_v55 = vld [vmem:[%s2933_s1 + $0x308] sm:$0xff]  }
  0x34   :  { %1985 = vmatprep.subr.bf16.mxu0 %v2218_v58  ;;  %v2278_v58 = vld [vmem:[%s2933_s1 + $0x350] sm:$0xff]  }
  0x35   :  { %2006 = vmatpush3.bf16.msra.mxu1 %v2217_v57  ;;  %v2277_v57 = vld [vmem:[%s2933_s1 + $0x388] sm:$0xff]  }
  0x36   :  { %2007 = vmatprep.subr.bf16.mxu1 %v2220_v60  ;;  %v2280_v60 = vld [vmem:[%s2933_s1 + $0x3d0] sm:$0xff]  }
  0x37   :  { %1986 = vmatpush3.bf16.msra.mxu0 %v2219_v59  ;;  %v2279_v59 = vld [vmem:[%s2933_s1 + $0x310] sm:$0xff]  }
  0x38   :  { %1987 = vmatprep.subr.bf16.mxu0 %v2222_v62  ;;  %v2282_v62 = vld [vmem:[%s2933_s1 + $0x358] sm:$0xff]  }
  0x39   :  { %2008 = vmatpush3.bf16.msra.mxu1 %v2221_v61  ;;  %v2281_v61 = vld [vmem:[%s2933_s1 + $0x390] sm:$0xff]  }
  0x3a   :  { %2009 = vmatprep.subr.bf16.mxu1 %v2224_v0  ;;  %v2284_v0 = vld [vmem:[%s2933_s1 + $0x3d8] sm:$0xff]  }
  0x3b   :  { %1988 = vmatpush3.bf16.msra.mxu0 %v2223_v63  ;;  %v2283_v63 = vld [vmem:[%s2933_s1 + $0x318] sm:$0xff]  }
  0x3c   :  { %1989 = vmatprep.subr.bf16.mxu0 %v2226_v2  ;;  %v2286_v2 = vld [vmem:[%s2933_s1 + $0x360] sm:$0xff]  }
  0x3d   :  { %2010 = vmatpush3.bf16.msra.mxu1 %v2225_v1  ;;  %v2285_v1 = vld [vmem:[%s2933_s1 + $0x398] sm:$0xff]  }
  0x3e   :  { %2011 = vmatprep.subr.bf16.mxu1 %v2228_v4  ;;  %v2288_v4 = vld [vmem:[%s2933_s1 + $0x3e0] sm:$0xff]  }
  0x3f   :  { %1990 = vmatpush3.bf16.msra.mxu0 %v2227_v3  ;;  %v2287_v3 = vld [vmem:[%s2933_s1 + $0x320] sm:$0xff]  }
  0x40   :  { %2019 = vmatprep.subr.bf16.mxu0 %v2232_v9  ;;  %v2293_v9 = vld [vmem:[%s2933_s1 + $0x3a8] sm:$0xff]  }
  0x41   :  { %2012 = vmatpush3.bf16.msra.mxu1 %v2231_v8  ;;  %v2292_v8 = vld [vmem:[%s2933_s1 + $0x3e8] sm:$0xff]  }
  0x42   :  { %1369 = vmatmul.mubr.bf16.vlgmr.msra.gmra.mrb[4].mxu0 %v1764_v6  ;;  %2041 = vmatprep.subr.bf16.mxu1 %v2236_v14  ;;  %v2290_v6 = vld [vmem:[%s2933_s1 + $0x368] sm:$0xff]   ;;  %v2298_v14 = vld [vmem:[%s2933_s1 + $0x378] sm:$0xff]  }
  0x43   :  { %2020 = vmatpush3.bf16.msra.mxu0 %v2235_v13  ;;  %1448 = vmatprep.mubr.bf16.mxu0 %v1769_v45  ;;  %v2297_v13 = vld [vmem:[%s2933_s1 + $0x3b0] sm:$0xff]  }
  0x44   :  { %1409 = vmatmul.mubr.bf16.vlgmr.msra.gmra.mrb[4].mxu1 %v1766_v11  ;;  %2021 = vmatprep.subr.bf16.mxu0 %v2238_v16  ;;  %v2295_v11 = vld [vmem:[%s2933_s1 + $0x330] sm:$0xff]   ;;  %v2300_v16 = vld [vmem:[%s2933_s1 + $0x3f8] sm:$0xff]  }
  0x45   :  { %2042 = vmatpush3.bf16.msra.mxu1 %v2237_v15  ;;  %1488 = vmatprep.mubr.bf16.mxu1 %v1771_v50  ;;  %v2299_v15 = vld [vmem:[%s2933_s1 + $0x338] sm:$0xff]  }
  0x46   :  { %2043 = vmatprep.subr.bf16.mxu1 %v2240_v18 }
  0x47   :  { %2022 = vmatpush3.bf16.msra.mxu0 %v2239_v17  ;;  %v31_v17 = vld [vmem:[%s2932_s0 + $0x30] sm:$0xff] }
  0x48   :  { %2023 = vmatprep.subr.bf16.mxu0 %v2242_v20  ;;  %v1772_v18 = vcombine.low %v31_v17, %v31_v17  ;;  %v2303_v20 = vld [vmem:[%s2933_s1 + $0x3b8] sm:$0xff]  }
  0x49   :  { %2044 = vmatpush3.bf16.msra.mxu1 %v2241_v19  ;;  %v1773_v19 = vcombine.high %v31_v17, %v31_v17 }
  0x4a   :  { %2045 = vmatprep.subr.bf16.mxu1 %v2244_v22  ;;  %v32_v22 = vld [vmem:[%s2932_s0 + $0x38] sm:$0xff] }
  0x4b   :  { %2024 = vmatpush3.bf16.msra.mxu0 %v2243_v21  ;;  %v2304_v21 = vld [vmem:[%s2933_s1 + $0x440] sm:$0xff]  }
  0x4c   :  { %2025 = vmatprep.subr.bf16.mxu0 %v2246_v24  ;;  %v1775_v24 = vcombine.high %v32_v22, %v32_v22 }
  0x4d   :  { %2046 = vmatpush3.bf16.msra.mxu1 %v2245_v23  ;;  %v1774_v23 = vcombine.low %v32_v22, %v32_v22 }
  0x4e   :  { %2047 = vmatprep.subr.bf16.mxu1 %v2248_v26  ;;  %v2308_v26 = vld [vmem:[%s2933_s1 + $0x448] sm:$0xff]  }
  0x4f   :  { %2026 = vmatpush3.bf16.msra.mxu0 %v2247_v25  ;;  %v2307_v25 = vld [vmem:[%s2933_s1 + $0x400] sm:$0xff]  }
  0x50   :  { %2027 = vmatprep.subr.bf16.mxu0 %v2250_v28  ;;  %v2310_v28 = vld [vmem:[%s2933_s1 + $0x450] sm:$0xff]  }
  0x51   :  { %2048 = vmatpush3.bf16.msra.mxu1 %v2249_v27  ;;  %v2309_v27 = vld [vmem:[%s2933_s1 + $0x408] sm:$0xff]  }
  0x52   :  { %2049 = vmatprep.subr.bf16.mxu1 %v2252_v30  ;;  %v2312_v30 = vld [vmem:[%s2933_s1 + $0x458] sm:$0xff]  }
  0x53   :  { %2028 = vmatpush3.bf16.msra.mxu0 %v2251_v29  ;;  %v2311_v29 = vld [vmem:[%s2933_s1 + $0x410] sm:$0xff]  }
  0x54   :  { %2029 = vmatprep.subr.bf16.mxu0 %v2254_v32  ;;  %v2314_v32 = vld [vmem:[%s2933_s1 + $0x460] sm:$0xff]  }
  0x55   :  { %2050 = vmatpush3.bf16.msra.mxu1 %v2253_v31  ;;  %v2313_v31 = vld [vmem:[%s2933_s1 + $0x418] sm:$0xff]  }
  0x56   :  { %2051 = vmatprep.subr.bf16.mxu1 %v2256_v34  ;;  %v33_v34 = vld [vmem:[%s2932_s0 + $0x40] sm:$0xff] }
  0x57   :  { %2030 = vmatpush3.bf16.msra.mxu0 %v2255_v33  ;;  %v2315_v33 = vld [vmem:[%s2933_s1 + $0x420] sm:$0xff]  }
  0x58   :  { %2031 = vmatprep.subr.bf16.mxu0 %v2258_v36  ;;  %v1777_v36 = vcombine.high %v33_v34, %v33_v34 }
  0x59   :  { %2052 = vmatpush3.bf16.msra.mxu1 %v2257_v35  ;;  %v2316_v35 = vld [vmem:[%s2933_s1 + $0x468] sm:$0xff]  }
  0x5a   :  { %2053 = vmatprep.subr.bf16.mxu1 %v2260_v38  ;;  %v2318_v38 = vld [vmem:[%s2933_s1 + $0x470] sm:$0xff]  }
  0x5b   :  { %2032 = vmatpush3.bf16.msra.mxu0 %v2259_v37  ;;  %v2317_v37 = vld [vmem:[%s2933_s1 + $0x428] sm:$0xff]  }
  0x5c   :  { %2033 = vmatprep.subr.bf16.mxu0 %v2262_v40 }
  0x5d   :  { %2054 = vmatpush3.bf16.msra.mxu1 %v2261_v39 }
  0x5e   :  { %2055 = vmatprep.subr.bf16.mxu1 %v2264_v42 }
  0x5f   :  { %2034 = vmatpush3.bf16.msra.mxu0 %v2263_v41 }
  0x60   :  { %2063 = vmatprep.subr.bf16.mxu0 %v2268_v47 }
  0x61   :  { %2056 = vmatpush3.bf16.msra.mxu1 %v2267_v46 }
  0x62   :  { %1449 = vmatmul.mubr.bf16.vlgmr.msra.gmra.mrb[8].mxu0 %v1768_v44  ;;  %2085 = vmatprep.subr.bf16.mxu1 %v2272_v52 }
  0x63   :  { %2064 = vmatpush3.bf16.msra.mxu0 %v2271_v51  ;;  %1528 = vmatprep.mubr.bf16.mxu0 %v1773_v19 }
  0x64   :  { %1489 = vmatmul.mubr.bf16.vlgmr.msra.gmra.mrb[8].mxu1 %v1770_v49  ;;  %2065 = vmatprep.subr.bf16.mxu0 %v2274_v54 }
  0x65   :  { %2086 = vmatpush3.bf16.msra.mxu1 %v2273_v53  ;;  %1568 = vmatprep.mubr.bf16.mxu1 %v1775_v24 }
  0x66   :  { %2087 = vmatprep.subr.bf16.mxu1 %v2276_v56 }
  0x67   :  { %2066 = vmatpush3.bf16.msra.mxu0 %v2275_v55 }
  0x68   :  { %2067 = vmatprep.subr.bf16.mxu0 %v2278_v58 }
  0x69   :  { %2088 = vmatpush3.bf16.msra.mxu1 %v2277_v57 }
  0x6a   :  { %2089 = vmatprep.subr.bf16.mxu1 %v2280_v60 }
  0x6b   :  { %2068 = vmatpush3.bf16.msra.mxu0 %v2279_v59 }
  0x6c   :  { %2069 = vmatprep.subr.bf16.mxu0 %v2282_v62 }
  0x6d   :  { %2090 = vmatpush3.bf16.msra.mxu1 %v2281_v61 }
  0x6e   :  { %2091 = vmatprep.subr.bf16.mxu1 %v2284_v0 }
  0x6f   :  { %2070 = vmatpush3.bf16.msra.mxu0 %v2283_v63 }
  0x70   :  { %2071 = vmatprep.subr.bf16.mxu0 %v2286_v2 }
  0x71   :  { %2092 = vmatpush3.bf16.msra.mxu1 %v2285_v1 }
  0x72   :  { %2093 = vmatprep.subr.bf16.mxu1 %v2288_v4 }
  0x73   :  { %2072 = vmatpush3.bf16.msra.mxu0 %v2287_v3 }
  0x74   :  { %2073 = vmatprep.subr.bf16.mxu0 %v2290_v6 }
  0x75   :  { %2094 = vmatpush3.bf16.msra.mxu1 %v2289_v5 }
  0x76   :  { %2095 = vmatprep.subr.bf16.mxu1 %v2292_v8 }
  0x77   :  { %2074 = vmatpush3.bf16.msra.mxu0 %v2291_v7 }
  0x78   :  { %2075 = vmatprep.subr.bf16.mxu0 %v2294_v10 }
  0x79   :  { %2096 = vmatpush3.bf16.msra.mxu1 %v2293_v9 }
  0x7a   :  { %2097 = vmatprep.subr.bf16.mxu1 %v2296_v12 }
  0x7b   :  { %2076 = vmatpush3.bf16.msra.mxu0 %v2295_v11 }
  0x7c   :  { %2077 = vmatprep.subr.bf16.mxu0 %v2298_v14 }
  0x7d   :  { %2098 = vmatpush3.bf16.msra.mxu1 %v2297_v13 }
  0x7e   :  { %2099 = vmatprep.subr.bf16.mxu1 %v2300_v16 }
  0x7f   :  { %2078 = vmatpush3.bf16.msra.mxu0 %v2299_v15 }
  0x80   :  { %2107 = vmatprep.subr.bf16.mxu0 %v2304_v21 }
  0x81   :  { %2100 = vmatpush3.bf16.msra.mxu1 %v2303_v20 }
  0x82   :  { %1529 = vmatmul.mubr.bf16.vlgmr.msra.gmra.mrb[12].mxu0 %v1772_v18 }
  0x83   :  { %2108 = vmatpush3.bf16.msra.mxu0 %v2307_v25  ;;  %1608 = vmatprep.mubr.bf16.mxu0 %v1777_v36 }
  0x84   :  { %1569 = vmatmul.mubr.bf16.vlgmr.msra.gmra.mrb[12].mxu1 %v1774_v23  ;;  %2109 = vmatprep.subr.bf16.mxu0 %v2308_v26 }
  0x87   :  { %2110 = vmatpush3.bf16.msra.mxu0 %v2309_v27 }
  0x88   :  { %2111 = vmatprep.subr.bf16.mxu0 %v2310_v28 }
  0x8b   :  { %2112 = vmatpush3.bf16.msra.mxu0 %v2311_v29 }
  0x8c   :  { %2113 = vmatprep.subr.bf16.mxu0 %v2312_v30 }
  0x8f   :  { %2114 = vmatpush3.bf16.msra.mxu0 %v2313_v31 }
  0x90   :  { %2115 = vmatprep.subr.bf16.mxu0 %v2314_v32 }
  0x93   :  { %2116 = vmatpush3.bf16.msra.mxu0 %v2315_v33 }
  0x94   :  { %2117 = vmatprep.subr.bf16.mxu0 %v2316_v35 }
  0x95   :  { %13 = vsyncpa [#allocation5], 0  ;;  %v2319_v39 = vld [vmem:[%s2933_s1 + $0x430] sm:$0xff]   ;;  %v2320_v40 = vld [vmem:[%s2933_s1 + $0x478] sm:$0xff]   ;;  %v1776_v42 = vcombine.low %v33_v34, %v33_v34  ;;  %v2380_v44 = vmov 0.0   ;;  %vm2381_vm0 = vmmov 0  }
  0x96   :  { %v2321_v41 = vld [vmem:[%s2933_s1 + $0x438] sm:$0xff]   ;;  %v2324_v43 = vld [vmem:[%s2935_s3] sm:$0xff]   ;;  %2138 = vmatprep.subr.bf16.mxu1 %v2380_v44  ;;  %v2325_v45 = vld [vmem:[%s2935_s3 + $0x8] sm:$0xff]   ;;  %2154 = vmatprep.mubr.msk.bf16.mxu1 %vm2381_vm0, %v2380_v44 }
  0x97   :  { %2118 = vmatpush3.bf16.msra.mxu0 %v2317_v37  ;;  %2139 = vmatpush3.bf16.msra.mxu1 %v2324_v43  ;;  %v2326_v46 = vld [vmem:[%s2935_s3 + $0x10] sm:$0xff]   ;;  %v2327_v47 = vld [vmem:[%s2935_s3 + $0x18] sm:$0xff]   ;;  %v2328_v48 = vld [vmem:[%s2935_s3 + $0x20] sm:$0xff]  }
  0x98   :  { %2119 = vmatprep.subr.bf16.mxu0 %v2318_v38  ;;  %2140 = vmatprep.subr.bf16.mxu1 %v2380_v44  ;;  %v2329_v49 = vld [vmem:[%s2935_s3 + $0x28] sm:$0xff]   ;;  %v1759_v51 = vld [vmem:[%s2934_s2] ss:$0 sm:$0xff]  ;;  %v2330_v58 = vld [vmem:[%s2935_s3 + $0x30] sm:$0xff]   ;;  %s2382_s2 = smov [#allocation2]  }
  0x99   :  { %v2331_v0 = vld [vmem:[%s2935_s3 + $0x38] sm:$0xff]   ;;  %s1737_s3 = sshll.u32 %s2382_s2, 4  ;;  %s1738_s3 = int_to_ptr.vmem [resolvable:$true] %s1737_s3 }
  0x9a   :  { %s2332_s7 = scalar_lea.vmem %s1738_s3, 64  ;;  %p2337_p1 = scmp.lt.s32.totalorder %s1738_s3, %s1738_s3 }
  0x9b   :  { %2120 = vmatpush3.bf16.msra.mxu0 %v2319_v39  ;;  %2141 = vmatpush3.bf16.msra.mxu1 %v2325_v45  ;;  %p2333_p0 = scmp.ne.s32.totalorder %s1738_s3, %s2332_s7  ;;  %p2338_p2 = scmp.lt.s32.totalorder %s2332_s7, %s2332_s7 }
  0x9c   :  { %2121 = vmatprep.subr.bf16.mxu0 %v2320_v40  ;;  %2142 = vmatprep.subr.bf16.mxu1 %v2380_v44 }
  0x9d   :  { %p2339_p3 = por %p2338_p2, %p2337_p1 }
  0x9f   :  { %2122 = vmatpush3.bf16.msra.mxu0 %v2321_v41  ;;  %2143 = vmatpush3.bf16.msra.mxu1 %v2326_v46  ;;  %p2340_p4 = pnand %p2339_p3, %p2333_p0 }
  0xa0   :  { %2144 = vmatprep.subr.bf16.mxu1 %v2380_v44 }
  0xa2   :  { %1609 = vmatmul.mubr.bf16.vlgmr.msra.gmra.mrb[16].mxu0 %v1776_v42 }
  0xa3   :  { %2145 = vmatpush3.bf16.msra.mxu1 %v2327_v47 }
  0xa4   :  { %2146 = vmatprep.subr.bf16.mxu1 %v2380_v44 }
  0xa7   :  { %2147 = vmatpush3.bf16.msra.mxu1 %v2328_v48 }
  0xa8   :  { %2148 = vmatprep.subr.bf16.mxu1 %v2380_v44 }
  0xab   :  { %2149 = vmatpush3.bf16.msra.mxu1 %v2329_v49 }
  0xac   :  { %2150 = vmatprep.subr.bf16.mxu1 %v2380_v44 }
  0xaf   :  { %2151 = vmatpush3.bf16.msra.mxu1 %v2330_v58 }
  0xb0   :  { %2152 = vmatprep.subr.bf16.mxu1 %v2380_v44 }
  0xb3   :  { %2153 = vmatpush3.bf16.msra.mxu1 %v2331_v0 }
  0xf5   :  { %v1947_v50 = vpop.f32.mrb[0].mxu0 }
  0xf6   :  { %v1948_v52 = vpop.f32.mrb[1].mxu0 }
  0xf7   :  { %v1949_v53 = vadd.f32 %v1948_v52, %v1947_v50  ;;  %v1950_v54 = vpop.f32.mrb[2].mxu0  ;;  %v1969_v55 = vpop.f32.mrb[0].mxu1 }
  0xf8   :  { %v1951_v56 = vpop.f32.mrb[3].mxu0  ;;  %v1970_v57 = vpop.f32.mrb[1].mxu1 }
  0xf9   :  { %v1291_v59 = vadd.f32 %v1949_v53, %v1759_v51  ;;  %v1971_v60 = vadd.f32 %v1970_v57, %v1969_v55  ;;  %v1972_v61 = vpop.f32.mrb[2].mxu1 }
  0xfa   :  { %v1973_v62 = vpop.f32.mrb[3].mxu1 }
  0xfb   :  { %v1331_v63 = vadd.f32 %v1971_v60, %v1291_v59 }
 0x115   :  { %v1991_v1 = vpop.f32.mrb[4].mxu0 }
 0x116   :  { %v1992_v2 = vpop.f32.mrb[5].mxu0 }
 0x117   :  { %v1993_v3 = vadd.f32 %v1992_v2, %v1991_v1  ;;  %v1994_v4 = vpop.f32.mrb[6].mxu0  ;;  %v2013_v5 = vpop.f32.mrb[4].mxu1 }
 0x118   :  { %v1995_v6 = vpop.f32.mrb[7].mxu0  ;;  %v2014_v8 = vpop.f32.mrb[5].mxu1 }
 0x119   :  { %v1371_v7 = vadd.f32 %v1993_v3, %v1331_v63  ;;  %v2015_v9 = vadd.f32 %v2014_v8, %v2013_v5  ;;  %v2016_v10 = vpop.f32.mrb[6].mxu1 }
 0x11a   :  { %v2017_v11 = vpop.f32.mrb[7].mxu1 }
 0x11b   :  { %v1411_v12 = vadd.f32 %v2015_v9, %v1371_v7 }
 0x135   :  { %v2035_v13 = vpop.f32.mrb[8].mxu0 }
 0x136   :  { %v2036_v14 = vpop.f32.mrb[9].mxu0 }
 0x137   :  { %v2037_v15 = vadd.f32 %v2036_v14, %v2035_v13  ;;  %v2038_v16 = vpop.f32.mrb[10].mxu0  ;;  %v2057_v17 = vpop.f32.mrb[8].mxu1 }
 0x138   :  { %v2039_v18 = vpop.f32.mrb[11].mxu0  ;;  %v2058_v19 = vpop.f32.mrb[9].mxu1 }
 0x139   :  { %v1451_v20 = vadd.f32 %v2037_v15, %v1411_v12  ;;  %v2059_v21 = vadd.f32 %v2058_v19, %v2057_v17  ;;  %v2060_v22 = vpop.f32.mrb[10].mxu1 }
 0x13a   :  { %v2061_v23 = vpop.f32.mrb[11].mxu1 }
 0x13b   :  { %v1491_v24 = vadd.f32 %v2059_v21, %v1451_v20 }
 0x155   :  { %v2079_v25 = vpop.f32.mrb[12].mxu0 }
 0x156   :  { %v2080_v26 = vpop.f32.mrb[13].mxu0 }
 0x157   :  { %v2081_v27 = vadd.f32 %v2080_v26, %v2079_v25  ;;  %v2082_v28 = vpop.f32.mrb[14].mxu0  ;;  %v2101_v29 = vpop.f32.mrb[12].mxu1 }
 0x158   :  { %v2083_v30 = vpop.f32.mrb[15].mxu0  ;;  %v2102_v31 = vpop.f32.mrb[13].mxu1 }
 0x159   :  { %v1531_v32 = vadd.f32 %v2081_v27, %v1491_v24  ;;  %v2103_v33 = vadd.f32 %v2102_v31, %v2101_v29  ;;  %v2104_v34 = vpop.f32.mrb[14].mxu1 }
 0x15a   :  { %v2105_v35 = vpop.f32.mrb[15].mxu1 }
 0x15b   :  { %v1571_v36 = vadd.f32 %v2103_v33, %v1531_v32 }
 0x175   :  { %v2123_v37 = vpop.f32.mrb[16].mxu0 }
 0x176   :  { %v2124_v38 = vpop.f32.mrb[17].mxu0 }
 0x177   :  { %v2125_v39 = vadd.f32 %v2124_v38, %v2123_v37  ;;  %v2126_v40 = vpop.f32.mrb[18].mxu0 }
 0x178   :  { %v2127_v41 = vpop.f32.mrb[19].mxu0 }
 0x179   :  { %v1611_v42 = vadd.f32 %v2125_v39, %v1571_v36 }
 0x17b   :  { %v1616_v43 = vmax.f32 %v1611_v42, 0.0 }
 0x17d   :  { %v1617_v44 = vpack.c.bf16 %v1616_v43, %v1616_v43 }
 0x17f   :  { %1618 = vst [vmem:[#allocation2] sm:$0xf] %v1617_v44  ;;  %2155 = vmatmul.mubr.bf16.vlgmr.msra.gmra.mrb[16].mxu1 %v1617_v44 }
 0x180   :  { %2343 = shalt.err (!%p2340_p4)
}
 0x181   :  { %s2344_s9 = scalar_lea.hbm %s2937_s5, 64 }
 0x182   :  { %p2345_p5 = scmp.ne.s32.totalorder %s2937_s5, %s2344_s9  ;;  %p2348_p6 = scmp.lt.u32.totalorder %s2344_s9, %s2937_s5 }
 0x184   :  { %p2350_p7 = pnand %p2348_p6, %p2345_p5 }
 0x186   :  { %2353 = shalt.err (!%p2350_p7)
}
 0x187   :  { %1740 = dma.vmem_to_hbm [thread:$0]  %s1738_s3, 64, %s2937_s5, [#allocation3]   ;;  %v1922_v45 = vld [vmem:[%s2936_s4] ss:$0 sm:$0xff] }
 0x188   :  { %s2383_s18 = smov [#allocation4]  }
 0x189   :  { %s1747_s19 = sshll.u32 %s2383_s18, 4  ;;  %s1748_s19 = int_to_ptr.vmem [resolvable:$true] %s1747_s19 }
 0x18a   :  { %s2354_s1 = scalar_lea.vmem %s1748_s19, 128  ;;  %p2359_p9 = scmp.lt.s32.totalorder %s1748_s19, %s1748_s19 }
 0x18b   :  { %p2355_p8 = scmp.ne.s32.totalorder %s1748_s19, %s2354_s1  ;;  %p2360_p10 = scmp.lt.s32.totalorder %s2354_s1, %s2354_s1 }
 0x18d   :  { %p2361_p11 = por %p2360_p10, %p2359_p9 }
 0x18f   :  { %p2362_p12 = pnand %p2361_p11, %p2355_p8 }
 0x252   :  { %v1724_v46 = vpop.f32.mrb[16].mxu1 }
 0x253   :  { %v1725_v47 = vadd.f32 %v1922_v45, %v1724_v46  ;;  %v2156_v48 = vpop.f32.mrb[17].mxu1 }
 0x254   :  { %v1727_v49 = vpop.f32.mrb[18].mxu1 }
 0x255   :  { %1730 = vst [vmem:[#allocation4] sm:$0xff] %v1725_v47  ;;  %v2157_v50 = vpop.f32.mrb[19].mxu1 }
 0x256   :  { %2365 = shalt.err (!%p2362_p12)
}
 0x257   :  { %s2366_s4 = scalar_lea.hbm %s2938_s6, 128 }
 0x258   :  { %p2367_p13 = scmp.ne.s32.totalorder %s2938_s6, %s2366_s4  ;;  %p2370_p0 = scmp.lt.u32.totalorder %s2366_s4, %s2938_s6 }
 0x25a   :  { %p2372_p1 = pnand %p2370_p0, %p2367_p13 }
 0x25c   :  { %2375 = shalt.err (!%p2372_p1)
}
 0x25d   :  { %1750 = dma.vmem_to_hbm [thread:$0]  %s1748_s19, 128, %s2938_s6, [#allocation5]  }
 0x25e   :  { %2376 = dma.done.wait [#allocation3], 64  }
 0x25f   :  { %2377 = vsyncadd [#allocation3], 4294967232 }
 0x260   :  { %2378 = dma.done.wait [#allocation5], 128  }
 0x261   :  { %2379 = vsyncadd [#allocation5], 4294967168 }
 0x262   :  { %1757 = vsyncpa [#allocation3], 1 }
 0x263   :  { %1758 = vsyncpa [#allocation5], 1 }

// kernel: dense_correspondence_forward.10
= control target key start
LH: loop header
LB: loop body
LE: loop exit
PB: predicated region body
PF: predicated region fallthrough
CT: control target
= control target key end

     0   :  { %s7865_s1 = inlined_call_operand.vmem [shape: bf16[4608,256], index: 1, kind: input, shape index: {}]   ;;  %s7866_s0 = inlined_call_operand.vmem [shape: bf16[8,4608], index: 0, kind: input, shape index: {}]   ;;  %s7867_s2 = inlined_call_operand.vmem [shape: f32[1,256], index: 2, kind: input, shape index: {}]   ;;  %s7868_s3 = inlined_call_operand.vmem [shape: bf16[8,256], index: 3, kind: output, shape index: {}]  }
   0x1   :  { %v5061_v0 = vld [vmem:[%s7865_s1 + $0x4] ss:$8 sps:$4 sm:$0xff]   ;;  %v5065_v2 = vld [vmem:[%s7865_s1] ss:$8 sps:$4 sm:$0xff]   ;;  %v5067_v4 = vld [vmem:[%s7865_s1 + $0x14] ss:$8 sps:$4 sm:$0xff]  }
   0x2   :  { %v5063_v1 = vld [vmem:[%s7865_s1 + $0x904] ss:$8 sps:$4 sm:$0xff]   ;;  %3626 = vmatprep.subr.bf16.mxu1 %v5061_v0  ;;  %v5066_v3 = vld [vmem:[%s7865_s1 + $0x900] ss:$8 sps:$4 sm:$0xff]   ;;  %v5069_v5 = vld [vmem:[%s7865_s1 + $0x914] ss:$8 sps:$4 sm:$0xff]  }
   0x3   :  { %3995 = vmatprep.subr.bf16.mxu0 %v5063_v1  ;;  %3627 = vmatpush1.bf16.msra.mxu1 %v5065_v2  ;;  %v5071_v6 = vld [vmem:[%s7865_s1 + $0x10] ss:$8 sps:$4 sm:$0xff]   ;;  %v5073_v8 = vld [vmem:[%s7865_s1 + $0x24] ss:$8 sps:$4 sm:$0xff]   ;;  %v5077_v10 = vld [vmem:[%s7865_s1 + $0x20] ss:$8 sps:$4 sm:$0xff]  }
   0x4   :  { %3996 = vmatpush1.bf16.msra.mxu0 %v5066_v3  ;;  %3628 = vmatprep.subr.bf16.mxu1 %v5067_v4  ;;  %v5072_v7 = vld [vmem:[%s7865_s1 + $0x910] ss:$8 sps:$4 sm:$0xff]   ;;  %v5075_v9 = vld [vmem:[%s7865_s1 + $0x924] ss:$8 sps:$4 sm:$0xff]   ;;  %v5078_v11 = vld [vmem:[%s7865_s1 + $0x920] ss:$8 sps:$4 sm:$0xff]  }
   0x5   :  { %3997 = vmatprep.subr.bf16.mxu0 %v5069_v5  ;;  %v5079_v12 = vld [vmem:[%s7865_s1 + $0x34] ss:$8 sps:$4 sm:$0xff]   ;;  %v5083_v14 = vld [vmem:[%s7865_s1 + $0x30] ss:$8 sps:$4 sm:$0xff]   ;;  %v5085_v16 = vld [vmem:[%s7865_s1 + $0x44] ss:$8 sps:$4 sm:$0xff]  }
   0x6   :  { %v5081_v13 = vld [vmem:[%s7865_s1 + $0x934] ss:$8 sps:$4 sm:$0xff]   ;;  %v5084_v15 = vld [vmem:[%s7865_s1 + $0x930] ss:$8 sps:$4 sm:$0xff]   ;;  %v5087_v17 = vld [vmem:[%s7865_s1 + $0x944] ss:$8 sps:$4 sm:$0xff]  }
   0x7   :  { %3629 = vmatpush1.bf16.msra.mxu1 %v5071_v6  ;;  %v5089_v18 = vld [vmem:[%s7865_s1 + $0x40] ss:$8 sps:$4 sm:$0xff]   ;;  %v5091_v20 = vld [vmem:[%s7865_s1 + $0x54] ss:$8 sps:$4 sm:$0xff]   ;;  %v5095_v22 = vld [vmem:[%s7865_s1 + $0x50] ss:$8 sps:$4 sm:$0xff]  }
   0x8   :  { %3998 = vmatpush1.bf16.msra.mxu0 %v5072_v7  ;;  %3630 = vmatprep.subr.bf16.mxu1 %v5073_v8  ;;  %v5090_v19 = vld [vmem:[%s7865_s1 + $0x940] ss:$8 sps:$4 sm:$0xff]   ;;  %v5093_v21 = vld [vmem:[%s7865_s1 + $0x954] ss:$8 sps:$4 sm:$0xff]   ;;  %v5096_v23 = vld [vmem:[%s7865_s1 + $0x950] ss:$8 sps:$4 sm:$0xff]  }
   0x9   :  { %3999 = vmatprep.subr.bf16.mxu0 %v5075_v9  ;;  %v5097_v24 = vld [vmem:[%s7865_s1 + $0x64] ss:$8 sps:$4 sm:$0xff]   ;;  %v5101_v26 = vld [vmem:[%s7865_s1 + $0x60] ss:$8 sps:$4 sm:$0xff]   ;;  %v5103_v28 = vld [vmem:[%s7865_s1 + $0x74] ss:$8 sps:$4 sm:$0xff]  }
   0xa   :  { %v5099_v25 = vld [vmem:[%s7865_s1 + $0x964] ss:$8 sps:$4 sm:$0xff]   ;;  %v5102_v27 = vld [vmem:[%s7865_s1 + $0x960] ss:$8 sps:$4 sm:$0xff]   ;;  %v5105_v29 = vld [vmem:[%s7865_s1 + $0x974] ss:$8 sps:$4 sm:$0xff]  }
   0xb   :  { %3631 = vmatpush1.bf16.msra.mxu1 %v5077_v10  ;;  %v5107_v30 = vld [vmem:[%s7865_s1 + $0x70] ss:$8 sps:$4 sm:$0xff]   ;;  %v5109_v32 = vld [vmem:[%s7865_s1 + $0x84] ss:$8 sps:$4 sm:$0xff]   ;;  %v5113_v34 = vld [vmem:[%s7865_s1 + $0x80] ss:$8 sps:$4 sm:$0xff]  }
   0xc   :  { %4000 = vmatpush1.bf16.msra.mxu0 %v5078_v11  ;;  %3632 = vmatprep.subr.bf16.mxu1 %v5079_v12  ;;  %v5108_v31 = vld [vmem:[%s7865_s1 + $0x970] ss:$8 sps:$4 sm:$0xff]   ;;  %v5111_v33 = vld [vmem:[%s7865_s1 + $0x984] ss:$8 sps:$4 sm:$0xff]   ;;  %v5114_v35 = vld [vmem:[%s7865_s1 + $0x980] ss:$8 sps:$4 sm:$0xff]  }
   0xd   :  { %4001 = vmatprep.subr.bf16.mxu0 %v5081_v13  ;;  %v5115_v36 = vld [vmem:[%s7865_s1 + $0x94] ss:$8 sps:$4 sm:$0xff]   ;;  %v5119_v38 = vld [vmem:[%s7865_s1 + $0x90] ss:$8 sps:$4 sm:$0xff]   ;;  %v5121_v40 = vld [vmem:[%s7865_s1 + $0xa4] ss:$8 sps:$4 sm:$0xff]  }
   0xe   :  { %v5117_v37 = vld [vmem:[%s7865_s1 + $0x994] ss:$8 sps:$4 sm:$0xff]   ;;  %v5120_v39 = vld [vmem:[%s7865_s1 + $0x990] ss:$8 sps:$4 sm:$0xff]   ;;  %v5123_v41 = vld [vmem:[%s7865_s1 + $0x9a4] ss:$8 sps:$4 sm:$0xff]  }
   0xf   :  { %3633 = vmatpush1.bf16.msra.mxu1 %v5083_v14  ;;  %v5125_v42 = vld [vmem:[%s7865_s1 + $0xa0] ss:$8 sps:$4 sm:$0xff]   ;;  %v5127_v44 = vld [vmem:[%s7865_s1 + $0xb4] ss:$8 sps:$4 sm:$0xff]   ;;  %v5131_v47 = vld [vmem:[%s7865_s1 + $0xb0] ss:$8 sps:$4 sm:$0xff]  }
  0x10   :  { %4002 = vmatpush1.bf16.msra.mxu0 %v5084_v15  ;;  %3634 = vmatprep.subr.bf16.mxu1 %v5085_v16  ;;  %v5126_v43 = vld [vmem:[%s7865_s1 + $0x9a0] ss:$8 sps:$4 sm:$0xff]   ;;  %v5129_v45 = vld [vmem:[%s7865_s1 + $0x9b4] ss:$8 sps:$4 sm:$0xff]   ;;  %v5132_v49 = vld [vmem:[%s7865_s1 + $0x9b0] ss:$8 sps:$4 sm:$0xff]  }
  0x11   :  { %4003 = vmatprep.subr.bf16.mxu0 %v5087_v17  ;;  %v14_v46 = vld [vmem:[%s7866_s0] sm:$0xff]  ;;  %v23_v50 = vld [vmem:[%s7866_s0 + $0x48] sm:$0xff]  ;;  %v5139_v56 = vld [vmem:[%s7865_s1 + $0xd4] ss:$8 sps:$4 sm:$0xff]  }
  0x12   :  { %v4380_v48 = vcombine.high %v14_v46, %v14_v46  ;;  %v5133_v51 = vld [vmem:[%s7865_s1 + $0xc4] ss:$8 sps:$4 sm:$0xff]   ;;  %v4398_v53 = vcombine.high %v23_v50, %v23_v50  ;;  %v5137_v54 = vld [vmem:[%s7865_s1 + $0xc0] ss:$8 sps:$4 sm:$0xff]   ;;  %v5141_v57 = vld [vmem:[%s7865_s1 + $0x9d4] ss:$8 sps:$4 sm:$0xff]   ;;  %v4379_v6 = vcombine.low %v14_v46, %v14_v46  ;;  %v4397_v7 = vcombine.low %v23_v50, %v23_v50 }
  0x13   :  { %3635 = vmatpush1.bf16.msra.mxu1 %v5089_v18  ;;  %v5135_v52 = vld [vmem:[%s7865_s1 + $0x9c4] ss:$8 sps:$4 sm:$0xff]   ;;  %v5138_v55 = vld [vmem:[%s7865_s1 + $0x9c0] ss:$8 sps:$4 sm:$0xff]   ;;  %v5143_v58 = vld [vmem:[%s7865_s1 + $0xd0] ss:$8 sps:$4 sm:$0xff]  }
  0x14   :  { %4004 = vmatpush1.bf16.msra.mxu0 %v5090_v19  ;;  %3636 = vmatprep.subr.bf16.mxu1 %v5091_v20  ;;  %v5144_v59 = vld [vmem:[%s7865_s1 + $0x9d0] ss:$8 sps:$4 sm:$0xff]   ;;  %v5145_v60 = vld [vmem:[%s7865_s1 + $0xe4] ss:$8 sps:$4 sm:$0xff]   ;;  %v5149_v62 = vld [vmem:[%s7865_s1 + $0xe0] ss:$8 sps:$4 sm:$0xff]  }
  0x15   :  { %4005 = vmatprep.subr.bf16.mxu0 %v5093_v21  ;;  %3658 = vmatprep.mubr.bf16.mxu1 %v4380_v48  ;;  %v5147_v61 = vld [vmem:[%s7865_s1 + $0x9e4] ss:$8 sps:$4 sm:$0xff]   ;;  %v5150_v63 = vld [vmem:[%s7865_s1 + $0x9e0] ss:$8 sps:$4 sm:$0xff]   ;;  %v5151_v0 = vld [vmem:[%s7865_s1 + $0xf4] ss:$8 sps:$4 sm:$0xff]  }
  0x16   :  { %4027 = vmatprep.mubr.bf16.mxu0 %v4398_v53  ;;  %v5153_v1 = vld [vmem:[%s7865_s1 + $0x9f4] ss:$8 sps:$4 sm:$0xff]   ;;  %v5155_v2 = vld [vmem:[%s7865_s1 + $0xf0] ss:$8 sps:$4 sm:$0xff]   ;;  %v5161_v4 = vld [vmem:[%s7865_s1 + $0x104] ss:$8 sps:$4 sm:$0xff]  }
  0x17   :  { %3637 = vmatpush1.bf16.msra.mxu1 %v5095_v22  ;;  %v5156_v3 = vld [vmem:[%s7865_s1 + $0x9f0] ss:$8 sps:$4 sm:$0xff]   ;;  %v5166_v5 = vld [vmem:[%s7865_s1 + $0xa04] ss:$8 sps:$4 sm:$0xff]   ;;  %v5159_v8 = vld [vmem:[%s7865_s1 + $0x100] ss:$8 sps:$4 sm:$0xff]  }
  0x18   :  { %4006 = vmatpush1.bf16.msra.mxu0 %v5096_v23  ;;  %3638 = vmatprep.subr.bf16.mxu1 %v5097_v24  ;;  %v5164_v9 = vld [vmem:[%s7865_s1 + $0xa00] ss:$8 sps:$4 sm:$0xff]   ;;  %v5169_v10 = vld [vmem:[%s7865_s1 + $0x114] ss:$8 sps:$4 sm:$0xff]   ;;  %v5167_v12 = vld [vmem:[%s7865_s1 + $0x110] ss:$8 sps:$4 sm:$0xff]  }
  0x19   :  { %4007 = vmatprep.subr.bf16.mxu0 %v5099_v25  ;;  %v5172_v11 = vld [vmem:[%s7865_s1 + $0xa14] ss:$8 sps:$4 sm:$0xff]   ;;  %v5170_v13 = vld [vmem:[%s7865_s1 + $0xa10] ss:$8 sps:$4 sm:$0xff]   ;;  %v5175_v14 = vld [vmem:[%s7865_s1 + $0x124] ss:$8 sps:$4 sm:$0xff]  }
  0x1a   :  { %v5178_v15 = vld [vmem:[%s7865_s1 + $0xa24] ss:$8 sps:$4 sm:$0xff]   ;;  %v5173_v16 = vld [vmem:[%s7865_s1 + $0x120] ss:$8 sps:$4 sm:$0xff]   ;;  %v5181_v18 = vld [vmem:[%s7865_s1 + $0x134] ss:$8 sps:$4 sm:$0xff]  }
  0x1b   :  { %3639 = vmatpush1.bf16.msra.mxu1 %v5101_v26  ;;  %v5176_v17 = vld [vmem:[%s7865_s1 + $0xa20] ss:$8 sps:$4 sm:$0xff]   ;;  %v5184_v19 = vld [vmem:[%s7865_s1 + $0xa34] ss:$8 sps:$4 sm:$0xff]   ;;  %v5179_v20 = vld [vmem:[%s7865_s1 + $0x130] ss:$8 sps:$4 sm:$0xff]  }
  0x1c   :  { %4008 = vmatpush1.bf16.msra.mxu0 %v5102_v27  ;;  %3640 = vmatprep.subr.bf16.mxu1 %v5103_v28  ;;  %v5182_v21 = vld [vmem:[%s7865_s1 + $0xa30] ss:$8 sps:$4 sm:$0xff]   ;;  %v5187_v22 = vld [vmem:[%s7865_s1 + $0x144] ss:$8 sps:$4 sm:$0xff]   ;;  %v5185_v24 = vld [vmem:[%s7865_s1 + $0x140] ss:$8 sps:$4 sm:$0xff]  }
  0x1d   :  { %4009 = vmatprep.subr.bf16.mxu0 %v5105_v29  ;;  %v5190_v23 = vld [vmem:[%s7865_s1 + $0xa44] ss:$8 sps:$4 sm:$0xff]   ;;  %v5188_v25 = vld [vmem:[%s7865_s1 + $0xa40] ss:$8 sps:$4 sm:$0xff]   ;;  %v5193_v26 = vld [vmem:[%s7865_s1 + $0x154] ss:$8 sps:$4 sm:$0xff]  }
  0x1e   :  { %v5196_v27 = vld [vmem:[%s7865_s1 + $0xa54] ss:$8 sps:$4 sm:$0xff]   ;;  %v5191_v28 = vld [vmem:[%s7865_s1 + $0x150] ss:$8 sps:$4 sm:$0xff]   ;;  %v5223_v50 = vld [vmem:[%s7865_s1 + $0x1a4] ss:$8 sps:$4 sm:$0xff]  }
  0x1f   :  { %3641 = vmatpush1.bf16.msra.mxu1 %v5107_v30  ;;  %v5194_v29 = vld [vmem:[%s7865_s1 + $0xa50] ss:$8 sps:$4 sm:$0xff]   ;;  %v5199_v30 = vld [vmem:[%s7865_s1 + $0x164] ss:$8 sps:$4 sm:$0xff]   ;;  %v5217_v46 = vld [vmem:[%s7865_s1 + $0x194] ss:$8 sps:$4 sm:$0xff]  }
  0x20   :  { %4010 = vmatpush1.bf16.msra.mxu0 %v5108_v31  ;;  %3642 = vmatprep.subr.bf16.mxu1 %v5109_v32  ;;  %v5202_v31 = vld [vmem:[%s7865_s1 + $0xa64] ss:$8 sps:$4 sm:$0xff]   ;;  %v5215_v48 = vld [vmem:[%s7865_s1 + $0x190] ss:$8 sps:$4 sm:$0xff]   ;;  %v5224_v53 = vld [vmem:[%s7865_s1 + $0xaa0] ss:$8 sps:$4 sm:$0xff]  }
  0x21   :  { %4011 = vmatprep.subr.bf16.mxu0 %v5111_v33  ;;  %v6260_v32 = vld [vmem:[%s7866_s0 + $0x8] sm:$0xff] }
  0x22   :  { %v5197_v33 = vld [vmem:[%s7865_s1 + $0x160] ss:$8 sps:$4 sm:$0xff]  }
  0x23   :  { %3643 = vmatpush1.bf16.msra.mxu1 %v5113_v34  ;;  %v5200_v34 = vld [vmem:[%s7865_s1 + $0xa60] ss:$8 sps:$4 sm:$0xff]  }
  0x24   :  { %4012 = vmatpush1.bf16.msra.mxu0 %v5114_v35  ;;  %3644 = vmatprep.subr.bf16.mxu1 %v5115_v36  ;;  %v4382_v35 = vcombine.high %v6260_v32, %v6260_v32  ;;  %v6273_v36 = vld [vmem:[%s7866_s0 + $0x50] sm:$0xff] }
  0x25   :  { %4013 = vmatprep.subr.bf16.mxu0 %v5117_v37  ;;  %v5205_v37 = vld [vmem:[%s7865_s1 + $0x174] ss:$8 sps:$4 sm:$0xff]  }
  0x27   :  { %3645 = vmatpush1.bf16.msra.mxu1 %v5119_v38  ;;  %v4400_v38 = vcombine.high %v6273_v36, %v6273_v36 }
  0x28   :  { %4014 = vmatpush1.bf16.msra.mxu0 %v5120_v39  ;;  %3646 = vmatprep.subr.bf16.mxu1 %v5121_v40  ;;  %v5208_v39 = vld [vmem:[%s7865_s1 + $0xa74] ss:$8 sps:$4 sm:$0xff]   ;;  %v5203_v40 = vld [vmem:[%s7865_s1 + $0x170] ss:$8 sps:$4 sm:$0xff]  }
  0x29   :  { %4015 = vmatprep.subr.bf16.mxu0 %v5123_v41  ;;  %v5206_v41 = vld [vmem:[%s7865_s1 + $0xa70] ss:$8 sps:$4 sm:$0xff]  }
  0x2b   :  { %3647 = vmatpush1.bf16.msra.mxu1 %v5125_v42  ;;  %v5211_v42 = vld [vmem:[%s7865_s1 + $0x184] ss:$8 sps:$4 sm:$0xff]  }
  0x2c   :  { %4016 = vmatpush1.bf16.msra.mxu0 %v5126_v43  ;;  %3648 = vmatprep.subr.bf16.mxu1 %v5127_v44  ;;  %v5214_v43 = vld [vmem:[%s7865_s1 + $0xa84] ss:$8 sps:$4 sm:$0xff]   ;;  %v5209_v44 = vld [vmem:[%s7865_s1 + $0x180] ss:$8 sps:$4 sm:$0xff]  }
  0x2d   :  { %4017 = vmatprep.subr.bf16.mxu0 %v5129_v45  ;;  %v5212_v45 = vld [vmem:[%s7865_s1 + $0xa80] ss:$8 sps:$4 sm:$0xff]  }
  0x2f   :  { %3649 = vmatpush1.bf16.msra.mxu1 %v5131_v47  ;;  %v5220_v47 = vld [vmem:[%s7865_s1 + $0xa94] ss:$8 sps:$4 sm:$0xff]  }
  0x30   :  { %4018 = vmatpush1.bf16.msra.mxu0 %v5132_v49  ;;  %3650 = vmatprep.subr.bf16.mxu1 %v5133_v51  ;;  %v5218_v49 = vld [vmem:[%s7865_s1 + $0xa90] ss:$8 sps:$4 sm:$0xff]   ;;  %v5226_v51 = vld [vmem:[%s7865_s1 + $0xaa4] ss:$8 sps:$4 sm:$0xff]  }
  0x31   :  { %4019 = vmatprep.subr.bf16.mxu0 %v5135_v52  ;;  %v5221_v52 = vld [vmem:[%s7865_s1 + $0x1a0] ss:$8 sps:$4 sm:$0xff]  }
  0x33   :  { %3651 = vmatpush1.bf16.msra.mxu1 %v5137_v54  ;;  %v5229_v54 = vld [vmem:[%s7865_s1 + $0x1b4] ss:$8 sps:$4 sm:$0xff]  }
  0x34   :  { %4020 = vmatpush1.bf16.msra.mxu0 %v5138_v55  ;;  %3652 = vmatprep.subr.bf16.mxu1 %v5139_v56  ;;  %v5232_v55 = vld [vmem:[%s7865_s1 + $0xab4] ss:$8 sps:$4 sm:$0xff]   ;;  %v5227_v56 = vld [vmem:[%s7865_s1 + $0x1b0] ss:$8 sps:$4 sm:$0xff]  }
  0x35   :  { %4021 = vmatprep.subr.bf16.mxu0 %v5141_v57  ;;  %v5230_v57 = vld [vmem:[%s7865_s1 + $0xab0] ss:$8 sps:$4 sm:$0xff]  }
  0x37   :  { %3653 = vmatpush1.bf16.msra.mxu1 %v5143_v58  ;;  %v5235_v58 = vld [vmem:[%s7865_s1 + $0x1c4] ss:$8 sps:$4 sm:$0xff]  }
  0x38   :  { %4022 = vmatpush1.bf16.msra.mxu0 %v5144_v59  ;;  %3654 = vmatprep.subr.bf16.mxu1 %v5145_v60  ;;  %v5238_v59 = vld [vmem:[%s7865_s1 + $0xac4] ss:$8 sps:$4 sm:$0xff]   ;;  %v5233_v60 = vld [vmem:[%s7865_s1 + $0x1c0] ss:$8 sps:$4 sm:$0xff]  }
  0x39   :  { %4023 = vmatprep.subr.bf16.mxu0 %v5147_v61  ;;  %v5236_v61 = vld [vmem:[%s7865_s1 + $0xac0] ss:$8 sps:$4 sm:$0xff]  }
  0x3b   :  { %3655 = vmatpush1.bf16.msra.mxu1 %v5149_v62  ;;  %v5241_v62 = vld [vmem:[%s7865_s1 + $0x1d4] ss:$8 sps:$4 sm:$0xff]  }
  0x3c   :  { %4024 = vmatpush1.bf16.msra.mxu0 %v5150_v63  ;;  %3656 = vmatprep.subr.bf16.mxu1 %v5151_v0  ;;  %v5244_v63 = vld [vmem:[%s7865_s1 + $0xad4] ss:$8 sps:$4 sm:$0xff]   ;;  %v5239_v0 = vld [vmem:[%s7865_s1 + $0x1d0] ss:$8 sps:$4 sm:$0xff]  }
  0x3d   :  { %4025 = vmatprep.subr.bf16.mxu0 %v5153_v1  ;;  %v5242_v1 = vld [vmem:[%s7865_s1 + $0xad0] ss:$8 sps:$4 sm:$0xff]  }
  0x3f   :  { %3657 = vmatpush1.bf16.msra.mxu1 %v5155_v2  ;;  %v5247_v2 = vld [vmem:[%s7865_s1 + $0x1e4] ss:$8 sps:$4 sm:$0xff]  }
  0x40   :  { %4026 = vmatpush1.bf16.msra.mxu0 %v5156_v3  ;;  %3667 = vmatprep.subr.bf16.mxu1 %v5161_v4  ;;  %v5250_v3 = vld [vmem:[%s7865_s1 + $0xae4] ss:$8 sps:$4 sm:$0xff]   ;;  %v5245_v4 = vld [vmem:[%s7865_s1 + $0x1e0] ss:$8 sps:$4 sm:$0xff]  }
  0x41   :  { %4036 = vmatprep.subr.bf16.mxu0 %v5166_v5  ;;  %v5248_v5 = vld [vmem:[%s7865_s1 + $0xae0] ss:$8 sps:$4 sm:$0xff]  }
  0x42   :  { %3659 = vmatmul.mubr.bf16.vlgmr.msra.gmra.mrb[0].mxu1 %v4379_v6  ;;  %v5253_v6 = vld [vmem:[%s7865_s1 + $0x1f4] ss:$8 sps:$4 sm:$0xff]  }
  0x43   :  { %4028 = vmatmul.mubr.bf16.vlgmr.msra.gmra.mrb[0].mxu0 %v4397_v7  ;;  %3668 = vmatpush1.bf16.msra.mxu1 %v5159_v8  ;;  %v5256_v7 = vld [vmem:[%s7865_s1 + $0xaf4] ss:$8 sps:$4 sm:$0xff]   ;;  %v5251_v8 = vld [vmem:[%s7865_s1 + $0x1f0] ss:$8 sps:$4 sm:$0xff]  }
  0x44   :  { %4037 = vmatpush1.bf16.msra.mxu0 %v5164_v9  ;;  %3669 = vmatprep.subr.bf16.mxu1 %v5169_v10  ;;  %v5254_v9 = vld [vmem:[%s7865_s1 + $0xaf0] ss:$8 sps:$4 sm:$0xff]   ;;  %v5261_v10 = vld [vmem:[%s7865_s1 + $0x204] ss:$8 sps:$4 sm:$0xff]  }
  0x45   :  { %4038 = vmatprep.subr.bf16.mxu0 %v5172_v11  ;;  %3699 = vmatprep.mubr.bf16.mxu1 %v4382_v35  ;;  %v5266_v11 = vld [vmem:[%s7865_s1 + $0xb04] ss:$8 sps:$4 sm:$0xff]   ;;  %v5288_v35 = vld [vmem:[%s7865_s1 + $0xb40] ss:$8 sps:$4 sm:$0xff]  }
  0x46   :  { %4068 = vmatprep.mubr.bf16.mxu0 %v4400_v38  ;;  %v5291_v38 = vld [vmem:[%s7865_s1 + $0x250] ss:$8 sps:$4 sm:$0xff]  }
  0x47   :  { %3670 = vmatpush1.bf16.msra.mxu1 %v5167_v12  ;;  %v4381_v12 = vcombine.low %v6260_v32, %v6260_v32  ;;  %v5287_v32 = vld [vmem:[%s7865_s1 + $0x244] ss:$8 sps:$4 sm:$0xff]  }
  0x48   :  { %4039 = vmatpush1.bf16.msra.mxu0 %v5170_v13  ;;  %3671 = vmatprep.subr.bf16.mxu1 %v5175_v14  ;;  %v5259_v13 = vld [vmem:[%s7865_s1 + $0x200] ss:$8 sps:$4 sm:$0xff]   ;;  %v4399_v14 = vcombine.low %v6273_v36, %v6273_v36  ;;  %v5293_v36 = vld [vmem:[%s7865_s1 + $0x254] ss:$8 sps:$4 sm:$0xff]  }
  0x49   :  { %4040 = vmatprep.subr.bf16.mxu0 %v5178_v15  ;;  %v5264_v15 = vld [vmem:[%s7865_s1 + $0xb00] ss:$8 sps:$4 sm:$0xff]  }
  0x4b   :  { %3672 = vmatpush1.bf16.msra.mxu1 %v5173_v16  ;;  %v5269_v16 = vld [vmem:[%s7865_s1 + $0x214] ss:$8 sps:$4 sm:$0xff]  }
  0x4c   :  { %4041 = vmatpush1.bf16.msra.mxu0 %v5176_v17  ;;  %3673 = vmatprep.subr.bf16.mxu1 %v5181_v18  ;;  %v5272_v17 = vld [vmem:[%s7865_s1 + $0xb14] ss:$8 sps:$4 sm:$0xff]  }
  0x4d   :  { %4042 = vmatprep.subr.bf16.mxu0 %v5184_v19  ;;  %v6410_v18 = vld [vmem:[%s7866_s0 + $0x10] sm:$0xff] }
  0x4e   :  { %v4384_v19 = vcombine.high %v6410_v18, %v6410_v18 }
  0x4f   :  { %3674 = vmatpush1.bf16.msra.mxu1 %v5179_v20  ;;  %v6417_v20 = vld [vmem:[%s7866_s0 + $0x58] sm:$0xff] }
  0x50   :  { %4043 = vmatpush1.bf16.msra.mxu0 %v5182_v21  ;;  %3675 = vmatprep.subr.bf16.mxu1 %v5187_v22  ;;  %v5267_v21 = vld [vmem:[%s7865_s1 + $0x210] ss:$8 sps:$4 sm:$0xff]  }
  0x51   :  { %4044 = vmatprep.subr.bf16.mxu0 %v5190_v23  ;;  %v5270_v22 = vld [vmem:[%s7865_s1 + $0xb10] ss:$8 sps:$4 sm:$0xff]   ;;  %v4402_v23 = vcombine.high %v6417_v20, %v6417_v20 }
  0x53   :  { %3676 = vmatpush1.bf16.msra.mxu1 %v5185_v24  ;;  %v5275_v24 = vld [vmem:[%s7865_s1 + $0x224] ss:$8 sps:$4 sm:$0xff]  }
  0x54   :  { %4045 = vmatpush1.bf16.msra.mxu0 %v5188_v25  ;;  %3677 = vmatprep.subr.bf16.mxu1 %v5193_v26  ;;  %v5278_v25 = vld [vmem:[%s7865_s1 + $0xb24] ss:$8 sps:$4 sm:$0xff]   ;;  %v5273_v26 = vld [vmem:[%s7865_s1 + $0x220] ss:$8 sps:$4 sm:$0xff]  }
  0x55   :  { %4046 = vmatprep.subr.bf16.mxu0 %v5196_v27  ;;  %v5276_v27 = vld [vmem:[%s7865_s1 + $0xb20] ss:$8 sps:$4 sm:$0xff]  }
  0x57   :  { %3678 = vmatpush1.bf16.msra.mxu1 %v5191_v28  ;;  %v5281_v28 = vld [vmem:[%s7865_s1 + $0x234] ss:$8 sps:$4 sm:$0xff]  }
  0x58   :  { %4047 = vmatpush1.bf16.msra.mxu0 %v5194_v29  ;;  %3679 = vmatprep.subr.bf16.mxu1 %v5199_v30  ;;  %v5284_v29 = vld [vmem:[%s7865_s1 + $0xb34] ss:$8 sps:$4 sm:$0xff]   ;;  %v5279_v30 = vld [vmem:[%s7865_s1 + $0x230] ss:$8 sps:$4 sm:$0xff]  }
  0x59   :  { %4048 = vmatprep.subr.bf16.mxu0 %v5202_v31  ;;  %v5282_v31 = vld [vmem:[%s7865_s1 + $0xb30] ss:$8 sps:$4 sm:$0xff]  }
  0x5b   :  { %3680 = vmatpush1.bf16.msra.mxu1 %v5197_v33  ;;  %v5290_v33 = vld [vmem:[%s7865_s1 + $0xb44] ss:$8 sps:$4 sm:$0xff]  }
  0x5c   :  { %4049 = vmatpush1.bf16.msra.mxu0 %v5200_v34  ;;  %3681 = vmatprep.subr.bf16.mxu1 %v5205_v37  ;;  %v5285_v34 = vld [vmem:[%s7865_s1 + $0x240] ss:$8 sps:$4 sm:$0xff]   ;;  %v5296_v37 = vld [vmem:[%s7865_s1 + $0xb54] ss:$8 sps:$4 sm:$0xff]  }
  0x5d   :  { %4050 = vmatprep.subr.bf16.mxu0 %v5208_v39  ;;  %v5294_v39 = vld [vmem:[%s7865_s1 + $0xb50] ss:$8 sps:$4 sm:$0xff]  }
  0x5f   :  { %3682 = vmatpush1.bf16.msra.mxu1 %v5203_v40  ;;  %v5299_v40 = vld [vmem:[%s7865_s1 + $0x264] ss:$8 sps:$4 sm:$0xff]  }
  0x60   :  { %4051 = vmatpush1.bf16.msra.mxu0 %v5206_v41  ;;  %3683 = vmatprep.subr.bf16.mxu1 %v5211_v42  ;;  %v5302_v41 = vld [vmem:[%s7865_s1 + $0xb64] ss:$8 sps:$4 sm:$0xff]   ;;  %v5297_v42 = vld [vmem:[%s7865_s1 + $0x260] ss:$8 sps:$4 sm:$0xff]  }
  0x61   :  { %4052 = vmatprep.subr.bf16.mxu0 %v5214_v43  ;;  %v5300_v43 = vld [vmem:[%s7865_s1 + $0xb60] ss:$8 sps:$4 sm:$0xff]  }
  0x63   :  { %3684 = vmatpush1.bf16.msra.mxu1 %v5209_v44  ;;  %v5305_v44 = vld [vmem:[%s7865_s1 + $0x274] ss:$8 sps:$4 sm:$0xff]  }
  0x64   :  { %4053 = vmatpush1.bf16.msra.mxu0 %v5212_v45  ;;  %3685 = vmatprep.subr.bf16.mxu1 %v5217_v46  ;;  %v5308_v45 = vld [vmem:[%s7865_s1 + $0xb74] ss:$8 sps:$4 sm:$0xff]   ;;  %v5303_v46 = vld [vmem:[%s7865_s1 + $0x270] ss:$8 sps:$4 sm:$0xff]  }
  0x65   :  { %4054 = vmatprep.subr.bf16.mxu0 %v5220_v47  ;;  %v5306_v47 = vld [vmem:[%s7865_s1 + $0xb70] ss:$8 sps:$4 sm:$0xff]  }
  0x67   :  { %3686 = vmatpush1.bf16.msra.mxu1 %v5215_v48  ;;  %v5311_v48 = vld [vmem:[%s7865_s1 + $0x284] ss:$8 sps:$4 sm:$0xff]  }
  0x68   :  { %4055 = vmatpush1.bf16.msra.mxu0 %v5218_v49  ;;  %3687 = vmatprep.subr.bf16.mxu1 %v5223_v50  ;;  %v5314_v49 = vld [vmem:[%s7865_s1 + $0xb84] ss:$8 sps:$4 sm:$0xff]   ;;  %v5309_v50 = vld [vmem:[%s7865_s1 + $0x280] ss:$8 sps:$4 sm:$0xff]  }
  0x69   :  { %4056 = vmatprep.subr.bf16.mxu0 %v5226_v51  ;;  %v5312_v51 = vld [vmem:[%s7865_s1 + $0xb80] ss:$8 sps:$4 sm:$0xff]  }
  0x6b   :  { %3688 = vmatpush1.bf16.msra.mxu1 %v5221_v52  ;;  %v5317_v52 = vld [vmem:[%s7865_s1 + $0x294] ss:$8 sps:$4 sm:$0xff]  }
  0x6c   :  { %4057 = vmatpush1.bf16.msra.mxu0 %v5224_v53  ;;  %3689 = vmatprep.subr.bf16.mxu1 %v5229_v54  ;;  %v5320_v53 = vld [vmem:[%s7865_s1 + $0xb94] ss:$8 sps:$4 sm:$0xff]   ;;  %v5315_v54 = vld [vmem:[%s7865_s1 + $0x290] ss:$8 sps:$4 sm:$0xff]  }
  0x6d   :  { %4058 = vmatprep.subr.bf16.mxu0 %v5232_v55  ;;  %v5318_v55 = vld [vmem:[%s7865_s1 + $0xb90] ss:$8 sps:$4 sm:$0xff]  }
  0x6f   :  { %3690 = vmatpush1.bf16.msra.mxu1 %v5227_v56  ;;  %v5323_v56 = vld [vmem:[%s7865_s1 + $0x2a4] ss:$8 sps:$4 sm:$0xff]  }
  0x70   :  { %4059 = vmatpush1.bf16.msra.mxu0 %v5230_v57  ;;  %3691 = vmatprep.subr.bf16.mxu1 %v5235_v58  ;;  %v5326_v57 = vld [vmem:[%s7865_s1 + $0xba4] ss:$8 sps:$4 sm:$0xff]   ;;  %v5321_v58 = vld [vmem:[%s7865_s1 + $0x2a0] ss:$8 sps:$4 sm:$0xff]  }
  0x71   :  { %4060 = vmatprep.subr.bf16.mxu0 %v5238_v59  ;;  %v5324_v59 = vld [vmem:[%s7865_s1 + $0xba0] ss:$8 sps:$4 sm:$0xff]  }
  0x73   :  { %3692 = vmatpush1.bf16.msra.mxu1 %v5233_v60  ;;  %v5329_v60 = vld [vmem:[%s7865_s1 + $0x2b4] ss:$8 sps:$4 sm:$0xff]  }
  0x74   :  { %4061 = vmatpush1.bf16.msra.mxu0 %v5236_v61  ;;  %3693 = vmatprep.subr.bf16.mxu1 %v5241_v62  ;;  %v5332_v61 = vld [vmem:[%s7865_s1 + $0xbb4] ss:$8 sps:$4 sm:$0xff]   ;;  %v5327_v62 = vld [vmem:[%s7865_s1 + $0x2b0] ss:$8 sps:$4 sm:$0xff]  }
  0x75   :  { %4062 = vmatprep.subr.bf16.mxu0 %v5244_v63  ;;  %v5330_v63 = vld [vmem:[%s7865_s1 + $0xbb0] ss:$8 sps:$4 sm:$0xff]  }
  0x77   :  { %3694 = vmatpush1.bf16.msra.mxu1 %v5239_v0  ;;  %v5335_v0 = vld [vmem:[%s7865_s1 + $0x2c4] ss:$8 sps:$4 sm:$0xff]  }
  0x78   :  { %4063 = vmatpush1.bf16.msra.mxu0 %v5242_v1  ;;  %3695 = vmatprep.subr.bf16.mxu1 %v5247_v2  ;;  %v5338_v1 = vld [vmem:[%s7865_s1 + $0xbc4] ss:$8 sps:$4 sm:$0xff]   ;;  %v5333_v2 = vld [vmem:[%s7865_s1 + $0x2c0] ss:$8 sps:$4 sm:$0xff]  }
  0x79   :  { %4064 = vmatprep.subr.bf16.mxu0 %v5250_v3  ;;  %v5336_v3 = vld [vmem:[%s7865_s1 + $0xbc0] ss:$8 sps:$4 sm:$0xff]  }
  0x7b   :  { %3696 = vmatpush1.bf16.msra.mxu1 %v5245_v4  ;;  %v5341_v4 = vld [vmem:[%s7865_s1 + $0x2d4] ss:$8 sps:$4 sm:$0xff]  }
  0x7c   :  { %4065 = vmatpush1.bf16.msra.mxu0 %v5248_v5  ;;  %3697 = vmatprep.subr.bf16.mxu1 %v5253_v6  ;;  %v5344_v5 = vld [vmem:[%s7865_s1 + $0xbd4] ss:$8 sps:$4 sm:$0xff]   ;;  %v5339_v6 = vld [vmem:[%s7865_s1 + $0x2d0] ss:$8 sps:$4 sm:$0xff]  }
  0x7d   :  { %4066 = vmatprep.subr.bf16.mxu0 %v5256_v7  ;;  %v5342_v7 = vld [vmem:[%s7865_s1 + $0xbd0] ss:$8 sps:$4 sm:$0xff]  }
  0x7f   :  { %3698 = vmatpush1.bf16.msra.mxu1 %v5251_v8  ;;  %v5347_v8 = vld [vmem:[%s7865_s1 + $0x2e4] ss:$8 sps:$4 sm:$0xff]  }
  0x80   :  { %4067 = vmatpush1.bf16.msra.mxu0 %v5254_v9  ;;  %3708 = vmatprep.subr.bf16.mxu1 %v5261_v10  ;;  %v5350_v9 = vld [vmem:[%s7865_s1 + $0xbe4] ss:$8 sps:$4 sm:$0xff]   ;;  %v5345_v10 = vld [vmem:[%s7865_s1 + $0x2e0] ss:$8 sps:$4 sm:$0xff]  }
  0x81   :  { %4077 = vmatprep.subr.bf16.mxu0 %v5266_v11  ;;  %v5348_v11 = vld [vmem:[%s7865_s1 + $0xbe0] ss:$8 sps:$4 sm:$0xff]  }
  0x82   :  { %3700 = vmatmul.mubr.bf16.vlgmr.msra.gmra.mrb[0].mxu1 %v4381_v12  ;;  %v5353_v12 = vld [vmem:[%s7865_s1 + $0x2f4] ss:$8 sps:$4 sm:$0xff]  }
  0x83   :  { %4069 = vmatmul.mubr.bf16.vlgmr.msra.gmra.mrb[0].mxu0 %v4399_v14  ;;  %3709 = vmatpush1.bf16.msra.mxu1 %v5259_v13  ;;  %v5356_v13 = vld [vmem:[%s7865_s1 + $0xbf4] ss:$8 sps:$4 sm:$0xff]   ;;  %v5351_v14 = vld [vmem:[%s7865_s1 + $0x2f0] ss:$8 sps:$4 sm:$0xff]  }
  0x84   :  { %4078 = vmatpush1.bf16.msra.mxu0 %v5264_v15  ;;  %3710 = vmatprep.subr.bf16.mxu1 %v5269_v16  ;;  %v5354_v15 = vld [vmem:[%s7865_s1 + $0xbf0] ss:$8 sps:$4 sm:$0xff]   ;;  %v5361_v16 = vld [vmem:[%s7865_s1 + $0x304] ss:$8 sps:$4 sm:$0xff]  }
  0x85   :  { %4079 = vmatprep.subr.bf16.mxu0 %v5272_v17  ;;  %3740 = vmatprep.mubr.bf16.mxu1 %v4384_v19  ;;  %v5366_v17 = vld [vmem:[%s7865_s1 + $0xc04] ss:$8 sps:$4 sm:$0xff]   ;;  %v5359_v19 = vld [vmem:[%s7865_s1 + $0x300] ss:$8 sps:$4 sm:$0xff]  }
  0x86   :  { %4109 = vmatprep.mubr.bf16.mxu0 %v4402_v23  ;;  %v4401_v23 = vcombine.low %v6417_v20, %v6417_v20 }
  0x87   :  { %3711 = vmatpush1.bf16.msra.mxu1 %v5267_v21  ;;  %v5364_v21 = vld [vmem:[%s7865_s1 + $0xc00] ss:$8 sps:$4 sm:$0xff]  }
  0x88   :  { %4080 = vmatpush1.bf16.msra.mxu0 %v5270_v22  ;;  %3712 = vmatprep.subr.bf16.mxu1 %v5275_v24  ;;  %v4383_v22 = vcombine.low %v6410_v18, %v6410_v18  ;;  %v6614_v24 = vld [vmem:[%s7866_s0 + $0x18] sm:$0xff] }
  0x89   :  { %4081 = vmatprep.subr.bf16.mxu0 %v5278_v25  ;;  %v6619_v25 = vld [vmem:[%s7866_s0 + $0x60] sm:$0xff]  ;;  %v5372_v18 = vld [vmem:[%s7865_s1 + $0xc14] ss:$8 sps:$4 sm:$0xff]   ;;  %v4386_v20 = vcombine.high %v6614_v24, %v6614_v24 }
  0x8b   :  { %3713 = vmatpush1.bf16.msra.mxu1 %v5273_v26  ;;  %v5369_v26 = vld [vmem:[%s7865_s1 + $0x314] ss:$8 sps:$4 sm:$0xff]  }
  0x8c   :  { %4082 = vmatpush1.bf16.msra.mxu0 %v5276_v27  ;;  %3714 = vmatprep.subr.bf16.mxu1 %v5281_v28  ;;  %v4404_v27 = vcombine.high %v6619_v25, %v6619_v25  ;;  %v5367_v28 = vld [vmem:[%s7865_s1 + $0x310] ss:$8 sps:$4 sm:$0xff]  }
  0x8d   :  { %4083 = vmatprep.subr.bf16.mxu0 %v5284_v29  ;;  %v5370_v29 = vld [vmem:[%s7865_s1 + $0xc10] ss:$8 sps:$4 sm:$0xff]  }
  0x8f   :  { %3715 = vmatpush1.bf16.msra.mxu1 %v5279_v30  ;;  %v5375_v30 = vld [vmem:[%s7865_s1 + $0x324] ss:$8 sps:$4 sm:$0xff]  }
  0x90   :  { %4084 = vmatpush1.bf16.msra.mxu0 %v5282_v31  ;;  %3716 = vmatprep.subr.bf16.mxu1 %v5287_v32  ;;  %v5378_v31 = vld [vmem:[%s7865_s1 + $0xc24] ss:$8 sps:$4 sm:$0xff]   ;;  %v5373_v32 = vld [vmem:[%s7865_s1 + $0x320] ss:$8 sps:$4 sm:$0xff]  }
  0x91   :  { %4085 = vmatprep.subr.bf16.mxu0 %v5290_v33  ;;  %v5376_v33 = vld [vmem:[%s7865_s1 + $0xc20] ss:$8 sps:$4 sm:$0xff]  }
  0x93   :  { %3717 = vmatpush1.bf16.msra.mxu1 %v5285_v34  ;;  %v5381_v34 = vld [vmem:[%s7865_s1 + $0x334] ss:$8 sps:$4 sm:$0xff]  }
  0x94   :  { %4086 = vmatpush1.bf16.msra.mxu0 %v5288_v35  ;;  %3718 = vmatprep.subr.bf16.mxu1 %v5293_v36  ;;  %v5384_v35 = vld [vmem:[%s7865_s1 + $0xc34] ss:$8 sps:$4 sm:$0xff]   ;;  %v5379_v36 = vld [vmem:[%s7865_s1 + $0x330] ss:$8 sps:$4 sm:$0xff]  }
  0x95   :  { %4087 = vmatprep.subr.bf16.mxu0 %v5296_v37  ;;  %v5382_v37 = vld [vmem:[%s7865_s1 + $0xc30] ss:$8 sps:$4 sm:$0xff]  }
  0x97   :  { %3719 = vmatpush1.bf16.msra.mxu1 %v5291_v38  ;;  %v5387_v38 = vld [vmem:[%s7865_s1 + $0x344] ss:$8 sps:$4 sm:$0xff]  }
  0x98   :  { %4088 = vmatpush1.bf16.msra.mxu0 %v5294_v39  ;;  %3720 = vmatprep.subr.bf16.mxu1 %v5299_v40  ;;  %v5390_v39 = vld [vmem:[%s7865_s1 + $0xc44] ss:$8 sps:$4 sm:$0xff]   ;;  %v5385_v40 = vld [vmem:[%s7865_s1 + $0x340] ss:$8 sps:$4 sm:$0xff]  }
  0x99   :  { %4089 = vmatprep.subr.bf16.mxu0 %v5302_v41  ;;  %v5388_v41 = vld [vmem:[%s7865_s1 + $0xc40] ss:$8 sps:$4 sm:$0xff]  }
  0x9b   :  { %3721 = vmatpush1.bf16.msra.mxu1 %v5297_v42  ;;  %v5393_v42 = vld [vmem:[%s7865_s1 + $0x354] ss:$8 sps:$4 sm:$0xff]  }
  0x9c   :  { %4090 = vmatpush1.bf16.msra.mxu0 %v5300_v43  ;;  %3722 = vmatprep.subr.bf16.mxu1 %v5305_v44  ;;  %v5396_v43 = vld [vmem:[%s7865_s1 + $0xc54] ss:$8 sps:$4 sm:$0xff]   ;;  %v5391_v44 = vld [vmem:[%s7865_s1 + $0x350] ss:$8 sps:$4 sm:$0xff]  }
  0x9d   :  { %4091 = vmatprep.subr.bf16.mxu0 %v5308_v45  ;;  %v5394_v45 = vld [vmem:[%s7865_s1 + $0xc50] ss:$8 sps:$4 sm:$0xff]  }
  0x9f   :  { %3723 = vmatpush1.bf16.msra.mxu1 %v5303_v46  ;;  %v5399_v46 = vld [vmem:[%s7865_s1 + $0x364] ss:$8 sps:$4 sm:$0xff]  }
  0xa0   :  { %4092 = vmatpush1.bf16.msra.mxu0 %v5306_v47  ;;  %3724 = vmatprep.subr.bf16.mxu1 %v5311_v48  ;;  %v5402_v47 = vld [vmem:[%s7865_s1 + $0xc64] ss:$8 sps:$4 sm:$0xff]   ;;  %v5397_v48 = vld [vmem:[%s7865_s1 + $0x360] ss:$8 sps:$4 sm:$0xff]  }
  0xa1   :  { %4093 = vmatprep.subr.bf16.mxu0 %v5314_v49  ;;  %v5400_v49 = vld [vmem:[%s7865_s1 + $0xc60] ss:$8 sps:$4 sm:$0xff]  }
  0xa3   :  { %3725 = vmatpush1.bf16.msra.mxu1 %v5309_v50  ;;  %v5405_v50 = vld [vmem:[%s7865_s1 + $0x374] ss:$8 sps:$4 sm:$0xff]  }
  0xa4   :  { %4094 = vmatpush1.bf16.msra.mxu0 %v5312_v51  ;;  %3726 = vmatprep.subr.bf16.mxu1 %v5317_v52  ;;  %v5408_v51 = vld [vmem:[%s7865_s1 + $0xc74] ss:$8 sps:$4 sm:$0xff]   ;;  %v5403_v52 = vld [vmem:[%s7865_s1 + $0x370] ss:$8 sps:$4 sm:$0xff]  }
  0xa5   :  { %4095 = vmatprep.subr.bf16.mxu0 %v5320_v53  ;;  %v5406_v53 = vld [vmem:[%s7865_s1 + $0xc70] ss:$8 sps:$4 sm:$0xff]  }
  0xa7   :  { %3727 = vmatpush1.bf16.msra.mxu1 %v5315_v54  ;;  %v5411_v54 = vld [vmem:[%s7865_s1 + $0x384] ss:$8 sps:$4 sm:$0xff]  }
  0xa8   :  { %4096 = vmatpush1.bf16.msra.mxu0 %v5318_v55  ;;  %3728 = vmatprep.subr.bf16.mxu1 %v5323_v56  ;;  %v5414_v55 = vld [vmem:[%s7865_s1 + $0xc84] ss:$8 sps:$4 sm:$0xff]   ;;  %v5409_v56 = vld [vmem:[%s7865_s1 + $0x380] ss:$8 sps:$4 sm:$0xff]  }
  0xa9   :  { %4097 = vmatprep.subr.bf16.mxu0 %v5326_v57  ;;  %v5412_v57 = vld [vmem:[%s7865_s1 + $0xc80] ss:$8 sps:$4 sm:$0xff]  }
  0xab   :  { %3729 = vmatpush1.bf16.msra.mxu1 %v5321_v58  ;;  %v5417_v58 = vld [vmem:[%s7865_s1 + $0x394] ss:$8 sps:$4 sm:$0xff]  }
  0xac   :  { %4098 = vmatpush1.bf16.msra.mxu0 %v5324_v59  ;;  %3730 = vmatprep.subr.bf16.mxu1 %v5329_v60  ;;  %v5420_v59 = vld [vmem:[%s7865_s1 + $0xc94] ss:$8 sps:$4 sm:$0xff]   ;;  %v5415_v60 = vld [vmem:[%s7865_s1 + $0x390] ss:$8 sps:$4 sm:$0xff]  }
  0xad   :  { %4099 = vmatprep.subr.bf16.mxu0 %v5332_v61  ;;  %v5418_v61 = vld [vmem:[%s7865_s1 + $0xc90] ss:$8 sps:$4 sm:$0xff]  }
  0xaf   :  { %3731 = vmatpush1.bf16.msra.mxu1 %v5327_v62  ;;  %v5423_v62 = vld [vmem:[%s7865_s1 + $0x3a4] ss:$8 sps:$4 sm:$0xff]  }
  0xb0   :  { %4100 = vmatpush1.bf16.msra.mxu0 %v5330_v63  ;;  %3732 = vmatprep.subr.bf16.mxu1 %v5335_v0  ;;  %v5426_v63 = vld [vmem:[%s7865_s1 + $0xca4] ss:$8 sps:$4 sm:$0xff]   ;;  %v5421_v0 = vld [vmem:[%s7865_s1 + $0x3a0] ss:$8 sps:$4 sm:$0xff]  }
  0xb1   :  { %4101 = vmatprep.subr.bf16.mxu0 %v5338_v1  ;;  %v5424_v1 = vld [vmem:[%s7865_s1 + $0xca0] ss:$8 sps:$4 sm:$0xff]  }
  0xb3   :  { %3733 = vmatpush1.bf16.msra.mxu1 %v5333_v2  ;;  %v5429_v2 = vld [vmem:[%s7865_s1 + $0x3b4] ss:$8 sps:$4 sm:$0xff]  }
  0xb4   :  { %4102 = vmatpush1.bf16.msra.mxu0 %v5336_v3  ;;  %3734 = vmatprep.subr.bf16.mxu1 %v5341_v4  ;;  %v5432_v3 = vld [vmem:[%s7865_s1 + $0xcb4] ss:$8 sps:$4 sm:$0xff]   ;;  %v5427_v4 = vld [vmem:[%s7865_s1 + $0x3b0] ss:$8 sps:$4 sm:$0xff]  }
  0xb5   :  { %4103 = vmatprep.subr.bf16.mxu0 %v5344_v5  ;;  %v5430_v5 = vld [vmem:[%s7865_s1 + $0xcb0] ss:$8 sps:$4 sm:$0xff]  }
  0xb7   :  { %3735 = vmatpush1.bf16.msra.mxu1 %v5339_v6  ;;  %v5435_v6 = vld [vmem:[%s7865_s1 + $0x3c4] ss:$8 sps:$4 sm:$0xff]  }
  0xb8   :  { %4104 = vmatpush1.bf16.msra.mxu0 %v5342_v7  ;;  %3736 = vmatprep.subr.bf16.mxu1 %v5347_v8  ;;  %v5438_v7 = vld [vmem:[%s7865_s1 + $0xcc4] ss:$8 sps:$4 sm:$0xff]   ;;  %v5433_v8 = vld [vmem:[%s7865_s1 + $0x3c0] ss:$8 sps:$4 sm:$0xff]  }
  0xb9   :  { %4105 = vmatprep.subr.bf16.mxu0 %v5350_v9  ;;  %v5436_v9 = vld [vmem:[%s7865_s1 + $0xcc0] ss:$8 sps:$4 sm:$0xff]  }
  0xbb   :  { %3737 = vmatpush1.bf16.msra.mxu1 %v5345_v10  ;;  %v5441_v10 = vld [vmem:[%s7865_s1 + $0x3d4] ss:$8 sps:$4 sm:$0xff]  }
  0xbc   :  { %4106 = vmatpush1.bf16.msra.mxu0 %v5348_v11  ;;  %3738 = vmatprep.subr.bf16.mxu1 %v5353_v12  ;;  %v5444_v11 = vld [vmem:[%s7865_s1 + $0xcd4] ss:$8 sps:$4 sm:$0xff]   ;;  %v5439_v12 = vld [vmem:[%s7865_s1 + $0x3d0] ss:$8 sps:$4 sm:$0xff]  }
  0xbd   :  { %4107 = vmatprep.subr.bf16.mxu0 %v5356_v13  ;;  %v5442_v13 = vld [vmem:[%s7865_s1 + $0xcd0] ss:$8 sps:$4 sm:$0xff]  }
  0xbf   :  { %3739 = vmatpush1.bf16.msra.mxu1 %v5351_v14  ;;  %v5447_v14 = vld [vmem:[%s7865_s1 + $0x3e4] ss:$8 sps:$4 sm:$0xff]  }
  0xc0   :  { %4108 = vmatpush1.bf16.msra.mxu0 %v5354_v15  ;;  %3749 = vmatprep.subr.bf16.mxu1 %v5361_v16  ;;  %v5450_v15 = vld [vmem:[%s7865_s1 + $0xce4] ss:$8 sps:$4 sm:$0xff]   ;;  %v5445_v16 = vld [vmem:[%s7865_s1 + $0x3e0] ss:$8 sps:$4 sm:$0xff]  }
  0xc1   :  { %4118 = vmatprep.subr.bf16.mxu0 %v5366_v17  ;;  %v5448_v17 = vld [vmem:[%s7865_s1 + $0xce0] ss:$8 sps:$4 sm:$0xff]  }
  0xc2   :  { %3741 = vmatmul.mubr.bf16.vlgmr.msra.gmra.mrb[0].mxu1 %v4383_v22  ;;  %v5451_v22 = vld [vmem:[%s7865_s1 + $0x3f0] ss:$8 sps:$4 sm:$0xff]  }
  0xc3   :  { %4110 = vmatmul.mubr.bf16.vlgmr.msra.gmra.mrb[0].mxu0 %v4401_v23  ;;  %3750 = vmatpush1.bf16.msra.mxu1 %v5359_v19  ;;  %v5453_v19 = vld [vmem:[%s7865_s1 + $0x3f4] ss:$8 sps:$4 sm:$0xff]   ;;  %v5454_v23 = vld [vmem:[%s7865_s1 + $0xcf0] ss:$8 sps:$4 sm:$0xff]  }
  0xc4   :  { %4119 = vmatpush1.bf16.msra.mxu0 %v5364_v21  ;;  %3751 = vmatprep.subr.bf16.mxu1 %v5369_v26  ;;  %v5456_v21 = vld [vmem:[%s7865_s1 + $0xcf4] ss:$8 sps:$4 sm:$0xff]   ;;  %v5461_v26 = vld [vmem:[%s7865_s1 + $0x404] ss:$8 sps:$4 sm:$0xff]  }
  0xc5   :  { %4120 = vmatprep.subr.bf16.mxu0 %v5372_v18  ;;  %3781 = vmatprep.mubr.bf16.mxu1 %v4386_v20  ;;  %v5466_v18 = vld [vmem:[%s7865_s1 + $0xd04] ss:$8 sps:$4 sm:$0xff]  }
  0xc6   :  { %4150 = vmatprep.mubr.bf16.mxu0 %v4404_v27  ;;  %v6814_v20 = vld [vmem:[%s7866_s0 + $0x20] sm:$0xff]  ;;  %v4385_v27 = vcombine.low %v6614_v24, %v6614_v24  ;;  %v5469_v24 = vld [vmem:[%s7865_s1 + $0x414] ss:$8 sps:$4 sm:$0xff]  }
  0xc7   :  { %3752 = vmatpush1.bf16.msra.mxu1 %v5367_v28  ;;  %v4403_v28 = vcombine.low %v6619_v25, %v6619_v25  ;;  %v5472_v25 = vld [vmem:[%s7865_s1 + $0xd14] ss:$8 sps:$4 sm:$0xff]  }
  0xc8   :  { %4121 = vmatpush1.bf16.msra.mxu0 %v5370_v29  ;;  %3753 = vmatprep.subr.bf16.mxu1 %v5375_v30  ;;  %v6823_v29 = vld [vmem:[%s7866_s0 + $0x68] sm:$0xff] }
  0xc9   :  { %4122 = vmatprep.subr.bf16.mxu0 %v5378_v31  ;;  %v5459_v30 = vld [vmem:[%s7865_s1 + $0x400] ss:$8 sps:$4 sm:$0xff]  }
  0xca   :  { %v5464_v31 = vld [vmem:[%s7865_s1 + $0xd00] ss:$8 sps:$4 sm:$0xff]  }
  0xcb   :  { %3754 = vmatpush1.bf16.msra.mxu1 %v5373_v32  ;;  %v4388_v32 = vcombine.high %v6814_v20, %v6814_v20 }
  0xcc   :  { %4123 = vmatpush1.bf16.msra.mxu0 %v5376_v33  ;;  %3755 = vmatprep.subr.bf16.mxu1 %v5381_v34  ;;  %v4406_v33 = vcombine.high %v6823_v29, %v6823_v29  ;;  %v5467_v34 = vld [vmem:[%s7865_s1 + $0x410] ss:$8 sps:$4 sm:$0xff]  }
  0xcd   :  { %4124 = vmatprep.subr.bf16.mxu0 %v5384_v35  ;;  %v5470_v35 = vld [vmem:[%s7865_s1 + $0xd10] ss:$8 sps:$4 sm:$0xff]  }
  0xcf   :  { %3756 = vmatpush1.bf16.msra.mxu1 %v5379_v36  ;;  %v5475_v36 = vld [vmem:[%s7865_s1 + $0x424] ss:$8 sps:$4 sm:$0xff]  }
  0xd0   :  { %4125 = vmatpush1.bf16.msra.mxu0 %v5382_v37  ;;  %3757 = vmatprep.subr.bf16.mxu1 %v5387_v38  ;;  %v5478_v37 = vld [vmem:[%s7865_s1 + $0xd24] ss:$8 sps:$4 sm:$0xff]   ;;  %v5473_v38 = vld [vmem:[%s7865_s1 + $0x420] ss:$8 sps:$4 sm:$0xff]  }
  0xd1   :  { %4126 = vmatprep.subr.bf16.mxu0 %v5390_v39  ;;  %v5476_v39 = vld [vmem:[%s7865_s1 + $0xd20] ss:$8 sps:$4 sm:$0xff]  }
  0xd3   :  { %3758 = vmatpush1.bf16.msra.mxu1 %v5385_v40  ;;  %v5481_v40 = vld [vmem:[%s7865_s1 + $0x434] ss:$8 sps:$4 sm:$0xff]  }
  0xd4   :  { %4127 = vmatpush1.bf16.msra.mxu0 %v5388_v41  ;;  %3759 = vmatprep.subr.bf16.mxu1 %v5393_v42  ;;  %v5484_v41 = vld [vmem:[%s7865_s1 + $0xd34] ss:$8 sps:$4 sm:$0xff]   ;;  %v5479_v42 = vld [vmem:[%s7865_s1 + $0x430] ss:$8 sps:$4 sm:$0xff]  }
  0xd5   :  { %4128 = vmatprep.subr.bf16.mxu0 %v5396_v43  ;;  %v5482_v43 = vld [vmem:[%s7865_s1 + $0xd30] ss:$8 sps:$4 sm:$0xff]  }
  0xd7   :  { %3760 = vmatpush1.bf16.msra.mxu1 %v5391_v44  ;;  %v5487_v44 = vld [vmem:[%s7865_s1 + $0x444] ss:$8 sps:$4 sm:$0xff]  }
  0xd8   :  { %4129 = vmatpush1.bf16.msra.mxu0 %v5394_v45  ;;  %3761 = vmatprep.subr.bf16.mxu1 %v5399_v46  ;;  %v5490_v45 = vld [vmem:[%s7865_s1 + $0xd44] ss:$8 sps:$4 sm:$0xff]   ;;  %v5485_v46 = vld [vmem:[%s7865_s1 + $0x440] ss:$8 sps:$4 sm:$0xff]  }
  0xd9   :  { %4130 = vmatprep.subr.bf16.mxu0 %v5402_v47  ;;  %v5488_v47 = vld [vmem:[%s7865_s1 + $0xd40] ss:$8 sps:$4 sm:$0xff]  }
  0xdb   :  { %3762 = vmatpush1.bf16.msra.mxu1 %v5397_v48  ;;  %v5493_v48 = vld [vmem:[%s7865_s1 + $0x454] ss:$8 sps:$4 sm:$0xff]  }
  0xdc   :  { %4131 = vmatpush1.bf16.msra.mxu0 %v5400_v49  ;;  %3763 = vmatprep.subr.bf16.mxu1 %v5405_v50  ;;  %v5496_v49 = vld [vmem:[%s7865_s1 + $0xd54] ss:$8 sps:$4 sm:$0xff]   ;;  %v5491_v50 = vld [vmem:[%s7865_s1 + $0x450] ss:$8 sps:$4 sm:$0xff]  }
  0xdd   :  { %4132 = vmatprep.subr.bf16.mxu0 %v5408_v51  ;;  %v5494_v51 = vld [vmem:[%s7865_s1 + $0xd50] ss:$8 sps:$4 sm:$0xff]  }
  0xdf   :  { %3764 = vmatpush1.bf16.msra.mxu1 %v5403_v52  ;;  %v5499_v52 = vld [vmem:[%s7865_s1 + $0x464] ss:$8 sps:$4 sm:$0xff]  }
  0xe0   :  { %4133 = vmatpush1.bf16.msra.mxu0 %v5406_v53  ;;  %3765 = vmatprep.subr.bf16.mxu1 %v5411_v54  ;;  %v5502_v53 = vld [vmem:[%s7865_s1 + $0xd64] ss:$8 sps:$4 sm:$0xff]   ;;  %v5497_v54 = vld [vmem:[%s7865_s1 + $0x460] ss:$8 sps:$4 sm:$0xff]  }
  0xe1   :  { %4134 = vmatprep.subr.bf16.mxu0 %v5414_v55  ;;  %v5500_v55 = vld [vmem:[%s7865_s1 + $0xd60] ss:$8 sps:$4 sm:$0xff]  }
  0xe3   :  { %3766 = vmatpush1.bf16.msra.mxu1 %v5409_v56  ;;  %v5505_v56 = vld [vmem:[%s7865_s1 + $0x474] ss:$8 sps:$4 sm:$0xff]  }
  0xe4   :  { %4135 = vmatpush1.bf16.msra.mxu0 %v5412_v57  ;;  %3767 = vmatprep.subr.bf16.mxu1 %v5417_v58  ;;  %v5508_v57 = vld [vmem:[%s7865_s1 + $0xd74] ss:$8 sps:$4 sm:$0xff]   ;;  %v5503_v58 = vld [vmem:[%s7865_s1 + $0x470] ss:$8 sps:$4 sm:$0xff]  }
  0xe5   :  { %4136 = vmatprep.subr.bf16.mxu0 %v5420_v59  ;;  %v5506_v59 = vld [vmem:[%s7865_s1 + $0xd70] ss:$8 sps:$4 sm:$0xff]  }
  0xe7   :  { %3768 = vmatpush1.bf16.msra.mxu1 %v5415_v60  ;;  %v5511_v60 = vld [vmem:[%s7865_s1 + $0x484] ss:$8 sps:$4 sm:$0xff]  }
  0xe8   :  { %4137 = vmatpush1.bf16.msra.mxu0 %v5418_v61  ;;  %3769 = vmatprep.subr.bf16.mxu1 %v5423_v62  ;;  %v5514_v61 = vld [vmem:[%s7865_s1 + $0xd84] ss:$8 sps:$4 sm:$0xff]   ;;  %v5509_v62 = vld [vmem:[%s7865_s1 + $0x480] ss:$8 sps:$4 sm:$0xff]  }
  0xe9   :  { %4138 = vmatprep.subr.bf16.mxu0 %v5426_v63  ;;  %v5512_v63 = vld [vmem:[%s7865_s1 + $0xd80] ss:$8 sps:$4 sm:$0xff]  }
  0xeb   :  { %3770 = vmatpush1.bf16.msra.mxu1 %v5421_v0  ;;  %v5517_v0 = vld [vmem:[%s7865_s1 + $0x494] ss:$8 sps:$4 sm:$0xff]  }
  0xec   :  { %4139 = vmatpush1.bf16.msra.mxu0 %v5424_v1  ;;  %3771 = vmatprep.subr.bf16.mxu1 %v5429_v2  ;;  %v5520_v1 = vld [vmem:[%s7865_s1 + $0xd94] ss:$8 sps:$4 sm:$0xff]   ;;  %v5515_v2 = vld [vmem:[%s7865_s1 + $0x490] ss:$8 sps:$4 sm:$0xff]  }
  0xed   :  { %4140 = vmatprep.subr.bf16.mxu0 %v5432_v3  ;;  %v5518_v3 = vld [vmem:[%s7865_s1 + $0xd90] ss:$8 sps:$4 sm:$0xff]  }
  0xef   :  { %3772 = vmatpush1.bf16.msra.mxu1 %v5427_v4  ;;  %v5523_v4 = vld [vmem:[%s7865_s1 + $0x4a4] ss:$8 sps:$4 sm:$0xff]  }
  0xf0   :  { %4141 = vmatpush1.bf16.msra.mxu0 %v5430_v5  ;;  %3773 = vmatprep.subr.bf16.mxu1 %v5435_v6  ;;  %v5526_v5 = vld [vmem:[%s7865_s1 + $0xda4] ss:$8 sps:$4 sm:$0xff]   ;;  %v5521_v6 = vld [vmem:[%s7865_s1 + $0x4a0] ss:$8 sps:$4 sm:$0xff]  }
  0xf1   :  { %4142 = vmatprep.subr.bf16.mxu0 %v5438_v7  ;;  %v5524_v7 = vld [vmem:[%s7865_s1 + $0xda0] ss:$8 sps:$4 sm:$0xff]  }
  0xf3   :  { %3774 = vmatpush1.bf16.msra.mxu1 %v5433_v8  ;;  %v5529_v8 = vld [vmem:[%s7865_s1 + $0x4b4] ss:$8 sps:$4 sm:$0xff]  }
  0xf4   :  { %4143 = vmatpush1.bf16.msra.mxu0 %v5436_v9  ;;  %3775 = vmatprep.subr.bf16.mxu1 %v5441_v10  ;;  %v5532_v9 = vld [vmem:[%s7865_s1 + $0xdb4] ss:$8 sps:$4 sm:$0xff]   ;;  %v5527_v10 = vld [vmem:[%s7865_s1 + $0x4b0] ss:$8 sps:$4 sm:$0xff]  }
  0xf5   :  { %4144 = vmatprep.subr.bf16.mxu0 %v5444_v11  ;;  %v5530_v11 = vld [vmem:[%s7865_s1 + $0xdb0] ss:$8 sps:$4 sm:$0xff]  }
  0xf7   :  { %3776 = vmatpush1.bf16.msra.mxu1 %v5439_v12  ;;  %v5535_v12 = vld [vmem:[%s7865_s1 + $0x4c4] ss:$8 sps:$4 sm:$0xff]  }
  0xf8   :  { %4145 = vmatpush1.bf16.msra.mxu0 %v5442_v13  ;;  %3777 = vmatprep.subr.bf16.mxu1 %v5447_v14  ;;  %v5538_v13 = vld [vmem:[%s7865_s1 + $0xdc4] ss:$8 sps:$4 sm:$0xff]   ;;  %v5533_v14 = vld [vmem:[%s7865_s1 + $0x4c0] ss:$8 sps:$4 sm:$0xff]  }
  0xf9   :  { %4146 = vmatprep.subr.bf16.mxu0 %v5450_v15  ;;  %v5536_v15 = vld [vmem:[%s7865_s1 + $0xdc0] ss:$8 sps:$4 sm:$0xff]  }
  0xfb   :  { %3778 = vmatpush1.bf16.msra.mxu1 %v5445_v16  ;;  %v5541_v16 = vld [vmem:[%s7865_s1 + $0x4d4] ss:$8 sps:$4 sm:$0xff]  }
  0xfc   :  { %4147 = vmatpush1.bf16.msra.mxu0 %v5448_v17  ;;  %3779 = vmatprep.subr.bf16.mxu1 %v5453_v19  ;;  %v5544_v17 = vld [vmem:[%s7865_s1 + $0xdd4] ss:$8 sps:$4 sm:$0xff]   ;;  %v5539_v19 = vld [vmem:[%s7865_s1 + $0x4d0] ss:$8 sps:$4 sm:$0xff]  }
  0xfd   :  { %4148 = vmatprep.subr.bf16.mxu0 %v5456_v21  ;;  %v5542_v21 = vld [vmem:[%s7865_s1 + $0xdd0] ss:$8 sps:$4 sm:$0xff]  }
  0xff   :  { %3780 = vmatpush1.bf16.msra.mxu1 %v5451_v22  ;;  %v5547_v22 = vld [vmem:[%s7865_s1 + $0x4e4] ss:$8 sps:$4 sm:$0xff]  }
 0x100   :  { %4149 = vmatpush1.bf16.msra.mxu0 %v5454_v23  ;;  %3790 = vmatprep.subr.bf16.mxu1 %v5461_v26  ;;  %v5550_v23 = vld [vmem:[%s7865_s1 + $0xde4] ss:$8 sps:$4 sm:$0xff]   ;;  %v5545_v26 = vld [vmem:[%s7865_s1 + $0x4e0] ss:$8 sps:$4 sm:$0xff]  }
 0x101   :  { %4159 = vmatprep.subr.bf16.mxu0 %v5466_v18  ;;  %v5548_v18 = vld [vmem:[%s7865_s1 + $0xde0] ss:$8 sps:$4 sm:$0xff]  }
 0x102   :  { %3782 = vmatmul.mubr.bf16.vlgmr.msra.gmra.mrb[0].mxu1 %v4385_v27  ;;  %v5553_v27 = vld [vmem:[%s7865_s1 + $0x4f4] ss:$8 sps:$4 sm:$0xff]  }
 0x103   :  { %4151 = vmatmul.mubr.bf16.vlgmr.msra.gmra.mrb[0].mxu0 %v4403_v28  ;;  %3791 = vmatpush1.bf16.msra.mxu1 %v5459_v30  ;;  %v5556_v28 = vld [vmem:[%s7865_s1 + $0xdf4] ss:$8 sps:$4 sm:$0xff]   ;;  %v5551_v30 = vld [vmem:[%s7865_s1 + $0x4f0] ss:$8 sps:$4 sm:$0xff]  }
 0x104   :  { %4160 = vmatpush1.bf16.msra.mxu0 %v5464_v31  ;;  %3792 = vmatprep.subr.bf16.mxu1 %v5469_v24  ;;  %v5554_v31 = vld [vmem:[%s7865_s1 + $0xdf0] ss:$8 sps:$4 sm:$0xff]   ;;  %v5561_v24 = vld [vmem:[%s7865_s1 + $0x504] ss:$8 sps:$4 sm:$0xff]  }
 0x105   :  { %4161 = vmatprep.subr.bf16.mxu0 %v5472_v25  ;;  %3822 = vmatprep.mubr.bf16.mxu1 %v4388_v32  ;;  %v5566_v25 = vld [vmem:[%s7865_s1 + $0xe04] ss:$8 sps:$4 sm:$0xff]  }
 0x106   :  { %4191 = vmatprep.mubr.bf16.mxu0 %v4406_v33  ;;  %v7024_v32 = vld [vmem:[%s7866_s0 + $0x28] sm:$0xff]  ;;  %v7029_v33 = vld [vmem:[%s7866_s0 + $0x70] sm:$0xff] }
 0x107   :  { %3793 = vmatpush1.bf16.msra.mxu1 %v5467_v34  ;;  %v4387_v34 = vcombine.low %v6814_v20, %v6814_v20  ;;  %v5572_v20 = vld [vmem:[%s7865_s1 + $0xe14] ss:$8 sps:$4 sm:$0xff]  }
 0x108   :  { %4162 = vmatpush1.bf16.msra.mxu0 %v5470_v35  ;;  %3794 = vmatprep.subr.bf16.mxu1 %v5475_v36  ;;  %v4405_v35 = vcombine.low %v6823_v29, %v6823_v29  ;;  %v5559_v36 = vld [vmem:[%s7865_s1 + $0x500] ss:$8 sps:$4 sm:$0xff]   ;;  %v4390_v29 = vcombine.high %v7024_v32, %v7024_v32 }
 0x109   :  { %4163 = vmatprep.subr.bf16.mxu0 %v5478_v37  ;;  %v5564_v37 = vld [vmem:[%s7865_s1 + $0xe00] ss:$8 sps:$4 sm:$0xff]  }
 0x10b   :  { %3795 = vmatpush1.bf16.msra.mxu1 %v5473_v38  ;;  %v5569_v38 = vld [vmem:[%s7865_s1 + $0x514] ss:$8 sps:$4 sm:$0xff]  }
 0x10c   :  { %4164 = vmatpush1.bf16.msra.mxu0 %v5476_v39  ;;  %3796 = vmatprep.subr.bf16.mxu1 %v5481_v40  ;;  %v4408_v39 = vcombine.high %v7029_v33, %v7029_v33  ;;  %v5567_v40 = vld [vmem:[%s7865_s1 + $0x510] ss:$8 sps:$4 sm:$0xff]  }
 0x10d   :  { %4165 = vmatprep.subr.bf16.mxu0 %v5484_v41  ;;  %v5570_v41 = vld [vmem:[%s7865_s1 + $0xe10] ss:$8 sps:$4 sm:$0xff]  }
 0x10f   :  { %3797 = vmatpush1.bf16.msra.mxu1 %v5479_v42  ;;  %v5575_v42 = vld [vmem:[%s7865_s1 + $0x524] ss:$8 sps:$4 sm:$0xff]  }
 0x110   :  { %4166 = vmatpush1.bf16.msra.mxu0 %v5482_v43  ;;  %3798 = vmatprep.subr.bf16.mxu1 %v5487_v44  ;;  %v5578_v43 = vld [vmem:[%s7865_s1 + $0xe24] ss:$8 sps:$4 sm:$0xff]   ;;  %v5573_v44 = vld [vmem:[%s7865_s1 + $0x520] ss:$8 sps:$4 sm:$0xff]  }
 0x111   :  { %4167 = vmatprep.subr.bf16.mxu0 %v5490_v45  ;;  %v5576_v45 = vld [vmem:[%s7865_s1 + $0xe20] ss:$8 sps:$4 sm:$0xff]  }
 0x113   :  { %3799 = vmatpush1.bf16.msra.mxu1 %v5485_v46  ;;  %v5581_v46 = vld [vmem:[%s7865_s1 + $0x534] ss:$8 sps:$4 sm:$0xff]  }
 0x114   :  { %4168 = vmatpush1.bf16.msra.mxu0 %v5488_v47  ;;  %3800 = vmatprep.subr.bf16.mxu1 %v5493_v48  ;;  %v5584_v47 = vld [vmem:[%s7865_s1 + $0xe34] ss:$8 sps:$4 sm:$0xff]   ;;  %v5579_v48 = vld [vmem:[%s7865_s1 + $0x530] ss:$8 sps:$4 sm:$0xff]  }
 0x115   :  { %4169 = vmatprep.subr.bf16.mxu0 %v5496_v49  ;;  %v5582_v49 = vld [vmem:[%s7865_s1 + $0xe30] ss:$8 sps:$4 sm:$0xff]  }
 0x117   :  { %3801 = vmatpush1.bf16.msra.mxu1 %v5491_v50  ;;  %v5587_v50 = vld [vmem:[%s7865_s1 + $0x544] ss:$8 sps:$4 sm:$0xff]  }
 0x118   :  { %4170 = vmatpush1.bf16.msra.mxu0 %v5494_v51  ;;  %3802 = vmatprep.subr.bf16.mxu1 %v5499_v52  ;;  %v5590_v51 = vld [vmem:[%s7865_s1 + $0xe44] ss:$8 sps:$4 sm:$0xff]   ;;  %v5585_v52 = vld [vmem:[%s7865_s1 + $0x540] ss:$8 sps:$4 sm:$0xff]  }
 0x119   :  { %4171 = vmatprep.subr.bf16.mxu0 %v5502_v53  ;;  %v5588_v53 = vld [vmem:[%s7865_s1 + $0xe40] ss:$8 sps:$4 sm:$0xff]  }
 0x11b   :  { %3803 = vmatpush1.bf16.msra.mxu1 %v5497_v54  ;;  %v5593_v54 = vld [vmem:[%s7865_s1 + $0x554] ss:$8 sps:$4 sm:$0xff]  }
 0x11c   :  { %4172 = vmatpush1.bf16.msra.mxu0 %v5500_v55  ;;  %3804 = vmatprep.subr.bf16.mxu1 %v5505_v56  ;;  %v5596_v55 = vld [vmem:[%s7865_s1 + $0xe54] ss:$8 sps:$4 sm:$0xff]   ;;  %v5591_v56 = vld [vmem:[%s7865_s1 + $0x550] ss:$8 sps:$4 sm:$0xff]  }
 0x11d   :  { %4173 = vmatprep.subr.bf16.mxu0 %v5508_v57  ;;  %v5594_v57 = vld [vmem:[%s7865_s1 + $0xe50] ss:$8 sps:$4 sm:$0xff]  }
 0x11f   :  { %3805 = vmatpush1.bf16.msra.mxu1 %v5503_v58  ;;  %v5599_v58 = vld [vmem:[%s7865_s1 + $0x564] ss:$8 sps:$4 sm:$0xff]  }
 0x120   :  { %4174 = vmatpush1.bf16.msra.mxu0 %v5506_v59  ;;  %3806 = vmatprep.subr.bf16.mxu1 %v5511_v60  ;;  %v5602_v59 = vld [vmem:[%s7865_s1 + $0xe64] ss:$8 sps:$4 sm:$0xff]   ;;  %v5597_v60 = vld [vmem:[%s7865_s1 + $0x560] ss:$8 sps:$4 sm:$0xff]  }
 0x121   :  { %4175 = vmatprep.subr.bf16.mxu0 %v5514_v61  ;;  %v5600_v61 = vld [vmem:[%s7865_s1 + $0xe60] ss:$8 sps:$4 sm:$0xff]  }
 0x123   :  { %3807 = vmatpush1.bf16.msra.mxu1 %v5509_v62  ;;  %v5605_v62 = vld [vmem:[%s7865_s1 + $0x574] ss:$8 sps:$4 sm:$0xff]  }
 0x124   :  { %4176 = vmatpush1.bf16.msra.mxu0 %v5512_v63  ;;  %3808 = vmatprep.subr.bf16.mxu1 %v5517_v0  ;;  %v5608_v63 = vld [vmem:[%s7865_s1 + $0xe74] ss:$8 sps:$4 sm:$0xff]   ;;  %v5603_v0 = vld [vmem:[%s7865_s1 + $0x570] ss:$8 sps:$4 sm:$0xff]  }
 0x125   :  { %4177 = vmatprep.subr.bf16.mxu0 %v5520_v1  ;;  %v5606_v1 = vld [vmem:[%s7865_s1 + $0xe70] ss:$8 sps:$4 sm:$0xff]  }
 0x127   :  { %3809 = vmatpush1.bf16.msra.mxu1 %v5515_v2  ;;  %v5611_v2 = vld [vmem:[%s7865_s1 + $0x584] ss:$8 sps:$4 sm:$0xff]  }
 0x128   :  { %4178 = vmatpush1.bf16.msra.mxu0 %v5518_v3  ;;  %3810 = vmatprep.subr.bf16.mxu1 %v5523_v4  ;;  %v5614_v3 = vld [vmem:[%s7865_s1 + $0xe84] ss:$8 sps:$4 sm:$0xff]   ;;  %v5609_v4 = vld [vmem:[%s7865_s1 + $0x580] ss:$8 sps:$4 sm:$0xff]  }
 0x129   :  { %4179 = vmatprep.subr.bf16.mxu0 %v5526_v5  ;;  %v5612_v5 = vld [vmem:[%s7865_s1 + $0xe80] ss:$8 sps:$4 sm:$0xff]  }
 0x12b   :  { %3811 = vmatpush1.bf16.msra.mxu1 %v5521_v6  ;;  %v5617_v6 = vld [vmem:[%s7865_s1 + $0x594] ss:$8 sps:$4 sm:$0xff]  }
 0x12c   :  { %4180 = vmatpush1.bf16.msra.mxu0 %v5524_v7  ;;  %3812 = vmatprep.subr.bf16.mxu1 %v5529_v8  ;;  %v5620_v7 = vld [vmem:[%s7865_s1 + $0xe94] ss:$8 sps:$4 sm:$0xff]   ;;  %v5615_v8 = vld [vmem:[%s7865_s1 + $0x590] ss:$8 sps:$4 sm:$0xff]  }
 0x12d   :  { %4181 = vmatprep.subr.bf16.mxu0 %v5532_v9  ;;  %v5618_v9 = vld [vmem:[%s7865_s1 + $0xe90] ss:$8 sps:$4 sm:$0xff]  }
 0x12f   :  { %3813 = vmatpush1.bf16.msra.mxu1 %v5527_v10  ;;  %v5623_v10 = vld [vmem:[%s7865_s1 + $0x5a4] ss:$8 sps:$4 sm:$0xff]  }
 0x130   :  { %4182 = vmatpush1.bf16.msra.mxu0 %v5530_v11  ;;  %3814 = vmatprep.subr.bf16.mxu1 %v5535_v12  ;;  %v5626_v11 = vld [vmem:[%s7865_s1 + $0xea4] ss:$8 sps:$4 sm:$0xff]   ;;  %v5621_v12 = vld [vmem:[%s7865_s1 + $0x5a0] ss:$8 sps:$4 sm:$0xff]  }
 0x131   :  { %4183 = vmatprep.subr.bf16.mxu0 %v5538_v13  ;;  %v5624_v13 = vld [vmem:[%s7865_s1 + $0xea0] ss:$8 sps:$4 sm:$0xff]  }
 0x133   :  { %3815 = vmatpush1.bf16.msra.mxu1 %v5533_v14  ;;  %v5629_v14 = vld [vmem:[%s7865_s1 + $0x5b4] ss:$8 sps:$4 sm:$0xff]  }
 0x134   :  { %4184 = vmatpush1.bf16.msra.mxu0 %v5536_v15  ;;  %3816 = vmatprep.subr.bf16.mxu1 %v5541_v16  ;;  %v5632_v15 = vld [vmem:[%s7865_s1 + $0xeb4] ss:$8 sps:$4 sm:$0xff]   ;;  %v5627_v16 = vld [vmem:[%s7865_s1 + $0x5b0] ss:$8 sps:$4 sm:$0xff]  }
 0x135   :  { %4185 = vmatprep.subr.bf16.mxu0 %v5544_v17  ;;  %v5630_v17 = vld [vmem:[%s7865_s1 + $0xeb0] ss:$8 sps:$4 sm:$0xff]  }
 0x137   :  { %3817 = vmatpush1.bf16.msra.mxu1 %v5539_v19  ;;  %v5635_v19 = vld [vmem:[%s7865_s1 + $0x5c4] ss:$8 sps:$4 sm:$0xff]  }
 0x138   :  { %4186 = vmatpush1.bf16.msra.mxu0 %v5542_v21  ;;  %3818 = vmatprep.subr.bf16.mxu1 %v5547_v22  ;;  %v5638_v21 = vld [vmem:[%s7865_s1 + $0xec4] ss:$8 sps:$4 sm:$0xff]   ;;  %v5633_v22 = vld [vmem:[%s7865_s1 + $0x5c0] ss:$8 sps:$4 sm:$0xff]  }
 0x139   :  { %4187 = vmatprep.subr.bf16.mxu0 %v5550_v23  ;;  %v5636_v23 = vld [vmem:[%s7865_s1 + $0xec0] ss:$8 sps:$4 sm:$0xff]  }
 0x13b   :  { %3819 = vmatpush1.bf16.msra.mxu1 %v5545_v26  ;;  %v5641_v26 = vld [vmem:[%s7865_s1 + $0x5d4] ss:$8 sps:$4 sm:$0xff]  }
 0x13c   :  { %4188 = vmatpush1.bf16.msra.mxu0 %v5548_v18  ;;  %3820 = vmatprep.subr.bf16.mxu1 %v5553_v27  ;;  %v5644_v18 = vld [vmem:[%s7865_s1 + $0xed4] ss:$8 sps:$4 sm:$0xff]   ;;  %v5639_v27 = vld [vmem:[%s7865_s1 + $0x5d0] ss:$8 sps:$4 sm:$0xff]  }
 0x13d   :  { %4189 = vmatprep.subr.bf16.mxu0 %v5556_v28  ;;  %v5642_v28 = vld [vmem:[%s7865_s1 + $0xed0] ss:$8 sps:$4 sm:$0xff]  }
 0x13f   :  { %3821 = vmatpush1.bf16.msra.mxu1 %v5551_v30  ;;  %v5647_v30 = vld [vmem:[%s7865_s1 + $0x5e4] ss:$8 sps:$4 sm:$0xff]  }
 0x140   :  { %4190 = vmatpush1.bf16.msra.mxu0 %v5554_v31  ;;  %3831 = vmatprep.subr.bf16.mxu1 %v5561_v24  ;;  %v5650_v31 = vld [vmem:[%s7865_s1 + $0xee4] ss:$8 sps:$4 sm:$0xff]   ;;  %v5645_v24 = vld [vmem:[%s7865_s1 + $0x5e0] ss:$8 sps:$4 sm:$0xff]  }
 0x141   :  { %4200 = vmatprep.subr.bf16.mxu0 %v5566_v25  ;;  %v5648_v25 = vld [vmem:[%s7865_s1 + $0xee0] ss:$8 sps:$4 sm:$0xff]  }
 0x142   :  { %3823 = vmatmul.mubr.bf16.vlgmr.msra.gmra.mrb[0].mxu1 %v4387_v34  ;;  %v5653_v34 = vld [vmem:[%s7865_s1 + $0x5f4] ss:$8 sps:$4 sm:$0xff]  }
 0x143   :  { %4192 = vmatmul.mubr.bf16.vlgmr.msra.gmra.mrb[0].mxu0 %v4405_v35  ;;  %3832 = vmatpush1.bf16.msra.mxu1 %v5559_v36  ;;  %v5656_v35 = vld [vmem:[%s7865_s1 + $0xef4] ss:$8 sps:$4 sm:$0xff]   ;;  %v5651_v36 = vld [vmem:[%s7865_s1 + $0x5f0] ss:$8 sps:$4 sm:$0xff]  }
 0x144   :  { %4201 = vmatpush1.bf16.msra.mxu0 %v5564_v37  ;;  %3833 = vmatprep.subr.bf16.mxu1 %v5569_v38  ;;  %v5654_v37 = vld [vmem:[%s7865_s1 + $0xef0] ss:$8 sps:$4 sm:$0xff]   ;;  %v5661_v38 = vld [vmem:[%s7865_s1 + $0x604] ss:$8 sps:$4 sm:$0xff]  }
 0x145   :  { %4202 = vmatprep.subr.bf16.mxu0 %v5572_v20  ;;  %3863 = vmatprep.mubr.bf16.mxu1 %v4390_v29  ;;  %v5666_v20 = vld [vmem:[%s7865_s1 + $0xf04] ss:$8 sps:$4 sm:$0xff]   ;;  %v4389_v29 = vcombine.low %v7024_v32, %v7024_v32  ;;  %v5664_v32 = vld [vmem:[%s7865_s1 + $0xf00] ss:$8 sps:$4 sm:$0xff]  }
 0x146   :  { %4232 = vmatprep.mubr.bf16.mxu0 %v4408_v39  ;;  %v4407_v39 = vcombine.low %v7029_v33, %v7029_v33  ;;  %v5669_v33 = vld [vmem:[%s7865_s1 + $0x614] ss:$8 sps:$4 sm:$0xff]  }
 0x147   :  { %3834 = vmatpush1.bf16.msra.mxu1 %v5567_v40  ;;  %v7238_v40 = vld [vmem:[%s7866_s0 + $0x30] sm:$0xff] }
 0x148   :  { %4203 = vmatpush1.bf16.msra.mxu0 %v5570_v41  ;;  %3835 = vmatprep.subr.bf16.mxu1 %v5575_v42  ;;  %v7243_v41 = vld [vmem:[%s7866_s0 + $0x78] sm:$0xff]  ;;  %v5659_v42 = vld [vmem:[%s7865_s1 + $0x600] ss:$8 sps:$4 sm:$0xff]  }
 0x149   :  { %4204 = vmatprep.subr.bf16.mxu0 %v5578_v43  ;;  %v5672_v43 = vld [vmem:[%s7865_s1 + $0xf14] ss:$8 sps:$4 sm:$0xff]  }
 0x14b   :  { %3836 = vmatpush1.bf16.msra.mxu1 %v5573_v44  ;;  %v4392_v44 = vcombine.high %v7238_v40, %v7238_v40 }
 0x14c   :  { %4205 = vmatpush1.bf16.msra.mxu0 %v5576_v45  ;;  %3837 = vmatprep.subr.bf16.mxu1 %v5581_v46  ;;  %v4410_v45 = vcombine.high %v7243_v41, %v7243_v41  ;;  %v5667_v46 = vld [vmem:[%s7865_s1 + $0x610] ss:$8 sps:$4 sm:$0xff]  }
 0x14d   :  { %4206 = vmatprep.subr.bf16.mxu0 %v5584_v47  ;;  %v5670_v47 = vld [vmem:[%s7865_s1 + $0xf10] ss:$8 sps:$4 sm:$0xff]  }
 0x14f   :  { %3838 = vmatpush1.bf16.msra.mxu1 %v5579_v48  ;;  %v5675_v48 = vld [vmem:[%s7865_s1 + $0x624] ss:$8 sps:$4 sm:$0xff]  }
 0x150   :  { %4207 = vmatpush1.bf16.msra.mxu0 %v5582_v49  ;;  %3839 = vmatprep.subr.bf16.mxu1 %v5587_v50  ;;  %v5678_v49 = vld [vmem:[%s7865_s1 + $0xf24] ss:$8 sps:$4 sm:$0xff]   ;;  %v5673_v50 = vld [vmem:[%s7865_s1 + $0x620] ss:$8 sps:$4 sm:$0xff]  }
 0x151   :  { %4208 = vmatprep.subr.bf16.mxu0 %v5590_v51  ;;  %v5676_v51 = vld [vmem:[%s7865_s1 + $0xf20] ss:$8 sps:$4 sm:$0xff]  }
 0x153   :  { %3840 = vmatpush1.bf16.msra.mxu1 %v5585_v52  ;;  %v5681_v52 = vld [vmem:[%s7865_s1 + $0x634] ss:$8 sps:$4 sm:$0xff]  }
 0x154   :  { %4209 = vmatpush1.bf16.msra.mxu0 %v5588_v53  ;;  %3841 = vmatprep.subr.bf16.mxu1 %v5593_v54  ;;  %v5684_v53 = vld [vmem:[%s7865_s1 + $0xf34] ss:$8 sps:$4 sm:$0xff]   ;;  %v5679_v54 = vld [vmem:[%s7865_s1 + $0x630] ss:$8 sps:$4 sm:$0xff]  }
 0x155   :  { %4210 = vmatprep.subr.bf16.mxu0 %v5596_v55  ;;  %v5682_v55 = vld [vmem:[%s7865_s1 + $0xf30] ss:$8 sps:$4 sm:$0xff]  }
 0x157   :  { %3842 = vmatpush1.bf16.msra.mxu1 %v5591_v56  ;;  %v5687_v56 = vld [vmem:[%s7865_s1 + $0x644] ss:$8 sps:$4 sm:$0xff]  }
 0x158   :  { %4211 = vmatpush1.bf16.msra.mxu0 %v5594_v57  ;;  %3843 = vmatprep.subr.bf16.mxu1 %v5599_v58  ;;  %v5690_v57 = vld [vmem:[%s7865_s1 + $0xf44] ss:$8 sps:$4 sm:$0xff]   ;;  %v5685_v58 = vld [vmem:[%s7865_s1 + $0x640] ss:$8 sps:$4 sm:$0xff]  }
 0x159   :  { %4212 = vmatprep.subr.bf16.mxu0 %v5602_v59  ;;  %v5688_v59 = vld [vmem:[%s7865_s1 + $0xf40] ss:$8 sps:$4 sm:$0xff]  }
 0x15b   :  { %3844 = vmatpush1.bf16.msra.mxu1 %v5597_v60  ;;  %v5693_v60 = vld [vmem:[%s7865_s1 + $0x654] ss:$8 sps:$4 sm:$0xff]  }
 0x15c   :  { %4213 = vmatpush1.bf16.msra.mxu0 %v5600_v61  ;;  %3845 = vmatprep.subr.bf16.mxu1 %v5605_v62  ;;  %v5696_v61 = vld [vmem:[%s7865_s1 + $0xf54] ss:$8 sps:$4 sm:$0xff]   ;;  %v5691_v62 = vld [vmem:[%s7865_s1 + $0x650] ss:$8 sps:$4 sm:$0xff]  }
 0x15d   :  { %4214 = vmatprep.subr.bf16.mxu0 %v5608_v63  ;;  %v5694_v63 = vld [vmem:[%s7865_s1 + $0xf50] ss:$8 sps:$4 sm:$0xff]  }
 0x15f   :  { %3846 = vmatpush1.bf16.msra.mxu1 %v5603_v0  ;;  %v5699_v0 = vld [vmem:[%s7865_s1 + $0x664] ss:$8 sps:$4 sm:$0xff]  }
 0x160   :  { %4215 = vmatpush1.bf16.msra.mxu0 %v5606_v1  ;;  %3847 = vmatprep.subr.bf16.mxu1 %v5611_v2  ;;  %v5702_v1 = vld [vmem:[%s7865_s1 + $0xf64] ss:$8 sps:$4 sm:$0xff]   ;;  %v5697_v2 = vld [vmem:[%s7865_s1 + $0x660] ss:$8 sps:$4 sm:$0xff]  }
 0x161   :  { %4216 = vmatprep.subr.bf16.mxu0 %v5614_v3  ;;  %v5700_v3 = vld [vmem:[%s7865_s1 + $0xf60] ss:$8 sps:$4 sm:$0xff]  }
 0x163   :  { %3848 = vmatpush1.bf16.msra.mxu1 %v5609_v4  ;;  %v5705_v4 = vld [vmem:[%s7865_s1 + $0x674] ss:$8 sps:$4 sm:$0xff]  }
 0x164   :  { %4217 = vmatpush1.bf16.msra.mxu0 %v5612_v5  ;;  %3849 = vmatprep.subr.bf16.mxu1 %v5617_v6  ;;  %v5708_v5 = vld [vmem:[%s7865_s1 + $0xf74] ss:$8 sps:$4 sm:$0xff]   ;;  %v5703_v6 = vld [vmem:[%s7865_s1 + $0x670] ss:$8 sps:$4 sm:$0xff]  }
 0x165   :  { %4218 = vmatprep.subr.bf16.mxu0 %v5620_v7  ;;  %v5706_v7 = vld [vmem:[%s7865_s1 + $0xf70] ss:$8 sps:$4 sm:$0xff]  }
 0x167   :  { %3850 = vmatpush1.bf16.msra.mxu1 %v5615_v8  ;;  %v5711_v8 = vld [vmem:[%s7865_s1 + $0x684] ss:$8 sps:$4 sm:$0xff]  }
 0x168   :  { %4219 = vmatpush1.bf16.msra.mxu0 %v5618_v9  ;;  %3851 = vmatprep.subr.bf16.mxu1 %v5623_v10  ;;  %v5714_v9 = vld [vmem:[%s7865_s1 + $0xf84] ss:$8 sps:$4 sm:$0xff]   ;;  %v5709_v10 = vld [vmem:[%s7865_s1 + $0x680] ss:$8 sps:$4 sm:$0xff]  }
 0x169   :  { %4220 = vmatprep.subr.bf16.mxu0 %v5626_v11  ;;  %v5712_v11 = vld [vmem:[%s7865_s1 + $0xf80] ss:$8 sps:$4 sm:$0xff]  }
 0x16b   :  { %3852 = vmatpush1.bf16.msra.mxu1 %v5621_v12  ;;  %v5717_v12 = vld [vmem:[%s7865_s1 + $0x694] ss:$8 sps:$4 sm:$0xff]  }
 0x16c   :  { %4221 = vmatpush1.bf16.msra.mxu0 %v5624_v13  ;;  %3853 = vmatprep.subr.bf16.mxu1 %v5629_v14  ;;  %v5720_v13 = vld [vmem:[%s7865_s1 + $0xf94] ss:$8 sps:$4 sm:$0xff]   ;;  %v5715_v14 = vld [vmem:[%s7865_s1 + $0x690] ss:$8 sps:$4 sm:$0xff]  }
 0x16d   :  { %4222 = vmatprep.subr.bf16.mxu0 %v5632_v15  ;;  %v5718_v15 = vld [vmem:[%s7865_s1 + $0xf90] ss:$8 sps:$4 sm:$0xff]  }
 0x16f   :  { %3854 = vmatpush1.bf16.msra.mxu1 %v5627_v16  ;;  %v5723_v16 = vld [vmem:[%s7865_s1 + $0x6a4] ss:$8 sps:$4 sm:$0xff]  }
 0x170   :  { %4223 = vmatpush1.bf16.msra.mxu0 %v5630_v17  ;;  %3855 = vmatprep.subr.bf16.mxu1 %v5635_v19  ;;  %v5726_v17 = vld [vmem:[%s7865_s1 + $0xfa4] ss:$8 sps:$4 sm:$0xff]   ;;  %v5721_v19 = vld [vmem:[%s7865_s1 + $0x6a0] ss:$8 sps:$4 sm:$0xff]  }
 0x171   :  { %4224 = vmatprep.subr.bf16.mxu0 %v5638_v21  ;;  %v5724_v21 = vld [vmem:[%s7865_s1 + $0xfa0] ss:$8 sps:$4 sm:$0xff]  }
 0x173   :  { %3856 = vmatpush1.bf16.msra.mxu1 %v5633_v22  ;;  %v5729_v22 = vld [vmem:[%s7865_s1 + $0x6b4] ss:$8 sps:$4 sm:$0xff]  }
 0x174   :  { %4225 = vmatpush1.bf16.msra.mxu0 %v5636_v23  ;;  %3857 = vmatprep.subr.bf16.mxu1 %v5641_v26  ;;  %v5732_v23 = vld [vmem:[%s7865_s1 + $0xfb4] ss:$8 sps:$4 sm:$0xff]   ;;  %v5727_v26 = vld [vmem:[%s7865_s1 + $0x6b0] ss:$8 sps:$4 sm:$0xff]  }
 0x175   :  { %4226 = vmatprep.subr.bf16.mxu0 %v5644_v18  ;;  %v5730_v18 = vld [vmem:[%s7865_s1 + $0xfb0] ss:$8 sps:$4 sm:$0xff]  }
 0x177   :  { %3858 = vmatpush1.bf16.msra.mxu1 %v5639_v27  ;;  %v5735_v27 = vld [vmem:[%s7865_s1 + $0x6c4] ss:$8 sps:$4 sm:$0xff]  }
 0x178   :  { %4227 = vmatpush1.bf16.msra.mxu0 %v5642_v28  ;;  %3859 = vmatprep.subr.bf16.mxu1 %v5647_v30  ;;  %v5738_v28 = vld [vmem:[%s7865_s1 + $0xfc4] ss:$8 sps:$4 sm:$0xff]   ;;  %v5733_v30 = vld [vmem:[%s7865_s1 + $0x6c0] ss:$8 sps:$4 sm:$0xff]  }
 0x179   :  { %4228 = vmatprep.subr.bf16.mxu0 %v5650_v31  ;;  %v5736_v31 = vld [vmem:[%s7865_s1 + $0xfc0] ss:$8 sps:$4 sm:$0xff]  }
 0x17b   :  { %3860 = vmatpush1.bf16.msra.mxu1 %v5645_v24  ;;  %v5741_v24 = vld [vmem:[%s7865_s1 + $0x6d4] ss:$8 sps:$4 sm:$0xff]  }
 0x17c   :  { %4229 = vmatpush1.bf16.msra.mxu0 %v5648_v25  ;;  %3861 = vmatprep.subr.bf16.mxu1 %v5653_v34  ;;  %v5744_v25 = vld [vmem:[%s7865_s1 + $0xfd4] ss:$8 sps:$4 sm:$0xff]   ;;  %v5739_v34 = vld [vmem:[%s7865_s1 + $0x6d0] ss:$8 sps:$4 sm:$0xff]  }
 0x17d   :  { %4230 = vmatprep.subr.bf16.mxu0 %v5656_v35  ;;  %v5742_v35 = vld [vmem:[%s7865_s1 + $0xfd0] ss:$8 sps:$4 sm:$0xff]  }
 0x17f   :  { %3862 = vmatpush1.bf16.msra.mxu1 %v5651_v36  ;;  %v5747_v36 = vld [vmem:[%s7865_s1 + $0x6e4] ss:$8 sps:$4 sm:$0xff]  }
 0x180   :  { %4231 = vmatpush1.bf16.msra.mxu0 %v5654_v37  ;;  %3872 = vmatprep.subr.bf16.mxu1 %v5661_v38  ;;  %v5750_v37 = vld [vmem:[%s7865_s1 + $0xfe4] ss:$8 sps:$4 sm:$0xff]   ;;  %v5745_v38 = vld [vmem:[%s7865_s1 + $0x6e0] ss:$8 sps:$4 sm:$0xff]  }
 0x181   :  { %4241 = vmatprep.subr.bf16.mxu0 %v5666_v20  ;;  %v5748_v20 = vld [vmem:[%s7865_s1 + $0xfe0] ss:$8 sps:$4 sm:$0xff]  }
 0x182   :  { %3864 = vmatmul.mubr.bf16.vlgmr.msra.gmra.mrb[0].mxu1 %v4389_v29  ;;  %v5753_v29 = vld [vmem:[%s7865_s1 + $0x6f4] ss:$8 sps:$4 sm:$0xff]  }
 0x183   :  { %4233 = vmatmul.mubr.bf16.vlgmr.msra.gmra.mrb[0].mxu0 %v4407_v39  ;;  %3873 = vmatpush1.bf16.msra.mxu1 %v5659_v42  ;;  %v5756_v39 = vld [vmem:[%s7865_s1 + $0xff4] ss:$8 sps:$4 sm:$0xff]   ;;  %v5751_v42 = vld [vmem:[%s7865_s1 + $0x6f0] ss:$8 sps:$4 sm:$0xff]  }
 0x184   :  { %4242 = vmatpush1.bf16.msra.mxu0 %v5664_v32  ;;  %3874 = vmatprep.subr.bf16.mxu1 %v5669_v33  ;;  %v5754_v32 = vld [vmem:[%s7865_s1 + $0xff0] ss:$8 sps:$4 sm:$0xff]   ;;  %v5761_v33 = vld [vmem:[%s7865_s1 + $0x704] ss:$8 sps:$4 sm:$0xff]  }
 0x185   :  { %4243 = vmatprep.subr.bf16.mxu0 %v5672_v43  ;;  %3904 = vmatprep.mubr.bf16.mxu1 %v4392_v44  ;;  %v5766_v43 = vld [vmem:[%s7865_s1 + $0x1004] ss:$8 sps:$4 sm:$0xff]   ;;  %v4391_v44 = vcombine.low %v7238_v40, %v7238_v40  ;;  %v5764_v40 = vld [vmem:[%s7865_s1 + $0x1000] ss:$8 sps:$4 sm:$0xff]  }
 0x186   :  { %4273 = vmatprep.mubr.bf16.mxu0 %v4410_v45  ;;  %v4409_v45 = vcombine.low %v7243_v41, %v7243_v41  ;;  %v5769_v41 = vld [vmem:[%s7865_s1 + $0x714] ss:$8 sps:$4 sm:$0xff]  }
 0x187   :  { %3875 = vmatpush1.bf16.msra.mxu1 %v5667_v46  ;;  %v7448_v46 = vld [vmem:[%s7866_s0 + $0x38] sm:$0xff] }
 0x188   :  { %4244 = vmatpush1.bf16.msra.mxu0 %v5670_v47  ;;  %3876 = vmatprep.subr.bf16.mxu1 %v5675_v48  ;;  %v7453_v47 = vld [vmem:[%s7866_s0 + $0x80] sm:$0xff] }
 0x189   :  { %4245 = vmatprep.subr.bf16.mxu0 %v5678_v49  ;;  %v5759_v48 = vld [vmem:[%s7865_s1 + $0x700] ss:$8 sps:$4 sm:$0xff]   ;;  %v5772_v49 = vld [vmem:[%s7865_s1 + $0x1014] ss:$8 sps:$4 sm:$0xff]  }
 0x18b   :  { %3877 = vmatpush1.bf16.msra.mxu1 %v5673_v50  ;;  %v4394_v50 = vcombine.high %v7448_v46, %v7448_v46 }
 0x18c   :  { %4246 = vmatpush1.bf16.msra.mxu0 %v5676_v51  ;;  %3878 = vmatprep.subr.bf16.mxu1 %v5681_v52  ;;  %v4412_v51 = vcombine.high %v7453_v47, %v7453_v47  ;;  %v5767_v52 = vld [vmem:[%s7865_s1 + $0x710] ss:$8 sps:$4 sm:$0xff]  }
 0x18d   :  { %4247 = vmatprep.subr.bf16.mxu0 %v5684_v53  ;;  %v5770_v53 = vld [vmem:[%s7865_s1 + $0x1010] ss:$8 sps:$4 sm:$0xff]  }
 0x18f   :  { %3879 = vmatpush1.bf16.msra.mxu1 %v5679_v54  ;;  %v5775_v54 = vld [vmem:[%s7865_s1 + $0x724] ss:$8 sps:$4 sm:$0xff]  }
 0x190   :  { %4248 = vmatpush1.bf16.msra.mxu0 %v5682_v55  ;;  %3880 = vmatprep.subr.bf16.mxu1 %v5687_v56  ;;  %v5778_v55 = vld [vmem:[%s7865_s1 + $0x1024] ss:$8 sps:$4 sm:$0xff]   ;;  %v5773_v56 = vld [vmem:[%s7865_s1 + $0x720] ss:$8 sps:$4 sm:$0xff]  }
 0x191   :  { %4249 = vmatprep.subr.bf16.mxu0 %v5690_v57  ;;  %v5776_v57 = vld [vmem:[%s7865_s1 + $0x1020] ss:$8 sps:$4 sm:$0xff]  }
 0x193   :  { %3881 = vmatpush1.bf16.msra.mxu1 %v5685_v58  ;;  %v5781_v58 = vld [vmem:[%s7865_s1 + $0x734] ss:$8 sps:$4 sm:$0xff]  }
 0x194   :  { %4250 = vmatpush1.bf16.msra.mxu0 %v5688_v59  ;;  %3882 = vmatprep.subr.bf16.mxu1 %v5693_v60  ;;  %v5784_v59 = vld [vmem:[%s7865_s1 + $0x1034] ss:$8 sps:$4 sm:$0xff]   ;;  %v5779_v60 = vld [vmem:[%s7865_s1 + $0x730] ss:$8 sps:$4 sm:$0xff]  }
 0x195   :  { %4251 = vmatprep.subr.bf16.mxu0 %v5696_v61  ;;  %v5782_v61 = vld [vmem:[%s7865_s1 + $0x1030] ss:$8 sps:$4 sm:$0xff]  }
 0x197   :  { %3883 = vmatpush1.bf16.msra.mxu1 %v5691_v62  ;;  %v5787_v62 = vld [vmem:[%s7865_s1 + $0x744] ss:$8 sps:$4 sm:$0xff]  }
 0x198   :  { %4252 = vmatpush1.bf16.msra.mxu0 %v5694_v63  ;;  %3884 = vmatprep.subr.bf16.mxu1 %v5699_v0  ;;  %v5790_v63 = vld [vmem:[%s7865_s1 + $0x1044] ss:$8 sps:$4 sm:$0xff]   ;;  %v5785_v0 = vld [vmem:[%s7865_s1 + $0x740] ss:$8 sps:$4 sm:$0xff]  }
 0x199   :  { %4253 = vmatprep.subr.bf16.mxu0 %v5702_v1  ;;  %v5788_v1 = vld [vmem:[%s7865_s1 + $0x1040] ss:$8 sps:$4 sm:$0xff]  }
 0x19b   :  { %3885 = vmatpush1.bf16.msra.mxu1 %v5697_v2  ;;  %v5793_v2 = vld [vmem:[%s7865_s1 + $0x754] ss:$8 sps:$4 sm:$0xff]  }
 0x19c   :  { %4254 = vmatpush1.bf16.msra.mxu0 %v5700_v3  ;;  %3886 = vmatprep.subr.bf16.mxu1 %v5705_v4  ;;  %v5796_v3 = vld [vmem:[%s7865_s1 + $0x1054] ss:$8 sps:$4 sm:$0xff]   ;;  %v5791_v4 = vld [vmem:[%s7865_s1 + $0x750] ss:$8 sps:$4 sm:$0xff]  }
 0x19d   :  { %4255 = vmatprep.subr.bf16.mxu0 %v5708_v5  ;;  %v5794_v5 = vld [vmem:[%s7865_s1 + $0x1050] ss:$8 sps:$4 sm:$0xff]  }
 0x19f   :  { %3887 = vmatpush1.bf16.msra.mxu1 %v5703_v6  ;;  %v5799_v6 = vld [vmem:[%s7865_s1 + $0x764] ss:$8 sps:$4 sm:$0xff]  }
 0x1a0   :  { %4256 = vmatpush1.bf16.msra.mxu0 %v5706_v7  ;;  %3888 = vmatprep.subr.bf16.mxu1 %v5711_v8  ;;  %v5802_v7 = vld [vmem:[%s7865_s1 + $0x1064] ss:$8 sps:$4 sm:$0xff]   ;;  %v5797_v8 = vld [vmem:[%s7865_s1 + $0x760] ss:$8 sps:$4 sm:$0xff]  }
 0x1a1   :  { %4257 = vmatprep.subr.bf16.mxu0 %v5714_v9  ;;  %v5800_v9 = vld [vmem:[%s7865_s1 + $0x1060] ss:$8 sps:$4 sm:$0xff]  }
 0x1a3   :  { %3889 = vmatpush1.bf16.msra.mxu1 %v5709_v10  ;;  %v5805_v10 = vld [vmem:[%s7865_s1 + $0x774] ss:$8 sps:$4 sm:$0xff]  }
 0x1a4   :  { %4258 = vmatpush1.bf16.msra.mxu0 %v5712_v11  ;;  %3890 = vmatprep.subr.bf16.mxu1 %v5717_v12  ;;  %v5808_v11 = vld [vmem:[%s7865_s1 + $0x1074] ss:$8 sps:$4 sm:$0xff]   ;;  %v5803_v12 = vld [vmem:[%s7865_s1 + $0x770] ss:$8 sps:$4 sm:$0xff]  }
 0x1a5   :  { %4259 = vmatprep.subr.bf16.mxu0 %v5720_v13  ;;  %v5806_v13 = vld [vmem:[%s7865_s1 + $0x1070] ss:$8 sps:$4 sm:$0xff]  }
 0x1a7   :  { %3891 = vmatpush1.bf16.msra.mxu1 %v5715_v14  ;;  %v5811_v14 = vld [vmem:[%s7865_s1 + $0x784] ss:$8 sps:$4 sm:$0xff]  }
 0x1a8   :  { %4260 = vmatpush1.bf16.msra.mxu0 %v5718_v15  ;;  %3892 = vmatprep.subr.bf16.mxu1 %v5723_v16  ;;  %v5814_v15 = vld [vmem:[%s7865_s1 + $0x1084] ss:$8 sps:$4 sm:$0xff]   ;;  %v5809_v16 = vld [vmem:[%s7865_s1 + $0x780] ss:$8 sps:$4 sm:$0xff]  }
 0x1a9   :  { %4261 = vmatprep.subr.bf16.mxu0 %v5726_v17  ;;  %v5812_v17 = vld [vmem:[%s7865_s1 + $0x1080] ss:$8 sps:$4 sm:$0xff]  }
 0x1ab   :  { %3893 = vmatpush1.bf16.msra.mxu1 %v5721_v19  ;;  %v5817_v19 = vld [vmem:[%s7865_s1 + $0x794] ss:$8 sps:$4 sm:$0xff]  }
 0x1ac   :  { %4262 = vmatpush1.bf16.msra.mxu0 %v5724_v21  ;;  %3894 = vmatprep.subr.bf16.mxu1 %v5729_v22  ;;  %v5820_v21 = vld [vmem:[%s7865_s1 + $0x1094] ss:$8 sps:$4 sm:$0xff]   ;;  %v5815_v22 = vld [vmem:[%s7865_s1 + $0x790] ss:$8 sps:$4 sm:$0xff]  }
 0x1ad   :  { %4263 = vmatprep.subr.bf16.mxu0 %v5732_v23  ;;  %v5818_v23 = vld [vmem:[%s7865_s1 + $0x1090] ss:$8 sps:$4 sm:$0xff]  }
 0x1af   :  { %3895 = vmatpush1.bf16.msra.mxu1 %v5727_v26  ;;  %v5823_v26 = vld [vmem:[%s7865_s1 + $0x7a4] ss:$8 sps:$4 sm:$0xff]  }
 0x1b0   :  { %4264 = vmatpush1.bf16.msra.mxu0 %v5730_v18  ;;  %3896 = vmatprep.subr.bf16.mxu1 %v5735_v27  ;;  %v5826_v18 = vld [vmem:[%s7865_s1 + $0x10a4] ss:$8 sps:$4 sm:$0xff]   ;;  %v5821_v27 = vld [vmem:[%s7865_s1 + $0x7a0] ss:$8 sps:$4 sm:$0xff]  }
 0x1b1   :  { %4265 = vmatprep.subr.bf16.mxu0 %v5738_v28  ;;  %v5824_v28 = vld [vmem:[%s7865_s1 + $0x10a0] ss:$8 sps:$4 sm:$0xff]  }
 0x1b3   :  { %3897 = vmatpush1.bf16.msra.mxu1 %v5733_v30  ;;  %v5829_v30 = vld [vmem:[%s7865_s1 + $0x7b4] ss:$8 sps:$4 sm:$0xff]  }
 0x1b4   :  { %4266 = vmatpush1.bf16.msra.mxu0 %v5736_v31  ;;  %3898 = vmatprep.subr.bf16.mxu1 %v5741_v24  ;;  %v5832_v31 = vld [vmem:[%s7865_s1 + $0x10b4] ss:$8 sps:$4 sm:$0xff]   ;;  %v5827_v24 = vld [vmem:[%s7865_s1 + $0x7b0] ss:$8 sps:$4 sm:$0xff]  }
 0x1b5   :  { %4267 = vmatprep.subr.bf16.mxu0 %v5744_v25  ;;  %v5830_v25 = vld [vmem:[%s7865_s1 + $0x10b0] ss:$8 sps:$4 sm:$0xff]  }
 0x1b7   :  { %3899 = vmatpush1.bf16.msra.mxu1 %v5739_v34  ;;  %v5835_v34 = vld [vmem:[%s7865_s1 + $0x7c4] ss:$8 sps:$4 sm:$0xff]  }
 0x1b8   :  { %4268 = vmatpush1.bf16.msra.mxu0 %v5742_v35  ;;  %3900 = vmatprep.subr.bf16.mxu1 %v5747_v36  ;;  %v5838_v35 = vld [vmem:[%s7865_s1 + $0x10c4] ss:$8 sps:$4 sm:$0xff]   ;;  %v5833_v36 = vld [vmem:[%s7865_s1 + $0x7c0] ss:$8 sps:$4 sm:$0xff]  }
 0x1b9   :  { %4269 = vmatprep.subr.bf16.mxu0 %v5750_v37  ;;  %v5836_v37 = vld [vmem:[%s7865_s1 + $0x10c0] ss:$8 sps:$4 sm:$0xff]  }
 0x1bb   :  { %3901 = vmatpush1.bf16.msra.mxu1 %v5745_v38  ;;  %v5841_v38 = vld [vmem:[%s7865_s1 + $0x7d4] ss:$8 sps:$4 sm:$0xff]  }
 0x1bc   :  { %4270 = vmatpush1.bf16.msra.mxu0 %v5748_v20  ;;  %3902 = vmatprep.subr.bf16.mxu1 %v5753_v29  ;;  %v5844_v20 = vld [vmem:[%s7865_s1 + $0x10d4] ss:$8 sps:$4 sm:$0xff]   ;;  %v5839_v29 = vld [vmem:[%s7865_s1 + $0x7d0] ss:$8 sps:$4 sm:$0xff]  }
 0x1bd   :  { %4271 = vmatprep.subr.bf16.mxu0 %v5756_v39  ;;  %v5842_v39 = vld [vmem:[%s7865_s1 + $0x10d0] ss:$8 sps:$4 sm:$0xff]  }
 0x1bf   :  { %3903 = vmatpush1.bf16.msra.mxu1 %v5751_v42  ;;  %v5847_v42 = vld [vmem:[%s7865_s1 + $0x7e4] ss:$8 sps:$4 sm:$0xff]  }
 0x1c0   :  { %4272 = vmatpush1.bf16.msra.mxu0 %v5754_v32  ;;  %3913 = vmatprep.subr.bf16.mxu1 %v5761_v33  ;;  %v5850_v32 = vld [vmem:[%s7865_s1 + $0x10e4] ss:$8 sps:$4 sm:$0xff]   ;;  %v5845_v33 = vld [vmem:[%s7865_s1 + $0x7e0] ss:$8 sps:$4 sm:$0xff]  }
 0x1c1   :  { %4282 = vmatprep.subr.bf16.mxu0 %v5766_v43  ;;  %v5848_v43 = vld [vmem:[%s7865_s1 + $0x10e0] ss:$8 sps:$4 sm:$0xff]  }
 0x1c2   :  { %3905 = vmatmul.mubr.bf16.vlgmr.msra.gmra.mrb[0].mxu1 %v4391_v44  ;;  %v5853_v44 = vld [vmem:[%s7865_s1 + $0x7f4] ss:$8 sps:$4 sm:$0xff]  }
 0x1c3   :  { %4274 = vmatmul.mubr.bf16.vlgmr.msra.gmra.mrb[0].mxu0 %v4409_v45  ;;  %3914 = vmatpush1.bf16.msra.mxu1 %v5759_v48  ;;  %v5856_v45 = vld [vmem:[%s7865_s1 + $0x10f4] ss:$8 sps:$4 sm:$0xff]   ;;  %v5851_v48 = vld [vmem:[%s7865_s1 + $0x7f0] ss:$8 sps:$4 sm:$0xff]  }
 0x1c4   :  { %4283 = vmatpush1.bf16.msra.mxu0 %v5764_v40  ;;  %3915 = vmatprep.subr.bf16.mxu1 %v5769_v41  ;;  %v5854_v40 = vld [vmem:[%s7865_s1 + $0x10f0] ss:$8 sps:$4 sm:$0xff]   ;;  %v5861_v41 = vld [vmem:[%s7865_s1 + $0x804] ss:$8 sps:$4 sm:$0xff]  }
 0x1c5   :  { %4284 = vmatprep.subr.bf16.mxu0 %v5772_v49  ;;  %3945 = vmatprep.mubr.bf16.mxu1 %v4394_v50  ;;  %v5866_v49 = vld [vmem:[%s7865_s1 + $0x1104] ss:$8 sps:$4 sm:$0xff]   ;;  %v4393_v50 = vcombine.low %v7448_v46, %v7448_v46  ;;  %v5864_v46 = vld [vmem:[%s7865_s1 + $0x1100] ss:$8 sps:$4 sm:$0xff]  }
 0x1c6   :  { %4314 = vmatprep.mubr.bf16.mxu0 %v4412_v51  ;;  %v4411_v51 = vcombine.low %v7453_v47, %v7453_v47  ;;  %v5869_v47 = vld [vmem:[%s7865_s1 + $0x814] ss:$8 sps:$4 sm:$0xff]  }
 0x1c7   :  { %3916 = vmatpush1.bf16.msra.mxu1 %v5767_v52  ;;  %v7658_v52 = vld [vmem:[%s7866_s0 + $0x40] sm:$0xff] }
 0x1c8   :  { %4285 = vmatpush1.bf16.msra.mxu0 %v5770_v53  ;;  %3917 = vmatprep.subr.bf16.mxu1 %v5775_v54  ;;  %v7663_v53 = vld [vmem:[%s7866_s0 + $0x88] sm:$0xff] }
 0x1c9   :  { %4286 = vmatprep.subr.bf16.mxu0 %v5778_v55  ;;  %v5859_v54 = vld [vmem:[%s7865_s1 + $0x800] ss:$8 sps:$4 sm:$0xff]   ;;  %v5872_v55 = vld [vmem:[%s7865_s1 + $0x1114] ss:$8 sps:$4 sm:$0xff]  }
 0x1cb   :  { %3918 = vmatpush1.bf16.msra.mxu1 %v5773_v56  ;;  %v4396_v56 = vcombine.high %v7658_v52, %v7658_v52 }
 0x1cc   :  { %4287 = vmatpush1.bf16.msra.mxu0 %v5776_v57  ;;  %3919 = vmatprep.subr.bf16.mxu1 %v5781_v58  ;;  %v4414_v57 = vcombine.high %v7663_v53, %v7663_v53  ;;  %v5867_v58 = vld [vmem:[%s7865_s1 + $0x810] ss:$8 sps:$4 sm:$0xff]  }
 0x1cd   :  { %4288 = vmatprep.subr.bf16.mxu0 %v5784_v59  ;;  %v5870_v59 = vld [vmem:[%s7865_s1 + $0x1110] ss:$8 sps:$4 sm:$0xff]  }
 0x1cf   :  { %3920 = vmatpush1.bf16.msra.mxu1 %v5779_v60  ;;  %v5875_v60 = vld [vmem:[%s7865_s1 + $0x824] ss:$8 sps:$4 sm:$0xff]  }
 0x1d0   :  { %4289 = vmatpush1.bf16.msra.mxu0 %v5782_v61  ;;  %3921 = vmatprep.subr.bf16.mxu1 %v5787_v62  ;;  %v5878_v61 = vld [vmem:[%s7865_s1 + $0x1124] ss:$8 sps:$4 sm:$0xff]   ;;  %v5873_v62 = vld [vmem:[%s7865_s1 + $0x820] ss:$8 sps:$4 sm:$0xff]  }
 0x1d1   :  { %4290 = vmatprep.subr.bf16.mxu0 %v5790_v63  ;;  %v5876_v63 = vld [vmem:[%s7865_s1 + $0x1120] ss:$8 sps:$4 sm:$0xff]  }
 0x1d3   :  { %3922 = vmatpush1.bf16.msra.mxu1 %v5785_v0  ;;  %v5881_v0 = vld [vmem:[%s7865_s1 + $0x834] ss:$8 sps:$4 sm:$0xff]  }
 0x1d4   :  { %4291 = vmatpush1.bf16.msra.mxu0 %v5788_v1  ;;  %3923 = vmatprep.subr.bf16.mxu1 %v5793_v2  ;;  %v5884_v1 = vld [vmem:[%s7865_s1 + $0x1134] ss:$8 sps:$4 sm:$0xff]   ;;  %v5879_v2 = vld [vmem:[%s7865_s1 + $0x830] ss:$8 sps:$4 sm:$0xff]  }
 0x1d5   :  { %4292 = vmatprep.subr.bf16.mxu0 %v5796_v3  ;;  %v5882_v3 = vld [vmem:[%s7865_s1 + $0x1130] ss:$8 sps:$4 sm:$0xff]  }
 0x1d7   :  { %3924 = vmatpush1.bf16.msra.mxu1 %v5791_v4  ;;  %v5887_v4 = vld [vmem:[%s7865_s1 + $0x844] ss:$8 sps:$4 sm:$0xff]  }
 0x1d8   :  { %4293 = vmatpush1.bf16.msra.mxu0 %v5794_v5  ;;  %3925 = vmatprep.subr.bf16.mxu1 %v5799_v6  ;;  %v5890_v5 = vld [vmem:[%s7865_s1 + $0x1144] ss:$8 sps:$4 sm:$0xff]   ;;  %v5885_v6 = vld [vmem:[%s7865_s1 + $0x840] ss:$8 sps:$4 sm:$0xff]  }
 0x1d9   :  { %4294 = vmatprep.subr.bf16.mxu0 %v5802_v7  ;;  %v5888_v7 = vld [vmem:[%s7865_s1 + $0x1140] ss:$8 sps:$4 sm:$0xff]  }
 0x1db   :  { %3926 = vmatpush1.bf16.msra.mxu1 %v5797_v8  ;;  %v5893_v8 = vld [vmem:[%s7865_s1 + $0x854] ss:$8 sps:$4 sm:$0xff]  }
 0x1dc   :  { %4295 = vmatpush1.bf16.msra.mxu0 %v5800_v9  ;;  %3927 = vmatprep.subr.bf16.mxu1 %v5805_v10  ;;  %v5896_v9 = vld [vmem:[%s7865_s1 + $0x1154] ss:$8 sps:$4 sm:$0xff]   ;;  %v5891_v10 = vld [vmem:[%s7865_s1 + $0x850] ss:$8 sps:$4 sm:$0xff]  }
 0x1dd   :  { %4296 = vmatprep.subr.bf16.mxu0 %v5808_v11  ;;  %v5894_v11 = vld [vmem:[%s7865_s1 + $0x1150] ss:$8 sps:$4 sm:$0xff]  }
 0x1df   :  { %3928 = vmatpush1.bf16.msra.mxu1 %v5803_v12  ;;  %v5899_v12 = vld [vmem:[%s7865_s1 + $0x864] ss:$8 sps:$4 sm:$0xff]  }
 0x1e0   :  { %4297 = vmatpush1.bf16.msra.mxu0 %v5806_v13  ;;  %3929 = vmatprep.subr.bf16.mxu1 %v5811_v14  ;;  %v5902_v13 = vld [vmem:[%s7865_s1 + $0x1164] ss:$8 sps:$4 sm:$0xff]   ;;  %v5897_v14 = vld [vmem:[%s7865_s1 + $0x860] ss:$8 sps:$4 sm:$0xff]  }
 0x1e1   :  { %4298 = vmatprep.subr.bf16.mxu0 %v5814_v15  ;;  %v5900_v15 = vld [vmem:[%s7865_s1 + $0x1160] ss:$8 sps:$4 sm:$0xff]  }
 0x1e3   :  { %3930 = vmatpush1.bf16.msra.mxu1 %v5809_v16  ;;  %v5905_v16 = vld [vmem:[%s7865_s1 + $0x874] ss:$8 sps:$4 sm:$0xff]  }
 0x1e4   :  { %4299 = vmatpush1.bf16.msra.mxu0 %v5812_v17  ;;  %3931 = vmatprep.subr.bf16.mxu1 %v5817_v19  ;;  %v5908_v17 = vld [vmem:[%s7865_s1 + $0x1174] ss:$8 sps:$4 sm:$0xff]   ;;  %v5903_v19 = vld [vmem:[%s7865_s1 + $0x870] ss:$8 sps:$4 sm:$0xff]  }
 0x1e5   :  { %4300 = vmatprep.subr.bf16.mxu0 %v5820_v21  ;;  %v5906_v21 = vld [vmem:[%s7865_s1 + $0x1170] ss:$8 sps:$4 sm:$0xff]  }
 0x1e7   :  { %3932 = vmatpush1.bf16.msra.mxu1 %v5815_v22  ;;  %v5911_v22 = vld [vmem:[%s7865_s1 + $0x884] ss:$8 sps:$4 sm:$0xff]  }
 0x1e8   :  { %4301 = vmatpush1.bf16.msra.mxu0 %v5818_v23  ;;  %3933 = vmatprep.subr.bf16.mxu1 %v5823_v26  ;;  %v5914_v23 = vld [vmem:[%s7865_s1 + $0x1184] ss:$8 sps:$4 sm:$0xff]   ;;  %v5909_v26 = vld [vmem:[%s7865_s1 + $0x880] ss:$8 sps:$4 sm:$0xff]  }
 0x1e9   :  { %4302 = vmatprep.subr.bf16.mxu0 %v5826_v18  ;;  %v5912_v18 = vld [vmem:[%s7865_s1 + $0x1180] ss:$8 sps:$4 sm:$0xff]  }
 0x1eb   :  { %3934 = vmatpush1.bf16.msra.mxu1 %v5821_v27  ;;  %v5917_v27 = vld [vmem:[%s7865_s1 + $0x894] ss:$8 sps:$4 sm:$0xff]  }
 0x1ec   :  { %4303 = vmatpush1.bf16.msra.mxu0 %v5824_v28  ;;  %3935 = vmatprep.subr.bf16.mxu1 %v5829_v30  ;;  %v5920_v28 = vld [vmem:[%s7865_s1 + $0x1194] ss:$8 sps:$4 sm:$0xff]   ;;  %v5915_v30 = vld [vmem:[%s7865_s1 + $0x890] ss:$8 sps:$4 sm:$0xff]  }
 0x1ed   :  { %4304 = vmatprep.subr.bf16.mxu0 %v5832_v31  ;;  %v5918_v31 = vld [vmem:[%s7865_s1 + $0x1190] ss:$8 sps:$4 sm:$0xff]  }
 0x1ef   :  { %3936 = vmatpush1.bf16.msra.mxu1 %v5827_v24  ;;  %v5923_v24 = vld [vmem:[%s7865_s1 + $0x8a4] ss:$8 sps:$4 sm:$0xff]  }
 0x1f0   :  { %4305 = vmatpush1.bf16.msra.mxu0 %v5830_v25  ;;  %3937 = vmatprep.subr.bf16.mxu1 %v5835_v34  ;;  %v5926_v25 = vld [vmem:[%s7865_s1 + $0x11a4] ss:$8 sps:$4 sm:$0xff]   ;;  %v5921_v34 = vld [vmem:[%s7865_s1 + $0x8a0] ss:$8 sps:$4 sm:$0xff]  }
 0x1f1   :  { %4306 = vmatprep.subr.bf16.mxu0 %v5838_v35  ;;  %v5924_v35 = vld [vmem:[%s7865_s1 + $0x11a0] ss:$8 sps:$4 sm:$0xff]  }
 0x1f3   :  { %3938 = vmatpush1.bf16.msra.mxu1 %v5833_v36  ;;  %v5929_v36 = vld [vmem:[%s7865_s1 + $0x8b4] ss:$8 sps:$4 sm:$0xff]  }
 0x1f4   :  { %4307 = vmatpush1.bf16.msra.mxu0 %v5836_v37  ;;  %3939 = vmatprep.subr.bf16.mxu1 %v5841_v38  ;;  %v5932_v37 = vld [vmem:[%s7865_s1 + $0x11b4] ss:$8 sps:$4 sm:$0xff]   ;;  %v5927_v38 = vld [vmem:[%s7865_s1 + $0x8b0] ss:$8 sps:$4 sm:$0xff]  }
 0x1f5   :  { %4308 = vmatprep.subr.bf16.mxu0 %v5844_v20  ;;  %v5930_v20 = vld [vmem:[%s7865_s1 + $0x11b0] ss:$8 sps:$4 sm:$0xff]  }
 0x1f7   :  { %3940 = vmatpush1.bf16.msra.mxu1 %v5839_v29  ;;  %v5935_v29 = vld [vmem:[%s7865_s1 + $0x8c4] ss:$8 sps:$4 sm:$0xff]  }
 0x1f8   :  { %4309 = vmatpush1.bf16.msra.mxu0 %v5842_v39  ;;  %3941 = vmatprep.subr.bf16.mxu1 %v5847_v42  ;;  %v5938_v39 = vld [vmem:[%s7865_s1 + $0x11c4] ss:$8 sps:$4 sm:$0xff]   ;;  %v5933_v42 = vld [vmem:[%s7865_s1 + $0x8c0] ss:$8 sps:$4 sm:$0xff]  }
 0x1f9   :  { %4310 = vmatprep.subr.bf16.mxu0 %v5850_v32  ;;  %v5936_v32 = vld [vmem:[%s7865_s1 + $0x11c0] ss:$8 sps:$4 sm:$0xff]  }
 0x1fb   :  { %3942 = vmatpush1.bf16.msra.mxu1 %v5845_v33  ;;  %v5941_v33 = vld [vmem:[%s7865_s1 + $0x8d4] ss:$8 sps:$4 sm:$0xff]  }
 0x1fc   :  { %4311 = vmatpush1.bf16.msra.mxu0 %v5848_v43  ;;  %3943 = vmatprep.subr.bf16.mxu1 %v5853_v44  ;;  %v5944_v43 = vld [vmem:[%s7865_s1 + $0x11d4] ss:$8 sps:$4 sm:$0xff]   ;;  %v5939_v44 = vld [vmem:[%s7865_s1 + $0x8d0] ss:$8 sps:$4 sm:$0xff]  }
 0x1fd   :  { %4312 = vmatprep.subr.bf16.mxu0 %v5856_v45  ;;  %v5942_v45 = vld [vmem:[%s7865_s1 + $0x11d0] ss:$8 sps:$4 sm:$0xff]  }
 0x1ff   :  { %3944 = vmatpush1.bf16.msra.mxu1 %v5851_v48  ;;  %v5947_v48 = vld [vmem:[%s7865_s1 + $0x8e4] ss:$8 sps:$4 sm:$0xff]  }
 0x200   :  { %4313 = vmatpush1.bf16.msra.mxu0 %v5854_v40  ;;  %3954 = vmatprep.subr.bf16.mxu1 %v5861_v41  ;;  %v5950_v40 = vld [vmem:[%s7865_s1 + $0x11e4] ss:$8 sps:$4 sm:$0xff]   ;;  %v5945_v41 = vld [vmem:[%s7865_s1 + $0x8e0] ss:$8 sps:$4 sm:$0xff]  }
 0x201   :  { %4323 = vmatprep.subr.bf16.mxu0 %v5866_v49  ;;  %v5948_v49 = vld [vmem:[%s7865_s1 + $0x11e0] ss:$8 sps:$4 sm:$0xff]  }
 0x202   :  { %3946 = vmatmul.mubr.bf16.vlgmr.msra.gmra.mrb[0].mxu1 %v4393_v50  ;;  %v5953_v50 = vld [vmem:[%s7865_s1 + $0x8f4] ss:$8 sps:$4 sm:$0xff]  }
 0x203   :  { %4315 = vmatmul.mubr.bf16.vlgmr.msra.gmra.mrb[0].mxu0 %v4411_v51  ;;  %3955 = vmatpush1.bf16.msra.mxu1 %v5859_v54  ;;  %v5956_v51 = vld [vmem:[%s7865_s1 + $0x11f4] ss:$8 sps:$4 sm:$0xff]   ;;  %v5951_v54 = vld [vmem:[%s7865_s1 + $0x8f0] ss:$8 sps:$4 sm:$0xff]  }
 0x204   :  { %4324 = vmatpush1.bf16.msra.mxu0 %v5864_v46  ;;  %3956 = vmatprep.subr.bf16.mxu1 %v5869_v47  ;;  %v5954_v46 = vld [vmem:[%s7865_s1 + $0x11f0] ss:$8 sps:$4 sm:$0xff]   ;;  %v4395_v47 = vcombine.low %v7658_v52, %v7658_v52 }
 0x205   :  { %4325 = vmatprep.subr.bf16.mxu0 %v5872_v55  ;;  %3986 = vmatprep.mubr.bf16.mxu1 %v4396_v56  ;;  %v4413_v55 = vcombine.low %v7663_v53, %v7663_v53  ;;  %v610_v56 = vlaneseq }
 0x206   :  { %4355 = vmatprep.mubr.bf16.mxu0 %v4414_v57 }
 0x207   :  { %3957 = vmatpush1.bf16.msra.mxu1 %v5867_v58  ;;  %v611_v57 = vshrl.u32 %v610_v56, 7 }
 0x208   :  { %4326 = vmatpush1.bf16.msra.mxu0 %v5870_v59  ;;  %3958 = vmatprep.subr.bf16.mxu1 %v5875_v60  ;;  %v608_v59 = vld [vmem:[%s7867_s2] sm:$0x3] }
 0x209   :  { %4327 = vmatprep.subr.bf16.mxu0 %v5878_v61  ;;  %v612_v58 = vsub.s32 0, %v611_v57  ;;  %v616_v60 = vsub.s32 1, %v611_v57 }
 0x20b   :  { %3959 = vmatpush1.bf16.msra.mxu1 %v5873_v62  ;;  %v613_v61 = vrot.slane %v608_v59, %v612_v58  ;;  %v617_v62 = vrot.slane %v608_v59, %v616_v60 }
 0x20c   :  { %4328 = vmatpush1.bf16.msra.mxu0 %v5876_v63  ;;  %3960 = vmatprep.subr.bf16.mxu1 %v5881_v0 }
 0x20d   :  { %4329 = vmatprep.subr.bf16.mxu0 %v5884_v1 }
 0x20f   :  { %3961 = vmatpush1.bf16.msra.mxu1 %v5879_v2 }
 0x210   :  { %4330 = vmatpush1.bf16.msra.mxu0 %v5882_v3  ;;  %3962 = vmatprep.subr.bf16.mxu1 %v5887_v4 }
 0x211   :  { %4331 = vmatprep.subr.bf16.mxu0 %v5890_v5 }
 0x213   :  { %3963 = vmatpush1.bf16.msra.mxu1 %v5885_v6 }
 0x214   :  { %4332 = vmatpush1.bf16.msra.mxu0 %v5888_v7  ;;  %3964 = vmatprep.subr.bf16.mxu1 %v5893_v8 }
 0x215   :  { %4333 = vmatprep.subr.bf16.mxu0 %v5896_v9 }
 0x217   :  { %3965 = vmatpush1.bf16.msra.mxu1 %v5891_v10 }
 0x218   :  { %4334 = vmatpush1.bf16.msra.mxu0 %v5894_v11  ;;  %3966 = vmatprep.subr.bf16.mxu1 %v5899_v12 }
 0x219   :  { %4335 = vmatprep.subr.bf16.mxu0 %v5902_v13 }
 0x21b   :  { %3967 = vmatpush1.bf16.msra.mxu1 %v5897_v14 }
 0x21c   :  { %4336 = vmatpush1.bf16.msra.mxu0 %v5900_v15  ;;  %3968 = vmatprep.subr.bf16.mxu1 %v5905_v16 }
 0x21d   :  { %4337 = vmatprep.subr.bf16.mxu0 %v5908_v17 }
 0x21f   :  { %3969 = vmatpush1.bf16.msra.mxu1 %v5903_v19 }
 0x220   :  { %4338 = vmatpush1.bf16.msra.mxu0 %v5906_v21  ;;  %3970 = vmatprep.subr.bf16.mxu1 %v5911_v22 }
 0x221   :  { %4339 = vmatprep.subr.bf16.mxu0 %v5914_v23 }
 0x223   :  { %3971 = vmatpush1.bf16.msra.mxu1 %v5909_v26 }
 0x224   :  { %4340 = vmatpush1.bf16.msra.mxu0 %v5912_v18  ;;  %3972 = vmatprep.subr.bf16.mxu1 %v5917_v27 }
 0x225   :  { %4341 = vmatprep.subr.bf16.mxu0 %v5920_v28 }
 0x227   :  { %3973 = vmatpush1.bf16.msra.mxu1 %v5915_v30 }
 0x228   :  { %4342 = vmatpush1.bf16.msra.mxu0 %v5918_v31  ;;  %3974 = vmatprep.subr.bf16.mxu1 %v5923_v24 }
 0x229   :  { %4343 = vmatprep.subr.bf16.mxu0 %v5926_v25 }
 0x22b   :  { %3975 = vmatpush1.bf16.msra.mxu1 %v5921_v34 }
 0x22c   :  { %4344 = vmatpush1.bf16.msra.mxu0 %v5924_v35  ;;  %3976 = vmatprep.subr.bf16.mxu1 %v5929_v36 }
 0x22d   :  { %4345 = vmatprep.subr.bf16.mxu0 %v5932_v37 }
 0x22f   :  { %3977 = vmatpush1.bf16.msra.mxu1 %v5927_v38 }
 0x230   :  { %4346 = vmatpush1.bf16.msra.mxu0 %v5930_v20  ;;  %3978 = vmatprep.subr.bf16.mxu1 %v5935_v29 }
 0x231   :  { %4347 = vmatprep.subr.bf16.mxu0 %v5938_v39 }
 0x233   :  { %3979 = vmatpush1.bf16.msra.mxu1 %v5933_v42 }
 0x234   :  { %4348 = vmatpush1.bf16.msra.mxu0 %v5936_v32  ;;  %3980 = vmatprep.subr.bf16.mxu1 %v5941_v33 }
 0x235   :  { %4349 = vmatprep.subr.bf16.mxu0 %v5944_v43 }
 0x237   :  { %3981 = vmatpush1.bf16.msra.mxu1 %v5939_v44 }
 0x238   :  { %4350 = vmatpush1.bf16.msra.mxu0 %v5942_v45  ;;  %3982 = vmatprep.subr.bf16.mxu1 %v5947_v48 }
 0x239   :  { %4351 = vmatprep.subr.bf16.mxu0 %v5950_v40 }
 0x23b   :  { %3983 = vmatpush1.bf16.msra.mxu1 %v5945_v41 }
 0x23c   :  { %4352 = vmatpush1.bf16.msra.mxu0 %v5948_v49  ;;  %3984 = vmatprep.subr.bf16.mxu1 %v5953_v50 }
 0x23d   :  { %4353 = vmatprep.subr.bf16.mxu0 %v5956_v51 }
 0x23f   :  { %3985 = vmatpush1.bf16.msra.mxu1 %v5951_v54 }
 0x240   :  { %4354 = vmatpush1.bf16.msra.mxu0 %v5954_v46 }
 0x242   :  { %3987 = vmatmul.mubr.bf16.vlgmr.msra.gmra.mrb[0].mxu1 %v4395_v47 }
 0x243   :  { %4356 = vmatmul.mubr.bf16.vlgmr.msra.gmra.mrb[0].mxu0 %v4413_v55 }
 0x315   :  { %v3988_v63 = vpop.f32.mrb[0].mxu1 }
 0x316   :  { %v4357_v0 = vpop.f32.mrb[0].mxu0  ;;  %v4993_v52 = vadd.f32 %v3988_v63, %v613_v61  ;;  %v3990_v1 = vpop.f32.mrb[1].mxu1 }
 0x317   :  { %v4359_v2 = vpop.f32.mrb[1].mxu0  ;;  %v4995_v53 = vadd.f32 %v3990_v1, %v617_v62  ;;  %v3992_v3 = vpop.f32.mrb[2].mxu1 }
 0x318   :  { %v4361_v4 = vpop.f32.mrb[2].mxu0  ;;  %v4994_v5 = vadd.f32 %v4993_v52, %v4357_v0  ;;  %v3993_v6 = vpop.f32.mrb[3].mxu1 }
 0x319   :  { %v4362_v7 = vpop.f32.mrb[3].mxu0  ;;  %v4996_v8 = vadd.f32 %v4995_v53, %v4359_v2 }
 0x31a   :  { %v4364_v9 = vmax.f32 %v4994_v5, 0.0 }
 0x31b   :  { %v4365_v10 = vmax.f32 %v4996_v8, 0.0 }
 0x31d   :  { %v4992_v11 = vpack.c.bf16 %v4365_v10, %v4364_v9 }
 0x31f   :  { %4374 = vst [vmem:[%s7868_s3] sm:$0xff] %v4992_v11 }

</bundles_post_ra>
